<compile_context>
chip_gen: v7x
topology: tpu7x:2x2x1
jax: 0.10.0
libtpu: 0.0.40
codegen_flags: <defaults>
</compile_context>

<pallas_src>
import jax
import jax.numpy as jnp
from jax.experimental import pallas as pl
from jax.experimental.pallas import tpu as pltpu

MXU_DTYPE = jnp.bfloat16  # matmul operand dtype; accumulation stays float32


def _spatial_tile(s, max_tile=512):
    """Largest tile <= max_tile that is a multiple of 128 and divides s (else s)."""
    if s <= max_tile:
        return s
    for t in range(max_tile, 127, -128):
        if s % t == 0:
            return t
    return s


# ----------------------------- K1: 1x1 conv --------------------------------

def _conv1x1_kernel(x_ref, w_ref, o_ref):
    # x_ref: (1, Cin, TS), w_ref: (Cout, Cin), o_ref: (1, Cout, TS)
    o_ref[0] = jnp.dot(w_ref[...].astype(MXU_DTYPE),
                       x_ref[0].astype(MXU_DTYPE),
                       preferred_element_type=jnp.float32)


def conv1x1(x_ncs, w_oc, *, max_tile=512):
    """x: (N, Cin, S) channels-first, spatial flattened on lanes; w: (Cout, Cin)."""
    N, Cin, S = x_ncs.shape
    Cout = w_oc.shape[0]
    ts = _spatial_tile(S, max_tile)
    return pl.pallas_call(
        _conv1x1_kernel,
        out_shape=jax.ShapeDtypeStruct((N, Cout, S), jnp.float32),
        grid=(N, S // ts),
        in_specs=[pl.BlockSpec((1, Cin, ts), lambda n, s: (n, 0, s)),
                  pl.BlockSpec((Cout, Cin), lambda n, s: (0, 0))],
        out_specs=pl.BlockSpec((1, Cout, ts), lambda n, s: (n, 0, s)),
        compiler_params=pltpu.CompilerParams(
            dimension_semantics=("parallel", "parallel")),
    )(x_ncs, w_oc)


# ------------------- K2: bilinear upsample (align_corners=False) -----------

def _resize_kernel(x_ref, ry_ref, rxT_ref, o_ref):
    # x_ref: (1, C, h_in, w_in); ry: (H, h_in); rxT: (w_in, W); o: (1, C, H, W)
    C = x_ref.shape[1]
    x = x_ref[0].astype(MXU_DTYPE)                                   # (C, h_in, w_in)
    rx_b = jnp.broadcast_to(rxT_ref[...].astype(MXU_DTYPE)[None],
                            (C,) + rxT_ref.shape)                    # (C, w_in, W)
    ry_b = jnp.broadcast_to(ry_ref[...].astype(MXU_DTYPE)[None],
                            (C,) + ry_ref.shape)                     # (C, H, h_in)
    # width resize then height resize; batched matmuls keep the output width on lanes.
    t1 = jnp.einsum('chw,cwk->chk', x, rx_b,
                    preferred_element_type=jnp.float32)              # (C, h_in, W)
    out = jnp.einsum('cyh,chk->cyk', ry_b, t1.astype(MXU_DTYPE),
                     preferred_element_type=jnp.float32)             # (C, H, W)
    o_ref[0] = out


def bilinear_resize(x_nchw, ry, rx_t):
    N, C, h_in, w_in = x_nchw.shape
    H, W = ry.shape[0], rx_t.shape[1]
    return pl.pallas_call(
        _resize_kernel,
        out_shape=jax.ShapeDtypeStruct((N, C, H, W), jnp.float32),
        grid=(N,),
        in_specs=[pl.BlockSpec((1, C, h_in, w_in), lambda n: (n, 0, 0, 0)),
                  pl.BlockSpec((H, h_in), lambda n: (0, 0)),
                  pl.BlockSpec((w_in, W), lambda n: (0, 0))],
        out_specs=pl.BlockSpec((1, C, H, W), lambda n: (n, 0, 0, 0)),
        compiler_params=pltpu.CompilerParams(dimension_semantics=("parallel",)),
    )(x_nchw, ry, rx_t)


# ------------------------ K3: 3x3 conv (flow_make) -------------------------

def _make_flow_conv_kernel(Cp, H, W):
    Wp = W + 2  # width-padded row length; output keeps 2 junk columns per row

    def kernel(hi_ref, lo_ref, w_ref, o_ref, xp_ref):
        # hi/lo: (1, Cp, H, W); w: (9, 2, 2*Cp); o: (1, 2, H*Wp)
        # xp_ref: VMEM scratch (2*Cp, (H+2)*Wp + 2) = zero-padded, row-flattened input
        xp_ref[...] = jnp.zeros_like(xp_ref)
        for y in range(H):                      # build padded concat in VMEM (no HBM
            off = (y + 1) * Wp + 1              # concat / pad / im2col materialization)
            xp_ref[0:Cp, off:off + W] = hi_ref[0, :, y, :]
            xp_ref[Cp:2 * Cp, off:off + W] = lo_ref[0, :, y, :]
        acc = jnp.zeros((2, H * Wp), jnp.float32)
        for k in range(9):                      # 9 shifted matmuls, f32 accumulation
            ky, kx = k // 3, k % 3
            off = ky * Wp + kx
            patch = xp_ref[:, off:off + H * Wp].astype(MXU_DTYPE)    # (2*Cp, H*Wp)
            acc = acc + jnp.dot(w_ref[k].astype(MXU_DTYPE), patch,
                                preferred_element_type=jnp.float32)
        o_ref[0] = acc

    return kernel


def flow_conv3x3(high_up, low_d, w9):
    """high_up, low_d: (N, Cp, H, W); w9: (9, 2, 2*Cp).
    Returns flow in a width-padded, row-flattened layout (N, 2, H*(W+2));
    columns W and W+1 of every row are junk and are dropped by the caller."""
    N, Cp, H, W = high_up.shape
    Wp = W + 2
    # NOTE: at very large H*W this kernel would additionally tile rows (with a
    # 1-row halo); for SFNet-scale decoder maps one image per step fits VMEM.
    return pl.pallas_call(
        _make_flow_conv_kernel(Cp, H, W),
        out_shape=jax.ShapeDtypeStruct((N, 2, H * Wp), jnp.float32),
        grid=(N,),
        in_specs=[pl.BlockSpec((1, Cp, H, W), lambda n: (n, 0, 0, 0)),
                  pl.BlockSpec((1, Cp, H, W), lambda n: (n, 0, 0, 0)),
                  pl.BlockSpec((9, 2, 2 * Cp), lambda n: (0, 0, 0))],
        out_specs=pl.BlockSpec((1, 2, H * Wp), lambda n: (n, 0, 0)),
        scratch_shapes=[pltpu.VMEM((2 * Cp, (H + 2) * Wp + 2), jnp.float32)],
        compiler_params=pltpu.CompilerParams(dimension_semantics=("parallel",)),
    )(high_up, low_d, w9)


# -------------------- K4: flow warp (grid_sample, zeros) -------------------

def _make_warp_kernel(H, W, h_in, w_in, TP):
    wd = float(max(W - 1, 1))   # guard degenerate 1-pixel dims (linspace semantics)
    hd = float(max(H - 1, 1))

    def kernel(src_ref, flow_ref, o_ref):
        # src_ref : (1, C, w_in, h_in)  with src[c, x, y] = h_feature[c, y, x]
        # flow_ref: (1, 2, TP)          channel 0 = x-flow, channel 1 = y-flow
        # o_ref   : (1, C, TP)
        C = src_ref.shape[1]
        flow = flow_ref[0]
        fx = flow[0:1, :]                                            # (1, TP)
        fy = flow[1:2, :]

        base = pl.program_id(1) * TP
        p = (base + jax.lax.broadcasted_iota(jnp.int32, (1, TP), 1)).astype(jnp.float32)
        row = jnp.floor(p / W)
        col = p - row * W

        # base grid (linspace(-1,1)) + flow / (W, H), then align_corners=True unnorm.
        gx = -1.0 + 2.0 * col / wd + fx / W
        gy = -1.0 + 2.0 * row / hd + fy / H
        ix = (gx + 1.0) * 0.5 * (w_in - 1)
        iy = (gy + 1.0) * 0.5 * (h_in - 1)
        ix0 = jnp.floor(ix)
        iy0 = jnp.floor(iy)
        tx = ix - ix0
        ty = iy - iy0

        # Separable one-hot bilinear weights (f32 VPU math).  Out-of-range corner
        # indices match no row/column, which reproduces padding_mode='zeros'.
        y_iota = jax.lax.broadcasted_iota(jnp.int32, (h_in, TP), 0).astype(jnp.float32)
        x_iota = jax.lax.broadcasted_iota(jnp.int32, (w_in, TP), 0).astype(jnp.float32)
        wy = (jnp.where(y_iota == iy0, 1.0 - ty, 0.0)
              + jnp.where(y_iota == iy0 + 1.0, ty, 0.0))             # (h_in, TP)
        wx = (jnp.where(x_iota == ix0, 1.0 - tx, 0.0)
              + jnp.where(x_iota == ix0 + 1.0, tx, 0.0))             # (w_in, TP)

        src = src_ref[0].astype(MXU_DTYPE)                           # (C, w_in, h_in)
        wy_b = jnp.broadcast_to(wy.astype(MXU_DTYPE)[None], (C, h_in, TP))
        # y-blend on the MXU (batched over channels), x-blend on the VPU.
        r = jnp.einsum('cwh,chp->cwp', src, wy_b,
                       preferred_element_type=jnp.float32)           # (C, w_in, TP)
        o_ref[0] = jnp.sum(r * wx[None, :, :], axis=1)               # (C, TP)

    return kernel


def flow_warp(src_cxy, flow_2p, H, W, h_in, w_in, *, max_tile=512):
    """src_cxy: (N, C, w_in, h_in); flow_2p: (N, 2, P=H*W)  ->  (N, C, P)."""
    N, C = src_cxy.shape[:2]
    P = flow_2p.shape[-1]
    tp = _spatial_tile(P, max_tile)
    return pl.pallas_call(
        _make_warp_kernel(H, W, h_in, w_in, tp),
        out_shape=jax.ShapeDtypeStruct((N, C, P), jnp.float32),
        grid=(N, P // tp),
        in_specs=[pl.BlockSpec((1, C, w_in, h_in), lambda n, t: (n, 0, 0, 0)),
                  pl.BlockSpec((1, 2, tp), lambda n, t: (n, 0, t))],
        out_specs=pl.BlockSpec((1, C, tp), lambda n, t: (n, 0, t)),
        compiler_params=pltpu.CompilerParams(
            dimension_semantics=("parallel", "parallel")),
    )(src_cxy, flow_2p)


# ------------------------------ glue / wrapper ------------------------------

def _resize_matrix(out_size, in_size):
    """Row-stochastic matrix implementing F.interpolate bilinear, align_corners=False."""
    o = jnp.arange(out_size, dtype=jnp.float32)
    scale = in_size / out_size
    src = jnp.maximum(scale * (o + 0.5) - 0.5, 0.0)
    i0f = jnp.minimum(jnp.floor(src), in_size - 1)
    t = src - i0f
    i0 = i0f.astype(jnp.int32)
    i1 = jnp.minimum(i0 + 1, in_size - 1)
    return (jax.nn.one_hot(i0, in_size, dtype=jnp.float32) * (1.0 - t)[:, None]
            + jax.nn.one_hot(i1, in_size, dtype=jnp.float32) * t[:, None])


def align_module_forward(low_nchw, high_nchw, params):
    """AlignModule forward.  Inputs/outputs NCHW.

    params:
      w_down_l, w_down_h : (outplane, inplane)    1x1 conv weights, (O, I)
      w_flow             : (2, 2*outplane, 3, 3)  3x3 conv weight, OIHW
    """
    N, Cin, H, W = low_nchw.shape
    _, _, h_in, w_in = high_nchw.shape
    Cout = params["w_down_l"].shape[0]

    # 1x1 convs, channels-first with spatial on lanes (lane-dense outputs).
    low_d = conv1x1(low_nchw.reshape(N, Cin, H * W),
                    params["w_down_l"]).reshape(N, Cout, H, W)
    high_d = conv1x1(high_nchw.reshape(N, Cin, h_in * w_in),
                     params["w_down_h"]).reshape(N, Cout, h_in, w_in)

    # Bilinear upsample of high_d to (H, W), align_corners=False.
    ry = _resize_matrix(H, h_in)
    rx_t = _resize_matrix(W, w_in).T
    high_up = bilinear_resize(high_d, ry, rx_t)                  # (N, Cout, H, W)

    # flow_make: 3x3 conv over concat([high_up, low_d]) without any im2col.
    w9 = jnp.transpose(params["w_flow"], (2, 3, 0, 1)).reshape(9, 2, 2 * Cout)
    flow_wp = flow_conv3x3(high_up, low_d, w9)                   # (N, 2, H*(W+2))
    flow = flow_wp.reshape(N, 2, H, W + 2)[:, :, :, :W]          # drop junk pad cols
    flow_2p = flow.reshape(N, 2, H * W)                          # lane-dense flow

    # flow_warp of the ORIGINAL high-level feature (grid_sample, align_corners=True).
    src_cxy = jnp.transpose(high_nchw, (0, 1, 3, 2))             # (N, Cin, w_in, h_in)
    out = flow_warp(src_cxy, flow_2p, H, W, h_in, w_in)          # (N, Cin, H*W)
    return out.reshape(N, Cin, H, W)


# ---------------------------------- main ----------------------------------

if __name__ == "__main__":
    N, inplane, outplane = 2, 4, 8
    H = W = 32          # low-level (high-resolution) feature spatial size
    h_in = w_in = 16    # high-level (low-resolution) feature spatial size

    key = jax.random.PRNGKey(0)
    kl, kh, k1, k2, k3 = jax.random.split(key, 5)

    low_feature = jax.random.normal(kl, (N, inplane, H, W), jnp.float32)
    h_feature = jax.random.normal(kh, (N, inplane, h_in, w_in), jnp.float32)

    # deterministic, kaiming-like scaled weights (synthetic — no checkpoint load)
    params = {
        "w_down_h": jax.random.normal(k1, (outplane, inplane), jnp.float32)
                    * (2.0 / inplane) ** 0.5,
        "w_down_l": jax.random.normal(k2, (outplane, inplane), jnp.float32)
                    * (2.0 / inplane) ** 0.5,
        "w_flow":   jax.random.normal(k3, (2, 2 * outplane, 3, 3), jnp.float32)
                    * (2.0 / (9 * 2 * outplane)) ** 0.5,
    }

    fwd = jax.jit(align_module_forward)
    out = jax.block_until_ready(fwd(low_feature, h_feature, params))

    assert out.shape == (N, inplane, H, W), out.shape
    assert bool(jnp.all(jnp.isfinite(out)))
    print("KERNEL_OK")
</pallas_src>

<mosaic_0001>
module attributes {stable_mosaic.version = 11 : i64} {
  func.func @_conv1x1_kernel(%arg0: i32, %arg1: i32, %arg2: memref<1x4x256xf32, #tpu.memory_space<vmem>>, %arg3: memref<8x4xf32, #tpu.memory_space<vmem>>, %arg4: memref<1x8x256xf32, #tpu.memory_space<vmem>>) attributes {dimension_semantics = [#tpu.dimension_semantics<parallel>, #tpu.dimension_semantics<parallel>], iteration_bounds = array<i64: 2, 1>, scalar_prefetch = 0 : i64, scratch_operands = 0 : i64, tpu.core_type = #tpu.core_type<tc>, window_params = [{transform_indices = @transform_0, window_bounds = array<i64: 1, 4, 256>}, {pipeline_mode = #tpu.pipeline_mode<synchronous>, transform_indices = @transform_1, window_bounds = array<i64: 8, 4>}, {transform_indices = @transform_2, window_bounds = array<i64: 1, 8, 256>}]} {
    %c0 = arith.constant 0 : index
    %c0_0 = arith.constant 0 : index
    %0 = vector.load %arg3[%c0, %c0_0] : memref<8x4xf32, #tpu.memory_space<vmem>>, vector<8x4xf32>
    %1 = arith.truncf %0 : vector<8x4xf32> to vector<8x4xbf16>
    %c0_1 = arith.constant 0 : index
    %c0_2 = arith.constant 0 : index
    %c0_3 = arith.constant 0 : index
    %2 = vector.load %arg2[%c0_1, %c0_2, %c0_3] : memref<1x4x256xf32, #tpu.memory_space<vmem>>, vector<1x4x256xf32>
    %3 = vector.shape_cast %2 : vector<1x4x256xf32> to vector<4x256xf32>
    %4 = arith.truncf %3 : vector<4x256xf32> to vector<4x256xbf16>
    %cst = arith.constant dense<0.000000e+00> : vector<8x256xf32>
    %5 = tpu.matmul %1, %4, %cst {dimension_numbers = #tpu.dot_dimension_numbers<[1], [0], [0], [1], [0, 0, 1, 1], [], []>} : vector<8x4xbf16>, vector<4x256xbf16>, vector<8x256xf32> -> vector<8x256xf32>
    %c0_4 = arith.constant 0 : index
    %c0_5 = arith.constant 0 : index
    %c0_6 = arith.constant 0 : index
    %6 = vector.load %arg4[%c0_4, %c0_5, %c0_6] : memref<1x8x256xf32, #tpu.memory_space<vmem>>, vector<1x8x256xf32>
    %7 = vector.shape_cast %6 : vector<1x8x256xf32> to vector<8x256xf32>
    %8 = vector.shape_cast %5 : vector<8x256xf32> to vector<1x8x256xf32>
    tpu.vector_store %arg4[%c0_4, %c0_5, %c0_6], %8 {strides = array<i32>} : memref<1x8x256xf32, #tpu.memory_space<vmem>>, vector<1x8x256xf32>,
    return
  }
  func.func @transform_0(%arg0: i32, %arg1: i32) -> (i32, i32, i32) {
    %c0_i32 = arith.constant 0 : i32
    %c0_i32_0 = arith.constant 0 : i32
    return %arg0, %c0_i32, %arg1 : i32, i32, i32
  }
  func.func @transform_1(%arg0: i32, %arg1: i32) -> (i32, i32) {
    %c0_i32 = arith.constant 0 : i32
    %c0_i32_0 = arith.constant 0 : i32
    %c0_i32_1 = arith.constant 0 : i32
    return %c0_i32, %c0_i32_0 : i32, i32
  }
  func.func @transform_2(%arg0: i32, %arg1: i32) -> (i32, i32, i32) {
    %c0_i32 = arith.constant 0 : i32
    %c0_i32_0 = arith.constant 0 : i32
    return %arg0, %c0_i32, %arg1 : i32, i32, i32
  }
}

module attributes {stable_mosaic.version = 11 : i64} {
  func.func @_resize_kernel(%arg0: i32, %arg1: memref<1x8x16x16xf32, #tpu.memory_space<vmem>>, %arg2: memref<32x16xf32, #tpu.memory_space<vmem>>, %arg3: memref<16x32xf32, #tpu.memory_space<vmem>>, %arg4: memref<1x8x32x32xf32, #tpu.memory_space<vmem>>) attributes {dimension_semantics = [#tpu.dimension_semantics<parallel>], iteration_bounds = array<i64: 2>, scalar_prefetch = 0 : i64, scratch_operands = 0 : i64, tpu.core_type = #tpu.core_type<tc>, window_params = [{transform_indices = @transform_0, window_bounds = array<i64: 1, 8, 16, 16>}, {pipeline_mode = #tpu.pipeline_mode<synchronous>, transform_indices = @transform_1, window_bounds = array<i64: 32, 16>}, {pipeline_mode = #tpu.pipeline_mode<synchronous>, transform_indices = @transform_2, window_bounds = array<i64: 16, 32>}, {transform_indices = @transform_3, window_bounds = array<i64: 1, 8, 32, 32>}]} {
    %c0 = arith.constant 0 : index
    %c0_0 = arith.constant 0 : index
    %c0_1 = arith.constant 0 : index
    %c0_2 = arith.constant 0 : index
    %0 = vector.load %arg1[%c0, %c0_0, %c0_1, %c0_2] : memref<1x8x16x16xf32, #tpu.memory_space<vmem>>, vector<1x8x16x16xf32>
    %1 = vector.shape_cast %0 : vector<1x8x16x16xf32> to vector<8x16x16xf32>
    %2 = arith.truncf %1 : vector<8x16x16xf32> to vector<8x16x16xbf16>
    %c0_3 = arith.constant 0 : index
    %c0_4 = arith.constant 0 : index
    %3 = vector.load %arg3[%c0_3, %c0_4] : memref<16x32xf32, #tpu.memory_space<vmem>>, vector<16x32xf32>
    %4 = arith.truncf %3 : vector<16x32xf32> to vector<16x32xbf16>
    %5 = vector.shape_cast %4 : vector<16x32xbf16> to vector<1x16x32xbf16>
    %6 = vector.shape_cast %5 : vector<1x16x32xbf16> to vector<1x16x32xbf16>
    %7 = vector.broadcast %6 : vector<1x16x32xbf16> to vector<8x16x32xbf16>
    %c0_5 = arith.constant 0 : index
    %c0_6 = arith.constant 0 : index
    %8 = vector.load %arg2[%c0_5, %c0_6] : memref<32x16xf32, #tpu.memory_space<vmem>>, vector<32x16xf32>
    %9 = arith.truncf %8 : vector<32x16xf32> to vector<32x16xbf16>
    %10 = vector.shape_cast %9 : vector<32x16xbf16> to vector<1x32x16xbf16>
    %11 = vector.shape_cast %10 : vector<1x32x16xbf16> to vector<1x32x16xbf16>
    %12 = vector.broadcast %11 : vector<1x32x16xbf16> to vector<8x32x16xbf16>
    "tpu.trace_start"() <{level = 10 : i32, message = "chw,cwk->chk"}> : () -> ()
    %cst = arith.constant dense<0.000000e+00> : vector<8x16x32xf32>
    %13 = tpu.matmul %2, %7, %cst {dimension_numbers = #tpu.dot_dimension_numbers<[2], [1], [1], [2], [0, 0, 0, 1, 1, 2], [0], [0]>} : vector<8x16x16xbf16>, vector<8x16x32xbf16>, vector<8x16x32xf32> -> vector<8x16x32xf32>
    "tpu.trace_stop"() : () -> ()
    %14 = arith.truncf %13 : vector<8x16x32xf32> to vector<8x16x32xbf16>
    "tpu.trace_start"() <{level = 10 : i32, message = "cyh,chk->cyk"}> : () -> ()
    %cst_7 = arith.constant dense<0.000000e+00> : vector<8x32x32xf32>
    %15 = tpu.matmul %12, %14, %cst_7 {dimension_numbers = #tpu.dot_dimension_numbers<[2], [1], [1], [2], [0, 0, 0, 1, 1, 2], [0], [0]>} : vector<8x32x16xbf16>, vector<8x16x32xbf16>, vector<8x32x32xf32> -> vector<8x32x32xf32>
    "tpu.trace_stop"() : () -> ()
    %c0_8 = arith.constant 0 : index
    %c0_9 = arith.constant 0 : index
    %c0_10 = arith.constant 0 : index
    %c0_11 = arith.constant 0 : index
    %16 = vector.load %arg4[%c0_8, %c0_9, %c0_10, %c0_11] : memref<1x8x32x32xf32, #tpu.memory_space<vmem>>, vector<1x8x32x32xf32>
    %17 = vector.shape_cast %16 : vector<1x8x32x32xf32> to vector<8x32x32xf32>
    %18 = vector.shape_cast %15 : vector<8x32x32xf32> to vector<1x8x32x32xf32>
    tpu.vector_store %arg4[%c0_8, %c0_9, %c0_10, %c0_11], %18 {strides = array<i32>} : memref<1x8x32x32xf32, #tpu.memory_space<vmem>>, vector<1x8x32x32xf32>,
    return
  }
  func.func @transform_0(%arg0: i32) -> (i32, i32, i32, i32) {
    %c0_i32 = arith.constant 0 : i32
    %c0_i32_0 = arith.constant 0 : i32
    %c0_i32_1 = arith.constant 0 : i32
    %c0_i32_2 = arith.constant 0 : i32
    return %arg0, %c0_i32, %c0_i32_0, %c0_i32_1 : i32, i32, i32, i32
  }
  func.func @transform_1(%arg0: i32) -> (i32, i32) {
    %c0_i32 = arith.constant 0 : i32
    %c0_i32_0 = arith.constant 0 : i32
    %c0_i32_1 = arith.constant 0 : i32
    return %c0_i32, %c0_i32_0 : i32, i32
  }
  func.func @transform_2(%arg0: i32) -> (i32, i32) {
    %c0_i32 = arith.constant 0 : i32
    %c0_i32_0 = arith.constant 0 : i32
    %c0_i32_1 = arith.constant 0 : i32
    return %c0_i32, %c0_i32_0 : i32, i32
  }
  func.func @transform_3(%arg0: i32) -> (i32, i32, i32, i32) {
    %c0_i32 = arith.constant 0 : i32
    %c0_i32_0 = arith.constant 0 : i32
    %c0_i32_1 = arith.constant 0 : i32
    %c0_i32_2 = arith.constant 0 : i32
    return %arg0, %c0_i32, %c0_i32_0, %c0_i32_1 : i32, i32, i32, i32
  }
}

module attributes {stable_mosaic.version = 11 : i64} {
  func.func @_conv1x1_kernel(%arg0: i32, %arg1: i32, %arg2: memref<1x4x512xf32, #tpu.memory_space<vmem>>, %arg3: memref<8x4xf32, #tpu.memory_space<vmem>>, %arg4: memref<1x8x512xf32, #tpu.memory_space<vmem>>) attributes {dimension_semantics = [#tpu.dimension_semantics<parallel>, #tpu.dimension_semantics<parallel>], iteration_bounds = array<i64: 2, 2>, scalar_prefetch = 0 : i64, scratch_operands = 0 : i64, tpu.core_type = #tpu.core_type<tc>, window_params = [{transform_indices = @transform_0, window_bounds = array<i64: 1, 4, 512>}, {pipeline_mode = #tpu.pipeline_mode<synchronous>, transform_indices = @transform_1, window_bounds = array<i64: 8, 4>}, {transform_indices = @transform_2, window_bounds = array<i64: 1, 8, 512>}]} {
    %c0 = arith.constant 0 : index
    %c0_0 = arith.constant 0 : index
    %0 = vector.load %arg3[%c0, %c0_0] : memref<8x4xf32, #tpu.memory_space<vmem>>, vector<8x4xf32>
    %1 = arith.truncf %0 : vector<8x4xf32> to vector<8x4xbf16>
    %c0_1 = arith.constant 0 : index
    %c0_2 = arith.constant 0 : index
    %c0_3 = arith.constant 0 : index
    %2 = vector.load %arg2[%c0_1, %c0_2, %c0_3] : memref<1x4x512xf32, #tpu.memory_space<vmem>>, vector<1x4x512xf32>
    %3 = vector.shape_cast %2 : vector<1x4x512xf32> to vector<4x512xf32>
    %4 = arith.truncf %3 : vector<4x512xf32> to vector<4x512xbf16>
    %cst = arith.constant dense<0.000000e+00> : vector<8x512xf32>
    %5 = tpu.matmul %1, %4, %cst {dimension_numbers = #tpu.dot_dimension_numbers<[1], [0], [0], [1], [0, 0, 1, 1], [], []>} : vector<8x4xbf16>, vector<4x512xbf16>, vector<8x512xf32> -> vector<8x512xf32>
    %c0_4 = arith.constant 0 : index
    %c0_5 = arith.constant 0 : index
    %c0_6 = arith.constant 0 : index
    %6 = vector.load %arg4[%c0_4, %c0_5, %c0_6] : memref<1x8x512xf32, #tpu.memory_space<vmem>>, vector<1x8x512xf32>
    %7 = vector.shape_cast %6 : vector<1x8x512xf32> to vector<8x512xf32>
    %8 = vector.shape_cast %5 : vector<8x512xf32> to vector<1x8x512xf32>
    tpu.vector_store %arg4[%c0_4, %c0_5, %c0_6], %8 {strides = array<i32>} : memref<1x8x512xf32, #tpu.memory_space<vmem>>, vector<1x8x512xf32>,
    return
  }
  func.func @transform_0(%arg0: i32, %arg1: i32) -> (i32, i32, i32) {
    %c0_i32 = arith.constant 0 : i32
    %c0_i32_0 = arith.constant 0 : i32
    return %arg0, %c0_i32, %arg1 : i32, i32, i32
  }
  func.func @transform_1(%arg0: i32, %arg1: i32) -> (i32, i32) {
    %c0_i32 = arith.constant 0 : i32
    %c0_i32_0 = arith.constant 0 : i32
    %c0_i32_1 = arith.constant 0 : i32
    return %c0_i32, %c0_i32_0 : i32, i32
  }
  func.func @transform_2(%arg0: i32, %arg1: i32) -> (i32, i32, i32) {
    %c0_i32 = arith.constant 0 : i32
    %c0_i32_0 = arith.constant 0 : i32
    return %arg0, %c0_i32, %arg1 : i32, i32, i32
  }
}

module attributes {stable_mosaic.version = 11 : i64} {
  func.func @kernel(%arg0: i32, %arg1: memref<1x8x32x32xf32, #tpu.memory_space<vmem>>, %arg2: memref<1x8x32x32xf32, #tpu.memory_space<vmem>>, %arg3: memref<9x2x16xf32, #tpu.memory_space<vmem>>, %arg4: memref<1x2x1088xf32, #tpu.memory_space<vmem>>, %arg5: memref<16x1158xf32, #tpu.memory_space<vmem>>) attributes {dimension_semantics = [#tpu.dimension_semantics<parallel>], iteration_bounds = array<i64: 2>, scalar_prefetch = 0 : i64, scratch_operands = 1 : i64, tpu.core_type = #tpu.core_type<tc>, window_params = [{transform_indices = @transform_0, window_bounds = array<i64: 1, 8, 32, 32>}, {transform_indices = @transform_1, window_bounds = array<i64: 1, 8, 32, 32>}, {pipeline_mode = #tpu.pipeline_mode<synchronous>, transform_indices = @transform_2, window_bounds = array<i64: 9, 2, 16>}, {transform_indices = @transform_3, window_bounds = array<i64: 1, 2, 1088>}]} {
    %cst = arith.constant 0.000000e+00 : f32
    %0 = vector.broadcast %cst : f32 to vector<16x1158xf32>
    %c0 = arith.constant 0 : index
    %c0_0 = arith.constant 0 : index
    %1 = vector.load %arg5[%c0, %c0_0] : memref<16x1158xf32, #tpu.memory_space<vmem>>, vector<16x1158xf32>
    tpu.vector_store %arg5[%c0, %c0_0], %0 {strides = array<i32>} : memref<16x1158xf32, #tpu.memory_space<vmem>>, vector<16x1158xf32>,
    %c0_1 = arith.constant 0 : index
    %c0_2 = arith.constant 0 : index
    %c0_3 = arith.constant 0 : index
    %c0_4 = arith.constant 0 : index
    %2 = vector.load %arg1[%c0_1, %c0_2, %c0_3, %c0_4] : memref<1x8x32x32xf32, #tpu.memory_space<vmem>>, vector<1x8x1x32xf32>
    %3 = vector.shape_cast %2 : vector<1x8x1x32xf32> to vector<8x32xf32>
    %c0_5 = arith.constant 0 : index
    %c35 = arith.constant 35 : index
    %4 = vector.load %arg5[%c0_5, %c35] : memref<16x1158xf32, #tpu.memory_space<vmem>>, vector<8x32xf32>
    tpu.vector_store %arg5[%c0_5, %c35], %3 {strides = array<i32>} : memref<16x1158xf32, #tpu.memory_space<vmem>>, vector<8x32xf32>,
    %c0_6 = arith.constant 0 : index
    %c0_7 = arith.constant 0 : index
    %c0_8 = arith.constant 0 : index
    %c0_9 = arith.constant 0 : index
    %5 = vector.load %arg2[%c0_6, %c0_7, %c0_8, %c0_9] : memref<1x8x32x32xf32, #tpu.memory_space<vmem>>, vector<1x8x1x32xf32>
    %6 = vector.shape_cast %5 : vector<1x8x1x32xf32> to vector<8x32xf32>
    %c8 = arith.constant 8 : index
    %c35_10 = arith.constant 35 : index
    %7 = vector.load %arg5[%c8, %c35_10] : memref<16x1158xf32, #tpu.memory_space<vmem>>, vector<8x32xf32>
    tpu.vector_store %arg5[%c8, %c35_10], %6 {strides = array<i32>} : memref<16x1158xf32, #tpu.memory_space<vmem>>, vector<8x32xf32>,
    %c0_11 = arith.constant 0 : index
    %c0_12 = arith.constant 0 : index
    %c1 = arith.constant 1 : index
    %c0_13 = arith.constant 0 : index
    %8 = vector.load %arg1[%c0_11, %c0_12, %c1, %c0_13] : memref<1x8x32x32xf32, #tpu.memory_space<vmem>>, vector<1x8x1x32xf32>
    %9 = vector.shape_cast %8 : vector<1x8x1x32xf32> to vector<8x32xf32>
    %c0_14 = arith.constant 0 : index
    %c69 = arith.constant 69 : index
    %10 = vector.load %arg5[%c0_14, %c69] : memref<16x1158xf32, #tpu.memory_space<vmem>>, vector<8x32xf32>
    tpu.vector_store %arg5[%c0_14, %c69], %9 {strides = array<i32>} : memref<16x1158xf32, #tpu.memory_space<vmem>>, vector<8x32xf32>,
    %c0_15 = arith.constant 0 : index
    %c0_16 = arith.constant 0 : index
    %c1_17 = arith.constant 1 : index
    %c0_18 = arith.constant 0 : index
    %11 = vector.load %arg2[%c0_15, %c0_16, %c1_17, %c0_18] : memref<1x8x32x32xf32, #tpu.memory_space<vmem>>, vector<1x8x1x32xf32>
    %12 = vector.shape_cast %11 : vector<1x8x1x32xf32> to vector<8x32xf32>
    %c8_19 = arith.constant 8 : index
    %c69_20 = arith.constant 69 : index
    %13 = vector.load %arg5[%c8_19, %c69_20] : memref<16x1158xf32, #tpu.memory_space<vmem>>, vector<8x32xf32>
    tpu.vector_store %arg5[%c8_19, %c69_20], %12 {strides = array<i32>} : memref<16x1158xf32, #tpu.memory_space<vmem>>, vector<8x32xf32>,
    %c0_21 = arith.constant 0 : index
    %c0_22 = arith.constant 0 : index
    %c2 = arith.constant 2 : index
    %c0_23 = arith.constant 0 : index
    %14 = vector.load %arg1[%c0_21, %c0_22, %c2, %c0_23] : memref<1x8x32x32xf32, #tpu.memory_space<vmem>>, vector<1x8x1x32xf32>
    %15 = vector.shape_cast %14 : vector<1x8x1x32xf32> to vector<8x32xf32>
    %c0_24 = arith.constant 0 : index
    %c103 = arith.constant 103 : index
    %16 = vector.load %arg5[%c0_24, %c103] : memref<16x1158xf32, #tpu.memory_space<vmem>>, vector<8x32xf32>
    tpu.vector_store %arg5[%c0_24, %c103], %15 {strides = array<i32>} : memref<16x1158xf32, #tpu.memory_space<vmem>>, vector<8x32xf32>,
    %c0_25 = arith.constant 0 : index
    %c0_26 = arith.constant 0 : index
    %c2_27 = arith.constant 2 : index
    %c0_28 = arith.constant 0 : index
    %17 = vector.load %arg2[%c0_25, %c0_26, %c2_27, %c0_28] : memref<1x8x32x32xf32, #tpu.memory_space<vmem>>, vector<1x8x1x32xf32>
    %18 = vector.shape_cast %17 : vector<1x8x1x32xf32> to vector<8x32xf32>
    %c8_29 = arith.constant 8 : index
    %c103_30 = arith.constant 103 : index
    %19 = vector.load %arg5[%c8_29, %c103_30] : memref<16x1158xf32, #tpu.memory_space<vmem>>, vector<8x32xf32>
    tpu.vector_store %arg5[%c8_29, %c103_30], %18 {strides = array<i32>} : memref<16x1158xf32, #tpu.memory_space<vmem>>, vector<8x32xf32>,
    %c0_31 = arith.constant 0 : index
    %c0_32 = arith.constant 0 : index
    %c3 = arith.constant 3 : index
    %c0_33 = arith.constant 0 : index
    %20 = vector.load %arg1[%c0_31, %c0_32, %c3, %c0_33] : memref<1x8x32x32xf32, #tpu.memory_space<vmem>>, vector<1x8x1x32xf32>
    %21 = vector.shape_cast %20 : vector<1x8x1x32xf32> to vector<8x32xf32>
    %c0_34 = arith.constant 0 : index
    %c137 = arith.constant 137 : index
    %22 = vector.load %arg5[%c0_34, %c137] : memref<16x1158xf32, #tpu.memory_space<vmem>>, vector<8x32xf32>
    tpu.vector_store %arg5[%c0_34, %c137], %21 {strides = array<i32>} : memref<16x1158xf32, #tpu.memory_space<vmem>>, vector<8x32xf32>,
    %c0_35 = arith.constant 0 : index
    %c0_36 = arith.constant 0 : index
    %c3_37 = arith.constant 3 : index
    %c0_38 = arith.constant 0 : index
    %23 = vector.load %arg2[%c0_35, %c0_36, %c3_37, %c0_38] : memref<1x8x32x32xf32, #tpu.memory_space<vmem>>, vector<1x8x1x32xf32>
    %24 = vector.shape_cast %23 : vector<1x8x1x32xf32> to vector<8x32xf32>
    %c8_39 = arith.constant 8 : index
    %c137_40 = arith.constant 137 : index
    %25 = vector.load %arg5[%c8_39, %c137_40] : memref<16x1158xf32, #tpu.memory_space<vmem>>, vector<8x32xf32>
    tpu.vector_store %arg5[%c8_39, %c137_40], %24 {strides = array<i32>} : memref<16x1158xf32, #tpu.memory_space<vmem>>, vector<8x32xf32>,
    %c0_41 = arith.constant 0 : index
    %c0_42 = arith.constant 0 : index
    %c4 = arith.constant 4 : index
    %c0_43 = arith.constant 0 : index
    %26 = vector.load %arg1[%c0_41, %c0_42, %c4, %c0_43] : memref<1x8x32x32xf32, #tpu.memory_space<vmem>>, vector<1x8x1x32xf32>
    %27 = vector.shape_cast %26 : vector<1x8x1x32xf32> to vector<8x32xf32>
    %c0_44 = arith.constant 0 : index
    %c171 = arith.constant 171 : index
    %28 = vector.load %arg5[%c0_44, %c171] : memref<16x1158xf32, #tpu.memory_space<vmem>>, vector<8x32xf32>
    tpu.vector_store %arg5[%c0_44, %c171], %27 {strides = array<i32>} : memref<16x1158xf32, #tpu.memory_space<vmem>>, vector<8x32xf32>,
    %c0_45 = arith.constant 0 : index
    %c0_46 = arith.constant 0 : index
    %c4_47 = arith.constant 4 : index
    %c0_48 = arith.constant 0 : index
    %29 = vector.load %arg2[%c0_45, %c0_46, %c4_47, %c0_48] : memref<1x8x32x32xf32, #tpu.memory_space<vmem>>, vector<1x8x1x32xf32>
    %30 = vector.shape_cast %29 : vector<1x8x1x32xf32> to vector<8x32xf32>
    %c8_49 = arith.constant 8 : index
    %c171_50 = arith.constant 171 : index
    %31 = vector.load %arg5[%c8_49, %c171_50] : memref<16x1158xf32, #tpu.memory_space<vmem>>, vector<8x32xf32>
    tpu.vector_store %arg5[%c8_49, %c171_50], %30 {strides = array<i32>} : memref<16x1158xf32, #tpu.memory_space<vmem>>, vector<8x32xf32>,
    %c0_51 = arith.constant 0 : index
    %c0_52 = arith.constant 0 : index
    %c5 = arith.constant 5 : index
    %c0_53 = arith.constant 0 : index
    %32 = vector.load %arg1[%c0_51, %c0_52, %c5, %c0_53] : memref<1x8x32x32xf32, #tpu.memory_space<vmem>>, vector<1x8x1x32xf32>
    %33 = vector.shape_cast %32 : vector<1x8x1x32xf32> to vector<8x32xf32>
    %c0_54 = arith.constant 0 : index
    %c205 = arith.constant 205 : index
    %34 = vector.load %arg5[%c0_54, %c205] : memref<16x1158xf32, #tpu.memory_space<vmem>>, vector<8x32xf32>
    tpu.vector_store %arg5[%c0_54, %c205], %33 {strides = array<i32>} : memref<16x1158xf32, #tpu.memory_space<vmem>>, vector<8x32xf32>,
    %c0_55 = arith.constant 0 : index
    %c0_56 = arith.constant 0 : index
    %c5_57 = arith.constant 5 : index
    %c0_58 = arith.constant 0 : index
    %35 = vector.load %arg2[%c0_55, %c0_56, %c5_57, %c0_58] : memref<1x8x32x32xf32, #tpu.memory_space<vmem>>, vector<1x8x1x32xf32>
    %36 = vector.shape_cast %35 : vector<1x8x1x32xf32> to vector<8x32xf32>
    %c8_59 = arith.constant 8 : index
    %c205_60 = arith.constant 205 : index
    %37 = vector.load %arg5[%c8_59, %c205_60] : memref<16x1158xf32, #tpu.memory_space<vmem>>, vector<8x32xf32>
    tpu.vector_store %arg5[%c8_59, %c205_60], %36 {strides = array<i32>} : memref<16x1158xf32, #tpu.memory_space<vmem>>, vector<8x32xf32>,
    %c0_61 = arith.constant 0 : index
    %c0_62 = arith.constant 0 : index
    %c6 = arith.constant 6 : index
    %c0_63 = arith.constant 0 : index
    %38 = vector.load %arg1[%c0_61, %c0_62, %c6, %c0_63] : memref<1x8x32x32xf32, #tpu.memory_space<vmem>>, vector<1x8x1x32xf32>
    %39 = vector.shape_cast %38 : vector<1x8x1x32xf32> to vector<8x32xf32>
    %c0_64 = arith.constant 0 : index
    %c239 = arith.constant 239 : index
    %40 = vector.load %arg5[%c0_64, %c239] : memref<16x1158xf32, #tpu.memory_space<vmem>>, vector<8x32xf32>
    tpu.vector_store %arg5[%c0_64, %c239], %39 {strides = array<i32>} : memref<16x1158xf32, #tpu.memory_space<vmem>>, vector<8x32xf32>,
    %c0_65 = arith.constant 0 : index
    %c0_66 = arith.constant 0 : index
    %c6_67 = arith.constant 6 : index
    %c0_68 = arith.constant 0 : index
    %41 = vector.load %arg2[%c0_65, %c0_66, %c6_67, %c0_68] : memref<1x8x32x32xf32, #tpu.memory_space<vmem>>, vector<1x8x1x32xf32>
    %42 = vector.shape_cast %41 : vector<1x8x1x32xf32> to vector<8x32xf32>
    %c8_69 = arith.constant 8 : index
    %c239_70 = arith.constant 239 : index
    %43 = vector.load %arg5[%c8_69, %c239_70] : memref<16x1158xf32, #tpu.memory_space<vmem>>, vector<8x32xf32>
    tpu.vector_store %arg5[%c8_69, %c239_70], %42 {strides = array<i32>} : memref<16x1158xf32, #tpu.memory_space<vmem>>, vector<8x32xf32>,
    %c0_71 = arith.constant 0 : index
    %c0_72 = arith.constant 0 : index
    %c7 = arith.constant 7 : index
    %c0_73 = arith.constant 0 : index
    %44 = vector.load %arg1[%c0_71, %c0_72, %c7, %c0_73] : memref<1x8x32x32xf32, #tpu.memory_space<vmem>>, vector<1x8x1x32xf32>
    %45 = vector.shape_cast %44 : vector<1x8x1x32xf32> to vector<8x32xf32>
    %c0_74 = arith.constant 0 : index
    %c273 = arith.constant 273 : index
    %46 = vector.load %arg5[%c0_74, %c273] : memref<16x1158xf32, #tpu.memory_space<vmem>>, vector<8x32xf32>
    tpu.vector_store %arg5[%c0_74, %c273], %45 {strides = array<i32>} : memref<16x1158xf32, #tpu.memory_space<vmem>>, vector<8x32xf32>,
    %c0_75 = arith.constant 0 : index
    %c0_76 = arith.constant 0 : index
    %c7_77 = arith.constant 7 : index
    %c0_78 = arith.constant 0 : index
    %47 = vector.load %arg2[%c0_75, %c0_76, %c7_77, %c0_78] : memref<1x8x32x32xf32, #tpu.memory_space<vmem>>, vector<1x8x1x32xf32>
    %48 = vector.shape_cast %47 : vector<1x8x1x32xf32> to vector<8x32xf32>
    %c8_79 = arith.constant 8 : index
    %c273_80 = arith.constant 273 : index
    %49 = vector.load %arg5[%c8_79, %c273_80] : memref<16x1158xf32, #tpu.memory_space<vmem>>, vector<8x32xf32>
    tpu.vector_store %arg5[%c8_79, %c273_80], %48 {strides = array<i32>} : memref<16x1158xf32, #tpu.memory_space<vmem>>, vector<8x32xf32>,
    %c0_81 = arith.constant 0 : index
    %c0_82 = arith.constant 0 : index
    %c8_83 = arith.constant 8 : index
    %c0_84 = arith.constant 0 : index
    %50 = vector.load %arg1[%c0_81, %c0_82, %c8_83, %c0_84] : memref<1x8x32x32xf32, #tpu.memory_space<vmem>>, vector<1x8x1x32xf32>
    %51 = vector.shape_cast %50 : vector<1x8x1x32xf32> to vector<8x32xf32>
    %c0_85 = arith.constant 0 : index
    %c307 = arith.constant 307 : index
    %52 = vector.load %arg5[%c0_85, %c307] : memref<16x1158xf32, #tpu.memory_space<vmem>>, vector<8x32xf32>
    tpu.vector_store %arg5[%c0_85, %c307], %51 {strides = array<i32>} : memref<16x1158xf32, #tpu.memory_space<vmem>>, vector<8x32xf32>,
    %c0_86 = arith.constant 0 : index
    %c0_87 = arith.constant 0 : index
    %c8_88 = arith.constant 8 : index
    %c0_89 = arith.constant 0 : index
    %53 = vector.load %arg2[%c0_86, %c0_87, %c8_88, %c0_89] : memref<1x8x32x32xf32, #tpu.memory_space<vmem>>, vector<1x8x1x32xf32>
    %54 = vector.shape_cast %53 : vector<1x8x1x32xf32> to vector<8x32xf32>
    %c8_90 = arith.constant 8 : index
    %c307_91 = arith.constant 307 : index
    %55 = vector.load %arg5[%c8_90, %c307_91] : memref<16x1158xf32, #tpu.memory_space<vmem>>, vector<8x32xf32>
    tpu.vector_store %arg5[%c8_90, %c307_91], %54 {strides = array<i32>} : memref<16x1158xf32, #tpu.memory_space<vmem>>, vector<8x32xf32>,
    %c0_92 = arith.constant 0 : index
    %c0_93 = arith.constant 0 : index
    %c9 = arith.constant 9 : index
    %c0_94 = arith.constant 0 : index
    %56 = vector.load %arg1[%c0_92, %c0_93, %c9, %c0_94] : memref<1x8x32x32xf32, #tpu.memory_space<vmem>>, vector<1x8x1x32xf32>
    %57 = vector.shape_cast %56 : vector<1x8x1x32xf32> to vector<8x32xf32>
    %c0_95 = arith.constant 0 : index
    %c341 = arith.constant 341 : index
    %58 = vector.load %arg5[%c0_95, %c341] : memref<16x1158xf32, #tpu.memory_space<vmem>>, vector<8x32xf32>
    tpu.vector_store %arg5[%c0_95, %c341], %57 {strides = array<i32>} : memref<16x1158xf32, #tpu.memory_space<vmem>>, vector<8x32xf32>,
    %c0_96 = arith.constant 0 : index
    %c0_97 = arith.constant 0 : index
    %c9_98 = arith.constant 9 : index
    %c0_99 = arith.constant 0 : index
    %59 = vector.load %arg2[%c0_96, %c0_97, %c9_98, %c0_99] : memref<1x8x32x32xf32, #tpu.memory_space<vmem>>, vector<1x8x1x32xf32>
    %60 = vector.shape_cast %59 : vector<1x8x1x32xf32> to vector<8x32xf32>
    %c8_100 = arith.constant 8 : index
    %c341_101 = arith.constant 341 : index
    %61 = vector.load %arg5[%c8_100, %c341_101] : memref<16x1158xf32, #tpu.memory_space<vmem>>, vector<8x32xf32>
    tpu.vector_store %arg5[%c8_100, %c341_101], %60 {strides = array<i32>} : memref<16x1158xf32, #tpu.memory_space<vmem>>, vector<8x32xf32>,
    %c0_102 = arith.constant 0 : index
    %c0_103 = arith.constant 0 : index
    %c10 = arith.constant 10 : index
    %c0_104 = arith.constant 0 : index
    %62 = vector.load %arg1[%c0_102, %c0_103, %c10, %c0_104] : memref<1x8x32x32xf32, #tpu.memory_space<vmem>>, vector<1x8x1x32xf32>
    %63 = vector.shape_cast %62 : vector<1x8x1x32xf32> to vector<8x32xf32>
    %c0_105 = arith.constant 0 : index
    %c375 = arith.constant 375 : index
    %64 = vector.load %arg5[%c0_105, %c375] : memref<16x1158xf32, #tpu.memory_space<vmem>>, vector<8x32xf32>
    tpu.vector_store %arg5[%c0_105, %c375], %63 {strides = array<i32>} : memref<16x1158xf32, #tpu.memory_space<vmem>>, vector<8x32xf32>,
    %c0_106 = arith.constant 0 : index
    %c0_107 = arith.constant 0 : index
    %c10_108 = arith.constant 10 : index
    %c0_109 = arith.constant 0 : index
    %65 = vector.load %arg2[%c0_106, %c0_107, %c10_108, %c0_109] : memref<1x8x32x32xf32, #tpu.memory_space<vmem>>, vector<1x8x1x32xf32>
    %66 = vector.shape_cast %65 : vector<1x8x1x32xf32> to vector<8x32xf32>
    %c8_110 = arith.constant 8 : index
    %c375_111 = arith.constant 375 : index
    %67 = vector.load %arg5[%c8_110, %c375_111] : memref<16x1158xf32, #tpu.memory_space<vmem>>, vector<8x32xf32>
    tpu.vector_store %arg5[%c8_110, %c375_111], %66 {strides = array<i32>} : memref<16x1158xf32, #tpu.memory_space<vmem>>, vector<8x32xf32>,
    %c0_112 = arith.constant 0 : index
    %c0_113 = arith.constant 0 : index
    %c11 = arith.constant 11 : index
    %c0_114 = arith.constant 0 : index
    %68 = vector.load %arg1[%c0_112, %c0_113, %c11, %c0_114] : memref<1x8x32x32xf32, #tpu.memory_space<vmem>>, vector<1x8x1x32xf32>
    %69 = vector.shape_cast %68 : vector<1x8x1x32xf32> to vector<8x32xf32>
    %c0_115 = arith.constant 0 : index
    %c409 = arith.constant 409 : index
    %70 = vector.load %arg5[%c0_115, %c409] : memref<16x1158xf32, #tpu.memory_space<vmem>>, vector<8x32xf32>
    tpu.vector_store %arg5[%c0_115, %c409], %69 {strides = array<i32>} : memref<16x1158xf32, #tpu.memory_space<vmem>>, vector<8x32xf32>,
    %c0_116 = arith.constant 0 : index
    %c0_117 = arith.constant 0 : index
    %c11_118 = arith.constant 11 : index
    %c0_119 = arith.constant 0 : index
    %71 = vector.load %arg2[%c0_116, %c0_117, %c11_118, %c0_119] : memref<1x8x32x32xf32, #tpu.memory_space<vmem>>, vector<1x8x1x32xf32>
    %72 = vector.shape_cast %71 : vector<1x8x1x32xf32> to vector<8x32xf32>
    %c8_120 = arith.constant 8 : index
    %c409_121 = arith.constant 409 : index
    %73 = vector.load %arg5[%c8_120, %c409_121] : memref<16x1158xf32, #tpu.memory_space<vmem>>, vector<8x32xf32>
    tpu.vector_store %arg5[%c8_120, %c409_121], %72 {strides = array<i32>} : memref<16x1158xf32, #tpu.memory_space<vmem>>, vector<8x32xf32>,
    %c0_122 = arith.constant 0 : index
    %c0_123 = arith.constant 0 : index
    %c12 = arith.constant 12 : index
    %c0_124 = arith.constant 0 : index
    %74 = vector.load %arg1[%c0_122, %c0_123, %c12, %c0_124] : memref<1x8x32x32xf32, #tpu.memory_space<vmem>>, vector<1x8x1x32xf32>
    %75 = vector.shape_cast %74 : vector<1x8x1x32xf32> to vector<8x32xf32>
    %c0_125 = arith.constant 0 : index
    %c443 = arith.constant 443 : index
    %76 = vector.load %arg5[%c0_125, %c443] : memref<16x1158xf32, #tpu.memory_space<vmem>>, vector<8x32xf32>
    tpu.vector_store %arg5[%c0_125, %c443], %75 {strides = array<i32>} : memref<16x1158xf32, #tpu.memory_space<vmem>>, vector<8x32xf32>,
    %c0_126 = arith.constant 0 : index
    %c0_127 = arith.constant 0 : index
    %c12_128 = arith.constant 12 : index
    %c0_129 = arith.constant 0 : index
    %77 = vector.load %arg2[%c0_126, %c0_127, %c12_128, %c0_129] : memref<1x8x32x32xf32, #tpu.memory_space<vmem>>, vector<1x8x1x32xf32>
    %78 = vector.shape_cast %77 : vector<1x8x1x32xf32> to vector<8x32xf32>
    %c8_130 = arith.constant 8 : index
    %c443_131 = arith.constant 443 : index
    %79 = vector.load %arg5[%c8_130, %c443_131] : memref<16x1158xf32, #tpu.memory_space<vmem>>, vector<8x32xf32>
    tpu.vector_store %arg5[%c8_130, %c443_131], %78 {strides = array<i32>} : memref<16x1158xf32, #tpu.memory_space<vmem>>, vector<8x32xf32>,
    %c0_132 = arith.constant 0 : index
    %c0_133 = arith.constant 0 : index
    %c13 = arith.constant 13 : index
    %c0_134 = arith.constant 0 : index
    %80 = vector.load %arg1[%c0_132, %c0_133, %c13, %c0_134] : memref<1x8x32x32xf32, #tpu.memory_space<vmem>>, vector<1x8x1x32xf32>
    %81 = vector.shape_cast %80 : vector<1x8x1x32xf32> to vector<8x32xf32>
    %c0_135 = arith.constant 0 : index
    %c477 = arith.constant 477 : index
    %82 = vector.load %arg5[%c0_135, %c477] : memref<16x1158xf32, #tpu.memory_space<vmem>>, vector<8x32xf32>
    tpu.vector_store %arg5[%c0_135, %c477], %81 {strides = array<i32>} : memref<16x1158xf32, #tpu.memory_space<vmem>>, vector<8x32xf32>,
    %c0_136 = arith.constant 0 : index
    %c0_137 = arith.constant 0 : index
    %c13_138 = arith.constant 13 : index
    %c0_139 = arith.constant 0 : index
    %83 = vector.load %arg2[%c0_136, %c0_137, %c13_138, %c0_139] : memref<1x8x32x32xf32, #tpu.memory_space<vmem>>, vector<1x8x1x32xf32>
    %84 = vector.shape_cast %83 : vector<1x8x1x32xf32> to vector<8x32xf32>
    %c8_140 = arith.constant 8 : index
    %c477_141 = arith.constant 477 : index
    %85 = vector.load %arg5[%c8_140, %c477_141] : memref<16x1158xf32, #tpu.memory_space<vmem>>, vector<8x32xf32>
    tpu.vector_store %arg5[%c8_140, %c477_141], %84 {strides = array<i32>} : memref<16x1158xf32, #tpu.memory_space<vmem>>, vector<8x32xf32>,
    %c0_142 = arith.constant 0 : index
    %c0_143 = arith.constant 0 : index
    %c14 = arith.constant 14 : index
    %c0_144 = arith.constant 0 : index
    %86 = vector.load %arg1[%c0_142, %c0_143, %c14, %c0_144] : memref<1x8x32x32xf32, #tpu.memory_space<vmem>>, vector<1x8x1x32xf32>
    %87 = vector.shape_cast %86 : vector<1x8x1x32xf32> to vector<8x32xf32>
    %c0_145 = arith.constant 0 : index
    %c511 = arith.constant 511 : index
    %88 = vector.load %arg5[%c0_145, %c511] : memref<16x1158xf32, #tpu.memory_space<vmem>>, vector<8x32xf32>
    tpu.vector_store %arg5[%c0_145, %c511], %87 {strides = array<i32>} : memref<16x1158xf32, #tpu.memory_space<vmem>>, vector<8x32xf32>,
    %c0_146 = arith.constant 0 : index
    %c0_147 = arith.constant 0 : index
    %c14_148 = arith.constant 14 : index
    %c0_149 = arith.constant 0 : index
    %89 = vector.load %arg2[%c0_146, %c0_147, %c14_148, %c0_149] : memref<1x8x32x32xf32, #tpu.memory_space<vmem>>, vector<1x8x1x32xf32>
    %90 = vector.shape_cast %89 : vector<1x8x1x32xf32> to vector<8x32xf32>
    %c8_150 = arith.constant 8 : index
    %c511_151 = arith.constant 511 : index
    %91 = vector.load %arg5[%c8_150, %c511_151] : memref<16x1158xf32, #tpu.memory_space<vmem>>, vector<8x32xf32>
    tpu.vector_store %arg5[%c8_150, %c511_151], %90 {strides = array<i32>} : memref<16x1158xf32, #tpu.memory_space<vmem>>, vector<8x32xf32>,
    %c0_152 = arith.constant 0 : index
    %c0_153 = arith.constant 0 : index
    %c15 = arith.constant 15 : index
    %c0_154 = arith.constant 0 : index
    %92 = vector.load %arg1[%c0_152, %c0_153, %c15, %c0_154] : memref<1x8x32x32xf32, #tpu.memory_space<vmem>>, vector<1x8x1x32xf32>
    %93 = vector.shape_cast %92 : vector<1x8x1x32xf32> to vector<8x32xf32>
    %c0_155 = arith.constant 0 : index
    %c545 = arith.constant 545 : index
    %94 = vector.load %arg5[%c0_155, %c545] : memref<16x1158xf32, #tpu.memory_space<vmem>>, vector<8x32xf32>
    tpu.vector_store %arg5[%c0_155, %c545], %93 {strides = array<i32>} : memref<16x1158xf32, #tpu.memory_space<vmem>>, vector<8x32xf32>,
    %c0_156 = arith.constant 0 : index
    %c0_157 = arith.constant 0 : index
    %c15_158 = arith.constant 15 : index
    %c0_159 = arith.constant 0 : index
    %95 = vector.load %arg2[%c0_156, %c0_157, %c15_158, %c0_159] : memref<1x8x32x32xf32, #tpu.memory_space<vmem>>, vector<1x8x1x32xf32>
    %96 = vector.shape_cast %95 : vector<1x8x1x32xf32> to vector<8x32xf32>
    %c8_160 = arith.constant 8 : index
    %c545_161 = arith.constant 545 : index
    %97 = vector.load %arg5[%c8_160, %c545_161] : memref<16x1158xf32, #tpu.memory_space<vmem>>, vector<8x32xf32>
    tpu.vector_store %arg5[%c8_160, %c545_161], %96 {strides = array<i32>} : memref<16x1158xf32, #tpu.memory_space<vmem>>, vector<8x32xf32>,
    %c0_162 = arith.constant 0 : index
    %c0_163 = arith.constant 0 : index
    %c16 = arith.constant 16 : index
    %c0_164 = arith.constant 0 : index
    %98 = vector.load %arg1[%c0_162, %c0_163, %c16, %c0_164] : memref<1x8x32x32xf32, #tpu.memory_space<vmem>>, vector<1x8x1x32xf32>
    %99 = vector.shape_cast %98 : vector<1x8x1x32xf32> to vector<8x32xf32>
    %c0_165 = arith.constant 0 : index
    %c579 = arith.constant 579 : index
    %100 = vector.load %arg5[%c0_165, %c579] : memref<16x1158xf32, #tpu.memory_space<vmem>>, vector<8x32xf32>
    tpu.vector_store %arg5[%c0_165, %c579], %99 {strides = array<i32>} : memref<16x1158xf32, #tpu.memory_space<vmem>>, vector<8x32xf32>,
    %c0_166 = arith.constant 0 : index
    %c0_167 = arith.constant 0 : index
    %c16_168 = arith.constant 16 : index
    %c0_169 = arith.constant 0 : index
    %101 = vector.load %arg2[%c0_166, %c0_167, %c16_168, %c0_169] : memref<1x8x32x32xf32, #tpu.memory_space<vmem>>, vector<1x8x1x32xf32>
    %102 = vector.shape_cast %101 : vector<1x8x1x32xf32> to vector<8x32xf32>
    %c8_170 = arith.constant 8 : index
    %c579_171 = arith.constant 579 : index
    %103 = vector.load %arg5[%c8_170, %c579_171] : memref<16x1158xf32, #tpu.memory_space<vmem>>, vector<8x32xf32>
    tpu.vector_store %arg5[%c8_170, %c579_171], %102 {strides = array<i32>} : memref<16x1158xf32, #tpu.memory_space<vmem>>, vector<8x32xf32>,
    %c0_172 = arith.constant 0 : index
    %c0_173 = arith.constant 0 : index
    %c17 = arith.constant 17 : index
    %c0_174 = arith.constant 0 : index
    %104 = vector.load %arg1[%c0_172, %c0_173, %c17, %c0_174] : memref<1x8x32x32xf32, #tpu.memory_space<vmem>>, vector<1x8x1x32xf32>
    %105 = vector.shape_cast %104 : vector<1x8x1x32xf32> to vector<8x32xf32>
    %c0_175 = arith.constant 0 : index
    %c613 = arith.constant 613 : index
    %106 = vector.load %arg5[%c0_175, %c613] : memref<16x1158xf32, #tpu.memory_space<vmem>>, vector<8x32xf32>
    tpu.vector_store %arg5[%c0_175, %c613], %105 {strides = array<i32>} : memref<16x1158xf32, #tpu.memory_space<vmem>>, vector<8x32xf32>,
    %c0_176 = arith.constant 0 : index
    %c0_177 = arith.constant 0 : index
    %c17_178 = arith.constant 17 : index
    %c0_179 = arith.constant 0 : index
    %107 = vector.load %arg2[%c0_176, %c0_177, %c17_178, %c0_179] : memref<1x8x32x32xf32, #tpu.memory_space<vmem>>, vector<1x8x1x32xf32>
    %108 = vector.shape_cast %107 : vector<1x8x1x32xf32> to vector<8x32xf32>
    %c8_180 = arith.constant 8 : index
    %c613_181 = arith.constant 613 : index
    %109 = vector.load %arg5[%c8_180, %c613_181] : memref<16x1158xf32, #tpu.memory_space<vmem>>, vector<8x32xf32>
    tpu.vector_store %arg5[%c8_180, %c613_181], %108 {strides = array<i32>} : memref<16x1158xf32, #tpu.memory_space<vmem>>, vector<8x32xf32>,
    %c0_182 = arith.constant 0 : index
    %c0_183 = arith.constant 0 : index
    %c18 = arith.constant 18 : index
    %c0_184 = arith.constant 0 : index
    %110 = vector.load %arg1[%c0_182, %c0_183, %c18, %c0_184] : memref<1x8x32x32xf32, #tpu.memory_space<vmem>>, vector<1x8x1x32xf32>
    %111 = vector.shape_cast %110 : vector<1x8x1x32xf32> to vector<8x32xf32>
    %c0_185 = arith.constant 0 : index
    %c647 = arith.constant 647 : index
    %112 = vector.load %arg5[%c0_185, %c647] : memref<16x1158xf32, #tpu.memory_space<vmem>>, vector<8x32xf32>
    tpu.vector_store %arg5[%c0_185, %c647], %111 {strides = array<i32>} : memref<16x1158xf32, #tpu.memory_space<vmem>>, vector<8x32xf32>,
    %c0_186 = arith.constant 0 : index
    %c0_187 = arith.constant 0 : index
    %c18_188 = arith.constant 18 : index
    %c0_189 = arith.constant 0 : index
    %113 = vector.load %arg2[%c0_186, %c0_187, %c18_188, %c0_189] : memref<1x8x32x32xf32, #tpu.memory_space<vmem>>, vector<1x8x1x32xf32>
    %114 = vector.shape_cast %113 : vector<1x8x1x32xf32> to vector<8x32xf32>
    %c8_190 = arith.constant 8 : index
    %c647_191 = arith.constant 647 : index
    %115 = vector.load %arg5[%c8_190, %c647_191] : memref<16x1158xf32, #tpu.memory_space<vmem>>, vector<8x32xf32>
    tpu.vector_store %arg5[%c8_190, %c647_191], %114 {strides = array<i32>} : memref<16x1158xf32, #tpu.memory_space<vmem>>, vector<8x32xf32>,
    %c0_192 = arith.constant 0 : index
    %c0_193 = arith.constant 0 : index
    %c19 = arith.constant 19 : index
    %c0_194 = arith.constant 0 : index
    %116 = vector.load %arg1[%c0_192, %c0_193, %c19, %c0_194] : memref<1x8x32x32xf32, #tpu.memory_space<vmem>>, vector<1x8x1x32xf32>
    %117 = vector.shape_cast %116 : vector<1x8x1x32xf32> to vector<8x32xf32>
    %c0_195 = arith.constant 0 : index
    %c681 = arith.constant 681 : index
    %118 = vector.load %arg5[%c0_195, %c681] : memref<16x1158xf32, #tpu.memory_space<vmem>>, vector<8x32xf32>
    tpu.vector_store %arg5[%c0_195, %c681], %117 {strides = array<i32>} : memref<16x1158xf32, #tpu.memory_space<vmem>>, vector<8x32xf32>,
    %c0_196 = arith.constant 0 : index
    %c0_197 = arith.constant 0 : index
    %c19_198 = arith.constant 19 : index
    %c0_199 = arith.constant 0 : index
    %119 = vector.load %arg2[%c0_196, %c0_197, %c19_198, %c0_199] : memref<1x8x32x32xf32, #tpu.memory_space<vmem>>, vector<1x8x1x32xf32>
    %120 = vector.shape_cast %119 : vector<1x8x1x32xf32> to vector<8x32xf32>
    %c8_200 = arith.constant 8 : index
    %c681_201 = arith.constant 681 : index
    %121 = vector.load %arg5[%c8_200, %c681_201] : memref<16x1158xf32, #tpu.memory_space<vmem>>, vector<8x32xf32>
    tpu.vector_store %arg5[%c8_200, %c681_201], %120 {strides = array<i32>} : memref<16x1158xf32, #tpu.memory_space<vmem>>, vector<8x32xf32>,
    %c0_202 = arith.constant 0 : index
    %c0_203 = arith.constant 0 : index
    %c20 = arith.constant 20 : index
    %c0_204 = arith.constant 0 : index
    %122 = vector.load %arg1[%c0_202, %c0_203, %c20, %c0_204] : memref<1x8x32x32xf32, #tpu.memory_space<vmem>>, vector<1x8x1x32xf32>
    %123 = vector.shape_cast %122 : vector<1x8x1x32xf32> to vector<8x32xf32>
    %c0_205 = arith.constant 0 : index
    %c715 = arith.constant 715 : index
    %124 = vector.load %arg5[%c0_205, %c715] : memref<16x1158xf32, #tpu.memory_space<vmem>>, vector<8x32xf32>
    tpu.vector_store %arg5[%c0_205, %c715], %123 {strides = array<i32>} : memref<16x1158xf32, #tpu.memory_space<vmem>>, vector<8x32xf32>,
    %c0_206 = arith.constant 0 : index
    %c0_207 = arith.constant 0 : index
    %c20_208 = arith.constant 20 : index
    %c0_209 = arith.constant 0 : index
    %125 = vector.load %arg2[%c0_206, %c0_207, %c20_208, %c0_209] : memref<1x8x32x32xf32, #tpu.memory_space<vmem>>, vector<1x8x1x32xf32>
    %126 = vector.shape_cast %125 : vector<1x8x1x32xf32> to vector<8x32xf32>
    %c8_210 = arith.constant 8 : index
    %c715_211 = arith.constant 715 : index
    %127 = vector.load %arg5[%c8_210, %c715_211] : memref<16x1158xf32, #tpu.memory_space<vmem>>, vector<8x32xf32>
    tpu.vector_store %arg5[%c8_210, %c715_211], %126 {strides = array<i32>} : memref<16x1158xf32, #tpu.memory_space<vmem>>, vector<8x32xf32>,
    %c0_212 = arith.constant 0 : index
    %c0_213 = arith.constant 0 : index
    %c21 = arith.constant 21 : index
    %c0_214 = arith.constant 0 : index
    %128 = vector.load %arg1[%c0_212, %c0_213, %c21, %c0_214] : memref<1x8x32x32xf32, #tpu.memory_space<vmem>>, vector<1x8x1x32xf32>
    %129 = vector.shape_cast %128 : vector<1x8x1x32xf32> to vector<8x32xf32>
    %c0_215 = arith.constant 0 : index
    %c749 = arith.constant 749 : index
    %130 = vector.load %arg5[%c0_215, %c749] : memref<16x1158xf32, #tpu.memory_space<vmem>>, vector<8x32xf32>
    tpu.vector_store %arg5[%c0_215, %c749], %129 {strides = array<i32>} : memref<16x1158xf32, #tpu.memory_space<vmem>>, vector<8x32xf32>,
    %c0_216 = arith.constant 0 : index
    %c0_217 = arith.constant 0 : index
    %c21_218 = arith.constant 21 : index
    %c0_219 = arith.constant 0 : index
    %131 = vector.load %arg2[%c0_216, %c0_217, %c21_218, %c0_219] : memref<1x8x32x32xf32, #tpu.memory_space<vmem>>, vector<1x8x1x32xf32>
    %132 = vector.shape_cast %131 : vector<1x8x1x32xf32> to vector<8x32xf32>
    %c8_220 = arith.constant 8 : index
    %c749_221 = arith.constant 749 : index
    %133 = vector.load %arg5[%c8_220, %c749_221] : memref<16x1158xf32, #tpu.memory_space<vmem>>, vector<8x32xf32>
    tpu.vector_store %arg5[%c8_220, %c749_221], %132 {strides = array<i32>} : memref<16x1158xf32, #tpu.memory_space<vmem>>, vector<8x32xf32>,
    %c0_222 = arith.constant 0 : index
    %c0_223 = arith.constant 0 : index
    %c22 = arith.constant 22 : index
    %c0_224 = arith.constant 0 : index
    %134 = vector.load %arg1[%c0_222, %c0_223, %c22, %c0_224] : memref<1x8x32x32xf32, #tpu.memory_space<vmem>>, vector<1x8x1x32xf32>
    %135 = vector.shape_cast %134 : vector<1x8x1x32xf32> to vector<8x32xf32>
    %c0_225 = arith.constant 0 : index
    %c783 = arith.constant 783 : index
    %136 = vector.load %arg5[%c0_225, %c783] : memref<16x1158xf32, #tpu.memory_space<vmem>>, vector<8x32xf32>
    tpu.vector_store %arg5[%c0_225, %c783], %135 {strides = array<i32>} : memref<16x1158xf32, #tpu.memory_space<vmem>>, vector<8x32xf32>,
    %c0_226 = arith.constant 0 : index
    %c0_227 = arith.constant 0 : index
    %c22_228 = arith.constant 22 : index
    %c0_229 = arith.constant 0 : index
    %137 = vector.load %arg2[%c0_226, %c0_227, %c22_228, %c0_229] : memref<1x8x32x32xf32, #tpu.memory_space<vmem>>, vector<1x8x1x32xf32>
    %138 = vector.shape_cast %137 : vector<1x8x1x32xf32> to vector<8x32xf32>
    %c8_230 = arith.constant 8 : index
    %c783_231 = arith.constant 783 : index
    %139 = vector.load %arg5[%c8_230, %c783_231] : memref<16x1158xf32, #tpu.memory_space<vmem>>, vector<8x32xf32>
    tpu.vector_store %arg5[%c8_230, %c783_231], %138 {strides = array<i32>} : memref<16x1158xf32, #tpu.memory_space<vmem>>, vector<8x32xf32>,
    %c0_232 = arith.constant 0 : index
    %c0_233 = arith.constant 0 : index
    %c23 = arith.constant 23 : index
    %c0_234 = arith.constant 0 : index
    %140 = vector.load %arg1[%c0_232, %c0_233, %c23, %c0_234] : memref<1x8x32x32xf32, #tpu.memory_space<vmem>>, vector<1x8x1x32xf32>
    %141 = vector.shape_cast %140 : vector<1x8x1x32xf32> to vector<8x32xf32>
    %c0_235 = arith.constant 0 : index
    %c817 = arith.constant 817 : index
    %142 = vector.load %arg5[%c0_235, %c817] : memref<16x1158xf32, #tpu.memory_space<vmem>>, vector<8x32xf32>
    tpu.vector_store %arg5[%c0_235, %c817], %141 {strides = array<i32>} : memref<16x1158xf32, #tpu.memory_space<vmem>>, vector<8x32xf32>,
    %c0_236 = arith.constant 0 : index
    %c0_237 = arith.constant 0 : index
    %c23_238 = arith.constant 23 : index
    %c0_239 = arith.constant 0 : index
    %143 = vector.load %arg2[%c0_236, %c0_237, %c23_238, %c0_239] : memref<1x8x32x32xf32, #tpu.memory_space<vmem>>, vector<1x8x1x32xf32>
    %144 = vector.shape_cast %143 : vector<1x8x1x32xf32> to vector<8x32xf32>
    %c8_240 = arith.constant 8 : index
    %c817_241 = arith.constant 817 : index
    %145 = vector.load %arg5[%c8_240, %c817_241] : memref<16x1158xf32, #tpu.memory_space<vmem>>, vector<8x32xf32>
    tpu.vector_store %arg5[%c8_240, %c817_241], %144 {strides = array<i32>} : memref<16x1158xf32, #tpu.memory_space<vmem>>, vector<8x32xf32>,
    %c0_242 = arith.constant 0 : index
    %c0_243 = arith.constant 0 : index
    %c24 = arith.constant 24 : index
    %c0_244 = arith.constant 0 : index
    %146 = vector.load %arg1[%c0_242, %c0_243, %c24, %c0_244] : memref<1x8x32x32xf32, #tpu.memory_space<vmem>>, vector<1x8x1x32xf32>
    %147 = vector.shape_cast %146 : vector<1x8x1x32xf32> to vector<8x32xf32>
    %c0_245 = arith.constant 0 : index
    %c851 = arith.constant 851 : index
    %148 = vector.load %arg5[%c0_245, %c851] : memref<16x1158xf32, #tpu.memory_space<vmem>>, vector<8x32xf32>
    tpu.vector_store %arg5[%c0_245, %c851], %147 {strides = array<i32>} : memref<16x1158xf32, #tpu.memory_space<vmem>>, vector<8x32xf32>,
    %c0_246 = arith.constant 0 : index
    %c0_247 = arith.constant 0 : index
    %c24_248 = arith.constant 24 : index
    %c0_249 = arith.constant 0 : index
    %149 = vector.load %arg2[%c0_246, %c0_247, %c24_248, %c0_249] : memref<1x8x32x32xf32, #tpu.memory_space<vmem>>, vector<1x8x1x32xf32>
    %150 = vector.shape_cast %149 : vector<1x8x1x32xf32> to vector<8x32xf32>
    %c8_250 = arith.constant 8 : index
    %c851_251 = arith.constant 851 : index
    %151 = vector.load %arg5[%c8_250, %c851_251] : memref<16x1158xf32, #tpu.memory_space<vmem>>, vector<8x32xf32>
    tpu.vector_store %arg5[%c8_250, %c851_251], %150 {strides = array<i32>} : memref<16x1158xf32, #tpu.memory_space<vmem>>, vector<8x32xf32>,
    %c0_252 = arith.constant 0 : index
    %c0_253 = arith.constant 0 : index
    %c25 = arith.constant 25 : index
    %c0_254 = arith.constant 0 : index
    %152 = vector.load %arg1[%c0_252, %c0_253, %c25, %c0_254] : memref<1x8x32x32xf32, #tpu.memory_space<vmem>>, vector<1x8x1x32xf32>
    %153 = vector.shape_cast %152 : vector<1x8x1x32xf32> to vector<8x32xf32>
    %c0_255 = arith.constant 0 : index
    %c885 = arith.constant 885 : index
    %154 = vector.load %arg5[%c0_255, %c885] : memref<16x1158xf32, #tpu.memory_space<vmem>>, vector<8x32xf32>
    tpu.vector_store %arg5[%c0_255, %c885], %153 {strides = array<i32>} : memref<16x1158xf32, #tpu.memory_space<vmem>>, vector<8x32xf32>,
    %c0_256 = arith.constant 0 : index
    %c0_257 = arith.constant 0 : index
    %c25_258 = arith.constant 25 : index
    %c0_259 = arith.constant 0 : index
    %155 = vector.load %arg2[%c0_256, %c0_257, %c25_258, %c0_259] : memref<1x8x32x32xf32, #tpu.memory_space<vmem>>, vector<1x8x1x32xf32>
    %156 = vector.shape_cast %155 : vector<1x8x1x32xf32> to vector<8x32xf32>
    %c8_260 = arith.constant 8 : index
    %c885_261 = arith.constant 885 : index
    %157 = vector.load %arg5[%c8_260, %c885_261] : memref<16x1158xf32, #tpu.memory_space<vmem>>, vector<8x32xf32>
    tpu.vector_store %arg5[%c8_260, %c885_261], %156 {strides = array<i32>} : memref<16x1158xf32, #tpu.memory_space<vmem>>, vector<8x32xf32>,
    %c0_262 = arith.constant 0 : index
    %c0_263 = arith.constant 0 : index
    %c26 = arith.constant 26 : index
    %c0_264 = arith.constant 0 : index
    %158 = vector.load %arg1[%c0_262, %c0_263, %c26, %c0_264] : memref<1x8x32x32xf32, #tpu.memory_space<vmem>>, vector<1x8x1x32xf32>
    %159 = vector.shape_cast %158 : vector<1x8x1x32xf32> to vector<8x32xf32>
    %c0_265 = arith.constant 0 : index
    %c919 = arith.constant 919 : index
    %160 = vector.load %arg5[%c0_265, %c919] : memref<16x1158xf32, #tpu.memory_space<vmem>>, vector<8x32xf32>
    tpu.vector_store %arg5[%c0_265, %c919], %159 {strides = array<i32>} : memref<16x1158xf32, #tpu.memory_space<vmem>>, vector<8x32xf32>,
    %c0_266 = arith.constant 0 : index
    %c0_267 = arith.constant 0 : index
    %c26_268 = arith.constant 26 : index
    %c0_269 = arith.constant 0 : index
    %161 = vector.load %arg2[%c0_266, %c0_267, %c26_268, %c0_269] : memref<1x8x32x32xf32, #tpu.memory_space<vmem>>, vector<1x8x1x32xf32>
    %162 = vector.shape_cast %161 : vector<1x8x1x32xf32> to vector<8x32xf32>
    %c8_270 = arith.constant 8 : index
    %c919_271 = arith.constant 919 : index
    %163 = vector.load %arg5[%c8_270, %c919_271] : memref<16x1158xf32, #tpu.memory_space<vmem>>, vector<8x32xf32>
    tpu.vector_store %arg5[%c8_270, %c919_271], %162 {strides = array<i32>} : memref<16x1158xf32, #tpu.memory_space<vmem>>, vector<8x32xf32>,
    %c0_272 = arith.constant 0 : index
    %c0_273 = arith.constant 0 : index
    %c27 = arith.constant 27 : index
    %c0_274 = arith.constant 0 : index
    %164 = vector.load %arg1[%c0_272, %c0_273, %c27, %c0_274] : memref<1x8x32x32xf32, #tpu.memory_space<vmem>>, vector<1x8x1x32xf32>
    %165 = vector.shape_cast %164 : vector<1x8x1x32xf32> to vector<8x32xf32>
    %c0_275 = arith.constant 0 : index
    %c953 = arith.constant 953 : index
    %166 = vector.load %arg5[%c0_275, %c953] : memref<16x1158xf32, #tpu.memory_space<vmem>>, vector<8x32xf32>
    tpu.vector_store %arg5[%c0_275, %c953], %165 {strides = array<i32>} : memref<16x1158xf32, #tpu.memory_space<vmem>>, vector<8x32xf32>,
    %c0_276 = arith.constant 0 : index
    %c0_277 = arith.constant 0 : index
    %c27_278 = arith.constant 27 : index
    %c0_279 = arith.constant 0 : index
    %167 = vector.load %arg2[%c0_276, %c0_277, %c27_278, %c0_279] : memref<1x8x32x32xf32, #tpu.memory_space<vmem>>, vector<1x8x1x32xf32>
    %168 = vector.shape_cast %167 : vector<1x8x1x32xf32> to vector<8x32xf32>
    %c8_280 = arith.constant 8 : index
    %c953_281 = arith.constant 953 : index
    %169 = vector.load %arg5[%c8_280, %c953_281] : memref<16x1158xf32, #tpu.memory_space<vmem>>, vector<8x32xf32>
    tpu.vector_store %arg5[%c8_280, %c953_281], %168 {strides = array<i32>} : memref<16x1158xf32, #tpu.memory_space<vmem>>, vector<8x32xf32>,
    %c0_282 = arith.constant 0 : index
    %c0_283 = arith.constant 0 : index
    %c28 = arith.constant 28 : index
    %c0_284 = arith.constant 0 : index
    %170 = vector.load %arg1[%c0_282, %c0_283, %c28, %c0_284] : memref<1x8x32x32xf32, #tpu.memory_space<vmem>>, vector<1x8x1x32xf32>
    %171 = vector.shape_cast %170 : vector<1x8x1x32xf32> to vector<8x32xf32>
    %c0_285 = arith.constant 0 : index
    %c987 = arith.constant 987 : index
    %172 = vector.load %arg5[%c0_285, %c987] : memref<16x1158xf32, #tpu.memory_space<vmem>>, vector<8x32xf32>
    tpu.vector_store %arg5[%c0_285, %c987], %171 {strides = array<i32>} : memref<16x1158xf32, #tpu.memory_space<vmem>>, vector<8x32xf32>,
    %c0_286 = arith.constant 0 : index
    %c0_287 = arith.constant 0 : index
    %c28_288 = arith.constant 28 : index
    %c0_289 = arith.constant 0 : index
    %173 = vector.load %arg2[%c0_286, %c0_287, %c28_288, %c0_289] : memref<1x8x32x32xf32, #tpu.memory_space<vmem>>, vector<1x8x1x32xf32>
    %174 = vector.shape_cast %173 : vector<1x8x1x32xf32> to vector<8x32xf32>
    %c8_290 = arith.constant 8 : index
    %c987_291 = arith.constant 987 : index
    %175 = vector.load %arg5[%c8_290, %c987_291] : memref<16x1158xf32, #tpu.memory_space<vmem>>, vector<8x32xf32>
    tpu.vector_store %arg5[%c8_290, %c987_291], %174 {strides = array<i32>} : memref<16x1158xf32, #tpu.memory_space<vmem>>, vector<8x32xf32>,
    %c0_292 = arith.constant 0 : index
    %c0_293 = arith.constant 0 : index
    %c29 = arith.constant 29 : index
    %c0_294 = arith.constant 0 : index
    %176 = vector.load %arg1[%c0_292, %c0_293, %c29, %c0_294] : memref<1x8x32x32xf32, #tpu.memory_space<vmem>>, vector<1x8x1x32xf32>
    %177 = vector.shape_cast %176 : vector<1x8x1x32xf32> to vector<8x32xf32>
    %c0_295 = arith.constant 0 : index
    %c1021 = arith.constant 1021 : index
    %178 = vector.load %arg5[%c0_295, %c1021] : memref<16x1158xf32, #tpu.memory_space<vmem>>, vector<8x32xf32>
    tpu.vector_store %arg5[%c0_295, %c1021], %177 {strides = array<i32>} : memref<16x1158xf32, #tpu.memory_space<vmem>>, vector<8x32xf32>,
    %c0_296 = arith.constant 0 : index
    %c0_297 = arith.constant 0 : index
    %c29_298 = arith.constant 29 : index
    %c0_299 = arith.constant 0 : index
    %179 = vector.load %arg2[%c0_296, %c0_297, %c29_298, %c0_299] : memref<1x8x32x32xf32, #tpu.memory_space<vmem>>, vector<1x8x1x32xf32>
    %180 = vector.shape_cast %179 : vector<1x8x1x32xf32> to vector<8x32xf32>
    %c8_300 = arith.constant 8 : index
    %c1021_301 = arith.constant 1021 : index
    %181 = vector.load %arg5[%c8_300, %c1021_301] : memref<16x1158xf32, #tpu.memory_space<vmem>>, vector<8x32xf32>
    tpu.vector_store %arg5[%c8_300, %c1021_301], %180 {strides = array<i32>} : memref<16x1158xf32, #tpu.memory_space<vmem>>, vector<8x32xf32>,
    %c0_302 = arith.constant 0 : index
    %c0_303 = arith.constant 0 : index
    %c30 = arith.constant 30 : index
    %c0_304 = arith.constant 0 : index
    %182 = vector.load %arg1[%c0_302, %c0_303, %c30, %c0_304] : memref<1x8x32x32xf32, #tpu.memory_space<vmem>>, vector<1x8x1x32xf32>
    %183 = vector.shape_cast %182 : vector<1x8x1x32xf32> to vector<8x32xf32>
    %c0_305 = arith.constant 0 : index
    %c1055 = arith.constant 1055 : index
    %184 = vector.load %arg5[%c0_305, %c1055] : memref<16x1158xf32, #tpu.memory_space<vmem>>, vector<8x32xf32>
    tpu.vector_store %arg5[%c0_305, %c1055], %183 {strides = array<i32>} : memref<16x1158xf32, #tpu.memory_space<vmem>>, vector<8x32xf32>,
    %c0_306 = arith.constant 0 : index
    %c0_307 = arith.constant 0 : index
    %c30_308 = arith.constant 30 : index
    %c0_309 = arith.constant 0 : index
    %185 = vector.load %arg2[%c0_306, %c0_307, %c30_308, %c0_309] : memref<1x8x32x32xf32, #tpu.memory_space<vmem>>, vector<1x8x1x32xf32>
    %186 = vector.shape_cast %185 : vector<1x8x1x32xf32> to vector<8x32xf32>
    %c8_310 = arith.constant 8 : index
    %c1055_311 = arith.constant 1055 : index
    %187 = vector.load %arg5[%c8_310, %c1055_311] : memref<16x1158xf32, #tpu.memory_space<vmem>>, vector<8x32xf32>
    tpu.vector_store %arg5[%c8_310, %c1055_311], %186 {strides = array<i32>} : memref<16x1158xf32, #tpu.memory_space<vmem>>, vector<8x32xf32>,
    %c0_312 = arith.constant 0 : index
    %c0_313 = arith.constant 0 : index
    %c31 = arith.constant 31 : index
    %c0_314 = arith.constant 0 : index
    %188 = vector.load %arg1[%c0_312, %c0_313, %c31, %c0_314] : memref<1x8x32x32xf32, #tpu.memory_space<vmem>>, vector<1x8x1x32xf32>
    %189 = vector.shape_cast %188 : vector<1x8x1x32xf32> to vector<8x32xf32>
    %c0_315 = arith.constant 0 : index
    %c1089 = arith.constant 1089 : index
    %190 = vector.load %arg5[%c0_315, %c1089] : memref<16x1158xf32, #tpu.memory_space<vmem>>, vector<8x32xf32>
    tpu.vector_store %arg5[%c0_315, %c1089], %189 {strides = array<i32>} : memref<16x1158xf32, #tpu.memory_space<vmem>>, vector<8x32xf32>,
    %c0_316 = arith.constant 0 : index
    %c0_317 = arith.constant 0 : index
    %c31_318 = arith.constant 31 : index
    %c0_319 = arith.constant 0 : index
    %191 = vector.load %arg2[%c0_316, %c0_317, %c31_318, %c0_319] : memref<1x8x32x32xf32, #tpu.memory_space<vmem>>, vector<1x8x1x32xf32>
    %192 = vector.shape_cast %191 : vector<1x8x1x32xf32> to vector<8x32xf32>
    %c8_320 = arith.constant 8 : index
    %c1089_321 = arith.constant 1089 : index
    %193 = vector.load %arg5[%c8_320, %c1089_321] : memref<16x1158xf32, #tpu.memory_space<vmem>>, vector<8x32xf32>
    tpu.vector_store %arg5[%c8_320, %c1089_321], %192 {strides = array<i32>} : memref<16x1158xf32, #tpu.memory_space<vmem>>, vector<8x32xf32>,
    %cst_322 = arith.constant 0.000000e+00 : f32
    %194 = vector.broadcast %cst_322 : f32 to vector<2x1088xf32>
    %c0_323 = arith.constant 0 : index
    %c0_324 = arith.constant 0 : index
    %195 = vector.load %arg5[%c0_323, %c0_324] : memref<16x1158xf32, #tpu.memory_space<vmem>>, vector<16x1088xf32>
    %196 = arith.truncf %195 : vector<16x1088xf32> to vector<16x1088xbf16>
    %c0_325 = arith.constant 0 : index
    %c0_326 = arith.constant 0 : index
    %c0_327 = arith.constant 0 : index
    %197 = vector.load %arg3[%c0_325, %c0_326, %c0_327] : memref<9x2x16xf32, #tpu.memory_space<vmem>>, vector<1x2x16xf32>
    %198 = vector.shape_cast %197 : vector<1x2x16xf32> to vector<2x16xf32>
    %199 = arith.truncf %198 : vector<2x16xf32> to vector<2x16xbf16>
    %cst_328 = arith.constant dense<0.000000e+00> : vector<2x1088xf32>
    %200 = tpu.matmul %199, %196, %cst_328 {dimension_numbers = #tpu.dot_dimension_numbers<[1], [0], [0], [1], [0, 0, 1, 1], [], []>} : vector<2x16xbf16>, vector<16x1088xbf16>, vector<2x1088xf32> -> vector<2x1088xf32>
    %201 = arith.addf %194, %200 : vector<2x1088xf32>
    %c0_329 = arith.constant 0 : index
    %c1_330 = arith.constant 1 : index
    %202 = vector.load %arg5[%c0_329, %c1_330] : memref<16x1158xf32, #tpu.memory_space<vmem>>, vector<16x1088xf32>
    %203 = arith.truncf %202 : vector<16x1088xf32> to vector<16x1088xbf16>
    %c1_331 = arith.constant 1 : index
    %c0_332 = arith.constant 0 : index
    %c0_333 = arith.constant 0 : index
    %204 = vector.load %arg3[%c1_331, %c0_332, %c0_333] : memref<9x2x16xf32, #tpu.memory_space<vmem>>, vector<1x2x16xf32>
    %205 = vector.shape_cast %204 : vector<1x2x16xf32> to vector<2x16xf32>
    %206 = arith.truncf %205 : vector<2x16xf32> to vector<2x16xbf16>
    %cst_334 = arith.constant dense<0.000000e+00> : vector<2x1088xf32>
    %207 = tpu.matmul %206, %203, %cst_334 {dimension_numbers = #tpu.dot_dimension_numbers<[1], [0], [0], [1], [0, 0, 1, 1], [], []>} : vector<2x16xbf16>, vector<16x1088xbf16>, vector<2x1088xf32> -> vector<2x1088xf32>
    %208 = arith.addf %201, %207 : vector<2x1088xf32>
    %c0_335 = arith.constant 0 : index
    %c2_336 = arith.constant 2 : index
    %209 = vector.load %arg5[%c0_335, %c2_336] : memref<16x1158xf32, #tpu.memory_space<vmem>>, vector<16x1088xf32>
    %210 = arith.truncf %209 : vector<16x1088xf32> to vector<16x1088xbf16>
    %c2_337 = arith.constant 2 : index
    %c0_338 = arith.constant 0 : index
    %c0_339 = arith.constant 0 : index
    %211 = vector.load %arg3[%c2_337, %c0_338, %c0_339] : memref<9x2x16xf32, #tpu.memory_space<vmem>>, vector<1x2x16xf32>
    %212 = vector.shape_cast %211 : vector<1x2x16xf32> to vector<2x16xf32>
    %213 = arith.truncf %212 : vector<2x16xf32> to vector<2x16xbf16>
    %cst_340 = arith.constant dense<0.000000e+00> : vector<2x1088xf32>
    %214 = tpu.matmul %213, %210, %cst_340 {dimension_numbers = #tpu.dot_dimension_numbers<[1], [0], [0], [1], [0, 0, 1, 1], [], []>} : vector<2x16xbf16>, vector<16x1088xbf16>, vector<2x1088xf32> -> vector<2x1088xf32>
    %215 = arith.addf %208, %214 : vector<2x1088xf32>
    %c0_341 = arith.constant 0 : index
    %c34 = arith.constant 34 : index
    %216 = vector.load %arg5[%c0_341, %c34] : memref<16x1158xf32, #tpu.memory_space<vmem>>, vector<16x1088xf32>
    %217 = arith.truncf %216 : vector<16x1088xf32> to vector<16x1088xbf16>
    %c3_342 = arith.constant 3 : index
    %c0_343 = arith.constant 0 : index
    %c0_344 = arith.constant 0 : index
    %218 = vector.load %arg3[%c3_342, %c0_343, %c0_344] : memref<9x2x16xf32, #tpu.memory_space<vmem>>, vector<1x2x16xf32>
    %219 = vector.shape_cast %218 : vector<1x2x16xf32> to vector<2x16xf32>
    %220 = arith.truncf %219 : vector<2x16xf32> to vector<2x16xbf16>
    %cst_345 = arith.constant dense<0.000000e+00> : vector<2x1088xf32>
    %221 = tpu.matmul %220, %217, %cst_345 {dimension_numbers = #tpu.dot_dimension_numbers<[1], [0], [0], [1], [0, 0, 1, 1], [], []>} : vector<2x16xbf16>, vector<16x1088xbf16>, vector<2x1088xf32> -> vector<2x1088xf32>
    %222 = arith.addf %215, %221 : vector<2x1088xf32>
    %c0_346 = arith.constant 0 : index
    %c35_347 = arith.constant 35 : index
    %223 = vector.load %arg5[%c0_346, %c35_347] : memref<16x1158xf32, #tpu.memory_space<vmem>>, vector<16x1088xf32>
    %224 = arith.truncf %223 : vector<16x1088xf32> to vector<16x1088xbf16>
    %c4_348 = arith.constant 4 : index
    %c0_349 = arith.constant 0 : index
    %c0_350 = arith.constant 0 : index
    %225 = vector.load %arg3[%c4_348, %c0_349, %c0_350] : memref<9x2x16xf32, #tpu.memory_space<vmem>>, vector<1x2x16xf32>
    %226 = vector.shape_cast %225 : vector<1x2x16xf32> to vector<2x16xf32>
    %227 = arith.truncf %226 : vector<2x16xf32> to vector<2x16xbf16>
    %cst_351 = arith.constant dense<0.000000e+00> : vector<2x1088xf32>
    %228 = tpu.matmul %227, %224, %cst_351 {dimension_numbers = #tpu.dot_dimension_numbers<[1], [0], [0], [1], [0, 0, 1, 1], [], []>} : vector<2x16xbf16>, vector<16x1088xbf16>, vector<2x1088xf32> -> vector<2x1088xf32>
    %229 = arith.addf %222, %228 : vector<2x1088xf32>
    %c0_352 = arith.constant 0 : index
    %c36 = arith.constant 36 : index
    %230 = vector.load %arg5[%c0_352, %c36] : memref<16x1158xf32, #tpu.memory_space<vmem>>, vector<16x1088xf32>
    %231 = arith.truncf %230 : vector<16x1088xf32> to vector<16x1088xbf16>
    %c5_353 = arith.constant 5 : index
    %c0_354 = arith.constant 0 : index
    %c0_355 = arith.constant 0 : index
    %232 = vector.load %arg3[%c5_353, %c0_354, %c0_355] : memref<9x2x16xf32, #tpu.memory_space<vmem>>, vector<1x2x16xf32>
    %233 = vector.shape_cast %232 : vector<1x2x16xf32> to vector<2x16xf32>
    %234 = arith.truncf %233 : vector<2x16xf32> to vector<2x16xbf16>
    %cst_356 = arith.constant dense<0.000000e+00> : vector<2x1088xf32>
    %235 = tpu.matmul %234, %231, %cst_356 {dimension_numbers = #tpu.dot_dimension_numbers<[1], [0], [0], [1], [0, 0, 1, 1], [], []>} : vector<2x16xbf16>, vector<16x1088xbf16>, vector<2x1088xf32> -> vector<2x1088xf32>
    %236 = arith.addf %229, %235 : vector<2x1088xf32>
    %c0_357 = arith.constant 0 : index
    %c68 = arith.constant 68 : index
    %237 = vector.load %arg5[%c0_357, %c68] : memref<16x1158xf32, #tpu.memory_space<vmem>>, vector<16x1088xf32>
    %238 = arith.truncf %237 : vector<16x1088xf32> to vector<16x1088xbf16>
    %c6_358 = arith.constant 6 : index
    %c0_359 = arith.constant 0 : index
    %c0_360 = arith.constant 0 : index
    %239 = vector.load %arg3[%c6_358, %c0_359, %c0_360] : memref<9x2x16xf32, #tpu.memory_space<vmem>>, vector<1x2x16xf32>
    %240 = vector.shape_cast %239 : vector<1x2x16xf32> to vector<2x16xf32>
    %241 = arith.truncf %240 : vector<2x16xf32> to vector<2x16xbf16>
    %cst_361 = arith.constant dense<0.000000e+00> : vector<2x1088xf32>
    %242 = tpu.matmul %241, %238, %cst_361 {dimension_numbers = #tpu.dot_dimension_numbers<[1], [0], [0], [1], [0, 0, 1, 1], [], []>} : vector<2x16xbf16>, vector<16x1088xbf16>, vector<2x1088xf32> -> vector<2x1088xf32>
    %243 = arith.addf %236, %242 : vector<2x1088xf32>
    %c0_362 = arith.constant 0 : index
    %c69_363 = arith.constant 69 : index
    %244 = vector.load %arg5[%c0_362, %c69_363] : memref<16x1158xf32, #tpu.memory_space<vmem>>, vector<16x1088xf32>
    %245 = arith.truncf %244 : vector<16x1088xf32> to vector<16x1088xbf16>
    %c7_364 = arith.constant 7 : index
    %c0_365 = arith.constant 0 : index
    %c0_366 = arith.constant 0 : index
    %246 = vector.load %arg3[%c7_364, %c0_365, %c0_366] : memref<9x2x16xf32, #tpu.memory_space<vmem>>, vector<1x2x16xf32>
    %247 = vector.shape_cast %246 : vector<1x2x16xf32> to vector<2x16xf32>
    %248 = arith.truncf %247 : vector<2x16xf32> to vector<2x16xbf16>
    %cst_367 = arith.constant dense<0.000000e+00> : vector<2x1088xf32>
    %249 = tpu.matmul %248, %245, %cst_367 {dimension_numbers = #tpu.dot_dimension_numbers<[1], [0], [0], [1], [0, 0, 1, 1], [], []>} : vector<2x16xbf16>, vector<16x1088xbf16>, vector<2x1088xf32> -> vector<2x1088xf32>
    %250 = arith.addf %243, %249 : vector<2x1088xf32>
    %c0_368 = arith.constant 0 : index
    %c70 = arith.constant 70 : index
    %251 = vector.load %arg5[%c0_368, %c70] : memref<16x1158xf32, #tpu.memory_space<vmem>>, vector<16x1088xf32>
    %252 = arith.truncf %251 : vector<16x1088xf32> to vector<16x1088xbf16>
    %c8_369 = arith.constant 8 : index
    %c0_370 = arith.constant 0 : index
    %c0_371 = arith.constant 0 : index
    %253 = vector.load %arg3[%c8_369, %c0_370, %c0_371] : memref<9x2x16xf32, #tpu.memory_space<vmem>>, vector<1x2x16xf32>
    %254 = vector.shape_cast %253 : vector<1x2x16xf32> to vector<2x16xf32>
    %255 = arith.truncf %254 : vector<2x16xf32> to vector<2x16xbf16>
    %cst_372 = arith.constant dense<0.000000e+00> : vector<2x1088xf32>
    %256 = tpu.matmul %255, %252, %cst_372 {dimension_numbers = #tpu.dot_dimension_numbers<[1], [0], [0], [1], [0, 0, 1, 1], [], []>} : vector<2x16xbf16>, vector<16x1088xbf16>, vector<2x1088xf32> -> vector<2x1088xf32>
    %257 = arith.addf %250, %256 : vector<2x1088xf32>
    %c0_373 = arith.constant 0 : index
    %c0_374 = arith.constant 0 : index
    %c0_375 = arith.constant 0 : index
    %258 = vector.load %arg4[%c0_373, %c0_374, %c0_375] : memref<1x2x1088xf32, #tpu.memory_space<vmem>>, vector<1x2x1088xf32>
    %259 = vector.shape_cast %258 : vector<1x2x1088xf32> to vector<2x1088xf32>
    %260 = vector.shape_cast %257 : vector<2x1088xf32> to vector<1x2x1088xf32>
    tpu.vector_store %arg4[%c0_373, %c0_374, %c0_375], %260 {strides = array<i32>} : memref<1x2x1088xf32, #tpu.memory_space<vmem>>, vector<1x2x1088xf32>,
    return
  }
  func.func @transform_0(%arg0: i32) -> (i32, i32, i32, i32) {
    %c0_i32 = arith.constant 0 : i32
    %c0_i32_0 = arith.constant 0 : i32
    %c0_i32_1 = arith.constant 0 : i32
    %c0_i32_2 = arith.constant 0 : i32
    return %arg0, %c0_i32, %c0_i32_0, %c0_i32_1 : i32, i32, i32, i32
  }
  func.func @transform_1(%arg0: i32) -> (i32, i32, i32, i32) {
    %c0_i32 = arith.constant 0 : i32
    %c0_i32_0 = arith.constant 0 : i32
    %c0_i32_1 = arith.constant 0 : i32
    %c0_i32_2 = arith.constant 0 : i32
    return %arg0, %c0_i32, %c0_i32_0, %c0_i32_1 : i32, i32, i32, i32
  }
  func.func @transform_2(%arg0: i32) -> (i32, i32, i32) {
    %c0_i32 = arith.constant 0 : i32
    %c0_i32_0 = arith.constant 0 : i32
    %c0_i32_1 = arith.constant 0 : i32
    %c0_i32_2 = arith.constant 0 : i32
    return %c0_i32, %c0_i32_0, %c0_i32_1 : i32, i32, i32
  }
  func.func @transform_3(%arg0: i32) -> (i32, i32, i32) {
    %c0_i32 = arith.constant 0 : i32
    %c0_i32_0 = arith.constant 0 : i32
    %c0_i32_1 = arith.constant 0 : i32
    return %arg0, %c0_i32, %c0_i32_0 : i32, i32, i32
  }
}

module attributes {stable_mosaic.version = 11 : i64} {
  func.func @kernel(%arg0: i32, %arg1: i32, %arg2: memref<1x4x16x16xf32, #tpu.memory_space<vmem>>, %arg3: memref<1x2x512xf32, #tpu.memory_space<vmem>>, %arg4: memref<1x4x512xf32, #tpu.memory_space<vmem>>) attributes {dimension_semantics = [#tpu.dimension_semantics<parallel>, #tpu.dimension_semantics<parallel>], iteration_bounds = array<i64: 2, 2>, scalar_prefetch = 0 : i64, scratch_operands = 0 : i64, tpu.core_type = #tpu.core_type<tc>, window_params = [{transform_indices = @transform_0, window_bounds = array<i64: 1, 4, 16, 16>}, {transform_indices = @transform_1, window_bounds = array<i64: 1, 2, 512>}, {transform_indices = @transform_2, window_bounds = array<i64: 1, 4, 512>}]} {
    %c0 = arith.constant 0 : index
    %c0_0 = arith.constant 0 : index
    %c0_1 = arith.constant 0 : index
    %0 = vector.load %arg3[%c0, %c0_0, %c0_1] : memref<1x2x512xf32, #tpu.memory_space<vmem>>, vector<1x2x512xf32>
    %1 = vector.shape_cast %0 : vector<1x2x512xf32> to vector<2x512xf32>
    %2 = vector.extract_strided_slice %1 {offsets = [0, 0], sizes = [1, 512], strides = [1, 1]} : vector<2x512xf32> to vector<1x512xf32>
    %3 = vector.extract_strided_slice %1 {offsets = [1, 0], sizes = [1, 512], strides = [1, 1]} : vector<2x512xf32> to vector<1x512xf32>
    %c512_i32 = arith.constant 512 : i32
    %4 = arith.muli %arg1, %c512_i32 : i32
    %5 = tpu.iota {dimensions = array<i32: 1>} : vector<1x512xi32>
    %6 = vector.broadcast %4 : i32 to vector<1x512xi32>
    %7 = arith.addi %6, %5 : vector<1x512xi32>
    %8 = arith.sitofp %7 : vector<1x512xi32> to vector<1x512xf32>
    %cst = arith.constant 3.200000e+01 : f32
    %9 = vector.broadcast %cst : f32 to vector<1x512xf32>
    %10 = arith.divf %8, %9 : vector<1x512xf32>
    %11 = math.floor %10 : vector<1x512xf32>
    %cst_2 = arith.constant 3.200000e+01 : f32
    %12 = vector.broadcast %cst_2 : f32 to vector<1x512xf32>
    %13 = arith.mulf %11, %12 : vector<1x512xf32>
    %14 = arith.subf %8, %13 : vector<1x512xf32>
    %cst_3 = arith.constant 2.000000e+00 : f32
    %15 = vector.broadcast %cst_3 : f32 to vector<1x512xf32>
    %16 = arith.mulf %15, %14 : vector<1x512xf32>
    %cst_4 = arith.constant 3.100000e+01 : f32
    %17 = vector.broadcast %cst_4 : f32 to vector<1x512xf32>
    %18 = arith.divf %16, %17 : vector<1x512xf32>
    %cst_5 = arith.constant -1.000000e+00 : f32
    %19 = vector.broadcast %cst_5 : f32 to vector<1x512xf32>
    %20 = arith.addf %19, %18 : vector<1x512xf32>
    %cst_6 = arith.constant 3.200000e+01 : f32
    %21 = vector.broadcast %cst_6 : f32 to vector<1x512xf32>
    %22 = arith.divf %2, %21 : vector<1x512xf32>
    %23 = arith.addf %20, %22 : vector<1x512xf32>
    %cst_7 = arith.constant 2.000000e+00 : f32
    %24 = vector.broadcast %cst_7 : f32 to vector<1x512xf32>
    %25 = arith.mulf %24, %11 : vector<1x512xf32>
    %cst_8 = arith.constant 3.100000e+01 : f32
    %26 = vector.broadcast %cst_8 : f32 to vector<1x512xf32>
    %27 = arith.divf %25, %26 : vector<1x512xf32>
    %cst_9 = arith.constant -1.000000e+00 : f32
    %28 = vector.broadcast %cst_9 : f32 to vector<1x512xf32>
    %29 = arith.addf %28, %27 : vector<1x512xf32>
    %cst_10 = arith.constant 3.200000e+01 : f32
    %30 = vector.broadcast %cst_10 : f32 to vector<1x512xf32>
    %31 = arith.divf %3, %30 : vector<1x512xf32>
    %32 = arith.addf %29, %31 : vector<1x512xf32>
    %cst_11 = arith.constant 1.000000e+00 : f32
    %33 = vector.broadcast %cst_11 : f32 to vector<1x512xf32>
    %34 = arith.addf %23, %33 : vector<1x512xf32>
    %cst_12 = arith.constant 5.000000e-01 : f32
    %35 = vector.broadcast %cst_12 : f32 to vector<1x512xf32>
    %36 = arith.mulf %34, %35 : vector<1x512xf32>
    %cst_13 = arith.constant 1.500000e+01 : f32
    %37 = vector.broadcast %cst_13 : f32 to vector<1x512xf32>
    %38 = arith.mulf %36, %37 : vector<1x512xf32>
    %cst_14 = arith.constant 1.000000e+00 : f32
    %39 = vector.broadcast %cst_14 : f32 to vector<1x512xf32>
    %40 = arith.addf %32, %39 : vector<1x512xf32>
    %cst_15 = arith.constant 5.000000e-01 : f32
    %41 = vector.broadcast %cst_15 : f32 to vector<1x512xf32>
    %42 = arith.mulf %40, %41 : vector<1x512xf32>
    %cst_16 = arith.constant 1.500000e+01 : f32
    %43 = vector.broadcast %cst_16 : f32 to vector<1x512xf32>
    %44 = arith.mulf %42, %43 : vector<1x512xf32>
    %45 = math.floor %38 : vector<1x512xf32>
    %46 = math.floor %44 : vector<1x512xf32>
    %47 = arith.subf %38, %45 : vector<1x512xf32>
    %48 = arith.subf %44, %46 : vector<1x512xf32>
    %49 = tpu.iota {dimensions = array<i32: 0>} : vector<16x512xi32>
    %50 = arith.sitofp %49 : vector<16x512xi32> to vector<16x512xf32>
    %51 = tpu.iota {dimensions = array<i32: 0>} : vector<16x512xi32>
    %52 = arith.sitofp %51 : vector<16x512xi32> to vector<16x512xf32>
    %53 = vector.broadcast %46 : vector<1x512xf32> to vector<16x512xf32>
    %54 = arith.cmpf oeq, %50, %53 : vector<16x512xf32>
    %cst_17 = arith.constant 1.000000e+00 : f32
    %55 = vector.broadcast %cst_17 : f32 to vector<1x512xf32>
    %56 = arith.subf %55, %48 : vector<1x512xf32>
    %cst_18 = arith.constant 0.000000e+00 : f32
    %57 = vector.shape_cast %56 : vector<1x512xf32> to vector<1x512xf32>
    %58 = vector.broadcast %57 : vector<1x512xf32> to vector<16x512xf32>
    %59 = vector.broadcast %cst_18 : f32 to vector<16x512xf32>
    %60 = arith.select %54, %58, %59 : vector<16x512xi1>, vector<16x512xf32>
    %cst_19 = arith.constant 1.000000e+00 : f32
    %61 = vector.broadcast %cst_19 : f32 to vector<1x512xf32>
    %62 = arith.addf %46, %61 : vector<1x512xf32>
    %63 = vector.broadcast %62 : vector<1x512xf32> to vector<16x512xf32>
    %64 = arith.cmpf oeq, %50, %63 : vector<16x512xf32>
    %cst_20 = arith.constant 0.000000e+00 : f32
    %65 = vector.shape_cast %48 : vector<1x512xf32> to vector<1x512xf32>
    %66 = vector.broadcast %65 : vector<1x512xf32> to vector<16x512xf32>
    %67 = vector.broadcast %cst_20 : f32 to vector<16x512xf32>
    %68 = arith.select %64, %66, %67 : vector<16x512xi1>, vector<16x512xf32>
    %69 = arith.addf %60, %68 : vector<16x512xf32>
    %70 = vector.broadcast %45 : vector<1x512xf32> to vector<16x512xf32>
    %71 = arith.cmpf oeq, %52, %70 : vector<16x512xf32>
    %cst_21 = arith.constant 1.000000e+00 : f32
    %72 = vector.broadcast %cst_21 : f32 to vector<1x512xf32>
    %73 = arith.subf %72, %47 : vector<1x512xf32>
    %cst_22 = arith.constant 0.000000e+00 : f32
    %74 = vector.shape_cast %73 : vector<1x512xf32> to vector<1x512xf32>
    %75 = vector.broadcast %74 : vector<1x512xf32> to vector<16x512xf32>
    %76 = vector.broadcast %cst_22 : f32 to vector<16x512xf32>
    %77 = arith.select %71, %75, %76 : vector<16x512xi1>, vector<16x512xf32>
    %cst_23 = arith.constant 1.000000e+00 : f32
    %78 = vector.broadcast %cst_23 : f32 to vector<1x512xf32>
    %79 = arith.addf %45, %78 : vector<1x512xf32>
    %80 = vector.broadcast %79 : vector<1x512xf32> to vector<16x512xf32>
    %81 = arith.cmpf oeq, %52, %80 : vector<16x512xf32>
    %cst_24 = arith.constant 0.000000e+00 : f32
    %82 = vector.shape_cast %47 : vector<1x512xf32> to vector<1x512xf32>
    %83 = vector.broadcast %82 : vector<1x512xf32> to vector<16x512xf32>
    %84 = vector.broadcast %cst_24 : f32 to vector<16x512xf32>
    %85 = arith.select %81, %83, %84 : vector<16x512xi1>, vector<16x512xf32>
    %86 = arith.addf %77, %85 : vector<16x512xf32>
    %c0_25 = arith.constant 0 : index
    %c0_26 = arith.constant 0 : index
    %c0_27 = arith.constant 0 : index
    %c0_28 = arith.constant 0 : index
    %87 = vector.load %arg2[%c0_25, %c0_26, %c0_27, %c0_28] : memref<1x4x16x16xf32, #tpu.memory_space<vmem>>, vector<1x4x16x16xf32>
    %88 = vector.shape_cast %87 : vector<1x4x16x16xf32> to vector<4x16x16xf32>
    %89 = arith.truncf %88 : vector<4x16x16xf32> to vector<4x16x16xbf16>
    %90 = arith.truncf %69 : vector<16x512xf32> to vector<16x512xbf16>
    %91 = vector.shape_cast %90 : vector<16x512xbf16> to vector<1x16x512xbf16>
    %92 = vector.shape_cast %91 : vector<1x16x512xbf16> to vector<1x16x512xbf16>
    %93 = vector.broadcast %92 : vector<1x16x512xbf16> to vector<4x16x512xbf16>
    "tpu.trace_start"() <{level = 10 : i32, message = "cwh,chp->cwp"}> : () -> ()
    %cst_29 = arith.constant dense<0.000000e+00> : vector<4x16x512xf32>
    %94 = tpu.matmul %89, %93, %cst_29 {dimension_numbers = #tpu.dot_dimension_numbers<[2], [1], [1], [2], [0, 0, 0, 1, 1, 2], [0], [0]>} : vector<4x16x16xbf16>, vector<4x16x512xbf16>, vector<4x16x512xf32> -> vector<4x16x512xf32>
    "tpu.trace_stop"() : () -> ()
    %95 = vector.shape_cast %86 : vector<16x512xf32> to vector<1x16x512xf32>
    %96 = vector.broadcast %95 : vector<1x16x512xf32> to vector<4x16x512xf32>
    %97 = arith.mulf %94, %96 : vector<4x16x512xf32>
    %cst_30 = arith.constant dense<0.000000e+00> : vector<4x512xf32>
    %98 = vector.multi_reduction <add>, %97, %cst_30 [1] : vector<4x16x512xf32> to vector<4x512xf32>
    %c0_31 = arith.constant 0 : index
    %c0_32 = arith.constant 0 : index
    %c0_33 = arith.constant 0 : index
    %99 = vector.load %arg4[%c0_31, %c0_32, %c0_33] : memref<1x4x512xf32, #tpu.memory_space<vmem>>, vector<1x4x512xf32>
    %100 = vector.shape_cast %99 : vector<1x4x512xf32> to vector<4x512xf32>
    %101 = vector.shape_cast %98 : vector<4x512xf32> to vector<1x4x512xf32>
    tpu.vector_store %arg4[%c0_31, %c0_32, %c0_33], %101 {strides = array<i32>} : memref<1x4x512xf32, #tpu.memory_space<vmem>>, vector<1x4x512xf32>,
    return
  }
  func.func @transform_0(%arg0: i32, %arg1: i32) -> (i32, i32, i32, i32) {
    %c0_i32 = arith.constant 0 : i32
    %c0_i32_0 = arith.constant 0 : i32
    %c0_i32_1 = arith.constant 0 : i32
    %c0_i32_2 = arith.constant 0 : i32
    return %arg0, %c0_i32, %c0_i32_0, %c0_i32_1 : i32, i32, i32, i32
  }
  func.func @transform_1(%arg0: i32, %arg1: i32) -> (i32, i32, i32) {
    %c0_i32 = arith.constant 0 : i32
    %c0_i32_0 = arith.constant 0 : i32
    return %arg0, %c0_i32, %arg1 : i32, i32, i32
  }
  func.func @transform_2(%arg0: i32, %arg1: i32) -> (i32, i32, i32) {
    %c0_i32 = arith.constant 0 : i32
    %c0_i32_0 = arith.constant 0 : i32
    return %arg0, %c0_i32, %arg1 : i32, i32, i32
  }
}

</mosaic_0001>

<bundles_post_ra>
// kernel: align_module_forward.6
= control target key start
LH: loop header
LB: loop body
LE: loop exit
PB: predicated region body
PF: predicated region fallthrough
CT: control target
= control target key end

     0   :  { %s414_s9 = smov 0   ;;  %s416_s10 = smov 0   ;;  %s450_s0 = inlined_call_operand.vmem [shape: f32[2,4,256], index: 0, kind: input, shape index: {}]   ;;  %s451_s1 = inlined_call_operand.vmem [shape: f32[8,4], index: 1, kind: input, shape index: {}]   ;;  %s452_s2 = inlined_call_operand.vmem [shape: f32[2,8,256], index: 2, kind: output, shape index: {}]  }
   0x1   :  { %s418_s11 = smov 0  }
   0x2 LB: > { %s24_s12 = sadd.s32 1, %s392_s10  ;;  %p337_p0 = scmp.ge.s32.totalorder %s396_s11, 1  ;;  %s396_s11 = sphi %s418_s11, %s12_s11   ;;  %s392_s10 = sphi %s416_s10, %s454_s10   ;;  %s388_s9 = sphi %s414_s9, %s453_s9  }
   0x3   : > { %p26_p1 = scmp.ge.s32.totalorder %s24_s12, 2  ;;  %p133_p2 = scmp.lt.s32.totalorder %s396_s11, 3 }
   0x5   : > { %s456_s12 = smov (%p26_p1, %s24_s12), 0  ;;  %p134_p3 = pnand %p337_p0, %p133_p2 }
   0x6   : > { %p164_p4 = scmp.lt.s32.totalorder (!%p134_p3), %s388_s9, 1  ;;  %v398_v0 = vmov (!%p134_p3), 0   ;;  %vm196_vm0 = vcmask (!%p134_p3), 1041408   ;;  %v184_v4 = vld [vmem:[%s451_s1] sm:$0xff] (!%p134_p3)  ;;  %vm192_vm1 = vcmask (!%p134_p3), 31744  }
   0x7   : > { %137 = sbr.rel (%p134_p3) target bundleno = 241 (0xf1), region = 28  ;;  %235 = vmatprep.mubr.bf16.mxu0 (!%p134_p3), %v398_v0  ;;  %v185_v7 = vpack.c.bf16 (!%p134_p3), %v184_v4, %v184_v4 }
   0xe   : > { %s458_s9 = smov (!%p164_p4, %s388_s9), 1 }
   0xf   : > { %s346_s13 = sshll.u32 %s458_s9, 3  ;;  %s347_s19 = sshll.u32 %s458_s9, 4 }
  0x10   : > { %s171_s16 = scalar_lea.vmem %s450_s0, %s346_s13  ;;  %s181_s22 = scalar_lea.vmem %s452_s2, %s347_s19 }
  0x11   : > { %v186_v1 = vld [vmem:[%s171_s16] sm:$0xff] }
  0x12   : > { %v188_v2 = vcombine.high %v186_v1, %v186_v1  ;;  %v190_v3 = vpack.c.bf16 %v186_v1, %v186_v1 }
  0x14   : > { %v191_v5 = vpack.c.bf16 %v188_v2, %v188_v2  ;;  %v198_v6 = vsel %vm196_vm0, %v190_v3, 0 }
  0x16   : > { %342 = vmatprep.subr.msk.bf16.mxu0 %vm196_vm0, %v191_v5 }
  0x17   : > { %204 = vmatpush1.bf16.msra.mxu0 %v198_v6 }
  0x1a   : > { %343 = vmatmul.mubr.msk.bf16.vlgmr.msra.gmra.mrb[0].mxu0 %vm192_vm1, %v185_v7 }
  0xed   : > { %v237_v8 = vpop.f32.mrb[0].mxu0 }
  0xee   : > { %244 = vst [vmem:[%s181_s22] sm:$0xff] %v237_v8  ;;  %v239_v9 = vpop.f32.mrb[1].mxu0 }
  0xef   : > { %245 = vst [vmem:[%s181_s22 + $0x8] sm:$0xff] %v239_v9  ;;  %v241_v10 = vpop.f32.mrb[2].mxu0 }
  0xf0   : > { %v242_v11 = vpop.f32.mrb[3].mxu0 }
  0xf1 PF: > { %s12_s11 = sadd.s32 1, %s396_s11   ;;  %s453_s9 = smov %s392_s10 }
  0xf2   : > { %p9_p5 = scmp.ge.s32.totalorder %s12_s11, 4   ;;  %s454_s10 = smov %s456_s12 }
  0xf4   :  { %11 = sbr.rel (!%p9_p5) target bundleno = 2 (0x2), region = 58 }

// kernel: align_module_forward.5
= control target key start
LH: loop header
LB: loop body
LE: loop exit
PB: predicated region body
PF: predicated region fallthrough
CT: control target
= control target key end

     0   :  { %s507_s9 = smov 0   ;;  %s509_s10 = smov 0   ;;  %s561_s0 = inlined_call_operand.vmem [shape: f32[2,4,1024], index: 0, kind: input, shape index: {}]   ;;  %s562_s1 = inlined_call_operand.vmem [shape: f32[8,4], index: 1, kind: input, shape index: {}]   ;;  %s563_s2 = inlined_call_operand.vmem [shape: f32[2,8,1024], index: 2, kind: output, shape index: {}]  }
   0x1   :  { %s511_s11 = smov 0   ;;  %s513_s12 = smov 0  }
   0x2   :  { %s515_s13 = smov 0  }
   0x3 LB: > { %s21_s14 = sadd.s32 1, %s481_s11  ;;  %s24_s15 = sadd.s32 1, %s485_s12  ;;  %s489_s13 = sphi %s515_s13, %s12_s13   ;;  %s485_s12 = sphi %s513_s12, %s567_s12   ;;  %s481_s11 = sphi %s511_s11, %s566_s11   ;;  %s477_s10 = sphi %s509_s10, %s565_s10   ;;  %s473_s9 = sphi %s507_s9, %s564_s9  }
   0x4   : > { %p22_p0 = scmp.ge.s32.totalorder %s21_s14, 2  ;;  %p395_p1 = scmp.ge.s32.totalorder %s489_s13, 1 }
   0x5   : > { %p133_p2 = scmp.lt.s32.totalorder %s489_s13, 5 }
   0x6   : > { %s569_s14 = smov (%p22_p0, %s21_s14), 0  ;;  %s571_s15 = smov (!%p22_p0, %s24_s15), %s485_s12 }
   0x7   : > { %p134_p3 = pnand %p395_p1, %p133_p2  ;;  %p26_p4 = scmp.ge.s32.totalorder %s571_s15, 2 }
   0x8   : > { %s396_s16 = sshll.u32 (!%p134_p3), %s473_s9, 2  ;;  %p164_p5 = scmp.lt.s32.totalorder (!%p134_p3), %s477_s10, 1  ;;  %v491_v0 = vmov (!%p134_p3), 0   ;;  %vm202_vm0 = vcmask (!%p134_p3), 1041408   ;;  %v184_v7 = vld [vmem:[%s562_s1] sm:$0xff] (!%p134_p3)  ;;  %vm198_vm1 = vcmask (!%p134_p3), 31744  }
   0x9   : > { %s573_s15 = smov (%p26_p4, %s571_s15), 0  ;;  %137 = sbr.rel (%p134_p3) target bundleno = 245 (0xf5), region = 28 }
   0xa   : > { %p166_p6 = scmp.lt.s32.totalorder (!%p134_p3), %s396_s16, 7  ;;  %247 = vmatprep.mubr.bf16.mxu0 (!%p134_p3), %v491_v0  ;;  %288 = vmatprep.mubr.bf16.mxu1 (!%p134_p3), %v491_v0  ;;  %v185_v12 = vpack.c.bf16 (!%p134_p3), %v184_v7, %v184_v7 }
  0x10   : > { %s575_s10 = smov (!%p164_p5, %s477_s10), 1  ;;  %s577_s16 = smov (!%p166_p6, %s396_s16), 7 }
  0x11   : > { %s397_s17 = sshll.u32 %s575_s10, 3 }
  0x12   : > { %s169_s18 = sadd.s32 %s397_s17, %s577_s16 }
  0x13   : > { %s398_s19 = sshll.u32 %s169_s18, 2  ;;  %s401_s25 = sshll.u32 %s169_s18, 3 }
  0x14   : > { %s171_s22 = scalar_lea.vmem %s561_s0, %s398_s19  ;;  %s181_s28 = scalar_lea.vmem %s563_s2, %s401_s25 }
  0x15   : > { %v186_v1 = vld [vmem:[%s171_s22] sm:$0xff]  ;;  %v187_v2 = vld [vmem:[%s171_s22 + $0x8] sm:$0xff] }
  0x16   : > { %v190_v3 = vcombine.high %v186_v1, %v186_v1  ;;  %v191_v4 = vcombine.high %v187_v2, %v187_v2  ;;  %v194_v5 = vpack.c.bf16 %v186_v1, %v186_v1  ;;  %v196_v6 = vpack.c.bf16 %v187_v2, %v187_v2 }
  0x18   : > { %v195_v8 = vpack.c.bf16 %v190_v3, %v190_v3  ;;  %v197_v9 = vpack.c.bf16 %v191_v4, %v191_v4  ;;  %v204_v10 = vsel %vm202_vm0, %v194_v5, 0  ;;  %v210_v11 = vsel %vm202_vm0, %v196_v6, 0 }
  0x1a   : > { %402 = vmatprep.subr.msk.bf16.mxu0 %vm202_vm0, %v195_v8  ;;  %404 = vmatprep.subr.msk.bf16.mxu1 %vm202_vm0, %v197_v9 }
  0x1b   : > { %216 = vmatpush1.bf16.msra.mxu0 %v204_v10  ;;  %257 = vmatpush1.bf16.msra.mxu1 %v210_v11 }
  0x1e   : > { %403 = vmatmul.mubr.msk.bf16.vlgmr.msra.gmra.mrb[0].mxu0 %vm198_vm1, %v185_v12  ;;  %405 = vmatmul.mubr.msk.bf16.vlgmr.msra.gmra.mrb[0].mxu1 %vm198_vm1, %v185_v12 }
  0xf1   : > { %v249_v13 = vpop.f32.mrb[0].mxu0  ;;  %v290_v14 = vpop.f32.mrb[0].mxu1 }
  0xf2   : > { %297 = vst [vmem:[%s181_s28] sm:$0xff] %v249_v13  ;;  %299 = vst [vmem:[%s181_s28 + $0x10] sm:$0xff] %v290_v14  ;;  %v251_v15 = vpop.f32.mrb[1].mxu0  ;;  %v292_v16 = vpop.f32.mrb[1].mxu1 }
  0xf3   : > { %298 = vst [vmem:[%s181_s28 + $0x8] sm:$0xff] %v251_v15  ;;  %300 = vst [vmem:[%s181_s28 + $0x18] sm:$0xff] %v292_v16  ;;  %v253_v17 = vpop.f32.mrb[2].mxu0  ;;  %v294_v18 = vpop.f32.mrb[2].mxu1 }
  0xf4   : > { %v254_v19 = vpop.f32.mrb[3].mxu0  ;;  %v295_v20 = vpop.f32.mrb[3].mxu1 }
  0xf5 PF: > { %s12_s13 = sadd.s32 1, %s489_s13   ;;  %s564_s9 = smov %s481_s11 }
  0xf6   : > { %p9_p7 = scmp.ge.s32.totalorder %s12_s13, 6   ;;  %s565_s10 = smov %s485_s12 }
  0xf7   : > { %s566_s11 = smov %s569_s14  ;;  %s567_s12 = smov %s573_s15 }
  0xf8   :  { %11 = sbr.rel (!%p9_p7) target bundleno = 3 (0x3), region = 58 }

// kernel: align_module_forward.7
= control target key start
LH: loop header
LB: loop body
LE: loop exit
PB: predicated region body
PF: predicated region fallthrough
CT: control target
= control target key end

     0   :  { %s1265_s12 = smov 0   ;;  %s1430_s0 = inlined_call_operand.vmem [shape: f32[2,8,16,16], index: 0, kind: input, shape index: {}]   ;;  %s1431_s1 = inlined_call_operand.vmem [shape: f32[32,16], index: 1, kind: input, shape index: {}]   ;;  %s1432_s2 = inlined_call_operand.vmem [shape: f32[16,32], index: 2, kind: input, shape index: {}]   ;;  %s1433_s3 = inlined_call_operand.vmem [shape: f32[2,8,32,32], index: 3, kind: output, shape index: {}]  }
   0x1 LB: > { %s1052_s13 = sadd.s32 4294967295, %s1241_s12   ;;  %p1056_p0 = scmp.ge.s32.totalorder %s1241_s12, 1  ;;  %s1241_s12 = sphi %s1265_s12, %s13_s12  }
   0x2   : > { %p137_p1 = scmp.lt.s32.totalorder %s1241_s12, 3 }
   0x4   : > { %p138_p2 = pnand %p1056_p0, %p137_p1 }
   0x5   : > { %v196_v0 = vld [vmem:[%s1432_s2] sm:$0xff] (!%p138_p2)  ;;  %v197_v1 = vld [vmem:[%s1432_s2 + $0x8] sm:$0xff] (!%p138_p2)  ;;  %p161_p3 = scmp.lt.s32.totalorder (!%p138_p2), %s1052_s13, 1  ;;  %v1243_v2 = vmov (!%p138_p2), 0.0   ;;  %vm1244_vm0 = vmmov (!%p138_p2), 0   ;;  %vm205_vm1 = vcmask (!%p138_p2), 130048  }
   0x6   : > { %141 = sbr.rel (%p138_p2) target bundleno = 480 (0x1e0), region = 32  ;;  %1129 = vmatprep.subr.bf16.mxu0 (!%p138_p2), %v1243_v2  ;;  %1135 = vmatprep.subr.bf16.mxu1 (!%p138_p2), %v1243_v2  ;;  %v198_v3 = vpack.c.bf16 (!%p138_p2), %v197_v1, %v196_v0  ;;  %v199_v28 = vld [vmem:[%s1431_s1] sm:$0xff] (!%p138_p2)  ;;  %v200_v29 = vld [vmem:[%s1431_s1 + $0x8] sm:$0xff] (!%p138_p2)  ;;  %v201_v36 = vld [vmem:[%s1431_s1 + $0x10] sm:$0xff] (!%p138_p2)  ;;  %vm964_vm2 = vcmask (!%p138_p2), 261120  }
   0x7   : > { %1131 = vmatprep.mubr.msk.bf16.mxu0 (!%p138_p2), %vm1244_vm0, %v1243_v2  ;;  %1137 = vmatprep.mubr.msk.bf16.mxu1 (!%p138_p2), %vm1244_vm0, %v1243_v2  ;;  %v1325_v30 = vpack.c.bf16 (!%p138_p2), %v200_v29, %v199_v28  ;;  %v202_v37 = vld [vmem:[%s1431_s1 + $0x18] sm:$0xff] (!%p138_p2) }
   0x8   : > { %1130 = vmatpush3.bf16.msra.mxu0 (!%p138_p2), %v198_v3  ;;  %1136 = vmatpush3.bf16.msra.mxu1 (!%p138_p2), %v198_v3  ;;  %v204_v43 = vpack.c.bf16 (!%p138_p2), %v202_v37, %v201_v36 }
   0x9   : > { %1141 = vmatprep.subr.bf16.mxu0 (!%p138_p2), %v1243_v2  ;;  %1147 = vmatprep.subr.bf16.mxu1 (!%p138_p2), %v1243_v2 }
   0xd   : > { %s1435_s13 = smov (!%p161_p3, %s1052_s13), 1 }
   0xe   : > { %s1087_s18 = sshll.u32 %s1435_s13, 7  ;;  %s1088_s30 = sshll.u32 %s1435_s13, 8 }
   0xf   : > { %s1287_s21 = scalar_lea.vmem %s1430_s0, %s1087_s18  ;;  %s1361_s6 = scalar_lea.vmem %s1433_s3, %s1088_s30 }
  0x10   : > { %v172_v4 = vld [vmem:[%s1287_s21] sm:$0xff]  ;;  %v173_v5 = vld [vmem:[%s1287_s21 + $0x8] sm:$0xff]  ;;  %v174_v6 = vld [vmem:[%s1287_s21 + $0x10] sm:$0xff] }
  0x11   : > { %v188_v7 = vpack.c.bf16 %v173_v5, %v172_v4  ;;  %v175_v8 = vld [vmem:[%s1287_s21 + $0x18] sm:$0xff]  ;;  %v176_v10 = vld [vmem:[%s1287_s21 + $0x20] sm:$0xff]  ;;  %v177_v11 = vld [vmem:[%s1287_s21 + $0x28] sm:$0xff] }
  0x12   : > { %v189_v9 = vpack.c.bf16 %v175_v8, %v174_v6  ;;  %v178_v12 = vld [vmem:[%s1287_s21 + $0x30] sm:$0xff]  ;;  %v179_v13 = vld [vmem:[%s1287_s21 + $0x38] sm:$0xff]  ;;  %v190_v14 = vpack.c.bf16 %v177_v11, %v176_v10  ;;  %v180_v16 = vld [vmem:[%s1287_s21 + $0x40] sm:$0xff] }
  0x13   : > { %1132 = vmatmul.mubr.msk.bf16.vlgmr.msra.gmra.mrb[0].mxu0 %vm205_vm1, %v188_v7  ;;  %v191_v15 = vpack.c.bf16 %v179_v13, %v178_v12  ;;  %v181_v17 = vld [vmem:[%s1287_s21 + $0x48] sm:$0xff]  ;;  %v182_v18 = vld [vmem:[%s1287_s21 + $0x50] sm:$0xff]  ;;  %v183_v19 = vld [vmem:[%s1287_s21 + $0x58] sm:$0xff] }
  0x14   : > { %1138 = vmatmul.mubr.msk.bf16.vlgmr.msra.gmra.mrb[0].mxu1 %vm205_vm1, %v189_v9  ;;  %1142 = vmatpush3.bf16.msra.mxu0 %v198_v3  ;;  %v192_v20 = vpack.c.bf16 %v181_v17, %v180_v16  ;;  %v193_v21 = vpack.c.bf16 %v183_v19, %v182_v18  ;;  %v184_v22 = vld [vmem:[%s1287_s21 + $0x60] sm:$0xff]  ;;  %v185_v23 = vld [vmem:[%s1287_s21 + $0x68] sm:$0xff]  ;;  %v186_v24 = vld [vmem:[%s1287_s21 + $0x70] sm:$0xff] }
  0x15   : > { %1148 = vmatpush3.bf16.msra.mxu1 %v198_v3  ;;  %1143 = vmatprep.mubr.msk.bf16.mxu0 %vm1244_vm0, %v1243_v2  ;;  %v187_v25 = vld [vmem:[%s1287_s21 + $0x78] sm:$0xff]  ;;  %v194_v26 = vpack.c.bf16 %v185_v23, %v184_v22 }
  0x16   : > { %1149 = vmatprep.mubr.msk.bf16.mxu1 %vm1244_vm0, %v1243_v2  ;;  %1153 = vmatprep.subr.bf16.mxu0 %v1243_v2  ;;  %v195_v27 = vpack.c.bf16 %v187_v25, %v186_v24 }
  0x17   : > { %1159 = vmatprep.subr.bf16.mxu1 %v1243_v2 }
  0x1b   : > { %1144 = vmatmul.mubr.msk.bf16.vlgmr.msra.gmra.mrb[4].mxu0 %vm205_vm1, %v190_v14 }
  0x1c   : > { %1150 = vmatmul.mubr.msk.bf16.vlgmr.msra.gmra.mrb[4].mxu1 %vm205_vm1, %v191_v15  ;;  %1154 = vmatpush3.bf16.msra.mxu0 %v198_v3 }
  0x1d   : > { %1160 = vmatpush3.bf16.msra.mxu1 %v198_v3  ;;  %1155 = vmatprep.mubr.msk.bf16.mxu0 %vm1244_vm0, %v1243_v2 }
  0x1e   : > { %1161 = vmatprep.mubr.msk.bf16.mxu1 %vm1244_vm0, %v1243_v2  ;;  %1165 = vmatprep.subr.bf16.mxu0 %v1243_v2 }
  0x1f   : > { %1171 = vmatprep.subr.bf16.mxu1 %v1243_v2 }
  0x23   : > { %1156 = vmatmul.mubr.msk.bf16.vlgmr.msra.gmra.mrb[8].mxu0 %vm205_vm1, %v192_v20 }
  0x24   : > { %1162 = vmatmul.mubr.msk.bf16.vlgmr.msra.gmra.mrb[8].mxu1 %vm205_vm1, %v193_v21  ;;  %1166 = vmatpush3.bf16.msra.mxu0 %v198_v3 }
  0x25   : > { %1172 = vmatpush3.bf16.msra.mxu1 %v198_v3  ;;  %1167 = vmatprep.mubr.msk.bf16.mxu0 %vm1244_vm0, %v1243_v2 }
  0x26   : > { %1173 = vmatprep.mubr.msk.bf16.mxu1 %vm1244_vm0, %v1243_v2 }
  0x2b   : > { %1168 = vmatmul.mubr.msk.bf16.vlgmr.msra.gmra.mrb[12].mxu0 %vm205_vm1, %v194_v26 }
  0x2c   : > { %1174 = vmatmul.mubr.msk.bf16.vlgmr.msra.gmra.mrb[12].mxu1 %vm205_vm1, %v195_v27  ;;  %1179 = vmatprep.mubr.msk.bf16.mxu0 %vm205_vm1, %v1325_v30 }
  0x2d   : > { %1185 = vmatprep.mubr.msk.bf16.mxu1 %vm205_vm1, %v1325_v30 }
  0xe6   : > { %v243_v31 = vpop.f32.mrb[0].mxu0 }
  0xe7   : > { %v287_v32 = vpop.f32.mrb[0].mxu1  ;;  %v1133_v33 = vpop.f32.mrb[1].mxu0 }
  0xe8   : > { %v1139_v34 = vpop.f32.mrb[1].mxu1  ;;  %v246_v35 = vpop.f32.mrb[2].mxu0 }
  0xe9   : > { %v558_v38 = vpack.c.bf16 %v246_v35, %v243_v31  ;;  %v290_v39 = vpop.f32.mrb[2].mxu1  ;;  %v1134_v40 = vpop.f32.mrb[3].mxu0 }
  0xea   : > { %v559_v41 = vpack.c.bf16 %v290_v39, %v287_v32  ;;  %v1140_v42 = vpop.f32.mrb[3].mxu1 }
  0xeb   : > { %1177 = vmatprep.subr.bf16.mxu0 %v558_v38 }
  0xec   : > { %1183 = vmatprep.subr.bf16.mxu1 %v559_v41  ;;  %1178 = vmatpush3.bf16.msra.mxu0 %v558_v38 }
  0xed   : > { %1184 = vmatpush3.bf16.msra.mxu1 %v559_v41 }
  0xee   : > { %v331_v44 = vpop.f32.mrb[4].mxu0 }
  0xef   : > { %v375_v45 = vpop.f32.mrb[4].mxu1  ;;  %v1145_v46 = vpop.f32.mrb[5].mxu0  ;;  %1180 = vmatmul.mubr.msk.bf16.vlgmr.msra.gmra.mrb[16].mxu0 %vm205_vm1, %v204_v43 }
  0xf0   : > { %v1151_v47 = vpop.f32.mrb[5].mxu1  ;;  %v334_v48 = vpop.f32.mrb[6].mxu0  ;;  %1186 = vmatmul.mubr.msk.bf16.vlgmr.msra.gmra.mrb[16].mxu1 %vm205_vm1, %v204_v43  ;;  %1191 = vmatprep.mubr.msk.bf16.mxu0 %vm205_vm1, %v1325_v30 }
  0xf1   : > { %v560_v49 = vpack.c.bf16 %v334_v48, %v331_v44  ;;  %v378_v50 = vpop.f32.mrb[6].mxu1  ;;  %v1146_v51 = vpop.f32.mrb[7].mxu0  ;;  %1197 = vmatprep.mubr.msk.bf16.mxu1 %vm205_vm1, %v1325_v30 }
  0xf2   : > { %v561_v52 = vpack.c.bf16 %v378_v50, %v375_v45  ;;  %v1152_v53 = vpop.f32.mrb[7].mxu1 }
  0xf3   : > { %1189 = vmatprep.subr.bf16.mxu0 %v560_v49 }
  0xf4   : > { %1195 = vmatprep.subr.bf16.mxu1 %v561_v52  ;;  %1190 = vmatpush3.bf16.msra.mxu0 %v560_v49 }
  0xf5   : > { %1196 = vmatpush3.bf16.msra.mxu1 %v561_v52 }
  0xf6   : > { %v419_v54 = vpop.f32.mrb[8].mxu0 }
  0xf7   : > { %v463_v55 = vpop.f32.mrb[8].mxu1  ;;  %v1157_v56 = vpop.f32.mrb[9].mxu0  ;;  %1192 = vmatmul.mubr.msk.bf16.vlgmr.msra.gmra.mrb[20].mxu0 %vm205_vm1, %v204_v43 }
  0xf8   : > { %v1163_v57 = vpop.f32.mrb[9].mxu1  ;;  %v422_v58 = vpop.f32.mrb[10].mxu0  ;;  %1198 = vmatmul.mubr.msk.bf16.vlgmr.msra.gmra.mrb[20].mxu1 %vm205_vm1, %v204_v43  ;;  %1203 = vmatprep.mubr.msk.bf16.mxu0 %vm205_vm1, %v1325_v30 }
  0xf9   : > { %v562_v59 = vpack.c.bf16 %v422_v58, %v419_v54  ;;  %v466_v60 = vpop.f32.mrb[10].mxu1  ;;  %v1158_v61 = vpop.f32.mrb[11].mxu0  ;;  %1209 = vmatprep.mubr.msk.bf16.mxu1 %vm205_vm1, %v1325_v30 }
  0xfa   : > { %v563_v62 = vpack.c.bf16 %v466_v60, %v463_v55  ;;  %v1164_v63 = vpop.f32.mrb[11].mxu1 }
  0xfb   : > { %1201 = vmatprep.subr.bf16.mxu0 %v562_v59 }
  0xfc   : > { %1207 = vmatprep.subr.bf16.mxu1 %v563_v62  ;;  %1202 = vmatpush3.bf16.msra.mxu0 %v562_v59 }
  0xfd   : > { %1208 = vmatpush3.bf16.msra.mxu1 %v563_v62 }
  0xfe   : > { %v507_v0 = vpop.f32.mrb[12].mxu0 }
  0xff   : > { %v551_v1 = vpop.f32.mrb[12].mxu1  ;;  %v1169_v2 = vpop.f32.mrb[13].mxu0  ;;  %1204 = vmatmul.mubr.msk.bf16.vlgmr.msra.gmra.mrb[24].mxu0 %vm205_vm1, %v204_v43 }
 0x100   : > { %v1175_v3 = vpop.f32.mrb[13].mxu1  ;;  %v510_v4 = vpop.f32.mrb[14].mxu0  ;;  %1210 = vmatmul.mubr.msk.bf16.vlgmr.msra.gmra.mrb[24].mxu1 %vm205_vm1, %v204_v43  ;;  %1215 = vmatprep.mubr.msk.bf16.mxu0 %vm205_vm1, %v1325_v30 }
 0x101   : > { %v564_v5 = vpack.c.bf16 %v510_v4, %v507_v0  ;;  %v554_v6 = vpop.f32.mrb[14].mxu1  ;;  %v1170_v7 = vpop.f32.mrb[15].mxu0  ;;  %1221 = vmatprep.mubr.msk.bf16.mxu1 %vm205_vm1, %v1325_v30 }
 0x102   : > { %v565_v8 = vpack.c.bf16 %v554_v6, %v551_v1  ;;  %v1176_v9 = vpop.f32.mrb[15].mxu1 }
 0x103   : > { %1213 = vmatprep.subr.bf16.mxu0 %v564_v5 }
 0x104   : > { %1219 = vmatprep.subr.bf16.mxu1 %v565_v8  ;;  %1214 = vmatpush3.bf16.msra.mxu0 %v564_v5 }
 0x105   : > { %1220 = vmatpush3.bf16.msra.mxu1 %v565_v8 }
 0x107   : > { %1216 = vmatmul.mubr.msk.bf16.vlgmr.msra.gmra.mrb[28].mxu0 %vm205_vm1, %v204_v43 }
 0x108   : > { %1222 = vmatmul.mubr.msk.bf16.vlgmr.msra.gmra.mrb[28].mxu1 %vm205_vm1, %v204_v43 }
 0x1c2   : > { %v1181_v10 = vpop.f32.mrb[16].mxu0 }
 0x1c3   : > { %967 = vst.msk [vmem:[%s1361_s6 + $0x10] sm:$0xff] %vm964_vm2, %v1181_v10  ;;  %v1187_v11 = vpop.f32.mrb[16].mxu1  ;;  %v606_v12 = vpop.f32.mrb[17].mxu0 }
 0x1c4   : > { %971 = vst.msk [vmem:[%s1361_s6 + $0x30] sm:$0xff] %vm964_vm2, %v1187_v11  ;;  %965 = vst.msk [vmem:[%s1361_s6] sm:$0xff] %vm964_vm2, %v606_v12  ;;  %v655_v13 = vpop.f32.mrb[17].mxu1  ;;  %v1182_v14 = vpop.f32.mrb[18].mxu0 }
 0x1c5   : > { %969 = vst.msk [vmem:[%s1361_s6 + $0x20] sm:$0xff] %vm964_vm2, %v655_v13  ;;  %968 = vst.msk [vmem:[%s1361_s6 + $0x18] sm:$0xff] %vm964_vm2, %v1182_v14  ;;  %v1188_v15 = vpop.f32.mrb[18].mxu1  ;;  %v609_v16 = vpop.f32.mrb[19].mxu0 }
 0x1c6   : > { %972 = vst.msk [vmem:[%s1361_s6 + $0x38] sm:$0xff] %vm964_vm2, %v1188_v15  ;;  %966 = vst.msk [vmem:[%s1361_s6 + $0x8] sm:$0xff] %vm964_vm2, %v609_v16  ;;  %v658_v17 = vpop.f32.mrb[19].mxu1 }
 0x1c7   : > { %970 = vst.msk [vmem:[%s1361_s6 + $0x28] sm:$0xff] %vm964_vm2, %v658_v17 }
 0x1ca   : > { %v1193_v18 = vpop.f32.mrb[20].mxu0 }
 0x1cb   : > { %975 = vst.msk [vmem:[%s1361_s6 + $0x50] sm:$0xff] %vm964_vm2, %v1193_v18  ;;  %v1199_v19 = vpop.f32.mrb[20].mxu1  ;;  %v704_v20 = vpop.f32.mrb[21].mxu0 }
 0x1cc   : > { %979 = vst.msk [vmem:[%s1361_s6 + $0x70] sm:$0xff] %vm964_vm2, %v1199_v19  ;;  %973 = vst.msk [vmem:[%s1361_s6 + $0x40] sm:$0xff] %vm964_vm2, %v704_v20  ;;  %v753_v21 = vpop.f32.mrb[21].mxu1  ;;  %v1194_v22 = vpop.f32.mrb[22].mxu0 }
 0x1cd   : > { %977 = vst.msk [vmem:[%s1361_s6 + $0x60] sm:$0xff] %vm964_vm2, %v753_v21  ;;  %976 = vst.msk [vmem:[%s1361_s6 + $0x58] sm:$0xff] %vm964_vm2, %v1194_v22  ;;  %v1200_v23 = vpop.f32.mrb[22].mxu1  ;;  %v707_v24 = vpop.f32.mrb[23].mxu0 }
 0x1ce   : > { %980 = vst.msk [vmem:[%s1361_s6 + $0x78] sm:$0xff] %vm964_vm2, %v1200_v23  ;;  %974 = vst.msk [vmem:[%s1361_s6 + $0x48] sm:$0xff] %vm964_vm2, %v707_v24  ;;  %v756_v25 = vpop.f32.mrb[23].mxu1 }
 0x1cf   : > { %978 = vst.msk [vmem:[%s1361_s6 + $0x68] sm:$0xff] %vm964_vm2, %v756_v25 }
 0x1d2   : > { %v1205_v26 = vpop.f32.mrb[24].mxu0 }
 0x1d3   : > { %983 = vst.msk [vmem:[%s1361_s6 + $0x90] sm:$0xff] %vm964_vm2, %v1205_v26  ;;  %v1211_v27 = vpop.f32.mrb[24].mxu1  ;;  %v802_v28 = vpop.f32.mrb[25].mxu0 }
 0x1d4   : > { %987 = vst.msk [vmem:[%s1361_s6 + $0xb0] sm:$0xff] %vm964_vm2, %v1211_v27  ;;  %981 = vst.msk [vmem:[%s1361_s6 + $0x80] sm:$0xff] %vm964_vm2, %v802_v28  ;;  %v851_v29 = vpop.f32.mrb[25].mxu1  ;;  %v1206_v30 = vpop.f32.mrb[26].mxu0 }
 0x1d5   : > { %985 = vst.msk [vmem:[%s1361_s6 + $0xa0] sm:$0xff] %vm964_vm2, %v851_v29  ;;  %984 = vst.msk [vmem:[%s1361_s6 + $0x98] sm:$0xff] %vm964_vm2, %v1206_v30  ;;  %v1212_v31 = vpop.f32.mrb[26].mxu1  ;;  %v805_v32 = vpop.f32.mrb[27].mxu0 }
 0x1d6   : > { %988 = vst.msk [vmem:[%s1361_s6 + $0xb8] sm:$0xff] %vm964_vm2, %v1212_v31  ;;  %982 = vst.msk [vmem:[%s1361_s6 + $0x88] sm:$0xff] %vm964_vm2, %v805_v32  ;;  %v854_v33 = vpop.f32.mrb[27].mxu1 }
 0x1d7   : > { %986 = vst.msk [vmem:[%s1361_s6 + $0xa8] sm:$0xff] %vm964_vm2, %v854_v33 }
 0x1da   : > { %v1217_v34 = vpop.f32.mrb[28].mxu0 }
 0x1db   : > { %991 = vst.msk [vmem:[%s1361_s6 + $0xd0] sm:$0xff] %vm964_vm2, %v1217_v34  ;;  %v1223_v35 = vpop.f32.mrb[28].mxu1  ;;  %v900_v36 = vpop.f32.mrb[29].mxu0 }
 0x1dc   : > { %995 = vst.msk [vmem:[%s1361_s6 + $0xf0] sm:$0xff] %vm964_vm2, %v1223_v35  ;;  %989 = vst.msk [vmem:[%s1361_s6 + $0xc0] sm:$0xff] %vm964_vm2, %v900_v36  ;;  %v949_v37 = vpop.f32.mrb[29].mxu1  ;;  %v1218_v38 = vpop.f32.mrb[30].mxu0 }
 0x1dd   : > { %993 = vst.msk [vmem:[%s1361_s6 + $0xe0] sm:$0xff] %vm964_vm2, %v949_v37  ;;  %992 = vst.msk [vmem:[%s1361_s6 + $0xd8] sm:$0xff] %vm964_vm2, %v1218_v38  ;;  %v1224_v39 = vpop.f32.mrb[30].mxu1  ;;  %v903_v40 = vpop.f32.mrb[31].mxu0 }
 0x1de   : > { %996 = vst.msk [vmem:[%s1361_s6 + $0xf8] sm:$0xff] %vm964_vm2, %v1224_v39  ;;  %990 = vst.msk [vmem:[%s1361_s6 + $0xc8] sm:$0xff] %vm964_vm2, %v903_v40  ;;  %v952_v41 = vpop.f32.mrb[31].mxu1 }
 0x1df   : > { %994 = vst.msk [vmem:[%s1361_s6 + $0xe8] sm:$0xff] %vm964_vm2, %v952_v41 }
 0x1e0 PF: > { %s13_s12 = sadd.s32 1, %s1241_s12  }
 0x1e1   : > { %p10_p4 = scmp.ge.s32.totalorder %s13_s12, 4  }
 0x1e3   :  { %12 = sbr.rel (!%p10_p4) target bundleno = 1 (0x1), region = 62 }

// kernel: align_module_forward.9
= control target key start
LH: loop header
LB: loop body
LE: loop exit
PB: predicated region body
PF: predicated region fallthrough
CT: control target
= control target key end

     0   :  { %s1374_s9 = smov 0   ;;  %s1376_s10 = smov 0   ;;  %s1686_s0 = inlined_call_operand.vmem [shape: f32[2,4,16,16], index: 0, kind: input, shape index: {}]   ;;  %s1687_s1 = inlined_call_operand.vmem [shape: f32[2,2,1024], index: 1, kind: input, shape index: {}]   ;;  %s1688_s2 = inlined_call_operand.vmem [shape: f32[2,4,1024], index: 2, kind: output, shape index: {}]  }
   0x1   :  { %s1378_s11 = smov 0   ;;  %s1380_s12 = smov 0  }
   0x2   :  { %s1382_s13 = smov 0  }
   0x3 LB: > { %s21_s14 = sadd.s32 1, %s1348_s11  ;;  %s24_s15 = sadd.s32 1, %s1352_s12  ;;  %s1356_s13 = sphi %s1382_s13, %s12_s13   ;;  %s1352_s12 = sphi %s1380_s12, %s1692_s12   ;;  %s1348_s11 = sphi %s1378_s11, %s1691_s11   ;;  %s1344_s10 = sphi %s1376_s10, %s1690_s10   ;;  %s1340_s9 = sphi %s1374_s9, %s1689_s9  }
   0x4   : > { %p22_p0 = scmp.ge.s32.totalorder %s21_s14, 2  ;;  %p1256_p1 = scmp.ge.s32.totalorder %s1356_s13, 1 }
   0x5   : > { %p143_p2 = scmp.lt.s32.totalorder %s1356_s13, 5 }
   0x6   : > { %s1694_s14 = smov (%p22_p0, %s21_s14), 0  ;;  %s1696_s15 = smov (!%p22_p0, %s24_s15), %s1352_s12 }
   0x7   : > { %p144_p3 = pnand %p1256_p1, %p143_p2  ;;  %p26_p4 = scmp.ge.s32.totalorder %s1696_s15, 2 }
   0x8   : > { %p178_p5 = scmp.lt.s32.totalorder (!%p144_p3), %s1344_s10, 1  ;;  %s1259_s16 = sshll.u32 (!%p144_p3), %s1340_s9, 2  ;;  %v206_v0 = vlaneseq (!%p144_p3)  ;;  %v1358_v1 = vmov (!%p144_p3), 0  }
   0x9   : > { %s1698_s15 = smov (%p26_p4, %s1696_s15), 0  ;;  %147 = sbr.rel (%p144_p3) target bundleno = 331 (0x14b), region = 28 }
   0xa   : > { %p186_p6 = scmp.lt.s32.totalorder (!%p144_p3), %s1259_s16, 7  ;;  %s1265_s17 = sshll.u32 (!%p144_p3), %s1340_s9, 9  ;;  %633 = vmatprep.mubr.bf16.mxu0 (!%p144_p3), %v1358_v1  ;;  %676 = vmatprep.mubr.bf16.mxu1 (!%p144_p3), %v1358_v1  ;;  %v207_v2 = vand.u32 (!%p144_p3), 127, %v206_v0  ;;  %v1417_v9 = vshrl.u32 (!%p144_p3), %v206_v0, 7 }
   0xb   : > { %v211_v3 = vstv (!%p144_p3), %s1265_s17 }
   0xc   : > { %v208_v4 = vadd.s32 (!%p144_p3), 128, %v207_v2  ;;  %v210_v5 = vadd.s32 (!%p144_p3), 384, %v207_v2  ;;  %v212_v6 = vadd.s32 (!%p144_p3), %v211_v3, %v207_v2  ;;  %v209_v8 = vadd.s32 (!%p144_p3), 256, %v207_v2 }
   0xd   : > { %v290_v22 = vsub.s32 (!%p144_p3), 1, %v1417_v9  ;;  %v294_v24 = vsub.s32 (!%p144_p3), 3, %v1417_v9  ;;  %v302_v27 = vsub.s32 (!%p144_p3), 7, %v1417_v9  ;;  %v298_v32 = vsub.s32 (!%p144_p3), 5, %v1417_v9 }
   0xe   : > { %v1412_v7 = vadd.s32 (!%p144_p3), %v211_v3, %v208_v4  ;;  %v1419_v10 = vadd.s32 (!%p144_p3), %v211_v3, %v210_v5  ;;  %v216_v11 = vcvt.s32.f32 (!%p144_p3), %v212_v6  ;;  %v1422_v14 = vadd.s32 (!%p144_p3), %v211_v3, %v209_v8 }
   0xf   : > { %v354_v57 = vadd.s32 (!%p144_p3), 8, %v1417_v9  ;;  %v1461_v59 = vsub.s32 (!%p144_p3), 0, %v1417_v9  ;;  %v1464_v0 = vcvt.s32.f32 (!%p144_p3), %v1417_v9 }
  0x10   : > { %s1700_s10 = smov (!%p178_p5, %s1344_s10), 1  ;;  %s1702_s16 = smov (!%p186_p6, %s1259_s16), 7  ;;  %v217_v13 = vcvt.s32.f32 %v1412_v7  ;;  %v219_v15 = vcvt.s32.f32 %v1419_v10  ;;  %v221_v16 = vmul.f32 0.03125, %v216_v11  ;;  %v218_v18 = vcvt.s32.f32 %v1422_v14 }
  0x11   : > { %s1260_s18 = sshll.u32 %s1700_s10, 3  ;;  %v1466_v5 = vcvt.s32.f32 %v354_v57  ;;  %s1276_s24 = sshll.u32 %s1700_s10, 6  ;;  %v258_v7 = vsub.s32 2, %v1417_v9 }
  0x12   : > { %s1409_s19 = sadd.s32 %s1260_s18, %s1702_s16  ;;  %v1427_v17 = vmul.f32 0.03125, %v217_v13  ;;  %v1434_v20 = vmul.f32 0.03125, %v219_v15  ;;  %v225_v21 = vfloor.f32 %v221_v16  ;;  %v1441_v25 = vmul.f32 0.03125, %v218_v18  ;;  %s1503_s27 = scalar_lea.vmem %s1686_s0, %s1276_s24 }
  0x13   : > { %s1261_s20 = sshll.u32 %s1409_s19, 1  ;;  %s1264_s28 = sshll.u32 %s1409_s19, 2 }
  0x14   : > { %s191_s23 = scalar_lea.vmem %s1687_s1, %s1261_s20  ;;  %v226_v23 = vfloor.f32 %v1427_v17  ;;  %v228_v26 = vfloor.f32 %v1434_v20  ;;  %v276_v28 = vmul.f32 2.0, %v225_v21  ;;  %v229_v29 = vmul.f32 32.0, %v225_v21  ;;  %s201_s3 = scalar_lea.vmem %s1688_s2, %s1264_s28 }
  0x15   : > { %v204_v12 = vld [vmem:[%s191_s23] sm:$0xff]  ;;  %v227_v31 = vfloor.f32 %v1441_v25  ;;  %v262_v20 = vsub.s32 4, %v1417_v9 }
  0x16   : > { %v1430_v19 = vmul.f32 0.03125, %v204_v12  ;;  %v277_v30 = vmul.f32 2.0, %v226_v23  ;;  %v279_v33 = vmul.f32 2.0, %v228_v26  ;;  %v280_v34 = vmul.f32 0.032258064, %v276_v28 }
  0x17   : > { %v1452_v36 = vsub.f32 %v216_v11, %v229_v29  ;;  %v278_v39 = vmul.f32 2.0, %v227_v31 }
  0x18   : > { %v291_v35 = vrot.slane %v1430_v19, %v290_v22  ;;  %v281_v37 = vmul.f32 0.032258064, %v277_v30  ;;  %v295_v38 = vrot.slane %v1430_v19, %v294_v24  ;;  %v283_v40 = vmul.f32 0.032258064, %v279_v33 }
  0x19   : > { %v303_v41 = vrot.slane %v1430_v19, %v302_v27  ;;  %v284_v42 = vadd.f32 -1.0, %v280_v34  ;;  %v282_v44 = vmul.f32 0.032258064, %v278_v39  ;;  %v299_v45 = vrot.slane %v1430_v19, %v298_v32 }
  0x1a   : > { %v285_v43 = vadd.f32 -1.0, %v281_v37  ;;  %v287_v46 = vadd.f32 -1.0, %v283_v40  ;;  %v255_v17 = vrot.slane %v1430_v19, %v1461_v59  ;;  %v259_v14 = vrot.slane %v1430_v19, %v258_v7 }
  0x1b   : > { %v308_v47 = vadd.f32 %v291_v35, %v284_v42  ;;  %v286_v49 = vadd.f32 -1.0, %v282_v44  ;;  %v263_v10 = vrot.slane %v1430_v19, %v262_v20 }
  0x1c   : > { %v309_v48 = vadd.f32 %v295_v38, %v285_v43  ;;  %v311_v50 = vadd.f32 %v303_v41, %v287_v46 }
  0x1d   : > { %v324_v51 = vadd.f32 1.0, %v308_v47  ;;  %v310_v53 = vadd.f32 %v299_v45, %v286_v49 }
  0x1e   : > { %v325_v52 = vadd.f32 1.0, %v309_v48  ;;  %v327_v54 = vadd.f32 1.0, %v311_v50 }
  0x1f   : > { %v328_v55 = vmul.f32 0.5, %v324_v51  ;;  %v326_v58 = vadd.f32 1.0, %v310_v53 }
  0x20   : > { %v329_v56 = vmul.f32 0.5, %v325_v52  ;;  %v331_v60 = vmul.f32 0.5, %v327_v54 }
  0x21   : > { %v332_v61 = vmul.f32 15.0, %v328_v55  ;;  %v330_v63 = vmul.f32 0.5, %v326_v58 }
  0x22   : > { %v333_v62 = vmul.f32 15.0, %v329_v56  ;;  %v335_v2 = vmul.f32 15.0, %v331_v60 }
  0x23   : > { %v340_v3 = vfloor.f32 %v332_v61  ;;  %v334_v6 = vmul.f32 15.0, %v330_v63 }
  0x24   : > { %v341_v4 = vfloor.f32 %v333_v62  ;;  %v343_v8 = vfloor.f32 %v335_v2 }
  0x25   : > { %v348_v11 = vsub.f32 %v332_v61, %v340_v3  ;;  %v360_v12 = vrot.slane %v340_v3, %v1461_v59  ;;  %v409_v16 = vadd.f32 1.0, %v340_v3  ;;  %v342_v27 = vfloor.f32 %v334_v6 }
  0x26   : > { %v349_v21 = vsub.f32 %v333_v62, %v341_v4  ;;  %v364_v22 = vrot.slane %v341_v4, %v1461_v59  ;;  %v410_v24 = vadd.f32 1.0, %v341_v4  ;;  %v351_v28 = vsub.f32 %v335_v2, %v343_v8 }
  0x27   : > { %v372_v29 = vrot.slane %v343_v8, %v1461_v59  ;;  %v412_v30 = vadd.f32 1.0, %v343_v8  ;;  %vm373_vm0 = vcmp.eq.f32.partialorder %v1464_v0, %v360_v12  ;;  %vm377_vm9 = vcmp.eq.f32.partialorder %v1466_v5, %v360_v12 }
  0x28   : > { %vm374_vm1 = vcmp.eq.f32.partialorder %v1464_v0, %v364_v22  ;;  %vm378_vm2 = vcmp.eq.f32.partialorder %v1466_v5, %v364_v22  ;;  %v382_v32 = vsub.f32 1.0, %v349_v21  ;;  %v420_v33 = vrot.slane %v410_v24, %v1461_v59 }
  0x29   : > { %v444_v34 = vrot.slane %v349_v21, %v1461_v59  ;;  %vm376_vm3 = vcmp.eq.f32.partialorder %v1464_v0, %v372_v29  ;;  %vm380_vm4 = vcmp.eq.f32.partialorder %v1466_v5, %v372_v29  ;;  %v384_v35 = vsub.f32 1.0, %v351_v28 }
  0x2a   : > { %v392_v37 = vrot.slane %v382_v32, %v1461_v59  ;;  %vm430_vm5 = vcmp.eq.f32.partialorder %v1464_v0, %v420_v33  ;;  %vm434_vm6 = vcmp.eq.f32.partialorder %v1466_v5, %v420_v33  ;;  %v428_v38 = vrot.slane %v412_v30, %v1461_v59 }
  0x2b   : > { %v454_v39 = vsel %vm430_vm5, %v444_v34, 0.0  ;;  %v458_v40 = vsel %vm434_vm6, %v444_v34, 0.0  ;;  %v400_v41 = vrot.slane %v384_v35, %v1461_v59  ;;  %v452_v42 = vrot.slane %v351_v28, %v1461_v59 }
  0x2c   : > { %v402_v43 = vsel %vm374_vm1, %v392_v37, 0.0  ;;  %v406_v44 = vsel %vm378_vm2, %v392_v37, 0.0  ;;  %vm432_vm7 = vcmp.eq.f32.partialorder %v1464_v0, %v428_v38  ;;  %vm436_vm8 = vcmp.eq.f32.partialorder %v1466_v5, %v428_v38  ;;  %v583_v38 = vld [vmem:[%s1503_s27 + $0x10] sm:$0xff] }
  0x2d   : > { %v462_v45 = vadd.f32 %v454_v39, %v402_v43  ;;  %v466_v46 = vadd.f32 %v458_v40, %v406_v44  ;;  %v404_v47 = vsel %vm376_vm3, %v400_v41, 0.0  ;;  %v408_v48 = vsel %vm380_vm4, %v400_v41, 0.0  ;;  %v584_v39 = vld [vmem:[%s1503_s27 + $0x18] sm:$0xff]  ;;  %v585_v41 = vld [vmem:[%s1503_s27 + $0x20] sm:$0xff]  ;;  %v587_v44 = vld [vmem:[%s1503_s27 + $0x30] sm:$0xff] }
  0x2e   : > { %v456_v49 = vsel %vm432_vm7, %v452_v42, 0.0  ;;  %v460_v50 = vsel %vm436_vm8, %v452_v42, 0.0  ;;  %v381_v51 = vsub.f32 1.0, %v348_v11  ;;  %v416_v55 = vrot.slane %v409_v16, %v1461_v59  ;;  %v582_v16 = vld [vmem:[%s1503_s27 + $0x8] sm:$0xff] }
  0x2f   : > { %v594_v52 = vpack.c.bf16 %v466_v46, %v462_v45  ;;  %v464_v53 = vadd.f32 %v456_v49, %v404_v47  ;;  %v468_v54 = vadd.f32 %v460_v50, %v408_v48  ;;  %v440_v57 = vrot.slane %v348_v11, %v1461_v59  ;;  %v581_v11 = vld [vmem:[%s1503_s27] sm:$0xff]  ;;  %v586_v42 = vld [vmem:[%s1503_s27 + $0x28] sm:$0xff]  ;;  %v588_v45 = vld [vmem:[%s1503_s27 + $0x38] sm:$0xff] }
  0x30   : > { %v388_v56 = vrot.slane %v381_v51, %v1461_v59  ;;  %v350_v58 = vsub.f32 %v334_v6, %v342_v27  ;;  %v368_v60 = vrot.slane %v342_v27, %v1461_v59  ;;  %vm429_vm10 = vcmp.eq.f32.partialorder %v1464_v0, %v416_v55 }
  0x31   : > { %601 = vmatprep.subr.bf16.mxu0 %v594_v52  ;;  %v596_v61 = vpack.c.bf16 %v468_v54, %v464_v53  ;;  %vm433_vm11 = vcmp.eq.f32.partialorder %v1466_v5, %v416_v55  ;;  %v411_v62 = vadd.f32 1.0, %v342_v27  ;;  %v453_v3 = vsel %vm429_vm10, %v440_v57, 0.0 }
  0x32   : > { %v401_v63 = vsel %vm373_vm0, %v388_v56, 0.0  ;;  %v405_v2 = vsel %vm377_vm9, %v388_v56, 0.0  ;;  %v457_v4 = vsel %vm433_vm11, %v440_v57, 0.0  ;;  %v383_v21 = vsub.f32 1.0, %v350_v58 }
  0x33   : > { %644 = vmatprep.subr.bf16.mxu1 %v596_v61  ;;  %v461_v6 = vadd.f32 %v453_v3, %v401_v63  ;;  %v465_v8 = vadd.f32 %v457_v4, %v405_v2  ;;  %v424_v22 = vrot.slane %v411_v62, %v1461_v59  ;;  %v448_v24 = vrot.slane %v350_v58, %v1461_v59 }
  0x34   : > { %vm375_vm12 = vcmp.eq.f32.partialorder %v1464_v0, %v368_v60  ;;  %vm379_vm13 = vcmp.eq.f32.partialorder %v1466_v5, %v368_v60  ;;  %v396_v12 = vrot.slane %v383_v21, %v1461_v59  ;;  %v589_v27 = vpack.c.bf16 %v582_v16, %v581_v11 }
  0x35   : > { %v593_v28 = vpack.c.bf16 %v465_v8, %v461_v6  ;;  %vm431_vm14 = vcmp.eq.f32.partialorder %v1464_v0, %v424_v22  ;;  %vm435_vm15 = vcmp.eq.f32.partialorder %v1466_v5, %v424_v22  ;;  %vm597_vm0 = vcmask 130048  }
  0x36   : > { %v455_v29 = vsel %vm431_vm14, %v448_v24, 0.0  ;;  %v459_v30 = vsel %vm435_vm15, %v448_v24, 0.0  ;;  %v403_v32 = vsel %vm375_vm12, %v396_v12, 0.0  ;;  %v407_v33 = vsel %vm379_vm13, %v396_v12, 0.0 }
  0x37   : > { %602 = vmatpush1.bf16.msra.mxu0 %v593_v28  ;;  %v463_v34 = vadd.f32 %v455_v29, %v403_v32  ;;  %v467_v35 = vadd.f32 %v459_v30, %v407_v33  ;;  %v590_v40 = vpack.c.bf16 %v584_v39, %v583_v38  ;;  %v591_v43 = vpack.c.bf16 %v586_v42, %v585_v41 }
  0x38   : > { %690 = vmatprep.subr.bf16.mxu0 %v594_v52  ;;  %v592_v46 = vpack.c.bf16 %v588_v45, %v587_v44  ;;  %v230_v47 = vmul.f32 32.0, %v226_v23  ;;  %v237_v48 = vmul.f32 2.0, %v1452_v36  ;;  %v231_v49 = vmul.f32 32.0, %v227_v31 }
  0x39   : > { %v595_v37 = vpack.c.bf16 %v467_v35, %v463_v34  ;;  %v266_v57 = vsub.s32 6, %v1417_v9 }
  0x3a   : > { %1266 = vmatmul.mubr.msk.bf16.vlgmr.msra.gmra.mrb[0].mxu0 %vm597_vm0, %v589_v27  ;;  %v234_v50 = vsub.f32 %v217_v13, %v230_v47  ;;  %v242_v51 = vmul.f32 0.032258064, %v237_v48 }
  0x3b   : > { %691 = vmatpush1.bf16.msra.mxu0 %v593_v28  ;;  %722 = vmatprep.mubr.bf16.mxu0 %v1358_v1  ;;  %v267_v62 = vrot.slane %v1430_v19, %v266_v57 }
  0x3c   : > { %779 = vmatprep.subr.bf16.mxu0 %v594_v52  ;;  %645 = vmatpush1.bf16.msra.mxu1 %v595_v37  ;;  %v238_v53 = vmul.f32 2.0, %v234_v50  ;;  %v246_v54 = vadd.f32 -1.0, %v242_v51 }
  0x3d   : > { %733 = vmatprep.subr.bf16.mxu1 %v596_v61 }
  0x3e   : > { %v243_v31 = vmul.f32 0.032258064, %v238_v53  ;;  %v272_v13 = vadd.f32 %v255_v17, %v246_v54 }
  0x3f   : > { %1267 = vmatmul.mubr.msk.bf16.vlgmr.msra.gmra.mrb[0].mxu1 %vm597_vm0, %v589_v27 }
  0x40   : > { %734 = vmatpush1.bf16.msra.mxu1 %v595_v37  ;;  %765 = vmatprep.mubr.bf16.mxu1 %v1358_v1 }
  0x41   : > { %822 = vmatprep.subr.bf16.mxu1 %v596_v61 }
  0x42   : > { %1268 = vmatmul.mubr.msk.bf16.vlgmr.msra.gmra.mrb[4].mxu0 %vm597_vm0, %v590_v40 }
  0x43   : > { %780 = vmatpush1.bf16.msra.mxu0 %v593_v28  ;;  %811 = vmatprep.mubr.bf16.mxu0 %v1358_v1 }
  0x44   : > { %868 = vmatprep.subr.bf16.mxu0 %v594_v52  ;;  %v232_v52 = vmul.f32 32.0, %v228_v26  ;;  %v247_v26 = vadd.f32 -1.0, %v243_v31 }
  0x46   : > { %v236_v23 = vsub.f32 %v219_v15, %v232_v52  ;;  %v273_v15 = vadd.f32 %v259_v14, %v247_v26 }
  0x47   : > { %1269 = vmatmul.mubr.msk.bf16.vlgmr.msra.gmra.mrb[4].mxu1 %vm597_vm0, %v590_v40 }
  0x48   : > { %823 = vmatpush1.bf16.msra.mxu1 %v595_v37  ;;  %854 = vmatprep.mubr.bf16.mxu1 %v1358_v1  ;;  %v240_v36 = vmul.f32 2.0, %v236_v23  ;;  %v313_v2 = vadd.f32 1.0, %v273_v15 }
  0x49   : > { %911 = vmatprep.subr.bf16.mxu1 %v596_v61 }
  0x4a   : > { %1270 = vmatmul.mubr.msk.bf16.vlgmr.msra.gmra.mrb[8].mxu0 %vm597_vm0, %v591_v43  ;;  %v245_v56 = vmul.f32 0.032258064, %v240_v36  ;;  %v317_v8 = vmul.f32 0.5, %v313_v2 }
  0x4b   : > { %869 = vmatpush1.bf16.msra.mxu0 %v593_v28  ;;  %900 = vmatprep.mubr.bf16.mxu0 %v1358_v1 }
  0x4c   : > { %v249_v61 = vadd.f32 -1.0, %v245_v56  ;;  %v321_v22 = vmul.f32 15.0, %v317_v8 }
  0x4e   : > { %v275_v4 = vadd.f32 %v267_v62, %v249_v61  ;;  %v337_v27 = vfloor.f32 %v321_v22 }
  0x4f   : > { %1271 = vmatmul.mubr.msk.bf16.vlgmr.msra.gmra.mrb[8].mxu1 %vm597_vm0, %v591_v43 }
  0x50   : > { %912 = vmatpush1.bf16.msra.mxu1 %v595_v37  ;;  %943 = vmatprep.mubr.bf16.mxu1 %v1358_v1  ;;  %v235_v1 = vsub.f32 %v218_v18, %v231_v49  ;;  %v312_v18 = vadd.f32 1.0, %v272_v13  ;;  %v315_v16 = vadd.f32 1.0, %v275_v4  ;;  %v345_v34 = vsub.f32 %v321_v22, %v337_v27 }
  0x51   : > { %v522_v35 = vadd.f32 1.0, %v337_v27  ;;  %v476_v43 = vrot.slane %v337_v27, %v1461_v59 }
  0x52   : > { %1272 = vmatmul.mubr.msk.bf16.vlgmr.msra.gmra.mrb[12].mxu0 %vm597_vm0, %v592_v46  ;;  %v239_v25 = vmul.f32 2.0, %v235_v1  ;;  %v316_v60 = vmul.f32 0.5, %v312_v18  ;;  %v319_v9 = vmul.f32 0.5, %v315_v16  ;;  %v494_v42 = vsub.f32 1.0, %v345_v34 }
  0x53   : > { %v532_v44 = vrot.slane %v522_v35, %v1461_v59  ;;  %v556_v53 = vrot.slane %v345_v34, %v1461_v59  ;;  %vm486_vm5 = vcmp.eq.f32.partialorder %v1464_v0, %v476_v43  ;;  %vm490_vm7 = vcmp.eq.f32.partialorder %v1466_v5, %v476_v43 }
  0x54   : > { %v244_v55 = vmul.f32 0.032258064, %v239_v25  ;;  %v320_v3 = vmul.f32 15.0, %v316_v60  ;;  %v323_v30 = vmul.f32 15.0, %v319_v9  ;;  %v504_v1 = vrot.slane %v494_v42, %v1461_v59 }
  0x55   : > { %vm542_vm6 = vcmp.eq.f32.partialorder %v1464_v0, %v532_v44  ;;  %vm546_vm8 = vcmp.eq.f32.partialorder %v1466_v5, %v532_v44 }
  0x56   : > { %v248_v58 = vadd.f32 -1.0, %v244_v55  ;;  %v336_v11 = vfloor.f32 %v320_v3  ;;  %v339_v39 = vfloor.f32 %v323_v30  ;;  %v514_v36 = vsel %vm486_vm5, %v504_v1, 0.0 }
  0x57   : > { %1273 = vmatmul.mubr.msk.bf16.vlgmr.msra.gmra.mrb[12].mxu1 %vm597_vm0, %v592_v46  ;;  %v566_v55 = vsel %vm542_vm6, %v556_v53, 0.0  ;;  %v518_v20 = vsel %vm490_vm7, %v504_v1, 0.0  ;;  %v570_v26 = vsel %vm546_vm8, %v556_v53, 0.0  ;;  %vm1133_vm5 = vcmask 1043459  }
  0x58   : > { %v274_v63 = vadd.f32 %v263_v10, %v248_v58  ;;  %v344_v24 = vsub.f32 %v320_v3, %v336_v11  ;;  %v521_v28 = vadd.f32 1.0, %v336_v11  ;;  %v472_v32 = vrot.slane %v336_v11, %v1461_v59 }
  0x59   : > { %v347_v47 = vsub.f32 %v323_v30, %v339_v39  ;;  %v524_v48 = vadd.f32 1.0, %v339_v39  ;;  %v484_v52 = vrot.slane %v339_v39, %v1461_v59  ;;  %v1595_v58 = vadd.f32 %v566_v55, %v514_v36 }
  0x5a   : > { %v314_v6 = vadd.f32 1.0, %v274_v63  ;;  %v493_v29 = vsub.f32 1.0, %v344_v24  ;;  %v528_v19 = vrot.slane %v521_v28, %v1461_v59  ;;  %v552_v38 = vrot.slane %v344_v24, %v1461_v59 }
  0x5b   : > { %vm485_vm1 = vcmp.eq.f32.partialorder %v1464_v0, %v472_v32  ;;  %vm489_vm3 = vcmp.eq.f32.partialorder %v1466_v5, %v472_v32  ;;  %v496_v23 = vsub.f32 1.0, %v347_v47  ;;  %v540_v25 = vrot.slane %v524_v48, %v1461_v59 }
  0x5c   : > { %v318_v21 = vmul.f32 0.5, %v314_v6  ;;  %v500_v37 = vrot.slane %v493_v29, %v1461_v59  ;;  %vm541_vm2 = vcmp.eq.f32.partialorder %v1464_v0, %v528_v19  ;;  %vm545_vm4 = vcmp.eq.f32.partialorder %v1466_v5, %v528_v19 }
  0x5d   : > { %v565_v46 = vsel %vm541_vm2, %v552_v38, 0.0  ;;  %v569_v13 = vsel %vm545_vm4, %v552_v38, 0.0  ;;  %vm488_vm11 = vcmp.eq.f32.partialorder %v1464_v0, %v484_v52  ;;  %v564_v14 = vrot.slane %v347_v47, %v1461_v59 }
  0x5e   : > { %v322_v12 = vmul.f32 15.0, %v318_v21  ;;  %v513_v45 = vsel %vm485_vm1, %v500_v37, 0.0  ;;  %v517_v7 = vsel %vm489_vm3, %v500_v37, 0.0  ;;  %v512_v18 = vrot.slane %v496_v23, %v1461_v59 }
  0x5f   : > { %v1580_v54 = vadd.f32 %v565_v46, %v513_v45  ;;  %vm544_vm13 = vcmp.eq.f32.partialorder %v1464_v0, %v540_v25  ;;  %v1592_v56 = vadd.f32 %v569_v13, %v517_v7  ;;  %v1597_v10 = vadd.f32 %v570_v26, %v518_v20 }
  0x60   : > { %v338_v33 = vfloor.f32 %v322_v12  ;;  %vm492_vm15 = vcmp.eq.f32.partialorder %v1466_v5, %v484_v52  ;;  %vm548_vm0 = vcmp.eq.f32.partialorder %v1466_v5, %v540_v25  ;;  %v568_v62 = vsel %vm544_vm13, %v564_v14, 0.0 }
  0x61   : > { %v516_v4 = vsel %vm488_vm11, %v512_v18, 0.0  ;;  %v520_v11 = vsel %vm492_vm15, %v512_v18, 0.0  ;;  %v572_v16 = vsel %vm548_vm0, %v564_v14, 0.0  ;;  %vm1123_vm1 = vcmask 1041409  }
  0x62   : > { %v346_v40 = vsub.f32 %v322_v12, %v338_v33  ;;  %v523_v41 = vadd.f32 1.0, %v338_v33  ;;  %v480_v49 = vrot.slane %v338_v33, %v1461_v59  ;;  %v1617_v12 = vadd.f32 %v568_v62, %v516_v4 }
  0x63   : > { %vm1125_vm2 = vcmask 1045509   ;;  %vm1128_vm3 = vcmask 1042434   ;;  %vm1130_vm4 = vcmask 1046534   ;;  %vm1135_vm6 = vcmask 1047559  }
  0x64   : > { %v495_v50 = vsub.f32 1.0, %v346_v40  ;;  %v536_v51 = vrot.slane %v523_v41, %v1461_v59  ;;  %v560_v17 = vrot.slane %v346_v40, %v1461_v59  ;;  %vm487_vm9 = vcmp.eq.f32.partialorder %v1464_v0, %v480_v49 }
  0x65   : > { %vm491_vm12 = vcmp.eq.f32.partialorder %v1466_v5, %v480_v49 }
  0x66   : > { %v508_v31 = vrot.slane %v495_v50, %v1461_v59  ;;  %vm543_vm10 = vcmp.eq.f32.partialorder %v1464_v0, %v536_v51  ;;  %vm547_vm14 = vcmp.eq.f32.partialorder %v1466_v5, %v536_v51  ;;  %v1619_v0 = vadd.f32 %v572_v16, %v520_v11 }
  0x67   : > { %v567_v61 = vsel %vm543_vm10, %v560_v17, 0.0  ;;  %v571_v3 = vsel %vm547_vm14, %v560_v17, 0.0 }
  0x68   : > { %v515_v59 = vsel %vm487_vm9, %v508_v31, 0.0  ;;  %v519_v2 = vsel %vm491_vm12, %v508_v31, 0.0 }
  0x69   : > { %v1613_v24 = vadd.f32 %v567_v61, %v515_v59  ;;  %v1615_v28 = vadd.f32 %v571_v3, %v519_v2 }
 0x10d   : > { %v635_v57 = vpop.f32.mrb[0].mxu0 }
 0x10e   : > { %v954_v15 = vmul.f32 %v635_v57, %v1580_v54  ;;  %v637_v60 = vpop.f32.mrb[1].mxu0 }
 0x10f   : > { %v639_v63 = vpop.f32.mrb[2].mxu0  ;;  %v955_v21 = vmul.f32 %v637_v60, %v1595_v58 }
 0x110   : > { %v958_v6 = vmul.f32 %v639_v63, %v1592_v56  ;;  %v641_v8 = vpop.f32.mrb[3].mxu0 }
 0x111   : > { %v959_v22 = vmul.f32 %v641_v8, %v1597_v10 }
 0x112   : > { %v986_v9 = vadd.f32 %v958_v6, %v954_v15  ;;  %v678_v5 = vpop.f32.mrb[0].mxu1 }
 0x113   : > { %v993_v27 = vadd.f32 %v959_v22, %v955_v21  ;;  %v680_v29 = vpop.f32.mrb[1].mxu1  ;;  %v956_v34 = vmul.f32 %v678_v5, %v1613_v24 }
 0x114   : > { %v987_v30 = vrot.slane %v986_v9, 4  ;;  %v682_v32 = vpop.f32.mrb[2].mxu1  ;;  %v957_v41 = vmul.f32 %v680_v29, %v1617_v12 }
 0x115   : > { %v994_v19 = vrot.slane %v993_v27, 4  ;;  %v724_v33 = vpop.f32.mrb[4].mxu0  ;;  %v960_v37 = vmul.f32 %v682_v32, %v1615_v28  ;;  %v684_v38 = vpop.f32.mrb[3].mxu1 }
 0x116   : > { %v988_v35 = vadd.f32 %v987_v30, %v986_v9  ;;  %v962_v39 = vmul.f32 %v724_v33, %v1580_v54  ;;  %v726_v40 = vpop.f32.mrb[5].mxu0  ;;  %v961_v43 = vmul.f32 %v684_v38, %v1619_v0 }
 0x117   : > { %v995_v42 = vadd.f32 %v994_v19, %v993_v27  ;;  %v728_v44 = vpop.f32.mrb[6].mxu0  ;;  %v1000_v46 = vadd.f32 %v960_v37, %v956_v34  ;;  %v963_v51 = vmul.f32 %v726_v40, %v1595_v58 }
 0x118   : > { %v989_v45 = vrot.slane %v988_v35, 2  ;;  %v966_v47 = vmul.f32 %v728_v44, %v1592_v56  ;;  %v730_v48 = vpop.f32.mrb[7].mxu0  ;;  %v1007_v50 = vadd.f32 %v961_v43, %v957_v41 }
 0x119   : > { %v996_v49 = vrot.slane %v995_v42, 2  ;;  %v967_v52 = vmul.f32 %v730_v48, %v1597_v10  ;;  %v1001_v53 = vrot.slane %v1000_v46, 4 }
 0x11a   : > { %v990_v1 = vadd.f32 %v989_v45, %v988_v35  ;;  %v1014_v17 = vadd.f32 %v966_v47, %v962_v39  ;;  %v1008_v25 = vrot.slane %v1007_v50, 4  ;;  %v767_v31 = vpop.f32.mrb[4].mxu1 }
 0x11b   : > { %v997_v23 = vadd.f32 %v996_v49, %v995_v42  ;;  %v1021_v7 = vadd.f32 %v967_v52, %v963_v51  ;;  %v1002_v36 = vadd.f32 %v1001_v53, %v1000_v46  ;;  %v964_v55 = vmul.f32 %v767_v31, %v1613_v24  ;;  %v769_v20 = vpop.f32.mrb[5].mxu1 }
 0x11c   : > { %v991_v13 = vrot.slane %v990_v1, 1  ;;  %v1015_v26 = vrot.slane %v1014_v17, 4  ;;  %v1009_v18 = vadd.f32 %v1008_v25, %v1007_v50  ;;  %v965_v57 = vmul.f32 %v769_v20, %v1617_v12  ;;  %v771_v15 = vpop.f32.mrb[6].mxu1 }
 0x11d   : > { %v998_v14 = vrot.slane %v997_v23, 1  ;;  %v1022_v59 = vrot.slane %v1021_v7, 4  ;;  %v813_v60 = vpop.f32.mrb[8].mxu0  ;;  %v1003_v62 = vrot.slane %v1002_v36, 2  ;;  %v968_v2 = vmul.f32 %v771_v15, %v1615_v28  ;;  %v773_v3 = vpop.f32.mrb[7].mxu1 }
 0x11e   : > { %v1631_v61 = vadd.f32 %v991_v13, %v990_v1  ;;  %v1016_v63 = vadd.f32 %v1015_v26, %v1014_v17  ;;  %v815_v4 = vpop.f32.mrb[9].mxu0  ;;  %v1010_v8 = vrot.slane %v1009_v18, 2  ;;  %v969_v16 = vmul.f32 %v773_v3, %v1619_v0 }
 0x11f   : > { %v1634_v6 = vadd.f32 %v998_v14, %v997_v23  ;;  %v1023_v11 = vadd.f32 %v1022_v59, %v1021_v7  ;;  %v817_v21 = vpop.f32.mrb[10].mxu0  ;;  %v1004_v22 = vadd.f32 %v1003_v62, %v1002_v36  ;;  %v1028_v5 = vadd.f32 %v968_v2, %v964_v55 }
 0x120   : > { %v1017_v9 = vrot.slane %v1016_v63, 2  ;;  %v970_v27 = vmul.f32 %v813_v60, %v1580_v54  ;;  %v819_v29 = vpop.f32.mrb[11].mxu0  ;;  %v1011_v32 = vadd.f32 %v1010_v8, %v1009_v18  ;;  %v1035_v33 = vadd.f32 %v969_v16, %v965_v57 }
 0x121   : > { %v1114_v30 = vcombine.low %v1631_v61, %v1634_v6  ;;  %v1024_v19 = vrot.slane %v1023_v11, 2  ;;  %v1005_v34 = vrot.slane %v1004_v22, 1  ;;  %v1029_v37 = vrot.slane %v1028_v5, 4 }
 0x122   : > { %v1018_v35 = vadd.f32 %v1017_v9, %v1016_v63  ;;  %v971_v38 = vmul.f32 %v815_v4, %v1595_v58  ;;  %v1012_v39 = vrot.slane %v1011_v32, 1  ;;  %v1036_v41 = vrot.slane %v1035_v33, 4  ;;  %v856_v42 = vpop.f32.mrb[8].mxu1 }
 0x123   : > { %v1025_v40 = vadd.f32 %v1024_v19, %v1023_v11  ;;  %v974_v43 = vmul.f32 %v817_v21, %v1592_v56  ;;  %v1642_v44 = vadd.f32 %v1005_v34, %v1004_v22  ;;  %v1030_v46 = vadd.f32 %v1029_v37, %v1028_v5  ;;  %v858_v48 = vpop.f32.mrb[9].mxu1 }
 0x124   : > { %v1019_v45 = vrot.slane %v1018_v35, 1  ;;  %v972_v47 = vmul.f32 %v856_v42, %v1613_v24  ;;  %v1645_v49 = vadd.f32 %v1012_v39, %v1011_v32  ;;  %v1037_v51 = vadd.f32 %v1036_v41, %v1035_v33  ;;  %v860_v1 = vpop.f32.mrb[10].mxu1 }
 0x125   : > { %v1026_v50 = vrot.slane %v1025_v40, 1  ;;  %v973_v52 = vmul.f32 %v858_v48, %v1617_v12  ;;  %v902_v53 = vpop.f32.mrb[12].mxu0  ;;  %v1031_v23 = vrot.slane %v1030_v46, 2  ;;  %v1042_v25 = vadd.f32 %v974_v43, %v970_v27  ;;  %v862_v7 = vpop.f32.mrb[11].mxu1 }
 0x126   : > { %v1020_v17 = vadd.f32 %v1019_v45, %v1018_v35  ;;  %v976_v31 = vmul.f32 %v860_v1, %v1615_v28  ;;  %v904_v13 = vpop.f32.mrb[13].mxu0  ;;  %v1115_v36 = vcombine.low %v1642_v44, %v1645_v49  ;;  %v1038_v20 = vrot.slane %v1037_v51, 2 }
 0x127   : > { %v1027_v55 = vadd.f32 %v1026_v50, %v1025_v40  ;;  %v975_v26 = vmul.f32 %v819_v29, %v1597_v10  ;;  %v906_v14 = vpop.f32.mrb[14].mxu0  ;;  %v1032_v18 = vadd.f32 %v1031_v23, %v1030_v46  ;;  %v1043_v57 = vrot.slane %v1042_v25, 4 }
 0x128   : > { %v1056_v15 = vadd.f32 %v976_v31, %v972_v47  ;;  %v977_v59 = vmul.f32 %v862_v7, %v1619_v0  ;;  %v908_v60 = vpop.f32.mrb[15].mxu0  ;;  %v1039_v62 = vadd.f32 %v1038_v20, %v1037_v51  ;;  %v978_v2 = vmul.f32 %v902_v53, %v1580_v54 }
 0x129   : > { %v1116_v61 = vcombine.low %v1020_v17, %v1027_v55  ;;  %v1049_v63 = vadd.f32 %v975_v26, %v971_v38  ;;  %v1033_v3 = vrot.slane %v1032_v18, 1  ;;  %v1044_v4 = vadd.f32 %v1043_v57, %v1042_v25 }
 0x12a   : > { %v1057_v6 = vrot.slane %v1056_v15, 4  ;;  %v1063_v8 = vadd.f32 %v977_v59, %v973_v52  ;;  %v1040_v16 = vrot.slane %v1039_v62, 1  ;;  %v945_v22 = vpop.f32.mrb[12].mxu1  ;;  %v979_v9 = vmul.f32 %v904_v13, %v1595_v58 }
 0x12b   : > { %v1122_v11 = vrot.slane %v1116_v61, 7  ;;  %v1050_v21 = vrot.slane %v1049_v63, 4  ;;  %v1034_v5 = vadd.f32 %v1033_v3, %v1032_v18  ;;  %v1045_v27 = vrot.slane %v1044_v4, 2  ;;  %v947_v19 = vpop.f32.mrb[13].mxu1 }
 0x12c   : > { %v1058_v29 = vadd.f32 %v1057_v6, %v1056_v15  ;;  %v1064_v32 = vrot.slane %v1063_v8, 4  ;;  %v1041_v34 = vadd.f32 %v1040_v16, %v1039_v62  ;;  %v980_v54 = vmul.f32 %v945_v22, %v1613_v24  ;;  %v949_v37 = vpop.f32.mrb[14].mxu1 }
 0x12d   : > { %v1124_v33 = vsel %vm1123_vm1, %v1122_v11, %v1114_v30  ;;  %v1051_v35 = vadd.f32 %v1050_v21, %v1049_v63  ;;  %v1046_v39 = vadd.f32 %v1045_v27, %v1044_v4  ;;  %v951_v42 = vpop.f32.mrb[15].mxu1  ;;  %v981_v44 = vmul.f32 %v947_v19, %v1617_v12 }
 0x12e   : > { %v1126_v38 = vsel %vm1125_vm2, %v1122_v11, %v1124_v33  ;;  %v1059_v40 = vrot.slane %v1058_v29, 2  ;;  %v1065_v41 = vadd.f32 %v1064_v32, %v1063_v8  ;;  %v1117_v43 = vcombine.low %v1034_v5, %v1041_v34 }
 0x12f   : > { %v1052_v58 = vrot.slane %v1051_v35, 2  ;;  %v982_v45 = vmul.f32 %v906_v14, %v1592_v56  ;;  %v1047_v46 = vrot.slane %v1046_v39, 1  ;;  %v984_v48 = vmul.f32 %v949_v37, %v1615_v28 }
 0x130   : > { %v1060_v47 = vadd.f32 %v1059_v40, %v1058_v29  ;;  %v1066_v30 = vrot.slane %v1065_v41, 2  ;;  %v1137_v49 = vrot.slane %v1117_v43, 7  ;;  %v983_v51 = vmul.f32 %v908_v60, %v1597_v10 }
 0x131   : > { %v1053_v24 = vadd.f32 %v1052_v58, %v1051_v35  ;;  %v1070_v50 = vadd.f32 %v982_v45, %v978_v2  ;;  %v1048_v52 = vadd.f32 %v1047_v46, %v1046_v39  ;;  %v1084_v17 = vadd.f32 %v984_v48, %v980_v54 }
 0x132   : > { %v1061_v1 = vrot.slane %v1060_v47, 1  ;;  %v1067_v53 = vadd.f32 %v1066_v30, %v1065_v41  ;;  %v1138_v23 = vsel %vm1123_vm1, %v1137_v49, %v1115_v36  ;;  %v1077_v31 = vadd.f32 %v983_v51, %v979_v9 }
 0x133   : > { %v1054_v25 = vrot.slane %v1053_v24, 1  ;;  %v1071_v12 = vrot.slane %v1070_v50, 4  ;;  %v1139_v56 = vsel %vm1125_vm2, %v1137_v49, %v1138_v23  ;;  %v1085_v55 = vrot.slane %v1084_v17, 4 }
 0x134   : > { %v1062_v7 = vadd.f32 %v1061_v1, %v1060_v47  ;;  %v1068_v13 = vrot.slane %v1067_v53, 1  ;;  %v1078_v26 = vrot.slane %v1077_v31, 4  ;;  %v985_v14 = vmul.f32 %v951_v42, %v1619_v0 }
 0x135   : > { %v1055_v28 = vadd.f32 %v1054_v25, %v1053_v24  ;;  %v1072_v20 = vadd.f32 %v1071_v12, %v1070_v50  ;;  %v1086_v18 = vadd.f32 %v1085_v55, %v1084_v17 }
 0x136   : > { %v1069_v10 = vadd.f32 %v1068_v13, %v1067_v53  ;;  %v1079_v59 = vadd.f32 %v1078_v26, %v1077_v31  ;;  %v1091_v60 = vadd.f32 %v985_v14, %v981_v44 }
 0x137   : > { %v1118_v57 = vcombine.low %v1048_v52, %v1055_v28  ;;  %v1073_v15 = vrot.slane %v1072_v20, 2  ;;  %v1087_v61 = vrot.slane %v1086_v18, 2 }
 0x138   : > { %v1119_v36 = vcombine.low %v1062_v7, %v1069_v10  ;;  %v1080_v2 = vrot.slane %v1079_v59, 2  ;;  %v1092_v3 = vrot.slane %v1091_v60, 4 }
 0x139   : > { %v1127_v62 = vrot.slane %v1118_v57, 6  ;;  %v1074_v63 = vadd.f32 %v1073_v15, %v1072_v20  ;;  %v1088_v6 = vadd.f32 %v1087_v61, %v1086_v18 }
 0x13a   : > { %v1140_v4 = vrot.slane %v1119_v36, 6  ;;  %v1081_v0 = vadd.f32 %v1080_v2, %v1079_v59  ;;  %v1093_v16 = vadd.f32 %v1092_v3, %v1091_v60 }
 0x13b   : > { %v1129_v8 = vsel %vm1128_vm3, %v1127_v62, %v1126_v38  ;;  %v1075_v11 = vrot.slane %v1074_v63, 1  ;;  %v1089_v9 = vrot.slane %v1088_v6, 1 }
 0x13c   : > { %v1131_v21 = vsel %vm1130_vm4, %v1127_v62, %v1129_v8  ;;  %v1141_v22 = vsel %vm1128_vm3, %v1140_v4, %v1139_v56  ;;  %v1082_v29 = vrot.slane %v1081_v0, 1  ;;  %v1094_v32 = vrot.slane %v1093_v16, 2 }
 0x13d   : > { %v1142_v5 = vsel %vm1130_vm4, %v1140_v4, %v1141_v22  ;;  %v1076_v27 = vadd.f32 %v1075_v11, %v1074_v63  ;;  %v1090_v34 = vadd.f32 %v1089_v9, %v1088_v6 }
 0x13e   : > { %v1083_v19 = vadd.f32 %v1082_v29, %v1081_v0  ;;  %v1095_v33 = vadd.f32 %v1094_v32, %v1093_v16 }
 0x140   : > { %v1120_v35 = vcombine.low %v1076_v27, %v1083_v19  ;;  %v1096_v54 = vrot.slane %v1095_v33, 1 }
 0x142   : > { %v1132_v37 = vrot.slane %v1120_v35, 5  ;;  %v1097_v38 = vadd.f32 %v1096_v54, %v1095_v33 }
 0x144   : > { %v1134_v39 = vsel %vm1133_vm5, %v1132_v37, %v1131_v21  ;;  %v1121_v40 = vcombine.low %v1090_v34, %v1097_v38 }
 0x145   : > { %v1136_v41 = vsel %vm1135_vm6, %v1132_v37, %v1134_v39 }
 0x146   : > { %1148 = vst [vmem:[%s201_s3] sm:$0xff] %v1136_v41  ;;  %v1143_v42 = vrot.slane %v1121_v40, 5 }
 0x148   : > { %v1144_v43 = vsel %vm1133_vm5, %v1143_v42, %v1142_v5 }
 0x149   : > { %v1145_v58 = vsel %vm1135_vm6, %v1143_v42, %v1144_v43 }
 0x14a   : > { %1149 = vst [vmem:[%s201_s3 + $0x8] sm:$0xff] %v1145_v58 }
 0x14b PF: > { %s12_s13 = sadd.s32 1, %s1356_s13   ;;  %s1689_s9 = smov %s1348_s11 }
 0x14c   : > { %p9_p7 = scmp.ge.s32.totalorder %s12_s13, 6   ;;  %s1690_s10 = smov %s1352_s12 }
 0x14d   : > { %s1691_s11 = smov %s1694_s14  ;;  %s1692_s12 = smov %s1698_s15 }
 0x14e   :  { %11 = sbr.rel (!%p9_p7) target bundleno = 3 (0x3), region = 61 }

// kernel: align_module_forward.8
= control target key start
LH: loop header
LB: loop body
LE: loop exit
PB: predicated region body
PF: predicated region fallthrough
CT: control target
= control target key end

     0   :  { %s5313_s12 = smov 0   ;;  %s6966_s0 = inlined_call_operand.vmem [shape: f32[2,8,32,32], index: 0, kind: input, shape index: {}]   ;;  %s6967_s1 = inlined_call_operand.vmem [shape: f32[2,8,32,32], index: 1, kind: input, shape index: {}]   ;;  %s6968_s2 = inlined_call_operand.vmem [shape: f32[9,2,16], index: 2, kind: input, shape index: {}]   ;;  %s6969_s3 = inlined_call_operand.vmem [shape: f32[2,2,1088], index: 3, kind: output, shape index: {}]  }
   0x1 LB: > { %s4902_s13 = sadd.s32 4294967295, %s5250_s12   ;;  %p4906_p0 = scmp.ge.s32.totalorder %s5250_s12, 1  ;;  %s5250_s12 = sphi %s5313_s12, %s13_s12  }
   0x2   : > { %p147_p1 = scmp.lt.s32.totalorder %s5250_s12, 3 }
   0x4   : > { %p148_p2 = pnand %p4906_p0, %p147_p1 }
   0x5   : > { %p176_p3 = scmp.lt.s32.totalorder (!%p148_p2), %s4902_s13, 1  ;;  %vm230_vm0 = vcmask (!%p148_p2), 1041409   ;;  %vm233_vm1 = vcmask (!%p148_p2), 1042434   ;;  %vm236_vm2 = vcmask (!%p148_p2), 1043459   ;;  %vm239_vm3 = vcmask (!%p148_p2), 1044484   ;;  %s5252_s21 = smov (!%p148_p2), 111  }
   0x6   : > { %151 = sbr.rel (%p148_p2) target bundleno = 895 (0x37f), region = 32  ;;  %vm242_vm4 = vcmask (!%p148_p2), 1045509   ;;  %vm245_vm5 = vcmask (!%p148_p2), 1046534   ;;  %vm248_vm6 = vcmask (!%p148_p2), 1047559   ;;  %s5253_s22 = smov (!%p148_p2), 103   ;;  %vm672_vm7 = vcmask (!%p148_p2), 121856  }
   0x7   : > { %s5254_s23 = smov (!%p148_p2), 9   ;;  %s5255_s24 = smov (!%p148_p2), 17   ;;  %vm393_vm8 = vcmask (!%p148_p2), 56320   ;;  %vm463_vm9 = vcmask (!%p148_p2), 334920   ;;  %vm742_vm10 = vcmask (!%p148_p2), 400520   ;;  %vm532_vm11 = vcmask (!%p148_p2), 613720  }
   0x8   : > { %s5256_s25 = smov (!%p148_p2), 43   ;;  %s5257_s26 = smov (!%p148_p2), 51   ;;  %vm811_vm12 = vcmask (!%p148_p2), 679320   ;;  %vm253_vm13 = vcmask (!%p148_p2), 548120   ;;  %vm601_vm14 = vcmask (!%p148_p2), 892520   ;;  %vm670_vm15 = vcmask (!%p148_p2), 1048440  }
   0x9   : > { %s5258_s27 = smov (!%p148_p2), 35   ;;  %s5259_s28 = smov (!%p148_p2), 77  }
   0xa   : > { %s5260_s29 = smov (!%p148_p2), 85   ;;  %s5261_s30 = smov (!%p148_p2), 69  }
   0xb   : > { %s5262_s4 = smov (!%p148_p2), 119   ;;  %s5263_s5 = smov (!%p148_p2), 25  }
   0xc   : > { %s5264_s6 = smov (!%p148_p2), 127   ;;  %s5265_s7 = smov (!%p148_p2), 59  }
   0xd   : > { %s6971_s13 = smov (!%p176_p3, %s4902_s13), 1  ;;  %s5266_s8 = smov 33  }
   0xe   : > { %s4967_s14 = sshll.u32 %s6971_s13, 8  ;;  %s5267_s9 = smov 93  }
   0xf   : > { %s5329_s17 = scalar_lea.vmem %s6966_s0, %s4967_s14  ;;  %s5352_s20 = scalar_lea.vmem %s6967_s1, %s4967_s14 }
  0x10   : > { %v637_v0 = vld [vmem:[%s5329_s17 + $0x6] sm:$0x1]  ;;  %v358_v13 = vld [vmem:[%s5329_s17 + $0x2] sm:$0x1]  ;;  %s5268_s10 = smov 67   ;;  %s5269_s11 = smov 101  }
  0x11   : > { %v638_v1 = vld [vmem:[%s5329_s17 + $0x26] sm:$0x1]  ;;  %v359_v17 = vld [vmem:[%s5329_s17 + $0x22] sm:$0x1]  ;;  %s5270_s14 = smov 109   ;;  %s5271_s15 = smov 7  }
  0x12   : > { %v639_v2 = vld [vmem:[%s5329_s17 + $0x46] sm:$0x1]  ;;  %v653_v8 = vrot.slane %v638_v1, 7  ;;  %v360_v18 = vld [vmem:[%s5329_s17 + $0x42] sm:$0x1]  ;;  %v374_v26 = vrot.slane %v359_v17, 7 }
  0x13   : > { %v640_v3 = vld [vmem:[%s5329_s17 + $0x66] sm:$0x1]  ;;  %v655_v9 = vrot.slane %v639_v2, 6  ;;  %v361_v20 = vld [vmem:[%s5329_s17 + $0x62] sm:$0x1]  ;;  %v376_v27 = vrot.slane %v360_v18, 6 }
  0x14   : > { %v641_v4 = vld [vmem:[%s5329_s17 + $0x86] sm:$0x1]  ;;  %v657_v10 = vrot.slane %v640_v3, 5  ;;  %v654_v14 = vsel %vm230_vm0, %v653_v8, %v637_v0  ;;  %v362_v21 = vld [vmem:[%s5329_s17 + $0x82] sm:$0x1]  ;;  %v378_v29 = vrot.slane %v361_v20, 5  ;;  %v375_v34 = vsel %vm230_vm0, %v374_v26, %v358_v13 }
  0x15   : > { %v642_v5 = vld [vmem:[%s5329_s17 + $0xa6] sm:$0x1]  ;;  %v659_v11 = vrot.slane %v641_v4, 4  ;;  %v656_v19 = vsel %vm233_vm1, %v655_v9, %v654_v14  ;;  %v363_v22 = vld [vmem:[%s5329_s17 + $0xa2] sm:$0x1]  ;;  %v380_v30 = vrot.slane %v362_v21, 4  ;;  %v377_v40 = vsel %vm233_vm1, %v376_v27, %v375_v34 }
  0x16   : > { %v643_v6 = vld [vmem:[%s5329_s17 + $0xc6] sm:$0x1]  ;;  %v661_v12 = vrot.slane %v642_v5, 3  ;;  %v658_v23 = vsel %vm236_vm2, %v657_v10, %v656_v19  ;;  %v364_v24 = vld [vmem:[%s5329_s17 + $0xc2] sm:$0x1]  ;;  %v382_v31 = vrot.slane %v363_v22, 3  ;;  %v379_v45 = vsel %vm236_vm2, %v378_v29, %v377_v40 }
  0x17   : > { %v644_v7 = vld [vmem:[%s5329_s17 + $0xe6] sm:$0x1]  ;;  %v663_v15 = vrot.slane %v643_v6, 2  ;;  %v365_v25 = vld [vmem:[%s5329_s17 + $0xe2] sm:$0x1]  ;;  %v660_v28 = vsel %vm239_vm3, %v659_v11, %v658_v23  ;;  %v384_v35 = vrot.slane %v364_v24, 2  ;;  %v381_v50 = vsel %vm239_vm3, %v380_v30, %v379_v45 }
  0x18   : > { %v665_v16 = vrot.slane %v644_v7, 1  ;;  %v674_v32 = vld [vmem:[%s5352_s20 + $0x6] sm:$0x1]  ;;  %v662_v33 = vsel %vm242_vm4, %v661_v12, %v660_v28  ;;  %v386_v36 = vrot.slane %v365_v25, 1  ;;  %v395_v54 = vld [vmem:[%s5352_s20 + $0x2] sm:$0x1]  ;;  %v383_v55 = vsel %vm242_vm4, %v382_v31, %v381_v50 }
  0x19   : > { %v675_v37 = vld [vmem:[%s5352_s20 + $0x26] sm:$0x1]  ;;  %v664_v39 = vsel %vm245_vm5, %v663_v15, %v662_v33  ;;  %v396_v59 = vld [vmem:[%s5352_s20 + $0x22] sm:$0x1]  ;;  %v385_v61 = vsel %vm245_vm5, %v384_v35, %v383_v55  ;;  %v465_v12 = vld [vmem:[%s5352_s20 + $0x3] sm:$0x1] }
  0x1a   : > { %v676_v38 = vld [vmem:[%s5352_s20 + $0x46] sm:$0x1]  ;;  %v666_v44 = vsel %vm248_vm6, %v665_v16, %v664_v39  ;;  %v690_v48 = vrot.slane %v675_v37, 7  ;;  %v397_v60 = vld [vmem:[%s5352_s20 + $0x42] sm:$0x1]  ;;  %v387_v2 = vsel %vm248_vm6, %v386_v36, %v385_v61  ;;  %v411_v6 = vrot.slane %v396_v59, 7 }
  0x1b   : > { %v677_v41 = vld [vmem:[%s5352_s20 + $0x66] sm:$0x1]  ;;  %v692_v49 = vrot.slane %v676_v38, 6  ;;  %667 = vrot.lane.b32.xlu1 %v666_v44, %s5252_s21  ;;  %v398_v63 = vld [vmem:[%s5352_s20 + $0x62] sm:$0x1]  ;;  %v413_v7 = vrot.slane %v397_v60, 6  ;;  %388 = vrot.lane.b32.xlu0 %v387_v2, %s5253_s22 }
  0x1c   : > { %v678_v42 = vld [vmem:[%s5352_s20 + $0x86] sm:$0x1]  ;;  %v694_v51 = vrot.slane %v677_v41, 5  ;;  %v691_v56 = vsel %vm230_vm0, %v690_v48, %v674_v32  ;;  %v399_v0 = vld [vmem:[%s5352_s20 + $0x82] sm:$0x1]  ;;  %v415_v9 = vrot.slane %v398_v63, 5  ;;  %v412_v14 = vsel %vm230_vm0, %v411_v6, %v395_v54 }
  0x1d   : > { %v679_v43 = vld [vmem:[%s5352_s20 + $0xa6] sm:$0x1]  ;;  %v696_v52 = vrot.slane %v678_v42, 4  ;;  %v693_v62 = vsel %vm233_vm1, %v692_v49, %v691_v56  ;;  %v400_v1 = vld [vmem:[%s5352_s20 + $0xa2] sm:$0x1]  ;;  %v417_v10 = vrot.slane %v399_v0, 4  ;;  %v414_v20 = vsel %vm233_vm1, %v413_v7, %v412_v14 }
  0x1e   : > { %v680_v46 = vld [vmem:[%s5352_s20 + $0xc6] sm:$0x1]  ;;  %v698_v53 = vrot.slane %v679_v43, 3  ;;  %v695_v3 = vsel %vm236_vm2, %v694_v51, %v693_v62  ;;  %v401_v4 = vld [vmem:[%s5352_s20 + $0xc2] sm:$0x1]  ;;  %v419_v11 = vrot.slane %v400_v1, 3  ;;  %v416_v25 = vsel %vm236_vm2, %v415_v9, %v414_v20 }
  0x1f   : > { %v681_v47 = vld [vmem:[%s5352_s20 + $0xe6] sm:$0x1]  ;;  %v700_v57 = vrot.slane %v680_v46, 2  ;;  %v402_v5 = vld [vmem:[%s5352_s20 + $0xe2] sm:$0x1]  ;;  %v697_v8 = vsel %vm239_vm3, %v696_v52, %v695_v3  ;;  %v421_v15 = vrot.slane %v401_v4, 2  ;;  %v418_v30 = vsel %vm239_vm3, %v417_v10, %v416_v25 }
  0x20   : > { %v702_v58 = vrot.slane %v681_v47, 1  ;;  %v699_v13 = vsel %vm242_vm4, %v698_v53, %v697_v8  ;;  %v423_v16 = vrot.slane %v402_v5, 1  ;;  %v466_v17 = vld [vmem:[%s5352_s20 + $0x23] sm:$0x1]  ;;  %v420_v35 = vsel %vm242_vm4, %v419_v11, %v418_v30  ;;  %v744_v56 = vld [vmem:[%s5352_s20 + $0x7] sm:$0x1] }
  0x21   : > { %v467_v18 = vld [vmem:[%s5352_s20 + $0x43] sm:$0x1]  ;;  %v701_v19 = vsel %vm245_vm5, %v700_v57, %v699_v13  ;;  %v481_v28 = vrot.slane %v466_v17, 7  ;;  %v422_v41 = vsel %vm245_vm5, %v421_v15, %v420_v35  ;;  %v745_v61 = vld [vmem:[%s5352_s20 + $0x27] sm:$0x1]  ;;  %s5272_s16 = smov 15  }
  0x22   : > { %v468_v21 = vld [vmem:[%s5352_s20 + $0x63] sm:$0x1]  ;;  %v703_v24 = vsel %vm248_vm6, %v702_v58, %v701_v19  ;;  %v483_v29 = vrot.slane %v467_v18, 6  ;;  %v424_v46 = vsel %vm248_vm6, %v423_v16, %v422_v41  ;;  %v746_v62 = vld [vmem:[%s5352_s20 + $0x47] sm:$0x1]  ;;  %v760_v8 = vrot.slane %v745_v61, 7 }
  0x23   : > { %v469_v22 = vld [vmem:[%s5352_s20 + $0x83] sm:$0x1]  ;;  %704 = vrot.lane.b32.xlu1 %v703_v24, %s5252_s21  ;;  %v485_v31 = vrot.slane %v468_v21, 5  ;;  %v482_v36 = vsel %vm230_vm0, %v481_v28, %v465_v12  ;;  %425 = vrot.lane.b32.xlu0 %v424_v46, %s5253_s22  ;;  %v747_v1 = vld [vmem:[%s5352_s20 + $0x67] sm:$0x1]  ;;  %v762_v9 = vrot.slane %v746_v62, 6 }
  0x24   : > { %v470_v23 = vld [vmem:[%s5352_s20 + $0xa3] sm:$0x1]  ;;  %v487_v32 = vrot.slane %v469_v22, 4  ;;  %v484_v42 = vsel %vm233_vm1, %v483_v29, %v482_v36  ;;  %v748_v2 = vld [vmem:[%s5352_s20 + $0x87] sm:$0x1]  ;;  %v764_v11 = vrot.slane %v747_v1, 5  ;;  %v761_v16 = vsel %vm230_vm0, %v760_v8, %v744_v56 }
  0x25   : > { %v471_v26 = vld [vmem:[%s5352_s20 + $0xc3] sm:$0x1]  ;;  %v489_v33 = vrot.slane %v470_v23, 3  ;;  %v486_v47 = vsel %vm236_vm2, %v485_v31, %v484_v42  ;;  %v749_v3 = vld [vmem:[%s5352_s20 + $0xa7] sm:$0x1]  ;;  %v766_v12 = vrot.slane %v748_v2, 4  ;;  %v763_v22 = vsel %vm233_vm1, %v762_v9, %v761_v16 }
  0x26   : > { %v472_v27 = vld [vmem:[%s5352_s20 + $0xe3] sm:$0x1]  ;;  %v491_v37 = vrot.slane %v471_v26, 2  ;;  %v488_v52 = vsel %vm239_vm3, %v487_v32, %v486_v47  ;;  %v750_v6 = vld [vmem:[%s5352_s20 + $0xc7] sm:$0x1]  ;;  %v768_v13 = vrot.slane %v749_v3, 3 }
  0x27   : > { %v430_v34 = vld [vmem:[%s5329_s17 + $0x3] sm:$0x1]  ;;  %v493_v38 = vrot.slane %v472_v27, 1  ;;  %v490_v57 = vsel %vm242_vm4, %v489_v33, %v488_v52  ;;  %v751_v7 = vld [vmem:[%s5352_s20 + $0xe7] sm:$0x1]  ;;  %v770_v17 = vrot.slane %v750_v6, 2  ;;  %v765_v27 = vsel %vm236_vm2, %v764_v11, %v763_v22 }
  0x28   : > { %v431_v39 = vld [vmem:[%s5329_s17 + $0x23] sm:$0x1]  ;;  %v492_v63 = vsel %vm245_vm5, %v491_v37, %v490_v57  ;;  %v709_v14 = vld [vmem:[%s5329_s17 + $0x7] sm:$0x1]  ;;  %v772_v18 = vrot.slane %v751_v7, 1  ;;  %v767_v32 = vsel %vm239_vm3, %v766_v12, %v765_v27  ;;  %s5273_s18 = smov 41  }
  0x29   : > { %v432_v40 = vld [vmem:[%s5329_s17 + $0x43] sm:$0x1]  ;;  %v446_v50 = vrot.slane %v431_v39, 7  ;;  %v494_v4 = vsel %vm248_vm6, %v493_v38, %v492_v63  ;;  %v710_v19 = vld [vmem:[%s5329_s17 + $0x27] sm:$0x1]  ;;  %v769_v37 = vsel %vm242_vm4, %v768_v13, %v767_v32  ;;  %s5274_s19 = smov 49  }
  0x2a   : > { %v433_v43 = vld [vmem:[%s5329_s17 + $0x63] sm:$0x1]  ;;  %v448_v51 = vrot.slane %v432_v40, 6  ;;  %495 = vrot.lane.b32.xlu1 %v494_v4, %s5254_s23  ;;  %v711_v20 = vld [vmem:[%s5329_s17 + $0x47] sm:$0x1]  ;;  %v725_v30 = vrot.slane %v710_v19, 7 }
  0x2b   : > { %v434_v44 = vld [vmem:[%s5329_s17 + $0x83] sm:$0x1]  ;;  %v450_v53 = vrot.slane %v433_v43, 5  ;;  %v447_v58 = vsel %vm230_vm0, %v446_v50, %v430_v34  ;;  %v712_v23 = vld [vmem:[%s5329_s17 + $0x67] sm:$0x1]  ;;  %v727_v31 = vrot.slane %v711_v20, 6  ;;  %v771_v43 = vsel %vm245_vm5, %v770_v17, %v769_v37 }
  0x2c   : > { %v435_v45 = vld [vmem:[%s5329_s17 + $0xa3] sm:$0x1]  ;;  %v452_v54 = vrot.slane %v434_v44, 4  ;;  %v449_v0 = vsel %vm233_vm1, %v448_v51, %v447_v58  ;;  %v713_v24 = vld [vmem:[%s5329_s17 + $0x87] sm:$0x1]  ;;  %v729_v33 = vrot.slane %v712_v23, 5  ;;  %v726_v38 = vsel %vm230_vm0, %v725_v30, %v709_v14 }
  0x2d   : > { %v436_v48 = vld [vmem:[%s5329_s17 + $0xc3] sm:$0x1]  ;;  %v454_v55 = vrot.slane %v435_v45, 3  ;;  %v451_v5 = vsel %vm236_vm2, %v450_v53, %v449_v0  ;;  %v714_v25 = vld [vmem:[%s5329_s17 + $0xa7] sm:$0x1]  ;;  %v731_v34 = vrot.slane %v713_v24, 4  ;;  %v728_v44 = vsel %vm233_vm1, %v727_v31, %v726_v38 }
  0x2e   : > { %v437_v49 = vld [vmem:[%s5329_s17 + $0xe3] sm:$0x1]  ;;  %v456_v59 = vrot.slane %v436_v48, 2  ;;  %v453_v10 = vsel %vm239_vm3, %v452_v54, %v451_v5  ;;  %v715_v28 = vld [vmem:[%s5329_s17 + $0xc7] sm:$0x1]  ;;  %v733_v35 = vrot.slane %v714_v25, 3  ;;  %v773_v48 = vsel %vm248_vm6, %v772_v18, %v771_v43 }
  0x2f   : > { %v458_v60 = vrot.slane %v437_v49, 1  ;;  %v455_v15 = vsel %vm242_vm4, %v454_v55, %v453_v10  ;;  %v716_v29 = vld [vmem:[%s5329_s17 + $0xe7] sm:$0x1]  ;;  %v534_v36 = vld [vmem:[%s5352_s20 + $0x4] sm:$0x1]  ;;  %v735_v39 = vrot.slane %v715_v28, 2  ;;  %v730_v49 = vsel %vm236_vm2, %v729_v33, %v728_v44  ;;  %774 = vrot.lane.b32.xlu1 %v773_v48, %s5255_s24 }
  0x30   : > { %v457_v21 = vsel %vm245_vm5, %v456_v59, %v455_v15  ;;  %v737_v40 = vrot.slane %v716_v29, 1  ;;  %v535_v41 = vld [vmem:[%s5352_s20 + $0x24] sm:$0x1]  ;;  %v732_v54 = vsel %vm239_vm3, %v731_v34, %v730_v49  ;;  %v813_v16 = vld [vmem:[%s5352_s20 + $0x8] sm:$0x1]  ;;  %s5275_s21 = smov 75  }
  0x31   : > { %v459_v26 = vsel %vm248_vm6, %v458_v60, %v457_v21  ;;  %v536_v42 = vld [vmem:[%s5352_s20 + $0x44] sm:$0x1]  ;;  %v550_v52 = vrot.slane %v535_v41, 7  ;;  %v734_v59 = vsel %vm242_vm4, %v733_v35, %v732_v54  ;;  %v814_v21 = vld [vmem:[%s5352_s20 + $0x28] sm:$0x1]  ;;  %s5276_s22 = smov 83  }
  0x32   : > { %460 = vrot.lane.b32.xlu0 %v459_v26, %s5254_s23  ;;  %v537_v45 = vld [vmem:[%s5352_s20 + $0x64] sm:$0x1]  ;;  %v552_v53 = vrot.slane %v536_v42, 6  ;;  %v736_v1 = vsel %vm245_vm5, %v735_v39, %v734_v59  ;;  %v815_v22 = vld [vmem:[%s5352_s20 + $0x48] sm:$0x1]  ;;  %v829_v32 = vrot.slane %v814_v21, 7 }
  0x33   : > { %v538_v46 = vld [vmem:[%s5352_s20 + $0x84] sm:$0x1]  ;;  %v554_v55 = vrot.slane %v537_v45, 5  ;;  %v551_v60 = vsel %vm230_vm0, %v550_v52, %v534_v36  ;;  %v738_v6 = vsel %vm248_vm6, %v737_v40, %v736_v1  ;;  %v816_v25 = vld [vmem:[%s5352_s20 + $0x68] sm:$0x1]  ;;  %v831_v33 = vrot.slane %v815_v22, 6 }
  0x34   : > { %v539_v47 = vld [vmem:[%s5352_s20 + $0xa4] sm:$0x1]  ;;  %v556_v56 = vrot.slane %v538_v46, 4  ;;  %v553_v2 = vsel %vm233_vm1, %v552_v53, %v551_v60  ;;  %v817_v26 = vld [vmem:[%s5352_s20 + $0x88] sm:$0x1]  ;;  %v833_v35 = vrot.slane %v816_v25, 5  ;;  %v830_v40 = vsel %vm230_vm0, %v829_v32, %v813_v16 }
  0x35   : > { %v540_v50 = vld [vmem:[%s5352_s20 + $0xc4] sm:$0x1]  ;;  %v558_v57 = vrot.slane %v539_v47, 3  ;;  %v555_v7 = vsel %vm236_vm2, %v554_v55, %v553_v2  ;;  %v818_v27 = vld [vmem:[%s5352_s20 + $0xa8] sm:$0x1]  ;;  %v835_v36 = vrot.slane %v817_v26, 4  ;;  %v832_v46 = vsel %vm233_vm1, %v831_v33, %v830_v40 }
  0x36   : > { %v541_v51 = vld [vmem:[%s5352_s20 + $0xe4] sm:$0x1]  ;;  %v560_v61 = vrot.slane %v540_v50, 2  ;;  %739 = vrot.lane.b32.xlu0 %v738_v6, %s5255_s24  ;;  %v557_v12 = vsel %vm239_vm3, %v556_v56, %v555_v7  ;;  %v819_v30 = vld [vmem:[%s5352_s20 + $0xc8] sm:$0x1]  ;;  %v837_v37 = vrot.slane %v818_v27, 3 }
  0x37   : > { %v499_v58 = vld [vmem:[%s5329_s17 + $0x4] sm:$0x1]  ;;  %v562_v62 = vrot.slane %v541_v51, 1  ;;  %v559_v17 = vsel %vm242_vm4, %v558_v57, %v557_v12  ;;  %v820_v31 = vld [vmem:[%s5352_s20 + $0xe8] sm:$0x1]  ;;  %v839_v41 = vrot.slane %v819_v30, 2  ;;  %v834_v51 = vsel %vm236_vm2, %v833_v35, %v832_v46 }
  0x38   : > { %v500_v63 = vld [vmem:[%s5329_s17 + $0x24] sm:$0x1]  ;;  %v561_v23 = vsel %vm245_vm5, %v560_v61, %v559_v17  ;;  %v778_v38 = vld [vmem:[%s5329_s17 + $0x8] sm:$0x1]  ;;  %v841_v42 = vrot.slane %v820_v31, 1  ;;  %v836_v56 = vsel %vm239_vm3, %v835_v36, %v834_v51  ;;  %s5277_s23 = smov 117  }
  0x39   : > { %v501_v0 = vld [vmem:[%s5329_s17 + $0x44] sm:$0x1]  ;;  %v515_v10 = vrot.slane %v500_v63, 7  ;;  %v563_v28 = vsel %vm248_vm6, %v562_v62, %v561_v23  ;;  %v779_v43 = vld [vmem:[%s5329_s17 + $0x28] sm:$0x1]  ;;  %v838_v61 = vsel %vm242_vm4, %v837_v37, %v836_v56  ;;  %s5278_s24 = smov 23  }
  0x3a   : > { %v502_v3 = vld [vmem:[%s5329_s17 + $0x64] sm:$0x1]  ;;  %v517_v11 = vrot.slane %v501_v0, 6  ;;  %564 = vrot.lane.b32.xlu1 %v563_v28, %s5256_s25  ;;  %v780_v44 = vld [vmem:[%s5329_s17 + $0x48] sm:$0x1]  ;;  %v794_v54 = vrot.slane %v779_v43, 7 }
  0x3b   : > { %v503_v4 = vld [vmem:[%s5329_s17 + $0x84] sm:$0x1]  ;;  %v519_v13 = vrot.slane %v502_v3, 5  ;;  %v516_v18 = vsel %vm230_vm0, %v515_v10, %v499_v58  ;;  %v781_v47 = vld [vmem:[%s5329_s17 + $0x68] sm:$0x1]  ;;  %v796_v55 = vrot.slane %v780_v44, 6  ;;  %v840_v3 = vsel %vm245_vm5, %v839_v41, %v838_v61 }
  0x3c   : > { %v504_v5 = vld [vmem:[%s5329_s17 + $0xa4] sm:$0x1]  ;;  %v521_v14 = vrot.slane %v503_v4, 4  ;;  %v518_v24 = vsel %vm233_vm1, %v517_v11, %v516_v18  ;;  %v782_v48 = vld [vmem:[%s5329_s17 + $0x88] sm:$0x1]  ;;  %v798_v57 = vrot.slane %v781_v47, 5  ;;  %v795_v62 = vsel %vm230_vm0, %v794_v54, %v778_v38 }
  0x3d   : > { %v505_v8 = vld [vmem:[%s5329_s17 + $0xc4] sm:$0x1]  ;;  %v523_v15 = vrot.slane %v504_v5, 3  ;;  %v520_v29 = vsel %vm236_vm2, %v519_v13, %v518_v24  ;;  %v783_v49 = vld [vmem:[%s5329_s17 + $0xa8] sm:$0x1]  ;;  %v800_v58 = vrot.slane %v782_v48, 4  ;;  %v797_v4 = vsel %vm233_vm1, %v796_v55, %v795_v62 }
  0x3e   : > { %v506_v9 = vld [vmem:[%s5329_s17 + $0xe4] sm:$0x1]  ;;  %v525_v19 = vrot.slane %v505_v8, 2  ;;  %v522_v34 = vsel %vm239_vm3, %v521_v14, %v520_v29  ;;  %v784_v52 = vld [vmem:[%s5329_s17 + $0xc8] sm:$0x1]  ;;  %v802_v59 = vrot.slane %v783_v49, 3  ;;  %v842_v8 = vsel %vm248_vm6, %v841_v42, %v840_v3 }
  0x3f   : > { %v527_v20 = vrot.slane %v506_v9, 1  ;;  %v524_v39 = vsel %vm242_vm4, %v523_v15, %v522_v34  ;;  %v785_v53 = vld [vmem:[%s5329_s17 + $0xe8] sm:$0x1]  ;;  %v255_v60 = vld [vmem:[%s5352_s20] sm:$0x1]  ;;  %v804_v63 = vrot.slane %v784_v52, 2  ;;  %v799_v9 = vsel %vm236_vm2, %v798_v57, %v797_v4  ;;  %843 = vrot.lane.b32.xlu1 %v842_v8, %s5257_s26 }
  0x40   : > { %v526_v45 = vsel %vm245_vm5, %v525_v19, %v524_v39  ;;  %v806_v0 = vrot.slane %v785_v53, 1  ;;  %v256_v1 = vld [vmem:[%s5352_s20 + $0x20] sm:$0x1]  ;;  %v801_v14 = vsel %vm239_vm3, %v800_v58, %v799_v9  ;;  %v603_v40 = vld [vmem:[%s5352_s20 + $0x5] sm:$0x1] }
  0x41   : > { %v528_v50 = vsel %vm248_vm6, %v527_v20, %v526_v45  ;;  %v257_v2 = vld [vmem:[%s5352_s20 + $0x40] sm:$0x1]  ;;  %v271_v12 = vrot.slane %v256_v1, 7  ;;  %v803_v19 = vsel %vm242_vm4, %v802_v59, %v801_v14  ;;  %v604_v45 = vld [vmem:[%s5352_s20 + $0x25] sm:$0x1] }
  0x42   : > { %529 = vrot.lane.b32.xlu0 %v528_v50, %s5256_s25  ;;  %v258_v5 = vld [vmem:[%s5352_s20 + $0x60] sm:$0x1]  ;;  %v273_v13 = vrot.slane %v257_v2, 6  ;;  %v805_v25 = vsel %vm245_vm5, %v804_v63, %v803_v19  ;;  %v605_v46 = vld [vmem:[%s5352_s20 + $0x45] sm:$0x1]  ;;  %v619_v56 = vrot.slane %v604_v45, 7 }
  0x43   : > { %v259_v6 = vld [vmem:[%s5352_s20 + $0x80] sm:$0x1]  ;;  %v275_v15 = vrot.slane %v258_v5, 5  ;;  %v272_v20 = vsel %vm230_vm0, %v271_v12, %v255_v60  ;;  %v807_v30 = vsel %vm248_vm6, %v806_v0, %v805_v25  ;;  %v606_v49 = vld [vmem:[%s5352_s20 + $0x65] sm:$0x1]  ;;  %v621_v57 = vrot.slane %v605_v46, 6 }
  0x44   : > { %v260_v7 = vld [vmem:[%s5352_s20 + $0xa0] sm:$0x1]  ;;  %v277_v16 = vrot.slane %v259_v6, 4  ;;  %v274_v26 = vsel %vm233_vm1, %v273_v13, %v272_v20  ;;  %v607_v50 = vld [vmem:[%s5352_s20 + $0x85] sm:$0x1]  ;;  %v623_v59 = vrot.slane %v606_v49, 5  ;;  %v620_v0 = vsel %vm230_vm0, %v619_v56, %v603_v40 }
  0x45   : > { %v261_v10 = vld [vmem:[%s5352_s20 + $0xc0] sm:$0x1]  ;;  %v279_v17 = vrot.slane %v260_v7, 3  ;;  %v276_v31 = vsel %vm236_vm2, %v275_v15, %v274_v26  ;;  %v608_v51 = vld [vmem:[%s5352_s20 + $0xa5] sm:$0x1]  ;;  %v625_v60 = vrot.slane %v607_v50, 4  ;;  %v622_v6 = vsel %vm233_vm1, %v621_v57, %v620_v0 }
  0x46   : > { %v262_v11 = vld [vmem:[%s5352_s20 + $0xe0] sm:$0x1]  ;;  %v281_v21 = vrot.slane %v261_v10, 2  ;;  %808 = vrot.lane.b32.xlu0 %v807_v30, %s5257_s26  ;;  %v278_v36 = vsel %vm239_vm3, %v277_v16, %v276_v31  ;;  %v609_v54 = vld [vmem:[%s5352_s20 + $0xc5] sm:$0x1]  ;;  %v627_v61 = vrot.slane %v608_v51, 3 }
  0x47   : > { %v213_v18 = vld [vmem:[%s5329_s17] sm:$0x1]  ;;  %v283_v22 = vrot.slane %v262_v11, 1  ;;  %v280_v41 = vsel %vm242_vm4, %v279_v17, %v278_v36  ;;  %v610_v55 = vld [vmem:[%s5352_s20 + $0xe5] sm:$0x1]  ;;  %v629_v1 = vrot.slane %v609_v54, 2  ;;  %v624_v11 = vsel %vm236_vm2, %v623_v59, %v622_v6 }
  0x48   : > { %v214_v23 = vld [vmem:[%s5329_s17 + $0x20] sm:$0x1]  ;;  %v282_v47 = vsel %vm245_vm5, %v281_v21, %v280_v41  ;;  %v568_v62 = vld [vmem:[%s5329_s17 + $0x5] sm:$0x1]  ;;  %v631_v2 = vrot.slane %v610_v55, 1  ;;  %v626_v16 = vsel %vm239_vm3, %v625_v60, %v624_v11  ;;  %s5279_s25 = smov 57  }
  0x49   : > { %v215_v24 = vld [vmem:[%s5329_s17 + $0x40] sm:$0x1]  ;;  %v229_v34 = vrot.slane %v214_v23, 7  ;;  %v284_v52 = vsel %vm248_vm6, %v283_v22, %v282_v47  ;;  %v569_v3 = vld [vmem:[%s5329_s17 + $0x25] sm:$0x1]  ;;  %v628_v21 = vsel %vm242_vm4, %v627_v61, %v626_v16  ;;  %s5281_s26 = smov 125  }
  0x4a   : > { %v216_v27 = vld [vmem:[%s5329_s17 + $0x60] sm:$0x1]  ;;  %v232_v35 = vrot.slane %v215_v24, 6  ;;  %285 = vrot.lane.b32.xlu1 %v284_v52, %s5258_s27  ;;  %v570_v4 = vld [vmem:[%s5329_s17 + $0x45] sm:$0x1]  ;;  %v584_v14 = vrot.slane %v569_v3, 7 }
  0x4b   : > { %v217_v28 = vld [vmem:[%s5329_s17 + $0x80] sm:$0x1]  ;;  %v235_v37 = vrot.slane %v216_v27, 5  ;;  %v231_v42 = vsel %vm230_vm0, %v229_v34, %v213_v18  ;;  %v571_v7 = vld [vmem:[%s5329_s17 + $0x65] sm:$0x1]  ;;  %v586_v15 = vrot.slane %v570_v4, 6  ;;  %v630_v27 = vsel %vm245_vm5, %v629_v1, %v628_v21 }
  0x4c   : > { %v218_v29 = vld [vmem:[%s5329_s17 + $0xa0] sm:$0x1]  ;;  %v238_v38 = vrot.slane %v217_v28, 4  ;;  %v234_v48 = vsel %vm233_vm1, %v232_v35, %v231_v42  ;;  %v572_v8 = vld [vmem:[%s5329_s17 + $0x85] sm:$0x1]  ;;  %v588_v17 = vrot.slane %v571_v7, 5  ;;  %v585_v22 = vsel %vm230_vm0, %v584_v14, %v568_v62 }
  0x4d   : > { %v219_v32 = vld [vmem:[%s5329_s17 + $0xc0] sm:$0x1]  ;;  %v241_v39 = vrot.slane %v218_v29, 3  ;;  %v237_v53 = vsel %vm236_vm2, %v235_v37, %v234_v48  ;;  %v573_v9 = vld [vmem:[%s5329_s17 + $0xa5] sm:$0x1]  ;;  %v590_v18 = vrot.slane %v572_v8, 4  ;;  %v587_v28 = vsel %vm233_vm1, %v586_v15, %v585_v22 }
  0x4e   : > { %v220_v33 = vld [vmem:[%s5329_s17 + $0xe0] sm:$0x1]  ;;  %v244_v43 = vrot.slane %v219_v32, 2  ;;  %v240_v58 = vsel %vm239_vm3, %v238_v38, %v237_v53  ;;  %v574_v12 = vld [vmem:[%s5329_s17 + $0xc5] sm:$0x1]  ;;  %v592_v19 = vrot.slane %v573_v9, 3  ;;  %v632_v32 = vsel %vm248_vm6, %v631_v2, %v630_v27 }
  0x4f   : > { %v247_v44 = vrot.slane %v220_v33, 1  ;;  %v243_v63 = vsel %vm242_vm4, %v241_v39, %v240_v58  ;;  %v575_v13 = vld [vmem:[%s5329_s17 + $0xe5] sm:$0x1]  ;;  %v882_v20 = vld [vmem:[%s5352_s20 + $0x9] sm:$0x1]  ;;  %v594_v23 = vrot.slane %v574_v12, 2  ;;  %v589_v33 = vsel %vm236_vm2, %v588_v17, %v587_v28  ;;  %633 = vrot.lane.b32.xlu1 %v632_v32, %s5259_s28 }
  0x50   : > { %v246_v5 = vsel %vm245_vm5, %v244_v43, %v243_v63  ;;  %v596_v24 = vrot.slane %v575_v13, 1  ;;  %v883_v25 = vld [vmem:[%s5352_s20 + $0x29] sm:$0x1]  ;;  %v591_v38 = vsel %vm239_vm3, %v590_v18, %v589_v33  ;;  %v324_v0 = vld [vmem:[%s5352_s20 + $0x1] sm:$0x1] }
  0x51   : > { %v249_v10 = vsel %vm248_vm6, %v247_v44, %v246_v5  ;;  %v884_v26 = vld [vmem:[%s5352_s20 + $0x49] sm:$0x1]  ;;  %v898_v36 = vrot.slane %v883_v25, 7  ;;  %v593_v43 = vsel %vm242_vm4, %v592_v19, %v591_v38  ;;  %v325_v5 = vld [vmem:[%s5352_s20 + $0x21] sm:$0x1] }
  0x52   : > { %250 = vrot.lane.b32.xlu0 %v249_v10, %s5258_s27  ;;  %v885_v29 = vld [vmem:[%s5352_s20 + $0x69] sm:$0x1]  ;;  %v900_v37 = vrot.slane %v884_v26, 6  ;;  %v595_v49 = vsel %vm245_vm5, %v594_v23, %v593_v43  ;;  %v326_v6 = vld [vmem:[%s5352_s20 + $0x41] sm:$0x1]  ;;  %v340_v16 = vrot.slane %v325_v5, 7 }
  0x53   : > { %v886_v30 = vld [vmem:[%s5352_s20 + $0x89] sm:$0x1]  ;;  %v902_v39 = vrot.slane %v885_v29, 5  ;;  %v899_v44 = vsel %vm230_vm0, %v898_v36, %v882_v20  ;;  %v597_v54 = vsel %vm248_vm6, %v596_v24, %v595_v49  ;;  %v327_v9 = vld [vmem:[%s5352_s20 + $0x61] sm:$0x1]  ;;  %v342_v17 = vrot.slane %v326_v6, 6 }
  0x54   : > { %v887_v31 = vld [vmem:[%s5352_s20 + $0xa9] sm:$0x1]  ;;  %v904_v40 = vrot.slane %v886_v30, 4  ;;  %v901_v50 = vsel %vm233_vm1, %v900_v37, %v899_v44  ;;  %v328_v10 = vld [vmem:[%s5352_s20 + $0x81] sm:$0x1]  ;;  %v344_v19 = vrot.slane %v327_v9, 5  ;;  %v341_v24 = vsel %vm230_vm0, %v340_v16, %v324_v0 }
  0x55   : > { %v888_v34 = vld [vmem:[%s5352_s20 + $0xc9] sm:$0x1]  ;;  %v906_v41 = vrot.slane %v887_v31, 3  ;;  %v903_v55 = vsel %vm236_vm2, %v902_v39, %v901_v50  ;;  %v329_v11 = vld [vmem:[%s5352_s20 + $0xa1] sm:$0x1]  ;;  %v346_v20 = vrot.slane %v328_v10, 4  ;;  %v343_v30 = vsel %vm233_vm1, %v342_v17, %v341_v24 }
  0x56   : > { %v889_v35 = vld [vmem:[%s5352_s20 + $0xe9] sm:$0x1]  ;;  %v908_v45 = vrot.slane %v888_v34, 2  ;;  %598 = vrot.lane.b32.xlu0 %v597_v54, %s5259_s28  ;;  %v905_v60 = vsel %vm239_vm3, %v904_v40, %v903_v55  ;;  %v330_v14 = vld [vmem:[%s5352_s20 + $0xc1] sm:$0x1]  ;;  %v348_v21 = vrot.slane %v329_v11, 3 }
  0x57   : > { %v847_v42 = vld [vmem:[%s5329_s17 + $0x9] sm:$0x1]  ;;  %v910_v46 = vrot.slane %v889_v35, 1  ;;  %v907_v1 = vsel %vm242_vm4, %v906_v41, %v905_v60  ;;  %v331_v15 = vld [vmem:[%s5352_s20 + $0xe1] sm:$0x1]  ;;  %v350_v25 = vrot.slane %v330_v14, 2  ;;  %v345_v35 = vsel %vm236_vm2, %v344_v19, %v343_v30 }
  0x58   : > { %v848_v47 = vld [vmem:[%s5329_s17 + $0x29] sm:$0x1]  ;;  %v909_v7 = vsel %vm245_vm5, %v908_v45, %v907_v1  ;;  %v289_v22 = vld [vmem:[%s5329_s17 + $0x1] sm:$0x1]  ;;  %v352_v26 = vrot.slane %v331_v15, 1  ;;  %v347_v40 = vsel %vm239_vm3, %v346_v20, %v345_v35  ;;  %s5282_s27 = smov 91  }
  0x59   : > { %v849_v48 = vld [vmem:[%s5329_s17 + $0x49] sm:$0x1]  ;;  %v863_v58 = vrot.slane %v848_v47, 7  ;;  %v911_v12 = vsel %vm248_vm6, %v910_v46, %v909_v7  ;;  %v290_v27 = vld [vmem:[%s5329_s17 + $0x21] sm:$0x1]  ;;  %v349_v45 = vsel %vm242_vm4, %v348_v21, %v347_v40  ;;  %s5283_s28 = smov 31  }
  0x5a   : > { %v850_v51 = vld [vmem:[%s5329_s17 + $0x69] sm:$0x1]  ;;  %v865_v59 = vrot.slane %v849_v48, 6  ;;  %912 = vrot.lane.b32.xlu1 %v911_v12, %s5260_s29  ;;  %v291_v28 = vld [vmem:[%s5329_s17 + $0x41] sm:$0x1]  ;;  %v305_v38 = vrot.slane %v290_v27, 7 }
  0x5b   : > { %v851_v52 = vld [vmem:[%s5329_s17 + $0x89] sm:$0x1]  ;;  %v867_v61 = vrot.slane %v850_v51, 5  ;;  %v864_v2 = vsel %vm230_vm0, %v863_v58, %v847_v42  ;;  %v292_v31 = vld [vmem:[%s5329_s17 + $0x61] sm:$0x1]  ;;  %v307_v39 = vrot.slane %v291_v28, 6  ;;  %v351_v51 = vsel %vm245_vm5, %v350_v25, %v349_v45 }
  0x5c   : > { %v852_v53 = vld [vmem:[%s5329_s17 + $0xa9] sm:$0x1]  ;;  %v869_v62 = vrot.slane %v851_v52, 4  ;;  %v866_v8 = vsel %vm233_vm1, %v865_v59, %v864_v2  ;;  %v293_v32 = vld [vmem:[%s5329_s17 + $0x81] sm:$0x1]  ;;  %v309_v41 = vrot.slane %v292_v31, 5  ;;  %v306_v46 = vsel %vm230_vm0, %v305_v38, %v289_v22 }
  0x5d   : > { %v853_v56 = vld [vmem:[%s5329_s17 + $0xc9] sm:$0x1]  ;;  %v871_v63 = vrot.slane %v852_v53, 3  ;;  %v868_v13 = vsel %vm236_vm2, %v867_v61, %v866_v8  ;;  %v294_v33 = vld [vmem:[%s5329_s17 + $0xa1] sm:$0x1]  ;;  %v311_v42 = vrot.slane %v293_v32, 4  ;;  %v308_v52 = vsel %vm233_vm1, %v307_v39, %v306_v46 }
  0x5e   : > { %v854_v57 = vld [vmem:[%s5329_s17 + $0xe9] sm:$0x1]  ;;  %v873_v3 = vrot.slane %v853_v56, 2  ;;  %v870_v18 = vsel %vm239_vm3, %v869_v62, %v868_v13  ;;  %v295_v36 = vld [vmem:[%s5329_s17 + $0xc1] sm:$0x1]  ;;  %v313_v43 = vrot.slane %v294_v33, 3  ;;  %v353_v56 = vsel %vm248_vm6, %v352_v26, %v351_v51 }
  0x5f   : > { %v875_v4 = vrot.slane %v854_v57, 1  ;;  %v872_v23 = vsel %vm242_vm4, %v871_v63, %v870_v18  ;;  %v296_v37 = vld [vmem:[%s5329_s17 + $0xe1] sm:$0x1]  ;;  %v953_v44 = vld [vmem:[%s5352_s20 + $0xa] sm:$0x1]  ;;  %v315_v47 = vrot.slane %v295_v36, 2  ;;  %v310_v57 = vsel %vm236_vm2, %v309_v41, %v308_v52  ;;  %354 = vrot.lane.b32.xlu1 %v353_v56, %s5261_s30 }
  0x60   : > { %v874_v29 = vsel %vm245_vm5, %v873_v3, %v872_v23  ;;  %v317_v48 = vrot.slane %v296_v37, 1  ;;  %v954_v49 = vld [vmem:[%s5352_s20 + $0x2a] sm:$0x1]  ;;  %v312_v62 = vsel %vm239_vm3, %v311_v42, %v310_v57  ;;  %v1023_v24 = vld [vmem:[%s5352_s20 + $0xb] sm:$0x1] }
  0x61   : > { %v876_v34 = vsel %vm248_vm6, %v875_v4, %v874_v29  ;;  %v955_v50 = vld [vmem:[%s5352_s20 + $0x4a] sm:$0x1]  ;;  %v969_v60 = vrot.slane %v954_v49, 7  ;;  %v314_v3 = vsel %vm242_vm4, %v313_v43, %v312_v62  ;;  %v1024_v29 = vld [vmem:[%s5352_s20 + $0x2b] sm:$0x1] }
  0x62   : > { %877 = vrot.lane.b32.xlu0 %v876_v34, %s5260_s29  ;;  %v956_v53 = vld [vmem:[%s5352_s20 + $0x6a] sm:$0x1]  ;;  %v971_v61 = vrot.slane %v955_v50, 6  ;;  %v316_v9 = vsel %vm245_vm5, %v315_v47, %v314_v3  ;;  %v1025_v30 = vld [vmem:[%s5352_s20 + $0x4b] sm:$0x1]  ;;  %v1039_v40 = vrot.slane %v1024_v29, 7 }
  0x63   : > { %v957_v54 = vld [vmem:[%s5352_s20 + $0x8a] sm:$0x1]  ;;  %v973_v63 = vrot.slane %v956_v53, 5  ;;  %v970_v4 = vsel %vm230_vm0, %v969_v60, %v953_v44  ;;  %v318_v14 = vsel %vm248_vm6, %v317_v48, %v316_v9  ;;  %v1026_v33 = vld [vmem:[%s5352_s20 + $0x6b] sm:$0x1]  ;;  %v1041_v41 = vrot.slane %v1025_v30, 6 }
  0x64   : > { %v958_v55 = vld [vmem:[%s5352_s20 + $0xaa] sm:$0x1]  ;;  %v975_v0 = vrot.slane %v957_v54, 4  ;;  %v972_v10 = vsel %vm233_vm1, %v971_v61, %v970_v4  ;;  %v1027_v34 = vld [vmem:[%s5352_s20 + $0x8b] sm:$0x1]  ;;  %v1043_v43 = vrot.slane %v1026_v33, 5  ;;  %v1040_v48 = vsel %vm230_vm0, %v1039_v40, %v1023_v24 }
  0x65   : > { %v959_v58 = vld [vmem:[%s5352_s20 + $0xca] sm:$0x1]  ;;  %v977_v1 = vrot.slane %v958_v55, 3  ;;  %v974_v15 = vsel %vm236_vm2, %v973_v63, %v972_v10  ;;  %v1028_v35 = vld [vmem:[%s5352_s20 + $0xab] sm:$0x1]  ;;  %v1045_v44 = vrot.slane %v1027_v34, 4  ;;  %v1042_v54 = vsel %vm233_vm1, %v1041_v41, %v1040_v48 }
  0x66   : > { %v960_v59 = vld [vmem:[%s5352_s20 + $0xea] sm:$0x1]  ;;  %v979_v5 = vrot.slane %v959_v58, 2  ;;  %319 = vrot.lane.b32.xlu0 %v318_v14, %s5261_s30  ;;  %v976_v20 = vsel %vm239_vm3, %v975_v0, %v974_v15  ;;  %v1029_v38 = vld [vmem:[%s5352_s20 + $0xcb] sm:$0x1]  ;;  %v1047_v45 = vrot.slane %v1028_v35, 3 }
  0x67   : > { %v916_v2 = vld [vmem:[%s5329_s17 + $0xa] sm:$0x1]  ;;  %v981_v6 = vrot.slane %v960_v59, 1  ;;  %v978_v25 = vsel %vm242_vm4, %v977_v1, %v976_v20  ;;  %v1030_v39 = vld [vmem:[%s5352_s20 + $0xeb] sm:$0x1]  ;;  %v1049_v49 = vrot.slane %v1029_v38, 2  ;;  %v1044_v59 = vsel %vm236_vm2, %v1043_v43, %v1042_v54 }
  0x68   : > { %v917_v7 = vld [vmem:[%s5329_s17 + $0x2a] sm:$0x1]  ;;  %v980_v31 = vsel %vm245_vm5, %v979_v5, %v978_v25  ;;  %v988_v46 = vld [vmem:[%s5329_s17 + $0xb] sm:$0x1]  ;;  %v1051_v50 = vrot.slane %v1030_v39, 1  ;;  %v1046_v0 = vsel %vm239_vm3, %v1045_v44, %v1044_v59 }
  0x69   : > { %v918_v8 = vld [vmem:[%s5329_s17 + $0x4a] sm:$0x1]  ;;  %v932_v18 = vrot.slane %v917_v7, 7  ;;  %v982_v36 = vsel %vm248_vm6, %v981_v6, %v980_v31  ;;  %v989_v51 = vld [vmem:[%s5329_s17 + $0x2b] sm:$0x1]  ;;  %v1048_v5 = vsel %vm242_vm4, %v1047_v45, %v1046_v0 }
  0x6a   : > { %v919_v11 = vld [vmem:[%s5329_s17 + $0x6a] sm:$0x1]  ;;  %v934_v19 = vrot.slane %v918_v8, 6  ;;  %983 = vrot.lane.b32.xlu1 %v982_v36, %s5262_s4  ;;  %v990_v52 = vld [vmem:[%s5329_s17 + $0x4b] sm:$0x1]  ;;  %v1004_v62 = vrot.slane %v989_v51, 7 }
  0x6b   : > { %v920_v12 = vld [vmem:[%s5329_s17 + $0x8a] sm:$0x1]  ;;  %v936_v21 = vrot.slane %v919_v11, 5  ;;  %v933_v26 = vsel %vm230_vm0, %v932_v18, %v916_v2  ;;  %v991_v55 = vld [vmem:[%s5329_s17 + $0x6b] sm:$0x1]  ;;  %v1006_v63 = vrot.slane %v990_v52, 6  ;;  %v1050_v11 = vsel %vm245_vm5, %v1049_v49, %v1048_v5 }
  0x6c   : > { %v921_v13 = vld [vmem:[%s5329_s17 + $0xaa] sm:$0x1]  ;;  %v938_v22 = vrot.slane %v920_v12, 4  ;;  %v935_v32 = vsel %vm233_vm1, %v934_v19, %v933_v26  ;;  %v992_v56 = vld [vmem:[%s5329_s17 + $0x8b] sm:$0x1]  ;;  %v1008_v1 = vrot.slane %v991_v55, 5  ;;  %v1005_v6 = vsel %vm230_vm0, %v1004_v62, %v988_v46 }
  0x6d   : > { %v922_v16 = vld [vmem:[%s5329_s17 + $0xca] sm:$0x1]  ;;  %v940_v23 = vrot.slane %v921_v13, 3  ;;  %v937_v37 = vsel %vm236_vm2, %v936_v21, %v935_v32  ;;  %v993_v57 = vld [vmem:[%s5329_s17 + $0xab] sm:$0x1]  ;;  %v1010_v2 = vrot.slane %v992_v56, 4  ;;  %v1007_v12 = vsel %vm233_vm1, %v1006_v63, %v1005_v6 }
  0x6e   : > { %v923_v17 = vld [vmem:[%s5329_s17 + $0xea] sm:$0x1]  ;;  %v942_v27 = vrot.slane %v922_v16, 2  ;;  %v939_v42 = vsel %vm239_vm3, %v938_v22, %v937_v37  ;;  %v994_v60 = vld [vmem:[%s5329_s17 + $0xcb] sm:$0x1]  ;;  %v1012_v3 = vrot.slane %v993_v57, 3  ;;  %v1052_v16 = vsel %vm248_vm6, %v1051_v50, %v1050_v11 }
  0x6f   : > { %v944_v28 = vrot.slane %v923_v17, 1  ;;  %v941_v47 = vsel %vm242_vm4, %v940_v23, %v939_v42  ;;  %v995_v61 = vld [vmem:[%s5329_s17 + $0xeb] sm:$0x1]  ;;  %v1232_v4 = vld [vmem:[%s5352_s20 + $0xe] sm:$0x1]  ;;  %v1014_v7 = vrot.slane %v994_v60, 2  ;;  %v1009_v17 = vsel %vm236_vm2, %v1008_v1, %v1007_v12  ;;  %1053 = vrot.lane.b32.xlu1 %v1052_v16, %s5263_s5 }
  0x70   : > { %v943_v53 = vsel %vm245_vm5, %v942_v27, %v941_v47  ;;  %v1016_v8 = vrot.slane %v995_v61, 1  ;;  %v1233_v9 = vld [vmem:[%s5352_s20 + $0x2e] sm:$0x1]  ;;  %v1011_v22 = vsel %vm239_vm3, %v1010_v2, %v1009_v17  ;;  %v1092_v48 = vld [vmem:[%s5352_s20 + $0xc] sm:$0x1] }
  0x71   : > { %v945_v58 = vsel %vm248_vm6, %v944_v28, %v943_v53  ;;  %v1234_v10 = vld [vmem:[%s5352_s20 + $0x4e] sm:$0x1]  ;;  %v1248_v20 = vrot.slane %v1233_v9, 7  ;;  %v1013_v27 = vsel %vm242_vm4, %v1012_v3, %v1011_v22  ;;  %v1093_v53 = vld [vmem:[%s5352_s20 + $0x2c] sm:$0x1] }
  0x72   : > { %946 = vrot.lane.b32.xlu0 %v945_v58, %s5262_s4  ;;  %v1235_v13 = vld [vmem:[%s5352_s20 + $0x6e] sm:$0x1]  ;;  %v1250_v21 = vrot.slane %v1234_v10, 6  ;;  %v1015_v33 = vsel %vm245_vm5, %v1014_v7, %v1013_v27  ;;  %v1094_v54 = vld [vmem:[%s5352_s20 + $0x4c] sm:$0x1]  ;;  %v1108_v0 = vrot.slane %v1093_v53, 7 }
  0x73   : > { %v1236_v14 = vld [vmem:[%s5352_s20 + $0x8e] sm:$0x1]  ;;  %v1252_v23 = vrot.slane %v1235_v13, 5  ;;  %v1249_v28 = vsel %vm230_vm0, %v1248_v20, %v1232_v4  ;;  %v1017_v38 = vsel %vm248_vm6, %v1016_v8, %v1015_v33  ;;  %v1095_v57 = vld [vmem:[%s5352_s20 + $0x6c] sm:$0x1]  ;;  %v1110_v1 = vrot.slane %v1094_v54, 6 }
  0x74   : > { %v1237_v15 = vld [vmem:[%s5352_s20 + $0xae] sm:$0x1]  ;;  %v1254_v24 = vrot.slane %v1236_v14, 4  ;;  %v1251_v34 = vsel %vm233_vm1, %v1250_v21, %v1249_v28  ;;  %v1096_v58 = vld [vmem:[%s5352_s20 + $0x8c] sm:$0x1]  ;;  %v1112_v3 = vrot.slane %v1095_v57, 5  ;;  %v1109_v8 = vsel %vm230_vm0, %v1108_v0, %v1092_v48 }
  0x75   : > { %v1238_v18 = vld [vmem:[%s5352_s20 + $0xce] sm:$0x1]  ;;  %v1256_v25 = vrot.slane %v1237_v15, 3  ;;  %v1253_v39 = vsel %vm236_vm2, %v1252_v23, %v1251_v34  ;;  %v1097_v59 = vld [vmem:[%s5352_s20 + $0xac] sm:$0x1]  ;;  %v1114_v4 = vrot.slane %v1096_v58, 4  ;;  %v1111_v14 = vsel %vm233_vm1, %v1110_v1, %v1109_v8 }
  0x76   : > { %v1239_v19 = vld [vmem:[%s5352_s20 + $0xee] sm:$0x1]  ;;  %v1258_v29 = vrot.slane %v1238_v18, 2  ;;  %1018 = vrot.lane.b32.xlu0 %v1017_v38, %s5263_s5  ;;  %v1255_v44 = vsel %vm239_vm3, %v1254_v24, %v1253_v39  ;;  %v1098_v62 = vld [vmem:[%s5352_s20 + $0xcc] sm:$0x1]  ;;  %v1116_v5 = vrot.slane %v1097_v59, 3 }
  0x77   : > { %v1195_v26 = vld [vmem:[%s5329_s17 + $0xe] sm:$0x1]  ;;  %v1260_v30 = vrot.slane %v1239_v19, 1  ;;  %v1257_v49 = vsel %vm242_vm4, %v1256_v25, %v1255_v44  ;;  %v1099_v63 = vld [vmem:[%s5352_s20 + $0xec] sm:$0x1]  ;;  %v1118_v9 = vrot.slane %v1098_v62, 2  ;;  %v1113_v19 = vsel %vm236_vm2, %v1112_v3, %v1111_v14 }
  0x78   : > { %v1196_v31 = vld [vmem:[%s5329_s17 + $0x2e] sm:$0x1]  ;;  %v1259_v55 = vsel %vm245_vm5, %v1258_v29, %v1257_v49  ;;  %v1057_v6 = vld [vmem:[%s5329_s17 + $0xc] sm:$0x1]  ;;  %v1120_v10 = vrot.slane %v1099_v63, 1  ;;  %v1115_v24 = vsel %vm239_vm3, %v1114_v4, %v1113_v19 }
  0x79   : > { %v1197_v32 = vld [vmem:[%s5329_s17 + $0x4e] sm:$0x1]  ;;  %v1211_v42 = vrot.slane %v1196_v31, 7  ;;  %v1261_v60 = vsel %vm248_vm6, %v1260_v30, %v1259_v55  ;;  %v1058_v11 = vld [vmem:[%s5329_s17 + $0x2c] sm:$0x1]  ;;  %v1117_v29 = vsel %vm242_vm4, %v1116_v5, %v1115_v24 }
  0x7a   : > { %v1198_v35 = vld [vmem:[%s5329_s17 + $0x6e] sm:$0x1]  ;;  %v1213_v43 = vrot.slane %v1197_v32, 6  ;;  %1262 = vrot.lane.b32.xlu1 %v1261_v60, %s5264_s6  ;;  %v1059_v12 = vld [vmem:[%s5329_s17 + $0x4c] sm:$0x1]  ;;  %v1073_v22 = vrot.slane %v1058_v11, 7 }
  0x7b   : > { %v1199_v36 = vld [vmem:[%s5329_s17 + $0x8e] sm:$0x1]  ;;  %v1215_v45 = vrot.slane %v1198_v35, 5  ;;  %v1212_v50 = vsel %vm230_vm0, %v1211_v42, %v1195_v26  ;;  %v1060_v15 = vld [vmem:[%s5329_s17 + $0x6c] sm:$0x1]  ;;  %v1075_v23 = vrot.slane %v1059_v12, 6  ;;  %v1119_v35 = vsel %vm245_vm5, %v1118_v9, %v1117_v29 }
  0x7c   : > { %v1200_v37 = vld [vmem:[%s5329_s17 + $0xae] sm:$0x1]  ;;  %v1217_v46 = vrot.slane %v1199_v36, 4  ;;  %v1214_v56 = vsel %vm233_vm1, %v1213_v43, %v1212_v50  ;;  %v1061_v16 = vld [vmem:[%s5329_s17 + $0x8c] sm:$0x1]  ;;  %v1077_v25 = vrot.slane %v1060_v15, 5  ;;  %v1074_v30 = vsel %vm230_vm0, %v1073_v22, %v1057_v6 }
  0x7d   : > { %v1201_v40 = vld [vmem:[%s5329_s17 + $0xce] sm:$0x1]  ;;  %v1219_v47 = vrot.slane %v1200_v37, 3  ;;  %v1216_v61 = vsel %vm236_vm2, %v1215_v45, %v1214_v56  ;;  %v1062_v17 = vld [vmem:[%s5329_s17 + $0xac] sm:$0x1]  ;;  %v1079_v26 = vrot.slane %v1061_v16, 4  ;;  %v1076_v36 = vsel %vm233_vm1, %v1075_v23, %v1074_v30 }
  0x7e   : > { %v1202_v41 = vld [vmem:[%s5329_s17 + $0xee] sm:$0x1]  ;;  %v1221_v51 = vrot.slane %v1201_v40, 2  ;;  %v1218_v2 = vsel %vm239_vm3, %v1217_v46, %v1216_v61  ;;  %v1063_v20 = vld [vmem:[%s5329_s17 + $0xcc] sm:$0x1]  ;;  %v1081_v27 = vrot.slane %v1062_v17, 3  ;;  %v1121_v40 = vsel %vm248_vm6, %v1120_v10, %v1119_v35 }
  0x7f   : > { %v1223_v52 = vrot.slane %v1202_v41, 1  ;;  %v1220_v7 = vsel %vm242_vm4, %v1219_v47, %v1218_v2  ;;  %v1064_v21 = vld [vmem:[%s5329_s17 + $0xec] sm:$0x1]  ;;  %v1302_v28 = vld [vmem:[%s5352_s20 + $0xf] sm:$0x1]  ;;  %v1083_v31 = vrot.slane %v1063_v20, 2  ;;  %v1078_v41 = vsel %vm236_vm2, %v1077_v25, %v1076_v36  ;;  %1122 = vrot.lane.b32.xlu1 %v1121_v40, %s5265_s7 }
  0x80   : > { %v1222_v13 = vsel %vm245_vm5, %v1221_v51, %v1220_v7  ;;  %v1085_v32 = vrot.slane %v1064_v21, 1  ;;  %v1303_v33 = vld [vmem:[%s5352_s20 + $0x2f] sm:$0x1]  ;;  %v1080_v46 = vsel %vm239_vm3, %v1079_v26, %v1078_v41  ;;  %v1161_v8 = vld [vmem:[%s5352_s20 + $0xd] sm:$0x1] }
  0x81   : > { %v1224_v18 = vsel %vm248_vm6, %v1223_v52, %v1222_v13  ;;  %v1304_v34 = vld [vmem:[%s5352_s20 + $0x4f] sm:$0x1]  ;;  %v1318_v44 = vrot.slane %v1303_v33, 7  ;;  %v1082_v51 = vsel %vm242_vm4, %v1081_v27, %v1080_v46  ;;  %v1162_v13 = vld [vmem:[%s5352_s20 + $0x2d] sm:$0x1] }
  0x82   : > { %1225 = vrot.lane.b32.xlu0 %v1224_v18, %s5264_s6  ;;  %v1305_v37 = vld [vmem:[%s5352_s20 + $0x6f] sm:$0x1]  ;;  %v1320_v45 = vrot.slane %v1304_v34, 6  ;;  %v1084_v57 = vsel %vm245_vm5, %v1083_v31, %v1082_v51  ;;  %v1163_v14 = vld [vmem:[%s5352_s20 + $0x4d] sm:$0x1]  ;;  %v1177_v24 = vrot.slane %v1162_v13, 7 }
  0x83   : > { %v1306_v38 = vld [vmem:[%s5352_s20 + $0x8f] sm:$0x1]  ;;  %v1322_v47 = vrot.slane %v1305_v37, 5  ;;  %v1319_v52 = vsel %vm230_vm0, %v1318_v44, %v1302_v28  ;;  %v1086_v62 = vsel %vm248_vm6, %v1085_v32, %v1084_v57  ;;  %v1164_v17 = vld [vmem:[%s5352_s20 + $0x6d] sm:$0x1]  ;;  %v1179_v25 = vrot.slane %v1163_v14, 6 }
  0x84   : > { %v1307_v39 = vld [vmem:[%s5352_s20 + $0xaf] sm:$0x1]  ;;  %v1324_v48 = vrot.slane %v1306_v38, 4  ;;  %v1321_v58 = vsel %vm233_vm1, %v1320_v45, %v1319_v52  ;;  %v1165_v18 = vld [vmem:[%s5352_s20 + $0x8d] sm:$0x1]  ;;  %v1181_v27 = vrot.slane %v1164_v17, 5  ;;  %v1178_v32 = vsel %vm230_vm0, %v1177_v24, %v1161_v8 }
  0x85   : > { %v1308_v42 = vld [vmem:[%s5352_s20 + $0xcf] sm:$0x1]  ;;  %v1326_v49 = vrot.slane %v1307_v39, 3  ;;  %v1323_v63 = vsel %vm236_vm2, %v1322_v47, %v1321_v58  ;;  %v1166_v19 = vld [vmem:[%s5352_s20 + $0xad] sm:$0x1]  ;;  %v1183_v28 = vrot.slane %v1165_v18, 4  ;;  %v1180_v38 = vsel %vm233_vm1, %v1179_v25, %v1178_v32 }
  0x86   : > { %v1309_v43 = vld [vmem:[%s5352_s20 + $0xef] sm:$0x1]  ;;  %v1328_v53 = vrot.slane %v1308_v42, 2  ;;  %1087 = vrot.lane.b32.xlu0 %v1086_v62, %s5265_s7  ;;  %v1325_v4 = vsel %vm239_vm3, %v1324_v48, %v1323_v63  ;;  %v1167_v22 = vld [vmem:[%s5352_s20 + $0xcd] sm:$0x1]  ;;  %v1185_v29 = vrot.slane %v1166_v19, 3 }
  0x87   : > { %v1267_v50 = vld [vmem:[%s5329_s17 + $0xf] sm:$0x1]  ;;  %v1330_v54 = vrot.slane %v1309_v43, 1  ;;  %v1327_v9 = vsel %vm242_vm4, %v1326_v49, %v1325_v4  ;;  %v1168_v23 = vld [vmem:[%s5352_s20 + $0xed] sm:$0x1]  ;;  %v1187_v33 = vrot.slane %v1167_v22, 2  ;;  %v1182_v43 = vsel %vm236_vm2, %v1181_v27, %v1180_v38 }
  0x88   : > { %v1268_v55 = vld [vmem:[%s5329_s17 + $0x2f] sm:$0x1]  ;;  %v1329_v15 = vsel %vm245_vm5, %v1328_v53, %v1327_v9  ;;  %v1126_v30 = vld [vmem:[%s5329_s17 + $0xd] sm:$0x1]  ;;  %v1189_v34 = vrot.slane %v1168_v23, 1  ;;  %v1184_v48 = vsel %vm239_vm3, %v1183_v28, %v1182_v43 }
  0x89   : > { %v1269_v56 = vld [vmem:[%s5329_s17 + $0x4f] sm:$0x1]  ;;  %v1283_v2 = vrot.slane %v1268_v55, 7  ;;  %v1331_v20 = vsel %vm248_vm6, %v1330_v54, %v1329_v15  ;;  %v1127_v35 = vld [vmem:[%s5329_s17 + $0x2d] sm:$0x1]  ;;  %v1186_v53 = vsel %vm242_vm4, %v1185_v29, %v1184_v48 }
  0x8a   : > { %v1270_v59 = vld [vmem:[%s5329_s17 + $0x6f] sm:$0x1]  ;;  %v1285_v3 = vrot.slane %v1269_v56, 6  ;;  %1332 = vrot.lane.b32.xlu1 %v1331_v20, %s5266_s8  ;;  %v1128_v36 = vld [vmem:[%s5329_s17 + $0x4d] sm:$0x1]  ;;  %v1142_v46 = vrot.slane %v1127_v35, 7 }
  0x8b   : > { %v1271_v60 = vld [vmem:[%s5329_s17 + $0x8f] sm:$0x1]  ;;  %v1287_v5 = vrot.slane %v1270_v59, 5  ;;  %v1284_v10 = vsel %vm230_vm0, %v1283_v2, %v1267_v50  ;;  %v1129_v39 = vld [vmem:[%s5329_s17 + $0x6d] sm:$0x1]  ;;  %v1144_v47 = vrot.slane %v1128_v36, 6  ;;  %v1188_v59 = vsel %vm245_vm5, %v1187_v33, %v1186_v53 }
  0x8c   : > { %v1272_v61 = vld [vmem:[%s5329_s17 + $0xaf] sm:$0x1]  ;;  %v1289_v6 = vrot.slane %v1271_v60, 4  ;;  %v1286_v16 = vsel %vm233_vm1, %v1285_v3, %v1284_v10  ;;  %v1130_v40 = vld [vmem:[%s5329_s17 + $0x8d] sm:$0x1]  ;;  %v1146_v49 = vrot.slane %v1129_v39, 5  ;;  %v1143_v54 = vsel %vm230_vm0, %v1142_v46, %v1126_v30 }
  0x8d   : > { %v1273_v0 = vld [vmem:[%s5329_s17 + $0xcf] sm:$0x1]  ;;  %v1291_v7 = vrot.slane %v1272_v61, 3  ;;  %v1288_v21 = vsel %vm236_vm2, %v1287_v5, %v1286_v16  ;;  %v1131_v41 = vld [vmem:[%s5329_s17 + $0xad] sm:$0x1]  ;;  %v1148_v50 = vrot.slane %v1130_v40, 4  ;;  %v1145_v60 = vsel %vm233_vm1, %v1144_v47, %v1143_v54 }
  0x8e   : > { %v1274_v1 = vld [vmem:[%s5329_s17 + $0xef] sm:$0x1]  ;;  %v1293_v11 = vrot.slane %v1273_v0, 2  ;;  %v1290_v26 = vsel %vm239_vm3, %v1289_v6, %v1288_v21  ;;  %v1132_v44 = vld [vmem:[%s5329_s17 + $0xcd] sm:$0x1]  ;;  %v1150_v51 = vrot.slane %v1131_v41, 3  ;;  %v1190_v0 = vsel %vm248_vm6, %v1189_v34, %v1188_v59 }
  0x8f   : > { %v1295_v12 = vrot.slane %v1274_v1, 1  ;;  %v1292_v31 = vsel %vm242_vm4, %v1291_v7, %v1290_v26  ;;  %v1133_v45 = vld [vmem:[%s5329_s17 + $0xed] sm:$0x1]  ;;  %v1371_v52 = vld [vmem:[%s5352_s20 + $0x10] sm:$0x1]  ;;  %v1152_v55 = vrot.slane %v1132_v44, 2  ;;  %v1147_v1 = vsel %vm236_vm2, %v1146_v49, %v1145_v60  ;;  %1191 = vrot.lane.b32.xlu1 %v1190_v0, %s5267_s9 }
  0x90   : > { %v1294_v37 = vsel %vm245_vm5, %v1293_v11, %v1292_v31  ;;  %v1154_v56 = vrot.slane %v1133_v45, 1  ;;  %v1372_v57 = vld [vmem:[%s5352_s20 + $0x30] sm:$0x1]  ;;  %v1149_v6 = vsel %vm239_vm3, %v1148_v50, %v1147_v1  ;;  %v1442_v32 = vld [vmem:[%s5352_s20 + $0x11] sm:$0x1] }
  0x91   : > { %v1296_v42 = vsel %vm248_vm6, %v1295_v12, %v1294_v37  ;;  %v1373_v58 = vld [vmem:[%s5352_s20 + $0x50] sm:$0x1]  ;;  %v1387_v4 = vrot.slane %v1372_v57, 7  ;;  %v1151_v11 = vsel %vm242_vm4, %v1150_v51, %v1149_v6  ;;  %v1443_v37 = vld [vmem:[%s5352_s20 + $0x31] sm:$0x1] }
  0x92   : > { %1297 = vrot.lane.b32.xlu0 %v1296_v42, %s5266_s8  ;;  %v1374_v61 = vld [vmem:[%s5352_s20 + $0x70] sm:$0x1]  ;;  %v1389_v5 = vrot.slane %v1373_v58, 6  ;;  %v1153_v17 = vsel %vm245_vm5, %v1152_v55, %v1151_v11  ;;  %v1444_v38 = vld [vmem:[%s5352_s20 + $0x51] sm:$0x1]  ;;  %v1458_v48 = vrot.slane %v1443_v37, 7 }
  0x93   : > { %v1375_v62 = vld [vmem:[%s5352_s20 + $0x90] sm:$0x1]  ;;  %v1391_v7 = vrot.slane %v1374_v61, 5  ;;  %v1388_v12 = vsel %vm230_vm0, %v1387_v4, %v1371_v52  ;;  %v1155_v22 = vsel %vm248_vm6, %v1154_v56, %v1153_v17  ;;  %v1445_v41 = vld [vmem:[%s5352_s20 + $0x71] sm:$0x1]  ;;  %v1460_v49 = vrot.slane %v1444_v38, 6 }
  0x94   : > { %v1376_v63 = vld [vmem:[%s5352_s20 + $0xb0] sm:$0x1]  ;;  %v1393_v8 = vrot.slane %v1375_v62, 4  ;;  %v1390_v18 = vsel %vm233_vm1, %v1389_v5, %v1388_v12  ;;  %v1446_v42 = vld [vmem:[%s5352_s20 + $0x91] sm:$0x1]  ;;  %v1462_v51 = vrot.slane %v1445_v41, 5  ;;  %v1459_v56 = vsel %vm230_vm0, %v1458_v48, %v1442_v32 }
  0x95   : > { %v1377_v2 = vld [vmem:[%s5352_s20 + $0xd0] sm:$0x1]  ;;  %v1395_v9 = vrot.slane %v1376_v63, 3  ;;  %v1392_v23 = vsel %vm236_vm2, %v1391_v7, %v1390_v18  ;;  %v1447_v43 = vld [vmem:[%s5352_s20 + $0xb1] sm:$0x1]  ;;  %v1464_v52 = vrot.slane %v1446_v42, 4  ;;  %v1461_v62 = vsel %vm233_vm1, %v1460_v49, %v1459_v56 }
  0x96   : > { %v1378_v3 = vld [vmem:[%s5352_s20 + $0xf0] sm:$0x1]  ;;  %v1397_v13 = vrot.slane %v1377_v2, 2  ;;  %1156 = vrot.lane.b32.xlu0 %v1155_v22, %s5267_s9  ;;  %v1394_v28 = vsel %vm239_vm3, %v1393_v8, %v1392_v23  ;;  %v1448_v46 = vld [vmem:[%s5352_s20 + $0xd1] sm:$0x1]  ;;  %v1466_v53 = vrot.slane %v1447_v43, 3 }
  0x97   : > { %v1336_v10 = vld [vmem:[%s5329_s17 + $0x10] sm:$0x1]  ;;  %v1399_v14 = vrot.slane %v1378_v3, 1  ;;  %v1396_v33 = vsel %vm242_vm4, %v1395_v9, %v1394_v28  ;;  %v1449_v47 = vld [vmem:[%s5352_s20 + $0xf1] sm:$0x1]  ;;  %v1468_v57 = vrot.slane %v1448_v46, 2  ;;  %v1463_v3 = vsel %vm236_vm2, %v1462_v51, %v1461_v62 }
  0x98   : > { %v1337_v15 = vld [vmem:[%s5329_s17 + $0x30] sm:$0x1]  ;;  %v1398_v39 = vsel %vm245_vm5, %v1397_v13, %v1396_v33  ;;  %v1405_v54 = vld [vmem:[%s5329_s17 + $0x11] sm:$0x1]  ;;  %v1470_v58 = vrot.slane %v1449_v47, 1  ;;  %v1465_v8 = vsel %vm239_vm3, %v1464_v52, %v1463_v3  ;;  %s5288_s8 = smov 94  }
  0x99   : > { %v1338_v16 = vld [vmem:[%s5329_s17 + $0x50] sm:$0x1]  ;;  %v1352_v26 = vrot.slane %v1337_v15, 7  ;;  %v1400_v44 = vsel %vm248_vm6, %v1399_v14, %v1398_v39  ;;  %v1406_v59 = vld [vmem:[%s5329_s17 + $0x31] sm:$0x1]  ;;  %v1467_v13 = vsel %vm242_vm4, %v1466_v53, %v1465_v8 }
  0x9a   : > { %v1339_v19 = vld [vmem:[%s5329_s17 + $0x70] sm:$0x1]  ;;  %v1354_v27 = vrot.slane %v1338_v16, 6  ;;  %1401 = vrot.lane.b32.xlu1 %v1400_v44, %s5268_s10  ;;  %v1407_v60 = vld [vmem:[%s5329_s17 + $0x51] sm:$0x1]  ;;  %v1421_v6 = vrot.slane %v1406_v59, 7 }
  0x9b   : > { %v1340_v20 = vld [vmem:[%s5329_s17 + $0x90] sm:$0x1]  ;;  %v1356_v29 = vrot.slane %v1339_v19, 5  ;;  %v1353_v34 = vsel %vm230_vm0, %v1352_v26, %v1336_v10  ;;  %v1408_v63 = vld [vmem:[%s5329_s17 + $0x71] sm:$0x1]  ;;  %v1423_v7 = vrot.slane %v1407_v60, 6  ;;  %v1469_v19 = vsel %vm245_vm5, %v1468_v57, %v1467_v13 }
  0x9c   : > { %v1341_v21 = vld [vmem:[%s5329_s17 + $0xb0] sm:$0x1]  ;;  %v1358_v30 = vrot.slane %v1340_v20, 4  ;;  %v1355_v40 = vsel %vm233_vm1, %v1354_v27, %v1353_v34  ;;  %v1409_v0 = vld [vmem:[%s5329_s17 + $0x91] sm:$0x1]  ;;  %v1425_v9 = vrot.slane %v1408_v63, 5  ;;  %v1422_v14 = vsel %vm230_vm0, %v1421_v6, %v1405_v54 }
  0x9d   : > { %v1342_v24 = vld [vmem:[%s5329_s17 + $0xd0] sm:$0x1]  ;;  %v1360_v31 = vrot.slane %v1341_v21, 3  ;;  %v1357_v45 = vsel %vm236_vm2, %v1356_v29, %v1355_v40  ;;  %v1410_v1 = vld [vmem:[%s5329_s17 + $0xb1] sm:$0x1]  ;;  %v1427_v10 = vrot.slane %v1409_v0, 4  ;;  %v1424_v20 = vsel %vm233_vm1, %v1423_v7, %v1422_v14 }
  0x9e   : > { %v1343_v25 = vld [vmem:[%s5329_s17 + $0xf0] sm:$0x1]  ;;  %v1362_v35 = vrot.slane %v1342_v24, 2  ;;  %v1359_v50 = vsel %vm239_vm3, %v1358_v30, %v1357_v45  ;;  %v1411_v4 = vld [vmem:[%s5329_s17 + $0xd1] sm:$0x1]  ;;  %v1429_v11 = vrot.slane %v1410_v1, 3  ;;  %v1471_v24 = vsel %vm248_vm6, %v1470_v58, %v1469_v19 }
  0x9f   : > { %v1364_v36 = vrot.slane %v1343_v25, 1  ;;  %v1361_v55 = vsel %vm242_vm4, %v1360_v31, %v1359_v50  ;;  %v1412_v5 = vld [vmem:[%s5329_s17 + $0xf1] sm:$0x1]  ;;  %v1721_v12 = vld [vmem:[%s5352_s20 + $0x15] sm:$0x1]  ;;  %v1431_v15 = vrot.slane %v1411_v4, 2  ;;  %v1426_v25 = vsel %vm236_vm2, %v1425_v9, %v1424_v20  ;;  %1472 = vrot.lane.b32.xlu1 %v1471_v24, %s5269_s11 }
  0xa0   : > { %v1363_v61 = vsel %vm245_vm5, %v1362_v35, %v1361_v55  ;;  %v1433_v16 = vrot.slane %v1412_v5, 1  ;;  %v1722_v17 = vld [vmem:[%s5352_s20 + $0x35] sm:$0x1]  ;;  %v1428_v30 = vsel %vm239_vm3, %v1427_v10, %v1426_v25  ;;  %v1512_v56 = vld [vmem:[%s5352_s20 + $0x12] sm:$0x1] }
  0xa1   : > { %v1365_v2 = vsel %vm248_vm6, %v1364_v36, %v1363_v61  ;;  %v1723_v18 = vld [vmem:[%s5352_s20 + $0x55] sm:$0x1]  ;;  %v1737_v28 = vrot.slane %v1722_v17, 7  ;;  %v1430_v35 = vsel %vm242_vm4, %v1429_v11, %v1428_v30  ;;  %v1513_v61 = vld [vmem:[%s5352_s20 + $0x32] sm:$0x1] }
  0xa2   : > { %1366 = vrot.lane.b32.xlu0 %v1365_v2, %s5268_s10  ;;  %v1724_v21 = vld [vmem:[%s5352_s20 + $0x75] sm:$0x1]  ;;  %v1739_v29 = vrot.slane %v1723_v18, 6  ;;  %v1432_v41 = vsel %vm245_vm5, %v1431_v15, %v1430_v35  ;;  %v1514_v62 = vld [vmem:[%s5352_s20 + $0x52] sm:$0x1]  ;;  %v1528_v8 = vrot.slane %v1513_v61, 7 }
  0xa3   : > { %v1725_v22 = vld [vmem:[%s5352_s20 + $0x95] sm:$0x1]  ;;  %v1741_v31 = vrot.slane %v1724_v21, 5  ;;  %v1738_v36 = vsel %vm230_vm0, %v1737_v28, %v1721_v12  ;;  %v1434_v46 = vsel %vm248_vm6, %v1433_v16, %v1432_v41  ;;  %v1515_v1 = vld [vmem:[%s5352_s20 + $0x72] sm:$0x1]  ;;  %v1530_v9 = vrot.slane %v1514_v62, 6 }
  0xa4   : > { %v1726_v23 = vld [vmem:[%s5352_s20 + $0xb5] sm:$0x1]  ;;  %v1743_v32 = vrot.slane %v1725_v22, 4  ;;  %v1740_v42 = vsel %vm233_vm1, %v1739_v29, %v1738_v36  ;;  %v1516_v2 = vld [vmem:[%s5352_s20 + $0x92] sm:$0x1]  ;;  %v1532_v11 = vrot.slane %v1515_v1, 5  ;;  %v1529_v16 = vsel %vm230_vm0, %v1528_v8, %v1512_v56 }
  0xa5   : > { %v1727_v26 = vld [vmem:[%s5352_s20 + $0xd5] sm:$0x1]  ;;  %v1745_v33 = vrot.slane %v1726_v23, 3  ;;  %v1742_v47 = vsel %vm236_vm2, %v1741_v31, %v1740_v42  ;;  %v1517_v3 = vld [vmem:[%s5352_s20 + $0xb2] sm:$0x1]  ;;  %v1534_v12 = vrot.slane %v1516_v2, 4  ;;  %v1531_v22 = vsel %vm233_vm1, %v1530_v9, %v1529_v16 }
  0xa6   : > { %v1728_v27 = vld [vmem:[%s5352_s20 + $0xf5] sm:$0x1]  ;;  %v1747_v37 = vrot.slane %v1727_v26, 2  ;;  %1435 = vrot.lane.b32.xlu0 %v1434_v46, %s5269_s11  ;;  %v1744_v52 = vsel %vm239_vm3, %v1743_v32, %v1742_v47  ;;  %v1518_v6 = vld [vmem:[%s5352_s20 + $0xd2] sm:$0x1]  ;;  %v1536_v13 = vrot.slane %v1517_v3, 3 }
  0xa7   : > { %v1684_v34 = vld [vmem:[%s5329_s17 + $0x15] sm:$0x1]  ;;  %v1749_v38 = vrot.slane %v1728_v27, 1  ;;  %v1746_v57 = vsel %vm242_vm4, %v1745_v33, %v1744_v52  ;;  %v1519_v7 = vld [vmem:[%s5352_s20 + $0xf2] sm:$0x1]  ;;  %v1538_v17 = vrot.slane %v1518_v6, 2  ;;  %v1533_v27 = vsel %vm236_vm2, %v1532_v11, %v1531_v22 }
  0xa8   : > { %v1685_v39 = vld [vmem:[%s5329_s17 + $0x35] sm:$0x1]  ;;  %v1748_v63 = vsel %vm245_vm5, %v1747_v37, %v1746_v57  ;;  %v1477_v14 = vld [vmem:[%s5329_s17 + $0x12] sm:$0x1]  ;;  %v1540_v18 = vrot.slane %v1519_v7, 1  ;;  %v1535_v32 = vsel %vm239_vm3, %v1534_v12, %v1533_v27  ;;  %s5289_s11 = smov 92  }
  0xa9   : > { %v1686_v40 = vld [vmem:[%s5329_s17 + $0x55] sm:$0x1]  ;;  %v1700_v50 = vrot.slane %v1685_v39, 7  ;;  %v1750_v4 = vsel %vm248_vm6, %v1749_v38, %v1748_v63  ;;  %v1478_v19 = vld [vmem:[%s5329_s17 + $0x32] sm:$0x1]  ;;  %v1537_v37 = vsel %vm242_vm4, %v1536_v13, %v1535_v32 }
  0xaa   : > { %v1687_v43 = vld [vmem:[%s5329_s17 + $0x75] sm:$0x1]  ;;  %v1702_v51 = vrot.slane %v1686_v40, 6  ;;  %1751 = vrot.lane.b32.xlu1 %v1750_v4, %s5270_s14  ;;  %v1479_v20 = vld [vmem:[%s5329_s17 + $0x52] sm:$0x1]  ;;  %v1493_v30 = vrot.slane %v1478_v19, 7 }
  0xab   : > { %v1688_v44 = vld [vmem:[%s5329_s17 + $0x95] sm:$0x1]  ;;  %v1704_v53 = vrot.slane %v1687_v43, 5  ;;  %v1701_v58 = vsel %vm230_vm0, %v1700_v50, %v1684_v34  ;;  %v1480_v23 = vld [vmem:[%s5329_s17 + $0x72] sm:$0x1]  ;;  %v1495_v31 = vrot.slane %v1479_v20, 6  ;;  %v5943_v43 = vpop.permute.xlu1 %667 }
  0xac   : > { %v1689_v45 = vld [vmem:[%s5329_s17 + $0xb5] sm:$0x1]  ;;  %v1706_v54 = vrot.slane %v1688_v44, 4  ;;  %v1703_v0 = vsel %vm233_vm1, %v1702_v51, %v1701_v58  ;;  %v1481_v24 = vld [vmem:[%s5329_s17 + $0x92] sm:$0x1]  ;;  %v1497_v33 = vrot.slane %v1480_v23, 5  ;;  %v1494_v38 = vsel %vm230_vm0, %v1493_v30, %v1477_v14 }
  0xad   : > { %v1690_v48 = vld [vmem:[%s5329_s17 + $0xd5] sm:$0x1]  ;;  %v1708_v55 = vrot.slane %v1689_v45, 3  ;;  %v1705_v5 = vsel %vm236_vm2, %v1704_v53, %v1703_v0  ;;  %v1482_v25 = vld [vmem:[%s5329_s17 + $0xb2] sm:$0x1]  ;;  %v1499_v34 = vrot.slane %v1481_v24, 4  ;;  %v1539_v44 = vsel %vm245_vm5, %v1538_v17, %v1537_v37 }
  0xae   : > { %v1691_v49 = vld [vmem:[%s5329_s17 + $0xf5] sm:$0x1]  ;;  %v1710_v59 = vrot.slane %v1690_v48, 2  ;;  %v1707_v10 = vsel %vm239_vm3, %v1706_v54, %v1705_v5  ;;  %v1483_v28 = vld [vmem:[%s5329_s17 + $0xd2] sm:$0x1]  ;;  %v1501_v35 = vrot.slane %v1482_v25, 3  ;;  %v1496_v45 = vsel %vm233_vm1, %v1495_v31, %v1494_v38 }
  0xaf   : > { %v1712_v60 = vrot.slane %v1691_v49, 1  ;;  %v1709_v15 = vsel %vm242_vm4, %v1708_v55, %v1707_v10  ;;  %v1484_v29 = vld [vmem:[%s5329_s17 + $0xf2] sm:$0x1]  ;;  %v1791_v36 = vld [vmem:[%s5352_s20 + $0x16] sm:$0x1]  ;;  %v1503_v39 = vrot.slane %v1483_v28, 2  ;;  %v1541_v49 = vsel %vm248_vm6, %v1540_v18, %v1539_v44  ;;  %v5971_v14 = vpop.permute.xlu1 %704 }
  0xb0   : > { %v1711_v21 = vsel %vm245_vm5, %v1710_v59, %v1709_v15  ;;  %v1505_v40 = vrot.slane %v1484_v29, 1  ;;  %v1792_v41 = vld [vmem:[%s5352_s20 + $0x36] sm:$0x1]  ;;  %v1498_v50 = vsel %vm236_vm2, %v1497_v33, %v1496_v45  ;;  %1542 = vrot.lane.b32.xlu1 %v1541_v49, %s5271_s15  ;;  %v1581_v19 = vld [vmem:[%s5352_s20 + $0x13] sm:$0x1] }
  0xb1   : > { %v1713_v26 = vsel %vm248_vm6, %v1712_v60, %v1711_v21  ;;  %v1793_v42 = vld [vmem:[%s5352_s20 + $0x56] sm:$0x1]  ;;  %v1807_v53 = vrot.slane %v1792_v41, 7  ;;  %v1500_v55 = vsel %vm239_vm3, %v1499_v34, %v1498_v50  ;;  %v5956_v60 = vpop.permute.xlu0 %388  ;;  %v1582_v24 = vld [vmem:[%s5352_s20 + $0x33] sm:$0x1] }
  0xb2   : > { %1714 = vrot.lane.b32.xlu0 %v1713_v26, %s5270_s14  ;;  %v1794_v46 = vld [vmem:[%s5352_s20 + $0x76] sm:$0x1]  ;;  %v1809_v54 = vrot.slane %v1793_v42, 6  ;;  %v1502_v61 = vsel %vm242_vm4, %v1501_v35, %v1500_v55  ;;  %v1583_v25 = vld [vmem:[%s5352_s20 + $0x53] sm:$0x1]  ;;  %s5290_s14 = smov 60  }
  0xb3   : > { %v1795_v47 = vld [vmem:[%s5352_s20 + $0x96] sm:$0x1]  ;;  %v1811_v56 = vrot.slane %v1794_v46, 5  ;;  %v1808_v62 = vsel %vm230_vm0, %v1807_v53, %v1791_v36  ;;  %v1504_v3 = vsel %vm245_vm5, %v1503_v39, %v1502_v61  ;;  %v1584_v28 = vld [vmem:[%s5352_s20 + $0x73] sm:$0x1]  ;;  %v1597_v36 = vrot.slane %v1582_v24, 7  ;;  %v5996_v50 = vpop.permute.xlu1 %495 }
  0xb4   : > { %v1796_v48 = vld [vmem:[%s5352_s20 + $0xb6] sm:$0x1]  ;;  %v1813_v57 = vrot.slane %v1795_v47, 4  ;;  %v1810_v4 = vsel %vm233_vm1, %v1809_v54, %v1808_v62  ;;  %v1506_v8 = vsel %vm248_vm6, %v1505_v40, %v1504_v3  ;;  %v1585_v29 = vld [vmem:[%s5352_s20 + $0x93] sm:$0x1]  ;;  %v1599_v37 = vrot.slane %v1583_v25, 6 }
  0xb5   : > { %v1797_v51 = vld [vmem:[%s5352_s20 + $0xd6] sm:$0x1]  ;;  %v1815_v58 = vrot.slane %v1796_v48, 3  ;;  %v1812_v9 = vsel %vm236_vm2, %v1811_v56, %v1810_v4  ;;  %v1586_v30 = vld [vmem:[%s5352_s20 + $0xb3] sm:$0x1]  ;;  %v5984_v31 = vpop.permute.xlu0 %425  ;;  %v1601_v39 = vrot.slane %v1584_v28, 5  ;;  %v1598_v45 = vsel %vm230_vm0, %v1597_v36, %v1581_v19 }
  0xb6   : > { %v1798_v52 = vld [vmem:[%s5352_s20 + $0xf6] sm:$0x1]  ;;  %v1817_v63 = vrot.slane %v1797_v51, 2  ;;  %1507 = vrot.lane.b32.xlu0 %v1506_v8, %s5271_s15  ;;  %v1814_v15 = vsel %vm239_vm3, %v1813_v57, %v1812_v9  ;;  %v1587_v34 = vld [vmem:[%s5352_s20 + $0xd3] sm:$0x1]  ;;  %v1603_v40 = vrot.slane %v1585_v29, 4 }
  0xb7   : > { %v1756_v59 = vld [vmem:[%s5329_s17 + $0x16] sm:$0x1]  ;;  %v1819_v0 = vrot.slane %v1798_v52, 1  ;;  %v1816_v20 = vsel %vm242_vm4, %v1815_v58, %v1814_v15  ;;  %v1588_v35 = vld [vmem:[%s5352_s20 + $0xf3] sm:$0x1]  ;;  %v1605_v41 = vrot.slane %v1586_v30, 3  ;;  %v1600_v52 = vsel %vm233_vm1, %v1599_v37, %v1598_v45 }
  0xb8   : > { %v1757_v1 = vld [vmem:[%s5329_s17 + $0x36] sm:$0x1]  ;;  %v1818_v26 = vsel %vm245_vm5, %v1817_v63, %v1816_v20  ;;  %v1546_v42 = vld [vmem:[%s5329_s17 + $0x13] sm:$0x1]  ;;  %v1607_v46 = vrot.slane %v1587_v34, 2  ;;  %v1609_v47 = vrot.slane %v1588_v35, 1  ;;  %v1602_v57 = vsel %vm236_vm2, %v1601_v39, %v1600_v52 }
  0xb9   : > { %v1758_v2 = vld [vmem:[%s5329_s17 + $0x56] sm:$0x1]  ;;  %v1772_v12 = vrot.slane %v1757_v1, 7  ;;  %v1820_v32 = vsel %vm248_vm6, %v1819_v0, %v1818_v26  ;;  %v1547_v48 = vld [vmem:[%s5329_s17 + $0x33] sm:$0x1]  ;;  %v1604_v63 = vsel %vm239_vm3, %v1603_v40, %v1602_v57  ;;  %v6009_v4 = vpop.permute.xlu0 %460 }
  0xba   : > { %v1759_v5 = vld [vmem:[%s5329_s17 + $0x76] sm:$0x1]  ;;  %v1774_v13 = vrot.slane %v1758_v2, 6  ;;  %1821 = vrot.lane.b32.xlu1 %v1820_v32, %s5272_s16  ;;  %v1548_v49 = vld [vmem:[%s5329_s17 + $0x53] sm:$0x1]  ;;  %v1562_v61 = vrot.slane %v1547_v48, 7 }
  0xbb   : > { %v1760_v6 = vld [vmem:[%s5329_s17 + $0x96] sm:$0x1]  ;;  %v1776_v16 = vrot.slane %v1759_v5, 5  ;;  %v1773_v21 = vsel %vm230_vm0, %v1772_v12, %v1756_v59  ;;  %v1549_v53 = vld [vmem:[%s5329_s17 + $0x73] sm:$0x1]  ;;  %v1564_v62 = vrot.slane %v1548_v49, 6  ;;  %v1606_v5 = vsel %vm242_vm4, %v1605_v41, %v1604_v63 }
  0xbc   : > { %v1761_v7 = vld [vmem:[%s5329_s17 + $0xb6] sm:$0x1]  ;;  %v1778_v17 = vrot.slane %v1760_v6, 4  ;;  %v1775_v27 = vsel %vm233_vm1, %v1774_v13, %v1773_v21  ;;  %v1550_v54 = vld [vmem:[%s5329_s17 + $0x93] sm:$0x1]  ;;  %v1566_v0 = vrot.slane %v1549_v53, 5  ;;  %v1563_v6 = vsel %vm230_vm0, %v1562_v61, %v1546_v42 }
  0xbd   : > { %v1762_v10 = vld [vmem:[%s5329_s17 + $0xd6] sm:$0x1]  ;;  %v1780_v18 = vrot.slane %v1761_v7, 3  ;;  %v1777_v33 = vsel %vm236_vm2, %v1776_v16, %v1775_v27  ;;  %v1551_v55 = vld [vmem:[%s5329_s17 + $0xb3] sm:$0x1]  ;;  %v1568_v1 = vrot.slane %v1550_v54, 4  ;;  %v1565_v12 = vsel %vm233_vm1, %v1564_v62, %v1563_v6  ;;  %v6037_v41 = vpop.permute.xlu0 %739 }
  0xbe   : > { %v1763_v11 = vld [vmem:[%s5329_s17 + $0xf6] sm:$0x1]  ;;  %v1782_v22 = vrot.slane %v1762_v10, 2  ;;  %v1779_v38 = vsel %vm239_vm3, %v1778_v17, %v1777_v33  ;;  %v1552_v58 = vld [vmem:[%s5329_s17 + $0xd3] sm:$0x1]  ;;  %v1570_v2 = vrot.slane %v1551_v55, 3 }
  0xbf   : > { %v1784_v23 = vrot.slane %v1763_v11, 1  ;;  %v1781_v44 = vsel %vm242_vm4, %v1780_v18, %v1779_v38  ;;  %v1553_v59 = vld [vmem:[%s5329_s17 + $0xf3] sm:$0x1]  ;;  %v1860_v3 = vld [vmem:[%s5352_s20 + $0x17] sm:$0x1]  ;;  %v1572_v7 = vrot.slane %v1552_v58, 2  ;;  %v1608_v11 = vsel %vm245_vm5, %v1607_v46, %v1606_v5 }
  0xc0   : > { %v1783_v51 = vsel %vm245_vm5, %v1782_v22, %v1781_v44  ;;  %v1574_v8 = vrot.slane %v1553_v59, 1  ;;  %v1861_v9 = vld [vmem:[%s5352_s20 + $0x37] sm:$0x1]  ;;  %v1610_v17 = vsel %vm248_vm6, %v1609_v47, %v1608_v11  ;;  %v1567_v18 = vsel %vm236_vm2, %v1566_v0, %v1565_v12  ;;  %v1650_v54 = vld [vmem:[%s5352_s20 + $0x14] sm:$0x1] }
  0xc1   : > { %v1785_v56 = vsel %vm248_vm6, %v1784_v23, %v1783_v51  ;;  %v1862_v10 = vld [vmem:[%s5352_s20 + $0x57] sm:$0x1]  ;;  %v1876_v21 = vrot.slane %v1861_v9, 7  ;;  %v6024_v23 = vpop.permute.xlu1 %774  ;;  %1611 = vrot.lane.b32.xlu1 %v1610_v17, %s5273_s18  ;;  %v1569_v24 = vsel %vm239_vm3, %v1568_v1, %v1567_v18  ;;  %v1651_v59 = vld [vmem:[%s5352_s20 + $0x34] sm:$0x1]  ;;  %v6062_v17 = vpop.permute.xlu0 %529 }
  0xc2   : > { %1786 = vrot.lane.b32.xlu0 %v1785_v56, %s5272_s16  ;;  %v1863_v13 = vld [vmem:[%s5352_s20 + $0x77] sm:$0x1]  ;;  %v1878_v22 = vrot.slane %v1862_v10, 6  ;;  %v1571_v29 = vsel %vm242_vm4, %v1570_v2, %v1569_v24  ;;  %v1652_v61 = vld [vmem:[%s5352_s20 + $0x54] sm:$0x1]  ;;  %v1666_v9 = vrot.slane %v1651_v59, 7 }
  0xc3   : > { %v1864_v15 = vld [vmem:[%s5352_s20 + $0x97] sm:$0x1]  ;;  %v1880_v25 = vrot.slane %v1863_v13, 5  ;;  %v1877_v30 = vsel %vm230_vm0, %v1876_v21, %v1860_v3  ;;  %v1573_v36 = vsel %vm245_vm5, %v1572_v7, %v1571_v29  ;;  %v1653_v1 = vld [vmem:[%s5352_s20 + $0x74] sm:$0x1]  ;;  %v1668_v10 = vrot.slane %v1652_v61, 6 }
  0xc4   : > { %v1865_v16 = vld [vmem:[%s5352_s20 + $0xb7] sm:$0x1]  ;;  %v1882_v26 = vrot.slane %v1864_v15, 4  ;;  %v1879_v37 = vsel %vm233_vm1, %v1878_v22, %v1877_v30  ;;  %v1575_v42 = vsel %vm248_vm6, %v1574_v8, %v1573_v36  ;;  %v1654_v2 = vld [vmem:[%s5352_s20 + $0x94] sm:$0x1]  ;;  %v1670_v12 = vrot.slane %v1653_v1, 5 }
  0xc5   : > { %v1866_v19 = vld [vmem:[%s5352_s20 + $0xd7] sm:$0x1]  ;;  %v1884_v27 = vrot.slane %v1865_v16, 3  ;;  %v1881_v44 = vsel %vm236_vm2, %v1880_v25, %v1879_v37  ;;  %v6049_v62 = vpop.permute.xlu1 %564  ;;  %v1655_v3 = vld [vmem:[%s5352_s20 + $0xb4] sm:$0x1]  ;;  %v1672_v13 = vrot.slane %v1654_v2, 4 }
  0xc6   : > { %v1867_v20 = vld [vmem:[%s5352_s20 + $0xf7] sm:$0x1]  ;;  %v1886_v32 = vrot.slane %v1866_v19, 2  ;;  %1576 = vrot.lane.b32.xlu0 %v1575_v42, %s5273_s18  ;;  %v1883_v49 = vsel %vm239_vm3, %v1882_v26, %v1881_v44  ;;  %v1656_v7 = vld [vmem:[%s5352_s20 + $0xd4] sm:$0x1]  ;;  %v1674_v15 = vrot.slane %v1655_v3, 3  ;;  %v1667_v19 = vsel %vm230_vm0, %v1666_v9, %v1650_v54 }
  0xc7   : > { %v1825_v28 = vld [vmem:[%s5329_s17 + $0x17] sm:$0x1]  ;;  %v1888_v33 = vrot.slane %v1867_v20, 1  ;;  %v1885_v55 = vsel %vm242_vm4, %v1884_v27, %v1883_v49  ;;  %v1657_v8 = vld [vmem:[%s5352_s20 + $0xf4] sm:$0x1]  ;;  %v1676_v20 = vrot.slane %v1656_v7, 2  ;;  %v1669_v26 = vsel %vm233_vm1, %v1668_v10, %v1667_v19 }
  0xc8   : > { %v1826_v34 = vld [vmem:[%s5329_s17 + $0x37] sm:$0x1]  ;;  %v1887_v63 = vsel %vm245_vm5, %v1886_v32, %v1885_v55  ;;  %v1615_v16 = vld [vmem:[%s5329_s17 + $0x14] sm:$0x1]  ;;  %v1678_v21 = vrot.slane %v1657_v8, 1  ;;  %v1671_v32 = vsel %vm236_vm2, %v1670_v12, %v1669_v26 }
  0xc9   : > { %v1827_v35 = vld [vmem:[%s5329_s17 + $0x57] sm:$0x1]  ;;  %v1841_v47 = vrot.slane %v1826_v34, 7  ;;  %v1889_v5 = vsel %vm248_vm6, %v1888_v33, %v1887_v63  ;;  %v1616_v22 = vld [vmem:[%s5329_s17 + $0x34] sm:$0x1]  ;;  %v6077_v37 = vpop.permute.xlu1 %843 }
  0xca   : > { %v1828_v38 = vld [vmem:[%s5329_s17 + $0x77] sm:$0x1]  ;;  %v1843_v48 = vrot.slane %v1827_v35, 6  ;;  %1890 = vrot.lane.b32.xlu1 %v1889_v5, %s5274_s19  ;;  %v1617_v24 = vld [vmem:[%s5329_s17 + $0x54] sm:$0x1]  ;;  %v1631_v35 = vrot.slane %v1616_v22, 7 }
  0xcb   : > { %v1829_v39 = vld [vmem:[%s5329_s17 + $0x97] sm:$0x1]  ;;  %v1845_v51 = vrot.slane %v1828_v38, 5  ;;  %v1842_v56 = vsel %vm230_vm0, %v1841_v47, %v1825_v28  ;;  %v1618_v27 = vld [vmem:[%s5329_s17 + $0x74] sm:$0x1]  ;;  %v1633_v36 = vrot.slane %v1617_v24, 6  ;;  %v1673_v38 = vsel %vm239_vm3, %v1672_v13, %v1671_v32 }
  0xcc   : > { %v1830_v40 = vld [vmem:[%s5329_s17 + $0xb7] sm:$0x1]  ;;  %v1847_v52 = vrot.slane %v1829_v39, 4  ;;  %v1844_v0 = vsel %vm233_vm1, %v1843_v48, %v1842_v56  ;;  %v1619_v28 = vld [vmem:[%s5329_s17 + $0x94] sm:$0x1]  ;;  %v1635_v39 = vrot.slane %v1618_v27, 5 }
  0xcd   : > { %v1831_v45 = vld [vmem:[%s5329_s17 + $0xd7] sm:$0x1]  ;;  %v1849_v53 = vrot.slane %v1830_v40, 3  ;;  %v1846_v6 = vsel %vm236_vm2, %v1845_v51, %v1844_v0  ;;  %v1620_v29 = vld [vmem:[%s5329_s17 + $0xb4] sm:$0x1]  ;;  %v1637_v40 = vrot.slane %v1619_v28, 4 }
  0xce   : > { %v1832_v46 = vld [vmem:[%s5329_s17 + $0xf7] sm:$0x1]  ;;  %v1851_v57 = vrot.slane %v1831_v45, 2  ;;  %v1848_v11 = vsel %vm239_vm3, %v1847_v52, %v1846_v6  ;;  %v1621_v33 = vld [vmem:[%s5329_s17 + $0xd4] sm:$0x1]  ;;  %v1639_v42 = vrot.slane %v1620_v29, 3  ;;  %v1675_v45 = vsel %vm242_vm4, %v1674_v15, %v1673_v38  ;;  %v6102_v15 = vpop.permute.xlu1 %285 }
  0xcf   : > { %v1853_v58 = vrot.slane %v1832_v46, 1  ;;  %v1850_v18 = vsel %vm242_vm4, %v1849_v53, %v1848_v11  ;;  %v1622_v34 = vld [vmem:[%s5329_s17 + $0xf4] sm:$0x1]  ;;  %v1929_v44 = vld [vmem:[%s5352_s20 + $0x18] sm:$0x1]  ;;  %v1632_v46 = vsel %vm230_vm0, %v1631_v35, %v1615_v16  ;;  %v1641_v47 = vrot.slane %v1621_v33, 2 }
  0xd0   : > { %v1852_v25 = vsel %vm245_vm5, %v1851_v57, %v1850_v18  ;;  %v1643_v48 = vrot.slane %v1622_v34, 1  ;;  %v1930_v49 = vld [vmem:[%s5352_s20 + $0x38] sm:$0x1]  ;;  %v1677_v52 = vsel %vm245_vm5, %v1676_v20, %v1675_v45  ;;  %v1634_v53 = vsel %vm233_vm1, %v1633_v36, %v1632_v46  ;;  %v6090_v57 = vpop.permute.xlu0 %808  ;;  %v2000_v34 = vld [vmem:[%s5352_s20 + $0x19] sm:$0x1] }
  0xd1   : > { %v1854_v30 = vsel %vm248_vm6, %v1853_v58, %v1852_v25  ;;  %v1931_v51 = vld [vmem:[%s5352_s20 + $0x58] sm:$0x1]  ;;  %v1679_v58 = vsel %vm248_vm6, %v1678_v21, %v1677_v52  ;;  %v1636_v59 = vsel %vm236_vm2, %v1635_v39, %v1634_v53  ;;  %v1945_v0 = vrot.slane %v1930_v49, 7  ;;  %v2005_v49 = vld [vmem:[%s5352_s20 + $0xb9] sm:$0x1] }
  0xd2   : > { %1855 = vrot.lane.b32.xlu0 %v1854_v30, %s5274_s19  ;;  %v1932_v54 = vld [vmem:[%s5352_s20 + $0x78] sm:$0x1]  ;;  %v1947_v1 = vrot.slane %v1931_v51, 6  ;;  %1680 = vrot.lane.b32.xlu1 %v1679_v58, %s5275_s21  ;;  %v1638_v2 = vsel %vm239_vm3, %v1637_v40, %v1636_v59  ;;  %v2006_v53 = vld [vmem:[%s5352_s20 + $0xd9] sm:$0x1]  ;;  %v6130_v58 = vpop.permute.xlu1 %633 }
  0xd3   : > { %v1933_v55 = vld [vmem:[%s5352_s20 + $0x98] sm:$0x1]  ;;  %v1949_v3 = vrot.slane %v1932_v54, 5  ;;  %v1640_v8 = vsel %vm242_vm4, %v1639_v42, %v1638_v2  ;;  %v1946_v9 = vsel %vm230_vm0, %v1945_v0, %v1929_v44  ;;  %v2001_v42 = vld [vmem:[%s5352_s20 + $0x39] sm:$0x1]  ;;  %v2024_v0 = vrot.slane %v2005_v49, 3 }
  0xd4   : > { %v1934_v56 = vld [vmem:[%s5352_s20 + $0xb8] sm:$0x1]  ;;  %v1951_v5 = vrot.slane %v1933_v55, 4  ;;  %v1642_v16 = vsel %vm245_vm5, %v1641_v47, %v1640_v8  ;;  %v1948_v18 = vsel %vm233_vm1, %v1947_v1, %v1946_v9  ;;  %v6115_v35 = vpop.permute.xlu0 %250  ;;  %v2002_v44 = vld [vmem:[%s5352_s20 + $0x59] sm:$0x1]  ;;  %v2016_v55 = vrot.slane %v2001_v42, 7 }
  0xd5   : > { %v1935_v61 = vld [vmem:[%s5352_s20 + $0xd8] sm:$0x1]  ;;  %v1953_v6 = vrot.slane %v1934_v56, 3  ;;  %v1644_v22 = vsel %vm248_vm6, %v1643_v48, %v1642_v16  ;;  %v1950_v24 = vsel %vm236_vm2, %v1949_v3, %v1948_v18  ;;  %v2003_v47 = vld [vmem:[%s5352_s20 + $0x79] sm:$0x1]  ;;  %v2018_v56 = vrot.slane %v2002_v44, 6 }
  0xd6   : > { %v1936_v63 = vld [vmem:[%s5352_s20 + $0xf8] sm:$0x1]  ;;  %v1955_v10 = vrot.slane %v1935_v61, 2  ;;  %1645 = vrot.lane.b32.xlu0 %v1644_v22, %s5275_s21  ;;  %v1952_v29 = vsel %vm239_vm3, %v1951_v5, %v1950_v24  ;;  %v2004_v48 = vld [vmem:[%s5352_s20 + $0x99] sm:$0x1]  ;;  %v2020_v61 = vrot.slane %v2003_v47, 5  ;;  %v2017_v3 = vsel %vm230_vm0, %v2016_v55, %v2000_v34 }
  0xd7   : > { %v1894_v7 = vld [vmem:[%s5329_s17 + $0x18] sm:$0x1]  ;;  %v1957_v11 = vrot.slane %v1936_v63, 1  ;;  %v1954_v36 = vsel %vm242_vm4, %v1953_v6, %v1952_v29  ;;  %v2007_v54 = vld [vmem:[%s5352_s20 + $0xf9] sm:$0x1]  ;;  %v2022_v63 = vrot.slane %v2004_v48, 4 }
  0xd8   : > { %v1895_v12 = vld [vmem:[%s5329_s17 + $0x38] sm:$0x1]  ;;  %v1956_v45 = vsel %vm245_vm5, %v1955_v10, %v1954_v36  ;;  %v1963_v1 = vld [vmem:[%s5329_s17 + $0x19] sm:$0x1]  ;;  %v2026_v5 = vrot.slane %v2006_v53, 2  ;;  %v2028_v6 = vrot.slane %v2007_v54, 1  ;;  %v2019_v10 = vsel %vm233_vm1, %v2018_v56, %v2017_v3  ;;  %v6143_v16 = vpop.permute.xlu0 %598 }
  0xd9   : > { %v1896_v13 = vld [vmem:[%s5329_s17 + $0x58] sm:$0x1]  ;;  %v1910_v27 = vrot.slane %v1895_v12, 7  ;;  %v1958_v51 = vsel %vm248_vm6, %v1957_v11, %v1956_v45  ;;  %v1965_v8 = vld [vmem:[%s5329_s17 + $0x59] sm:$0x1] }
  0xda   : > { %v1897_v19 = vld [vmem:[%s5329_s17 + $0x78] sm:$0x1]  ;;  %v1912_v28 = vrot.slane %v1896_v13, 6  ;;  %1959 = vrot.lane.b32.xlu1 %v1958_v51, %s5276_s22  ;;  %v1966_v11 = vld [vmem:[%s5329_s17 + $0x79] sm:$0x1]  ;;  %v1981_v24 = vrot.slane %v1965_v8, 6 }
  0xdb   : > { %v1898_v20 = vld [vmem:[%s5329_s17 + $0x98] sm:$0x1]  ;;  %v1914_v30 = vrot.slane %v1897_v19, 5  ;;  %v1911_v38 = vsel %vm230_vm0, %v1910_v27, %v1894_v7  ;;  %v1964_v7 = vld [vmem:[%s5329_s17 + $0x39] sm:$0x1]  ;;  %v2021_v19 = vsel %vm236_vm2, %v2020_v61, %v2019_v10 }
  0xdc   : > { %v1899_v21 = vld [vmem:[%s5329_s17 + $0xb8] sm:$0x1]  ;;  %v1916_v32 = vrot.slane %v1898_v20, 4  ;;  %v1913_v46 = vsel %vm233_vm1, %v1912_v28, %v1911_v38  ;;  %v1967_v12 = vld [vmem:[%s5329_s17 + $0x99] sm:$0x1]  ;;  %v1979_v22 = vrot.slane %v1964_v7, 7 }
  0xdd   : > { %v1900_v25 = vld [vmem:[%s5329_s17 + $0xd8] sm:$0x1]  ;;  %v1918_v33 = vrot.slane %v1899_v21, 3  ;;  %v1915_v52 = vsel %vm236_vm2, %v1914_v30, %v1913_v46  ;;  %v1968_v13 = vld [vmem:[%s5329_s17 + $0xb9] sm:$0x1]  ;;  %v1985_v27 = vrot.slane %v1967_v12, 4 }
  0xde   : > { %v1901_v26 = vld [vmem:[%s5329_s17 + $0xf8] sm:$0x1]  ;;  %v1920_v39 = vrot.slane %v1900_v25, 2  ;;  %v1917_v59 = vsel %vm239_vm3, %v1916_v32, %v1915_v52  ;;  %v1969_v20 = vld [vmem:[%s5329_s17 + $0xd9] sm:$0x1]  ;;  %v2023_v25 = vsel %vm239_vm3, %v2022_v63, %v2021_v19  ;;  %v1987_v28 = vrot.slane %v1968_v13, 3  ;;  %v6168_v63 = vpop.permute.xlu0 %877 }
  0xdf   : > { %v1922_v40 = vrot.slane %v1901_v26, 1  ;;  %v1919_v2 = vsel %vm242_vm4, %v1918_v33, %v1917_v59  ;;  %v1970_v21 = vld [vmem:[%s5329_s17 + $0xf9] sm:$0x1]  ;;  %v1983_v26 = vrot.slane %v1966_v11, 5  ;;  %v2070_v29 = vld [vmem:[%s5352_s20 + $0x1a] sm:$0x1]  ;;  %v2025_v30 = vsel %vm242_vm4, %v2024_v0, %v2023_v25 }
  0xe0   : > { %v1921_v9 = vsel %vm245_vm5, %v1920_v39, %v1919_v2  ;;  %v1980_v32 = vsel %vm230_vm0, %v1979_v22, %v1963_v1  ;;  %v1989_v33 = vrot.slane %v1969_v20, 2  ;;  %v1991_v34 = vrot.slane %v1970_v21, 1  ;;  %v2071_v36 = vld [vmem:[%s5352_s20 + $0x3a] sm:$0x1]  ;;  %v6155_v39 = vpop.permute.xlu1 %912 }
  0xe1   : > { %v1923_v18 = vsel %vm248_vm6, %v1922_v40, %v1921_v9  ;;  %v2072_v38 = vld [vmem:[%s5352_s20 + $0x5a] sm:$0x1]  ;;  %v2027_v40 = vsel %vm245_vm5, %v2026_v5, %v2025_v30  ;;  %v1982_v42 = vsel %vm233_vm1, %v1981_v24, %v1980_v32  ;;  %v2086_v52 = vrot.slane %v2071_v36, 7  ;;  %v2141_v36 = vld [vmem:[%s5352_s20 + $0x5b] sm:$0x1] }
  0xe2   : > { %1924 = vrot.lane.b32.xlu0 %v1923_v18, %s5276_s22  ;;  %v2073_v44 = vld [vmem:[%s5352_s20 + $0x7a] sm:$0x1]  ;;  %v2029_v47 = vsel %vm248_vm6, %v2028_v6, %v2027_v40  ;;  %v1984_v48 = vsel %vm236_vm2, %v1983_v26, %v1982_v42  ;;  %v2088_v53 = vrot.slane %v2072_v38, 6  ;;  %v2142_v42 = vld [vmem:[%s5352_s20 + $0x7b] sm:$0x1] }
  0xe3   : > { %v2074_v45 = vld [vmem:[%s5352_s20 + $0x9a] sm:$0x1]  ;;  %2030 = vrot.lane.b32.xlu1 %v2029_v47, %s5277_s23  ;;  %v1986_v54 = vsel %vm239_vm3, %v1985_v27, %v1984_v48  ;;  %v2090_v55 = vrot.slane %v2073_v44, 5  ;;  %v2087_v1 = vsel %vm230_vm0, %v2086_v52, %v2070_v29  ;;  %v2143_v44 = vld [vmem:[%s5352_s20 + $0x9b] sm:$0x1] }
  0xe4   : > { %v2075_v46 = vld [vmem:[%s5352_s20 + $0xba] sm:$0x1]  ;;  %v2092_v56 = vrot.slane %v2074_v45, 4  ;;  %v1988_v0 = vsel %vm242_vm4, %v1987_v28, %v1986_v54  ;;  %v2089_v8 = vsel %vm233_vm1, %v2088_v53, %v2087_v1  ;;  %v6183_v22 = vpop.permute.xlu1 %354  ;;  %v2139_v28 = vld [vmem:[%s5352_s20 + $0x1b] sm:$0x1]  ;;  %v2157_v53 = vrot.slane %v2141_v36, 6 }
  0xe5   : > { %v2076_v49 = vld [vmem:[%s5352_s20 + $0xda] sm:$0x1]  ;;  %v2094_v59 = vrot.slane %v2075_v46, 3  ;;  %v1990_v7 = vsel %vm245_vm5, %v1989_v33, %v1988_v0  ;;  %v2091_v13 = vsel %vm236_vm2, %v2090_v55, %v2089_v8  ;;  %v2144_v45 = vld [vmem:[%s5352_s20 + $0xbb] sm:$0x1]  ;;  %v6196_v46 = vpop.permute.xlu0 %319  ;;  %v2159_v55 = vrot.slane %v2142_v42, 5 }
  0xe6   : > { %v2077_v51 = vld [vmem:[%s5352_s20 + $0xfa] sm:$0x1]  ;;  %v2096_v2 = vrot.slane %v2076_v49, 2  ;;  %v1992_v12 = vsel %vm248_vm6, %v1991_v34, %v1990_v7  ;;  %v2093_v24 = vsel %vm239_vm3, %v2092_v56, %v2091_v13  ;;  %v2140_v34 = vld [vmem:[%s5352_s20 + $0x3b] sm:$0x1]  ;;  %v2161_v56 = vrot.slane %v2143_v44, 4 }
  0xe7   : > { %v2035_v61 = vld [vmem:[%s5329_s17 + $0x1a] sm:$0x1]  ;;  %v2098_v3 = vrot.slane %v2077_v51, 1  ;;  %1993 = vrot.lane.b32.xlu0 %v1992_v12, %s5277_s23  ;;  %v2095_v29 = vsel %vm242_vm4, %v2094_v59, %v2093_v24  ;;  %v2145_v49 = vld [vmem:[%s5352_s20 + $0xdb] sm:$0x1]  ;;  %v2155_v52 = vrot.slane %v2140_v34, 7 }
  0xe8   : > { %v2036_v5 = vld [vmem:[%s5329_s17 + $0x3a] sm:$0x1]  ;;  %v2097_v38 = vsel %vm245_vm5, %v2096_v2, %v2095_v29  ;;  %v2146_v51 = vld [vmem:[%s5352_s20 + $0xfb] sm:$0x1]  ;;  %v2163_v59 = vrot.slane %v2144_v45, 3  ;;  %v2165_v2 = vrot.slane %v2145_v49, 2  ;;  %v6208_v7 = vpop.permute.xlu1 %983 }
  0xe9   : > { %v2037_v6 = vld [vmem:[%s5329_s17 + $0x5a] sm:$0x1]  ;;  %v2051_v20 = vrot.slane %v2036_v5, 7  ;;  %v2099_v47 = vsel %vm248_vm6, %v2098_v3, %v2097_v38  ;;  %v2156_v1 = vsel %vm230_vm0, %v2155_v52, %v2139_v28  ;;  %v2167_v3 = vrot.slane %v2146_v51, 1  ;;  %v2105_v5 = vld [vmem:[%s5329_s17 + $0x3b] sm:$0x1] }
  0xea   : > { %v2038_v9 = vld [vmem:[%s5329_s17 + $0x7a] sm:$0x1]  ;;  %v2053_v21 = vrot.slane %v2037_v6, 6  ;;  %2100 = vrot.lane.b32.xlu1 %v2099_v47, %s5278_s24  ;;  %v2106_v6 = vld [vmem:[%s5329_s17 + $0x5b] sm:$0x1] }
  0xeb   : > { %v2039_v10 = vld [vmem:[%s5329_s17 + $0x9a] sm:$0x1]  ;;  %v2055_v25 = vrot.slane %v2038_v9, 5  ;;  %v2052_v30 = vsel %vm230_vm0, %v2051_v20, %v2035_v61  ;;  %v2104_v61 = vld [vmem:[%s5329_s17 + $0x1b] sm:$0x1]  ;;  %v2158_v9 = vsel %vm233_vm1, %v2157_v53, %v2156_v1  ;;  %v2122_v24 = vrot.slane %v2106_v6, 6 }
  0xec   : > { %v2040_v11 = vld [vmem:[%s5329_s17 + $0xba] sm:$0x1]  ;;  %v2057_v26 = vrot.slane %v2039_v10, 4  ;;  %v2054_v40 = vsel %vm233_vm1, %v2053_v21, %v2052_v30  ;;  %v2107_v10 = vld [vmem:[%s5329_s17 + $0x7b] sm:$0x1]  ;;  %v2120_v21 = vrot.slane %v2105_v5, 7  ;;  %v6221_v30 = vpop.permute.xlu0 %946 }
  0xed   : > { %v2041_v18 = vld [vmem:[%s5329_s17 + $0xda] sm:$0x1]  ;;  %v2059_v27 = vrot.slane %v2040_v11, 3  ;;  %v2056_v48 = vsel %vm236_vm2, %v2055_v25, %v2054_v40  ;;  %v2108_v11 = vld [vmem:[%s5329_s17 + $0x9b] sm:$0x1] }
  0xee   : > { %v2042_v19 = vld [vmem:[%s5329_s17 + $0xfa] sm:$0x1]  ;;  %v2061_v32 = vrot.slane %v2041_v18, 2  ;;  %v2058_v54 = vsel %vm239_vm3, %v2057_v26, %v2056_v48  ;;  %v2109_v12 = vld [vmem:[%s5329_s17 + $0xbb] sm:$0x1]  ;;  %v2160_v18 = vsel %vm236_vm2, %v2159_v55, %v2158_v9  ;;  %v2124_v26 = vrot.slane %v2107_v10, 5 }
  0xef   : > { %v2063_v33 = vrot.slane %v2042_v19, 1  ;;  %v2060_v0 = vsel %vm242_vm4, %v2059_v27, %v2058_v54  ;;  %v2110_v19 = vld [vmem:[%s5329_s17 + $0xdb] sm:$0x1]  ;;  %v2162_v25 = vsel %vm239_vm3, %v2161_v56, %v2160_v18  ;;  %v2126_v27 = vrot.slane %v2108_v11, 4  ;;  %v2279_v29 = vld [vmem:[%s5352_s20 + $0x1d] sm:$0x1]  ;;  %v6236_v56 = vpop.permute.xlu1 %1053 }
  0xf0   : > { %v2062_v8 = vsel %vm245_vm5, %v2061_v32, %v2060_v0  ;;  %v2111_v20 = vld [vmem:[%s5329_s17 + $0xfb] sm:$0x1]  ;;  %v2128_v28 = vrot.slane %v2109_v12, 3  ;;  %v2164_v32 = vsel %vm242_vm4, %v2163_v59, %v2162_v25  ;;  %v2130_v34 = vrot.slane %v2110_v19, 2  ;;  %v2280_v38 = vld [vmem:[%s5352_s20 + $0x3d] sm:$0x1] }
  0xf1   : > { %v2064_v13 = vsel %vm248_vm6, %v2063_v33, %v2062_v8  ;;  %v2121_v33 = vsel %vm230_vm0, %v2120_v21, %v2104_v61  ;;  %v2132_v36 = vrot.slane %v2111_v20, 1  ;;  %v2281_v40 = vld [vmem:[%s5352_s20 + $0x5d] sm:$0x1]  ;;  %v2166_v42 = vsel %vm245_vm5, %v2165_v2, %v2164_v32  ;;  %v6251_v20 = vpop.permute.xlu0 %1018 }
  0xf2   : > { %2065 = vrot.lane.b32.xlu0 %v2064_v13, %s5278_s24  ;;  %v2123_v44 = vsel %vm233_vm1, %v2122_v24, %v2121_v33  ;;  %v2282_v45 = vld [vmem:[%s5352_s20 + $0x7d] sm:$0x1]  ;;  %v2168_v49 = vsel %vm248_vm6, %v2167_v3, %v2166_v42  ;;  %v2295_v54 = vrot.slane %v2280_v38, 7  ;;  %v2297_v55 = vrot.slane %v2281_v40, 6 }
  0xf3   : > { %v2283_v47 = vld [vmem:[%s5352_s20 + $0x9d] sm:$0x1]  ;;  %v2125_v51 = vsel %vm236_vm2, %v2124_v26, %v2123_v44  ;;  %2169 = vrot.lane.b32.xlu1 %v2168_v49, %s5279_s25  ;;  %v2299_v61 = vrot.slane %v2282_v45, 5  ;;  %v2209_v45 = vld [vmem:[%s5352_s20 + $0x3c] sm:$0x1] }
  0xf4   : > { %v2284_v48 = vld [vmem:[%s5352_s20 + $0xbd] sm:$0x1]  ;;  %v2127_v59 = vsel %vm239_vm3, %v2126_v27, %v2125_v51  ;;  %v2301_v0 = vrot.slane %v2283_v47, 4  ;;  %v2296_v5 = vsel %vm230_vm0, %v2295_v54, %v2279_v29  ;;  %v2210_v47 = vld [vmem:[%s5352_s20 + $0x5c] sm:$0x1] }
  0xf5   : > { %v2285_v52 = vld [vmem:[%s5352_s20 + $0xdd] sm:$0x1]  ;;  %v2303_v1 = vrot.slane %v2284_v48, 3  ;;  %v2129_v3 = vsel %vm242_vm4, %v2128_v28, %v2127_v59  ;;  %v2298_v12 = vsel %vm233_vm1, %v2297_v55, %v2296_v5  ;;  %v6270_v48 = vpop.permute.xlu1 %1262  ;;  %v5280_v59 = vmov 0.0  }
  0xf6   : > { %v2286_v53 = vld [vmem:[%s5352_s20 + $0xfd] sm:$0x1]  ;;  %v2305_v6 = vrot.slane %v2285_v52, 2  ;;  %v2131_v11 = vsel %vm245_vm5, %v2130_v34, %v2129_v3  ;;  %v2300_v24 = vsel %vm236_vm2, %v2299_v61, %v2298_v12  ;;  %v2211_v52 = vld [vmem:[%s5352_s20 + $0x7c] sm:$0x1]  ;;  %194 = vst [vmem:[#allocation2 + $0x10] sm:$0xff] %v5280_v59 }
  0xf7   : > { %v2242_v2 = vld [vmem:[%s5329_s17 + $0x1d] sm:$0x1]  ;;  %v2307_v8 = vrot.slane %v2286_v53, 1  ;;  %v2133_v21 = vsel %vm248_vm6, %v2132_v36, %v2131_v11  ;;  %v2302_v29 = vsel %vm239_vm3, %v2301_v0, %v2300_v24  ;;  %v2208_v36 = vld [vmem:[%s5352_s20 + $0x1c] sm:$0x1]  ;;  %192 = vst [vmem:[#allocation2] sm:$0xff] %v5280_v59 }
  0xf8   : > { %v2243_v9 = vld [vmem:[%s5329_s17 + $0x3d] sm:$0x1]  ;;  %2134 = vrot.lane.b32.xlu0 %v2133_v21, %s5279_s25  ;;  %v2304_v38 = vsel %vm242_vm4, %v2303_v1, %v2302_v29  ;;  %v2212_v53 = vld [vmem:[%s5352_s20 + $0x9c] sm:$0x1]  ;;  %193 = vst [vmem:[#allocation2 + $0x8] sm:$0xff] %v5280_v59  ;;  %195 = vst [vmem:[#allocation2 + $0x18] sm:$0xff] %v5280_v59 }
  0xf9   : > { %v2244_v10 = vld [vmem:[%s5329_s17 + $0x5d] sm:$0x1]  ;;  %v2258_v27 = vrot.slane %v2243_v9, 7  ;;  %v2306_v49 = vsel %vm245_vm5, %v2305_v6, %v2304_v38  ;;  %196 = vst [vmem:[#allocation2 + $0x20] sm:$0xff] %v5280_v59  ;;  %197 = vst [vmem:[#allocation2 + $0x28] sm:$0xff] %v5280_v59  ;;  %v2224_v1 = vrot.slane %v2209_v45, 7  ;;  %v6306_v9 = vpop.permute.xlu0 %1225  ;;  %v6321_v38 = vpop.permute.xlu1 %1122 }
  0xfa   : > { %v2245_v13 = vld [vmem:[%s5329_s17 + $0x7d] sm:$0x1]  ;;  %v2260_v28 = vrot.slane %v2244_v10, 6  ;;  %v2308_v54 = vsel %vm248_vm6, %v2307_v8, %v2306_v49  ;;  %198 = vst [vmem:[#allocation2 + $0x30] sm:$0xff] %v5280_v59  ;;  %199 = vst [vmem:[#allocation2 + $0x38] sm:$0xff] %v5280_v59  ;;  %v2226_v5 = vrot.slane %v2210_v47, 6 }
  0xfb   : > { %v2246_v18 = vld [vmem:[%s5329_s17 + $0x9d] sm:$0x1]  ;;  %v2262_v32 = vrot.slane %v2245_v13, 5  ;;  %v2259_v40 = vsel %vm230_vm0, %v2258_v27, %v2242_v2  ;;  %200 = vst [vmem:[#allocation2 + $0x40] sm:$0xff] %v5280_v59  ;;  %203 = vst [vmem:[#allocation2 + $0x50] sm:$0xff] %v5280_v59  ;;  %2309 = vrot.lane.b32.xlu1 %v2308_v54, %s5281_s26  ;;  %v2228_v6 = vrot.slane %v2211_v52, 5  ;;  %v2225_v11 = vsel %vm230_vm0, %v2224_v1, %v2208_v36 }
  0xfc   : > { %v6249_v19 = vld [vmem:[%s5329_s17 + $0xbd] sm:$0x1]  ;;  %v2264_v33 = vrot.slane %v2246_v18, 4  ;;  %v2261_v51 = vsel %vm233_vm1, %v2260_v28, %v2259_v40  ;;  %204 = vst [vmem:[#allocation2 + $0x58] sm:$0xff] %v5280_v59  ;;  %205 = vst [vmem:[#allocation2 + $0x60] sm:$0xff] %v5280_v59  ;;  %v2230_v8 = vrot.slane %v2212_v53, 4  ;;  %v2227_v24 = vsel %vm233_vm1, %v2226_v5, %v2225_v11 }
  0xfd   : > { %v6256_v25 = vld [vmem:[%s5329_s17 + $0xdd] sm:$0x1]  ;;  %v2266_v34 = vrot.slane %v6249_v19, 3  ;;  %v2263_v55 = vsel %vm236_vm2, %v2262_v32, %v2261_v51  ;;  %206 = vst [vmem:[#allocation2 + $0x68] sm:$0xff] %v5280_v59  ;;  %207 = vst [vmem:[#allocation2 + $0x70] sm:$0xff] %v5280_v59  ;;  %v2229_v32 = vsel %vm236_vm2, %v2228_v6, %v2227_v24  ;;  %v6333_v6 = vpop.permute.xlu0 %1087 }
  0xfe   : > { %v6259_v26 = vld [vmem:[%s5329_s17 + $0xfd] sm:$0x1]  ;;  %v2268_v42 = vrot.slane %v6256_v25, 2  ;;  %208 = vst [vmem:[#allocation2 + $0x78] sm:$0xff] %v5280_v59  ;;  %209 = vst [vmem:[#allocation2 + $0x80] sm:$0xff] %v5280_v59  ;;  %v2265_v2 = vsel %vm239_vm3, %v2264_v33, %v2263_v55  ;;  %v2231_v40 = vsel %vm239_vm3, %v2230_v8, %v2229_v32 }
  0xff   : > { %v2270_v44 = vrot.slane %v6259_v26, 1  ;;  %210 = vst [vmem:[#allocation2 + $0x88] sm:$0xff] %v5280_v59  ;;  %211 = vst [vmem:[#allocation2 + $0x90] sm:$0xff] %v5280_v59  ;;  %v2213_v61 = vld [vmem:[%s5352_s20 + $0xbc] sm:$0x1]  ;;  %v2267_v10 = vsel %vm242_vm4, %v2266_v34, %v2265_v2 }
 0x100   : > { %v2214_v0 = vld [vmem:[%s5352_s20 + $0xdc] sm:$0x1]  ;;  %673 = vst.msk [vmem:[#allocation2 + $0x10] sm:$0xff] %vm672_vm7, %v5943_v43  ;;  %708 = vst.msk [vmem:[#allocation2 + $0x60] sm:$0xff] %vm672_vm7, %v5971_v14  ;;  %v2232_v12 = vrot.slane %v2213_v61, 3  ;;  %v2269_v21 = vsel %vm245_vm5, %v2268_v42, %v2267_v10  ;;  %vm951_vm7 = vcmask 187392  }
 0x101   : > { %394 = vst.msk [vmem:[#allocation2 + $0x8] sm:$0xff] %vm393_vm8, %v5956_v60  ;;  %v2215_v3 = vld [vmem:[%s5352_s20 + $0xfc] sm:$0x1]  ;;  %429 = vst.msk [vmem:[#allocation2 + $0x58] sm:$0xff] %vm393_vm8, %v5984_v31  ;;  %v2234_v13 = vrot.slane %v2214_v0, 2  ;;  %v2271_v29 = vsel %vm248_vm6, %v2270_v44, %v2269_v21  ;;  %vm1230_vm8 = vcmask 252928  }
 0x102   : > { %v2173_v18 = vld [vmem:[%s5329_s17 + $0x1c] sm:$0x1]  ;;  %v2236_v25 = vrot.slane %v2215_v3, 1  ;;  %2272 = vrot.lane.b32.xlu0 %v2271_v29, %s5281_s26  ;;  %v2349_v44 = vld [vmem:[%s5352_s20 + $0x1e] sm:$0x1]  ;;  %v2233_v51 = vsel %vm242_vm4, %v2232_v12, %v2231_v40  ;;  %498 = vst.msk [vmem:[#allocation2 + $0x58] sm:$0xff] %vm463_vm9, %v5996_v50 }
 0x103   : > { %v2174_v19 = vld [vmem:[%s5329_s17 + $0x3c] sm:$0x1]  ;;  %v2350_v55 = vld [vmem:[%s5352_s20 + $0x3e] sm:$0x1]  ;;  %v2235_v61 = vsel %vm245_vm5, %v2234_v13, %v2233_v51  ;;  %464 = vst.msk [vmem:[#allocation2 + $0x8] sm:$0xff] %vm463_vm9, %v6009_v4  ;;  %vm1090_vm9 = vcmask 744920  }
 0x104   : > { %v2175_v26 = vld [vmem:[%s5329_s17 + $0x5c] sm:$0x1]  ;;  %v2189_v28 = vrot.slane %v2174_v19, 7  ;;  %v2351_v2 = vld [vmem:[%s5352_s20 + $0x5e] sm:$0x1]  ;;  %v2365_v5 = vrot.slane %v2350_v55, 7  ;;  %v2237_v8 = vsel %vm248_vm6, %v2236_v25, %v2235_v61 }
 0x105   : > { %v2176_v27 = vld [vmem:[%s5329_s17 + $0x7c] sm:$0x1]  ;;  %v2191_v47 = vrot.slane %v2175_v26, 6  ;;  %v2352_v3 = vld [vmem:[%s5352_s20 + $0x7e] sm:$0x1]  ;;  %2238 = vrot.lane.b32.xlu1 %v2237_v8, %s5282_s27  ;;  %v2367_v24 = vrot.slane %v2351_v2, 6 }
 0x106   : > { %v2177_v33 = vld [vmem:[%s5329_s17 + $0x9c] sm:$0x1]  ;;  %v2190_v45 = vsel %vm230_vm0, %v2189_v28, %v2173_v18  ;;  %v2193_v49 = vrot.slane %v2176_v27, 5  ;;  %v2353_v11 = vld [vmem:[%s5352_s20 + $0x9e] sm:$0x1]  ;;  %v2366_v21 = vsel %vm230_vm0, %v2365_v5, %v2349_v44  ;;  %v2369_v26 = vrot.slane %v2352_v3, 5  ;;  %v6360_v5 = vpop.permute.xlu0 %1297 }
 0x107   : > { %v2178_v34 = vld [vmem:[%s5329_s17 + $0xbc] sm:$0x1]  ;;  %v2195_v52 = vrot.slane %v2177_v33, 4  ;;  %v2192_v0 = vsel %vm233_vm1, %v2191_v47, %v2190_v45  ;;  %v2354_v12 = vld [vmem:[%s5352_s20 + $0xbe] sm:$0x1]  ;;  %v2371_v28 = vrot.slane %v2353_v11, 4  ;;  %v2368_v40 = vsel %vm233_vm1, %v2367_v24, %v2366_v21 }
 0x108   : > { %v2179_v36 = vld [vmem:[%s5329_s17 + $0xdc] sm:$0x1]  ;;  %v2197_v53 = vrot.slane %v2178_v34, 3  ;;  %v2194_v10 = vsel %vm236_vm2, %v2193_v49, %v2192_v0  ;;  %v2355_v18 = vld [vmem:[%s5352_s20 + $0xde] sm:$0x1]  ;;  %v2373_v29 = vrot.slane %v2354_v12, 3  ;;  %v6346_v34 = vpop.permute.xlu1 %1332  ;;  %v2370_v51 = vsel %vm236_vm2, %v2369_v26, %v2368_v40 }
 0x109   : > { %v2180_v42 = vld [vmem:[%s5329_s17 + $0xfc] sm:$0x1]  ;;  %v2199_v54 = vrot.slane %v2179_v36, 2  ;;  %v2196_v13 = vsel %vm239_vm3, %v2195_v52, %v2194_v10  ;;  %v2356_v19 = vld [vmem:[%s5352_s20 + $0xfe] sm:$0x1]  ;;  %v2375_v32 = vrot.slane %v2355_v18, 2  ;;  %v2372_v61 = vsel %vm239_vm3, %v2371_v28, %v2370_v51 }
 0x10a   : > { %v2201_v1 = vrot.slane %v2180_v42, 1  ;;  %v2314_v27 = vld [vmem:[%s5329_s17 + $0x1e] sm:$0x1]  ;;  %v2198_v25 = vsel %vm242_vm4, %v2197_v53, %v2196_v13  ;;  %v2377_v42 = vrot.slane %v2356_v19, 1  ;;  %v2418_v12 = vld [vmem:[%s5352_s20 + $0x1f] sm:$0x1] }
 0x10b   : > { %v2315_v33 = vld [vmem:[%s5329_s17 + $0x3e] sm:$0x1]  ;;  %v2200_v36 = vsel %vm245_vm5, %v2199_v54, %v2198_v25  ;;  %v2419_v18 = vld [vmem:[%s5352_s20 + $0x3f] sm:$0x1]  ;;  %777 = vst.msk [vmem:[#allocation2 + $0x60] sm:$0xff] %vm742_vm10, %v6024_v23  ;;  %743 = vst.msk [vmem:[#allocation2 + $0x10] sm:$0xff] %vm742_vm10, %v6037_v41 }
 0x10c   : > { %v2316_v45 = vld [vmem:[%s5329_s17 + $0x5e] sm:$0x1]  ;;  %v2330_v49 = vrot.slane %v2315_v33, 7  ;;  %v2202_v44 = vsel %vm248_vm6, %v2201_v1, %v2200_v36  ;;  %v2374_v1 = vsel %vm242_vm4, %v2373_v29, %v2372_v61  ;;  %v2420_v24 = vld [vmem:[%s5352_s20 + $0x5f] sm:$0x1]  ;;  %567 = vst.msk [vmem:[#allocation2 + $0x58] sm:$0xff] %vm532_vm11, %v6049_v62 }
 0x10d   : > { %v2317_v47 = vld [vmem:[%s5329_s17 + $0x7e] sm:$0x1]  ;;  %2203 = vrot.lane.b32.xlu0 %v2202_v44, %s5282_s27  ;;  %v2332_v2 = vrot.slane %v2316_v45, 6  ;;  %v2376_v13 = vsel %vm245_vm5, %v2375_v32, %v2374_v1  ;;  %v2421_v26 = vld [vmem:[%s5352_s20 + $0x7f] sm:$0x1]  ;;  %v6376_v32 = vpop.permute.xlu1 %1191  ;;  %v2436_v45 = vrot.slane %v2420_v24, 6 }
 0x10e   : > { %v2318_v52 = vld [vmem:[%s5329_s17 + $0x9e] sm:$0x1]  ;;  %v2331_v0 = vsel %vm230_vm0, %v2330_v49, %v2314_v27  ;;  %v2334_v3 = vrot.slane %v2317_v47, 5  ;;  %v2378_v27 = vsel %vm248_vm6, %v2377_v42, %v2376_v13  ;;  %v2422_v28 = vld [vmem:[%s5352_s20 + $0x9f] sm:$0x1]  ;;  %v2434_v42 = vrot.slane %v2419_v18, 7 }
 0x10f   : > { %v2319_v53 = vld [vmem:[%s5329_s17 + $0xbe] sm:$0x1]  ;;  %v2336_v8 = vrot.slane %v2318_v52, 4  ;;  %v2333_v19 = vsel %vm233_vm1, %v2332_v2, %v2331_v0  ;;  %v2423_v29 = vld [vmem:[%s5352_s20 + $0xbf] sm:$0x1]  ;;  %2379 = vrot.lane.b32.xlu1 %v2378_v27, %s5283_s28  ;;  %v2438_v47 = vrot.slane %v2421_v26, 5  ;;  %v6386_v0 = vpop.permute.xlu0 %1156 }
 0x110   : > { %v2320_v55 = vld [vmem:[%s5329_s17 + $0xde] sm:$0x1]  ;;  %v2338_v10 = vrot.slane %v2319_v53, 3  ;;  %v2335_v25 = vsel %vm236_vm2, %v2334_v3, %v2333_v19  ;;  %v2424_v33 = vld [vmem:[%s5352_s20 + $0xdf] sm:$0x1]  ;;  %v2440_v4 = vrot.slane %v2422_v28, 4  ;;  %v2435_v53 = vsel %vm230_vm0, %v2434_v42, %v2418_v12 }
 0x111   : > { %v2321_v54 = vld [vmem:[%s5329_s17 + $0xfe] sm:$0x1]  ;;  %v2340_v11 = vrot.slane %v2320_v55, 2  ;;  %v2337_v36 = vsel %vm239_vm3, %v2336_v8, %v2335_v25  ;;  %v2425_v40 = vld [vmem:[%s5352_s20 + $0xff] sm:$0x1]  ;;  %v2442_v49 = vrot.slane %v2423_v29, 3  ;;  %v2437_v3 = vsel %vm233_vm1, %v2436_v45, %v2435_v53  ;;  %v6399_v25 = vpop.permute.xlu1 %1401 }
 0x112   : > { %v2342_v21 = vrot.slane %v2321_v54, 1  ;;  %v2339_v50 = vsel %vm242_vm4, %v2338_v10, %v2337_v36  ;;  %v2444_v44 = vrot.slane %v2424_v33, 2  ;;  %v2383_v51 = vld [vmem:[%s5329_s17 + $0x1f] sm:$0x1]  ;;  %v2446_v55 = vrot.slane %v2425_v40, 1  ;;  %533 = vst.msk [vmem:[#allocation2 + $0x8] sm:$0xff] %vm532_vm11, %v6062_v17 }
 0x113   : > { %v2341_v52 = vsel %vm245_vm5, %v2340_v11, %v2339_v50  ;;  %v2384_v61 = vld [vmem:[%s5329_s17 + $0x3f] sm:$0x1]  ;;  %v2439_v11 = vsel %vm236_vm2, %v2438_v47, %v2437_v3  ;;  %846 = vst.msk [vmem:[#allocation2 + $0x60] sm:$0xff] %vm811_vm12, %v6077_v37  ;;  %812 = vst.msk [vmem:[#allocation2 + $0x10] sm:$0xff] %vm811_vm12, %v6090_v57  ;;  %vm1159_vm10 = vcmask 1023720   ;;  %vm1228_vm11 = vcmask 1048568  }
 0x114   : > { %v2385_v54 = vld [vmem:[%s5329_s17 + $0x5f] sm:$0x1]  ;;  %v2343_v2 = vsel %vm248_vm6, %v2342_v21, %v2341_v52  ;;  %v2399_v13 = vrot.slane %v2384_v61, 7  ;;  %v2441_v24 = vsel %vm239_vm3, %v2440_v4, %v2439_v11  ;;  %v1367_v45 = vpop.permute.xlu0 %1366  ;;  %288 = vst.msk [vmem:[#allocation2 + $0x50] sm:$0xff] %vm253_vm13, %v6102_v15  ;;  %254 = vst.msk [vmem:[#allocation2] sm:$0xff] %vm253_vm13, %v6115_v35  ;;  %vm1438_vm12 = vcmask 1048360  }
 0x115   : > { %v2386_v1 = vld [vmem:[%s5329_s17 + $0x7f] sm:$0x1]  ;;  %2344 = vrot.lane.b32.xlu0 %v2343_v2, %s5283_s28  ;;  %v2401_v19 = vrot.slane %v2385_v54, 6  ;;  %v2443_v28 = vsel %vm242_vm4, %v2442_v49, %v2441_v24  ;;  %636 = vst.msk [vmem:[#allocation2 + $0x58] sm:$0xff] %vm601_vm14, %v6130_v58  ;;  %602 = vst.msk [vmem:[#allocation2 + $0x8] sm:$0xff] %vm601_vm14, %v6143_v16  ;;  %vm1440_vm13 = vcmask 39936  }
 0x116   : > { %v2387_v8 = vld [vmem:[%s5329_s17 + $0x9f] sm:$0x1]  ;;  %v2403_v26 = vrot.slane %v2386_v1, 5  ;;  %v2400_v23 = vsel %vm230_vm0, %v2399_v13, %v2383_v51  ;;  %v2445_v33 = vsel %vm245_vm5, %v2444_v44, %v2443_v28  ;;  %vm880_vm0 = vcmask 958120   ;;  %707 = vst.msk [vmem:[#allocation2 + $0x58] sm:$0xff] %vm670_vm15, %v5971_v14  ;;  %671 = vst.msk [vmem:[#allocation2 + $0x8] sm:$0xff] %vm670_vm15, %v5943_v43  ;;  %v1473_v43 = vpop.permute.xlu1 %1472 }
 0x117   : > { %v2388_v10 = vld [vmem:[%s5329_s17 + $0xbf] sm:$0x1]  ;;  %v2405_v21 = vrot.slane %v2387_v8, 4  ;;  %v2402_v36 = vsel %vm233_vm1, %v2401_v19, %v2400_v23  ;;  %v2447_v40 = vsel %vm248_vm6, %v2446_v55, %v2445_v33  ;;  %vm322_vm1 = vcmask 826920   ;;  %915 = vst.msk [vmem:[#allocation2 + $0x60] sm:$0xff] %vm880_vm0, %v6155_v39  ;;  %881 = vst.msk [vmem:[#allocation2 + $0x10] sm:$0xff] %vm880_vm0, %v6168_v63 }
 0x118   : > { %v2389_v12 = vld [vmem:[%s5329_s17 + $0xdf] sm:$0x1]  ;;  %v2407_v27 = vrot.slane %v2388_v10, 3  ;;  %v2404_v42 = vsel %vm236_vm2, %v2403_v26, %v2402_v36  ;;  %vm391_vm2 = vcmask 1048376   ;;  %357 = vst.msk [vmem:[#allocation2 + $0x50] sm:$0xff] %vm322_vm1, %v6183_v22  ;;  %323 = vst.msk [vmem:[#allocation2] sm:$0xff] %vm322_vm1, %v6196_v46 }
 0x119   : > { %v2390_v18 = vld [vmem:[%s5329_s17 + $0xff] sm:$0x1]  ;;  %v2409_v29 = vrot.slane %v2389_v12, 2  ;;  %s5284_s17 = smov 65   ;;  %v2406_v47 = vsel %vm239_vm3, %v2405_v21, %v2404_v42  ;;  %vm949_vm3 = vcmask 1048504   ;;  %428 = vst.msk [vmem:[#allocation2 + $0x50] sm:$0xff] %vm391_vm2, %v5984_v31 }
 0x11a   : > { %v2411_v41 = vrot.slane %v2390_v18, 1  ;;  %2448 = vrot.lane.b32.xlu1 %v2447_v40, %s5284_s17  ;;  %v2408_v62 = vsel %vm242_vm4, %v2407_v27, %v2406_v47  ;;  %392 = vst.msk [vmem:[#allocation2] sm:$0xff] %vm391_vm2, %v5956_v60  ;;  %vm1021_vm4 = vcmask 466120   ;;  %v1436_v60 = vpop.permute.xlu0 %1435  ;;  %vm1719_vm14 = vcmask 105472   ;;  %s5286_s20 = smov 126   ;;  %s5194_s28 = smul.u32 18, %s6971_s13 }
 0x11b   : > { %v2410_v17 = vsel %vm245_vm5, %v2409_v29, %v2408_v62  ;;  %986 = vst.msk [vmem:[#allocation2 + $0x60] sm:$0xff] %vm949_vm3, %v6208_v7  ;;  %950 = vst.msk [vmem:[#allocation2 + $0x10] sm:$0xff] %vm949_vm3, %v6221_v30  ;;  %vm1300_vm5 = vcmask 531720   ;;  %v5285_v16 = vmov 0   ;;  %vm1510_vm15 = vcmask 318520  }
 0x11c   : > { %987 = vst.msk [vmem:[#allocation2 + $0x68] sm:$0xff] %vm951_vm7, %v6208_v7  ;;  %952 = vst.msk [vmem:[#allocation2 + $0x18] sm:$0xff] %vm951_vm7, %v6221_v30  ;;  %v2412_v14 = vsel %vm248_vm6, %v2411_v41, %v2410_v17  ;;  %vm1369_vm6 = vcmask 810520   ;;  %v1752_v15 = vpop.permute.xlu1 %1751  ;;  %2854 = vmatprep.mubr.bf16.mxu0 %v5285_v16  ;;  %2565 = vmatprep.mubr.bf16.mxu1 %v5285_v16  ;;  %vm1789_vm0 = vcmask 384120   ;;  %vm1579_vm1 = vcmask 597320   ;;  %s190_s29 = scalar_lea.vmem %s6969_s3, %s5194_s28 }
 0x11d   : > { %1056 = vst.msk [vmem:[#allocation2 + $0x68] sm:$0xff] %vm1021_vm4, %v6236_v56  ;;  %1022 = vst.msk [vmem:[#allocation2 + $0x18] sm:$0xff] %vm1021_vm4, %v6251_v20  ;;  %2413 = vrot.lane.b32.xlu0 %v2412_v14, %s5284_s17  ;;  %v2453_v63 = vld [vmem:[#allocation2 + $0x8] sm:$0xff]  ;;  %v2462_v22 = vld [vmem:[#allocation2 + $0x58] sm:$0xff]  ;;  %vm1858_vm2 = vcmask 662920   ;;  %vm1648_vm3 = vcmask 876120  }
 0x11e   : > { %1266 = vst.msk [vmem:[#allocation2 + $0x70] sm:$0xff] %vm1230_vm8, %v6270_v48  ;;  %1231 = vst.msk [vmem:[#allocation2 + $0x20] sm:$0xff] %vm1230_vm8, %v6306_v9  ;;  %v6459_v30 = vpack.c.bf16 %v2462_v22, %v2453_v63  ;;  %vm1717_vm7 = vcmask 1048424   ;;  %vm1927_vm4 = vcmask 941720   ;;  %vm1996_vm8 = vcmask 1048488  }
 0x11f   : > { %1125 = vst.msk [vmem:[#allocation2 + $0x68] sm:$0xff] %vm1090_vm9, %v6321_v38  ;;  %1091 = vst.msk [vmem:[#allocation2 + $0x18] sm:$0xff] %vm1090_vm9, %v6333_v6  ;;  %vm1998_vm9 = vcmask 171008  }
 0x120   : > { %1335 = vst.msk [vmem:[#allocation2 + $0x70] sm:$0xff] %vm1300_vm5, %v6346_v34  ;;  %1301 = vst.msk [vmem:[#allocation2 + $0x20] sm:$0xff] %vm1300_vm5, %v6360_v5  ;;  %v2461_v37 = vld [vmem:[#allocation2 + $0x50] sm:$0xff]  ;;  %vm2529_vm5 = vcmask 130048  }
 0x121   : > { %1194 = vst.msk [vmem:[#allocation2 + $0x68] sm:$0xff] %vm1159_vm10, %v6376_v32  ;;  %1160 = vst.msk [vmem:[#allocation2 + $0x18] sm:$0xff] %vm1159_vm10, %v6386_v0  ;;  %v2452_v31 = vld [vmem:[#allocation2] sm:$0xff]  ;;  %vm201_vm10 = vcmask 48128  }
 0x122   : > { %1404 = vst.msk [vmem:[#allocation2 + $0x70] sm:$0xff] %vm1369_vm6, %v6399_v25  ;;  %1370 = vst.msk [vmem:[#allocation2 + $0x20] sm:$0xff] %vm1369_vm6, %v1367_v45  ;;  %v2454_v57 = vld [vmem:[#allocation2 + $0x10] sm:$0xff]  ;;  %v6448_v35 = vpack.c.bf16 %v2461_v37, %v2452_v31  ;;  %v2463_v58 = vld [vmem:[#allocation2 + $0x60] sm:$0xff]  ;;  %v1543_v6 = vpop.permute.xlu1 %1542  ;;  %vm2068_vm6 = vcmask 449720  }
 0x123   : > { %1476 = vst.msk [vmem:[#allocation2 + $0x78] sm:$0xff] %vm1440_vm13, %v1473_v43  ;;  %1441 = vst.msk [vmem:[#allocation2 + $0x28] sm:$0xff] %vm1440_vm13, %v1436_v60  ;;  %v6453_v39 = vpack.c.bf16 %v2463_v58, %v2454_v57  ;;  %v2479_v0 = vld [vmem:[%s6968_s2] sm:$0x3]  ;;  %vm2277_vm13 = vcmask 236544  }
 0x124   : > { %1265 = vst.msk [vmem:[#allocation2 + $0x68] sm:$0xff] %vm1228_vm11, %v6270_v48  ;;  %1229 = vst.msk [vmem:[#allocation2 + $0x18] sm:$0xff] %vm1228_vm11, %v6306_v9  ;;  %2493 = vrot.lane.b32.xlu0 %v6448_v35, %s5264_s6  ;;  %v1715_v46 = vpop.permute.xlu0 %1714  ;;  %v6486_v1 = vpack.c.bf16 %v2479_v0, %v2479_v0  ;;  %vm5287_vm11 = vmmov 0   ;;  %v4912_v37 = vld [vmem:[%s6968_s2 + $0x2] sm:$0x3] }
 0x125   : > { %1475 = vst.msk [vmem:[#allocation2 + $0x70] sm:$0xff] %vm1438_vm12, %v1473_v43  ;;  %1439 = vst.msk [vmem:[#allocation2 + $0x20] sm:$0xff] %vm1438_vm12, %v1436_v60  ;;  %2497 = vrot.lane.b32.xlu1 %v6453_v39, %s5264_s6  ;;  %vm2137_vm12 = vcmask 728520  }
 0x126   : > { %1755 = vst.msk [vmem:[#allocation2 + $0x80] sm:$0xff] %vm1719_vm14, %v1752_v15  ;;  %1720 = vst.msk [vmem:[#allocation2 + $0x30] sm:$0xff] %vm1719_vm14, %v1715_v46  ;;  %vm2206_vm14 = vcmask 1007320  }
 0x127   : > { %1545 = vst.msk [vmem:[#allocation2 + $0x78] sm:$0xff] %vm1510_vm15, %v1543_v6 }
 0x128   : > { %2495 = vrot.lane.b32.xlu0 %v6459_v30, %s5264_s6  ;;  %v1508_v34 = vpop.permute.xlu0 %1507  ;;  %202 = vst.msk [vmem:[#allocation2 + $0x48] sm:$0xff] %vm201_vm10, %v5280_v59  ;;  %212 = vst.msk [vmem:[#allocation2 + $0x98] sm:$0xff] %vm201_vm10, %v5280_v59  ;;  %vm4285_vm10 = vcmask 482304  }
 0x129   : > { %2947 = vrot.lane.b32.xlu1 %v6448_v35, %s5286_s20  ;;  %1511 = vst.msk [vmem:[#allocation2 + $0x28] sm:$0xff] %vm1510_vm15, %v1508_v34  ;;  %vm2275_vm15 = vcmask 1048552  }
 0x12b   : > { %v2455_v56 = vld [vmem:[#allocation2 + $0x18] sm:$0xff]  ;;  %v2464_v20 = vld [vmem:[#allocation2 + $0x68] sm:$0xff] }
 0x12c   : > { %v2456_v7 = vld [vmem:[#allocation2 + $0x20] sm:$0xff]  ;;  %v2465_v48 = vld [vmem:[#allocation2 + $0x70] sm:$0xff]  ;;  %v6468_v38 = vpack.c.bf16 %v2464_v20, %v2455_v56  ;;  %v1822_v5 = vpop.permute.xlu1 %1821 }
 0x12d   : > { %v6464_v9 = vpack.c.bf16 %v2465_v48, %v2456_v7  ;;  %1824 = vst.msk [vmem:[#allocation2 + $0x80] sm:$0xff] %vm1789_vm0, %v1822_v5  ;;  %v4923_v56 = vld [vmem:[%s6968_s2 + $0x4] sm:$0x3] }
 0x12e   : > { %2499 = vrot.lane.b32.xlu1 %v6468_v38, %s5264_s6  ;;  %v6559_v6 = vpack.c.bf16 %v4923_v56, %v4923_v56 }
 0x12f   : > { %2501 = vrot.lane.b32.xlu0 %v6464_v9, %s5264_s6 }
 0x132   : > { %2949 = vrot.lane.b32.xlu1 %v6459_v30, %s5286_s20 }
 0x133   : > { %2951 = vrot.lane.b32.xlu0 %v6453_v39, %s5286_s20  ;;  %v1612_v50 = vpop.permute.xlu1 %1611 }
 0x134   : > { %v1787_v32 = vpop.permute.xlu0 %1786  ;;  %1614 = vst.msk [vmem:[#allocation2 + $0x78] sm:$0xff] %vm1579_vm1, %v1612_v50 }
 0x135   : > { %1790 = vst.msk [vmem:[#allocation2 + $0x30] sm:$0xff] %vm1789_vm0, %v1787_v32  ;;  %vm2347_vm0 = vcmask 515320  }
 0x138   : > { %v1577_v4 = vpop.permute.xlu0 %1576 }
 0x139   : > { %1580 = vst.msk [vmem:[#allocation2 + $0x28] sm:$0xff] %vm1579_vm1, %v1577_v4  ;;  %vm2416_vm1 = vcmask 794120  }
 0x13c   : > { %v1891_v49 = vpop.permute.xlu1 %1890 }
 0x13d   : > { %1893 = vst.msk [vmem:[#allocation2 + $0x80] sm:$0xff] %vm1858_vm2, %v1891_v49  ;;  %v3973_v49 = vld [vmem:[#allocation2 + $0x48] sm:$0xff] }
 0x144   : > { %v1856_v44 = vpop.permute.xlu0 %1855  ;;  %v1681_v51 = vpop.permute.xlu1 %1680 }
 0x145   : > { %1859 = vst.msk [vmem:[#allocation2 + $0x30] sm:$0xff] %vm1858_vm2, %v1856_v44  ;;  %vm2511_vm2 = vcmask 1039360   ;;  %v3983_v44 = vld [vmem:[#allocation2 + $0x98] sm:$0xff] }
 0x146   : > { %1683 = vst.msk [vmem:[#allocation2 + $0x78] sm:$0xff] %vm1648_vm3, %v1681_v51 }
 0x147   : > { %1754 = vst.msk [vmem:[#allocation2 + $0x78] sm:$0xff] %vm1717_vm7, %v1752_v15  ;;  %v6532_v15 = vpack.c.bf16 %v4912_v37, %v4912_v37 }
 0x148   : > { %v1646_v52 = vpop.permute.xlu0 %1645 }
 0x149   : > { %1649 = vst.msk [vmem:[#allocation2 + $0x28] sm:$0xff] %vm1648_vm3, %v1646_v52  ;;  %vm2965_vm3 = vcmask 1031168  }
 0x14a   : > { %1718 = vst.msk [vmem:[#allocation2 + $0x28] sm:$0xff] %vm1717_vm7, %v1715_v46  ;;  %vm3220_vm7 = vcmask 769024  }
 0x14c   : > { %v1960_v53 = vpop.permute.xlu1 %1959 }
 0x14d   : > { %1962 = vst.msk [vmem:[#allocation2 + $0x80] sm:$0xff] %vm1927_vm4, %v1960_v53 }
 0x14e   : > { %v2466_v55 = vld [vmem:[#allocation2 + $0x78] sm:$0xff] }
 0x151   : > { %v2457_v54 = vld [vmem:[#allocation2 + $0x28] sm:$0xff] }
 0x152   : > { %v6481_v2 = vpack.c.bf16 %v2466_v55, %v2457_v54  ;;  %v3993_v55 = vpack.c.bf16 %v3983_v44, %v3973_v49 }
 0x154   : > { %v1925_v61 = vpop.permute.xlu0 %1924  ;;  %2503 = vrot.lane.b32.xlu0 %v6481_v2, %s5264_s6  ;;  %2822 = vmatprep.subr.bf16.mxu0 %v6481_v2 }
 0x155   : > { %1928 = vst.msk [vmem:[#allocation2 + $0x30] sm:$0xff] %vm1927_vm4, %v1925_v61  ;;  %v2031_v3 = vpop.permute.xlu1 %2030  ;;  %2823 = vmatpush1.bf16.msra.mxu0 %v6464_v9  ;;  %vm3475_vm4 = vcmask 760832  }
 0x156   : > { %2033 = vst.msk [vmem:[#allocation2 + $0x80] sm:$0xff] %vm1996_vm8, %v2031_v3  ;;  %4993 = vmatprep.subr.bf16.mxu0 %v5280_v59 }
 0x157   : > { %2034 = vst.msk [vmem:[#allocation2 + $0x88] sm:$0xff] %vm1998_vm9, %v2031_v3 }
 0x158   : > { %2957 = vrot.lane.b32.xlu0 %v6481_v2, %s5286_s20  ;;  %4920 = vmatmul.mubr.msk.bf16.vlgmr.msra.gmra.mrb[0].mxu0 %vm2529_vm5, %v6486_v1 }
 0x159   : > { %v1994_v8 = vpop.permute.xlu0 %1993  ;;  %4995 = vmatprep.mubr.msk.bf16.mxu0 %vm5287_vm11, %v5280_v59 }
 0x15a   : > { %1997 = vst.msk [vmem:[#allocation2 + $0x30] sm:$0xff] %vm1996_vm8, %v1994_v8  ;;  %vm3730_vm8 = vcmask 752640  }
 0x15b   : > { %1999 = vst.msk [vmem:[#allocation2 + $0x38] sm:$0xff] %vm1998_vm9, %v1994_v8  ;;  %vm4027_vm9 = vcmask 490496  }
 0x15c   : > { %v2101_v10 = vpop.permute.xlu1 %2100  ;;  %2955 = vrot.lane.b32.xlu0 %v6464_v9, %s5286_s20 }
 0x15d   : > { %2103 = vst.msk [vmem:[#allocation2 + $0x88] sm:$0xff] %vm2068_vm6, %v2101_v10  ;;  %v2467_v11 = vld [vmem:[#allocation2 + $0x80] sm:$0xff] }
 0x161   : > { %v2458_v18 = vld [vmem:[#allocation2 + $0x30] sm:$0xff] }
 0x162   : > { %v6504_v13 = vpack.c.bf16 %v2467_v11, %v2458_v18 }
 0x164   : > { %v2066_v12 = vpop.permute.xlu0 %2065  ;;  %2505 = vrot.lane.b32.xlu1 %v6504_v13, %s5264_s6 }
 0x165   : > { %2069 = vst.msk [vmem:[#allocation2 + $0x38] sm:$0xff] %vm2068_vm6, %v2066_v12  ;;  %v2170_v19 = vpop.permute.xlu1 %2169  ;;  %v4929_v12 = vld [vmem:[%s6968_s2 + $0x6] sm:$0x3]  ;;  %vm4543_vm6 = vcmask 474112  }
 0x166   : > { %2172 = vst.msk [vmem:[#allocation2 + $0x88] sm:$0xff] %vm2137_vm12, %v2170_v19 }
 0x168   : > { %2959 = vrot.lane.b32.xlu1 %v6504_v13, %s5286_s20 }
 0x16a   : > { %v2135_v24 = vpop.permute.xlu0 %2134 }
 0x16b   : > { %2138 = vst.msk [vmem:[#allocation2 + $0x38] sm:$0xff] %vm2137_vm12, %v2135_v24 }
 0x16d   : > { %v2310_v26 = vpop.permute.xlu1 %2309 }
 0x16e   : > { %2313 = vst.msk [vmem:[#allocation2 + $0x90] sm:$0xff] %vm2277_vm13, %v2310_v26 }
 0x174   : > { %v2273_v21 = vpop.permute.xlu0 %2272 }
 0x175   : > { %2278 = vst.msk [vmem:[#allocation2 + $0x40] sm:$0xff] %vm2277_vm13, %v2273_v21 }
 0x177   : > { %v2239_v27 = vpop.permute.xlu1 %2238 }
 0x178   : > { %2241 = vst.msk [vmem:[#allocation2 + $0x88] sm:$0xff] %vm2206_vm14, %v2239_v27 }
 0x179   : > { %2312 = vst.msk [vmem:[#allocation2 + $0x88] sm:$0xff] %vm2275_vm15, %v2310_v26  ;;  %v6701_v26 = vpack.c.bf16 %v4929_v12, %v4929_v12 }
 0x17f   : > { %v2204_v25 = vpop.permute.xlu0 %2203 }
 0x180   : > { %2207 = vst.msk [vmem:[#allocation2 + $0x38] sm:$0xff] %vm2206_vm14, %v2204_v25  ;;  %v2468_v23 = vld [vmem:[#allocation2 + $0x88] sm:$0xff] }
 0x181   : > { %2276 = vst.msk [vmem:[#allocation2 + $0x38] sm:$0xff] %vm2275_vm15, %v2273_v21  ;;  %v2380_v28 = vpop.permute.xlu1 %2379 }
 0x182   : > { %2382 = vst.msk [vmem:[#allocation2 + $0x90] sm:$0xff] %vm2347_vm0, %v2380_v28 }
 0x187   : > { %v2345_v29 = vpop.permute.xlu0 %2344 }
 0x188   : > { %2348 = vst.msk [vmem:[#allocation2 + $0x40] sm:$0xff] %vm2347_vm0, %v2345_v29  ;;  %v2459_v41 = vld [vmem:[#allocation2 + $0x38] sm:$0xff] }
 0x189   : > { %v6510_v33 = vpack.c.bf16 %v2468_v23, %v2459_v41 }
 0x18b   : > { %2507 = vrot.lane.b32.xlu1 %v6510_v33, %s5264_s6 }
 0x18c   : > { %v2449_v36 = vpop.permute.xlu1 %2448 }
 0x18d   : > { %2451 = vst.msk [vmem:[#allocation2 + $0x90] sm:$0xff] %vm2416_vm1, %v2449_v36 }
 0x18f   : > { %v2414_v40 = vpop.permute.xlu0 %2413 }
 0x190   : > { %2417 = vst.msk [vmem:[#allocation2 + $0x40] sm:$0xff] %vm2416_vm1, %v2414_v40 }
 0x194   : > { %v2469_v42 = vld [vmem:[#allocation2 + $0x90] sm:$0xff] }
 0x196   : > { %v2494_v47 = vpop.permute.xlu0 %2493 }
 0x197   : > { %v2460_v45 = vld [vmem:[#allocation2 + $0x40] sm:$0xff]  ;;  %v2498_v17 = vpop.permute.xlu1 %2497 }
 0x198   : > { %v6514_v62 = vpack.c.bf16 %v2469_v42, %v2460_v45 }
 0x19a   : > { %2963 = vrot.lane.b32.xlu1 %v6514_v62, %s5286_s20  ;;  %2509 = vrot.lane.b32.xlu0 %v6514_v62, %s5264_s6  ;;  %v2496_v43 = vpop.permute.xlu0 %2495 }
 0x19b   : > { %4994 = vmatpush3.bf16.msra.mxu0 %v6514_v62  ;;  %v2513_v14 = vsel %vm2511_vm2, %v2496_v43, %v2498_v17  ;;  %v2948_v60 = vpop.permute.xlu1 %2947  ;;  %v2512_v31 = vsel %vm2511_vm2, %v2494_v47, %v2496_v43 }
 0x19c   : > { %2533 = vmatprep.subr.bf16.mxu1 %v2513_v14 }
 0x19d   : > { %2534 = vmatpush1.bf16.msra.mxu1 %v2512_v31 }
 0x19e   : > { %3206 = vrot.lane.b32.xlu1 %v6453_v39, %s5288_s8  ;;  %3204 = vrot.lane.b32.xlu0 %v6459_v30, %s5288_s8 }
 0x19f   : > { %4996 = vmatmul.mubr.msk.bf16.vlgmr.msra.gmra.mrb[4].mxu0 %vm2529_vm5, %v6486_v1 }
 0x1a0   : > { %v2500_v58 = vpop.permute.xlu1 %2499  ;;  %3018 = vmatprep.mubr.bf16.mxu0 %v5285_v16  ;;  %4913 = vmatmul.mubr.msk.bf16.vlgmr.msra.gmra.mrb[0].mxu1 %vm2529_vm5, %v6532_v15 }
 0x1a1   : > { %v6530_v57 = vpop.permute.xlu0 %2501  ;;  %v2514_v22 = vsel %vm2511_vm2, %v2498_v17, %v2500_v58  ;;  %2606 = vmatprep.mubr.bf16.mxu1 %v5285_v16 }
 0x1a2   : > { %v2515_v63 = vsel %vm2511_vm2, %v2500_v58, %v6530_v57  ;;  %3212 = vrot.lane.b32.xlu1 %v6481_v2, %s5288_s8  ;;  %3202 = vrot.lane.b32.xlu0 %v6448_v35, %s5288_s8 }
 0x1a3   : > { %2574 = vmatprep.subr.bf16.mxu1 %v2515_v63 }
 0x1a4   : > { %v2950_v7 = vpop.permute.xlu1 %2949  ;;  %2575 = vmatpush1.bf16.msra.mxu1 %v2514_v22 }
 0x1a5   : > { %v6546_v46 = vpop.permute.xlu0 %2951  ;;  %v2966_v48 = vsel %vm2965_vm3, %v2948_v60, %v2950_v7 }
 0x1a6   : > { %v2967_v20 = vsel %vm2965_vm3, %v2950_v7, %v6546_v46  ;;  %3210 = vrot.lane.b32.xlu1 %v6464_v9, %s5288_s8  ;;  %3214 = vrot.lane.b32.xlu0 %v6504_v13, %s5288_s8 }
 0x1a7   : > { %2986 = vmatprep.subr.bf16.mxu0 %v2967_v20 }
 0x1a8   : > { %2987 = vmatpush1.bf16.msra.mxu0 %v2966_v48  ;;  %4914 = vmatmul.mubr.msk.bf16.vlgmr.msra.gmra.mrb[4].mxu1 %vm2529_vm5, %v6532_v15 }
 0x1a9   : > { %2647 = vmatprep.mubr.bf16.mxu1 %v5285_v16 }
 0x1aa   : > { %3459 = vrot.lane.b32.xlu1 %v6459_v30, %s5267_s9  ;;  %3218 = vrot.lane.b32.xlu0 %v6514_v62, %s5288_s8 }
 0x1ab   : > { %4924 = vmatmul.mubr.msk.bf16.vlgmr.msra.gmra.mrb[8].mxu0 %vm2529_vm5, %v6559_v6 }
 0x1ac   : > { %3100 = vmatprep.mubr.bf16.mxu0 %v5285_v16 }
 0x1ae   : > { %3457 = vrot.lane.b32.xlu1 %v6448_v35, %s5267_s9  ;;  %3461 = vrot.lane.b32.xlu0 %v6453_v39, %s5267_s9 }
 0x1b2   : > { %3467 = vrot.lane.b32.xlu1 %v6481_v2, %s5267_s9  ;;  %2953 = vrot.lane.b32.xlu0 %v6468_v38, %s5286_s20 }
 0x1b6   : > { %3465 = vrot.lane.b32.xlu1 %v6464_v9, %s5267_s9  ;;  %3469 = vrot.lane.b32.xlu0 %v6504_v13, %s5267_s9 }
 0x1ba   : > { %3473 = vrot.lane.b32.xlu1 %v6514_v62, %s5267_s9  ;;  %2961 = vrot.lane.b32.xlu0 %v6510_v33, %s5286_s20 }
 0x1be   : > { %3714 = vrot.lane.b32.xlu1 %v6459_v30, %s5289_s11  ;;  %3208 = vrot.lane.b32.xlu0 %v6468_v38, %s5288_s8 }
 0x1c2   : > { %3712 = vrot.lane.b32.xlu1 %v6448_v35, %s5289_s11  ;;  %3716 = vrot.lane.b32.xlu0 %v6453_v39, %s5289_s11 }
 0x1c6   : > { %3722 = vrot.lane.b32.xlu1 %v6481_v2, %s5289_s11  ;;  %3216 = vrot.lane.b32.xlu0 %v6510_v33, %s5288_s8  ;;  %v2504_v34 = vpop.permute.xlu0 %2503 }
 0x1c7   : > { %v2516_v4 = vsel %vm2511_vm2, %v6530_v57, %v2504_v34 }
 0x1ca   : > { %3720 = vrot.lane.b32.xlu1 %v6464_v9, %s5289_s11  ;;  %3724 = vrot.lane.b32.xlu0 %v6504_v13, %s5289_s11  ;;  %v2958_v5 = vpop.permute.xlu0 %2957 }
 0x1ce   : > { %3728 = vrot.lane.b32.xlu1 %v6514_v62, %s5289_s11  ;;  %3463 = vrot.lane.b32.xlu0 %v6468_v38, %s5267_s9  ;;  %v6626_v51 = vpop.permute.xlu0 %2955 }
 0x1cf   : > { %v2970_v61 = vsel %vm2965_vm3, %v6626_v51, %v2958_v5 }
 0x1d2   : > { %4009 = vrot.lane.b32.xlu1 %v6459_v30, %s5290_s14  ;;  %3471 = vrot.lane.b32.xlu0 %v6510_v33, %s5267_s9  ;;  %s5291_s9 = smov 58  }
 0x1d6   : > { %4007 = vrot.lane.b32.xlu1 %v6448_v35, %s5290_s14  ;;  %4011 = vrot.lane.b32.xlu0 %v6453_v39, %s5290_s14  ;;  %v2506_v32 = vpop.permute.xlu1 %2505 }
 0x1d7   : > { %v2517_v50 = vsel %vm2511_vm2, %v2504_v34, %v2506_v32 }
 0x1d8   : > { %2615 = vmatprep.subr.bf16.mxu1 %v2517_v50 }
 0x1d9   : > { %2616 = vmatpush1.bf16.msra.mxu1 %v2516_v4 }
 0x1da   : > { %4017 = vrot.lane.b32.xlu1 %v6481_v2, %s5290_s14  ;;  %3718 = vrot.lane.b32.xlu0 %v6468_v38, %s5289_s11  ;;  %v6628_v52 = vpop.permute.xlu1 %2959 }
 0x1db   : > { %v2971_v53 = vsel %vm2965_vm3, %v2958_v5, %v6628_v52 }
 0x1dc   : > { %3068 = vmatprep.subr.bf16.mxu0 %v2971_v53  ;;  %4915 = vmatmul.mubr.msk.bf16.vlgmr.msra.gmra.mrb[8].mxu1 %vm2529_vm5, %v6532_v15 }
 0x1dd   : > { %3069 = vmatpush1.bf16.msra.mxu0 %v2970_v61  ;;  %2688 = vmatprep.mubr.bf16.mxu1 %v5285_v16 }
 0x1de   : > { %4015 = vrot.lane.b32.xlu1 %v6464_v9, %s5290_s14  ;;  %4019 = vrot.lane.b32.xlu0 %v6504_v13, %s5290_s14 }
 0x1df   : > { %4999 = vmatprep.subr.bf16.mxu0 %v5280_v59 }
 0x1e0   : > { %4926 = vmatmul.mubr.msk.bf16.vlgmr.msra.gmra.mrb[0].mxu0 %vm2529_vm5, %v6559_v6 }
 0x1e1   : > { %5001 = vmatprep.mubr.msk.bf16.mxu0 %vm5287_vm11, %v5280_v59 }
 0x1e2   : > { %4023 = vrot.lane.b32.xlu1 %v6514_v62, %s5290_s14  ;;  %3726 = vrot.lane.b32.xlu0 %v6510_v33, %s5289_s11 }
 0x1e6   : > { %4013 = vrot.lane.b32.xlu1 %v6468_v38, %s5290_s14  ;;  %4025 = vrot.lane.b32.xlu0 %v3993_v55, %s5290_s14 }
 0x1ea   : > { %4269 = vrot.lane.b32.xlu1 %v6453_v39, %s5265_s7  ;;  %4267 = vrot.lane.b32.xlu0 %v6459_v30, %s5265_s7 }
 0x1ee   : > { %4021 = vrot.lane.b32.xlu1 %v6510_v33, %s5290_s14  ;;  %4265 = vrot.lane.b32.xlu0 %v6448_v35, %s5265_s7 }
 0x1f2   : > { %4277 = vrot.lane.b32.xlu1 %v6504_v13, %s5265_s7  ;;  %4275 = vrot.lane.b32.xlu0 %v6481_v2, %s5265_s7 }
 0x1f6   : > { %4271 = vrot.lane.b32.xlu1 %v6468_v38, %s5265_s7  ;;  %4273 = vrot.lane.b32.xlu0 %v6464_v9, %s5265_s7 }
 0x1fa   : > { %4283 = vrot.lane.b32.xlu1 %v3993_v55, %s5265_s7  ;;  %4281 = vrot.lane.b32.xlu0 %v6514_v62, %s5265_s7 }
 0x1fd   : > { %v2508_v54 = vpop.permute.xlu1 %2507 }
 0x1fe   : > { %4525 = vrot.lane.b32.xlu1 %v6459_v30, %s5291_s9  ;;  %4279 = vrot.lane.b32.xlu0 %v6510_v33, %s5265_s7 }
 0x202   : > { %4523 = vrot.lane.b32.xlu1 %v6448_v35, %s5291_s9  ;;  %4527 = vrot.lane.b32.xlu0 %v6453_v39, %s5291_s9 }
 0x206   : > { %4531 = vrot.lane.b32.xlu1 %v6464_v9, %s5291_s9  ;;  %4529 = vrot.lane.b32.xlu0 %v6468_v38, %s5291_s9  ;;  %v2518_v9 = vsel %vm2511_vm2, %v2506_v32, %v2508_v54  ;;  %v4941_v32 = vld [vmem:[%s6968_s2 + $0xa] sm:$0x3] }
 0x20a   : > { %4535 = vrot.lane.b32.xlu1 %v6504_v13, %s5291_s9  ;;  %4533 = vrot.lane.b32.xlu0 %v6481_v2, %s5291_s9 }
 0x20c   : > { %v6677_v0 = vpop.permute.xlu1 %2963  ;;  %v2510_v3 = vpop.permute.xlu0 %2509 }
 0x20d   : > { %5000 = vmatpush3.bf16.msra.mxu0 %v6677_v0  ;;  %v2519_v8 = vsel %vm2511_vm2, %v2508_v54, %v2510_v3 }
 0x20e   : > { %4539 = vrot.lane.b32.xlu1 %v6514_v62, %s5291_s9  ;;  %4537 = vrot.lane.b32.xlu0 %v6510_v33, %s5291_s9 }
 0x20f   : > { %2656 = vmatprep.subr.bf16.mxu1 %v2519_v8 }
 0x210   : > { %2657 = vmatpush1.bf16.msra.mxu1 %v2518_v9  ;;  %v6684_v10 = vpop.permute.xlu1 %3206  ;;  %v3205_v11 = vpop.permute.xlu0 %3204  ;;  %5002 = vmatmul.mubr.msk.bf16.vlgmr.msra.gmra.mrb[4].mxu0 %vm2529_vm5, %v6559_v6 }
 0x211   : > { %4987 = vmatprep.subr.bf16.mxu1 %v5280_v59  ;;  %v3222_v2 = vsel %vm3220_vm7, %v3205_v11, %v6684_v10  ;;  %3273 = vmatprep.mubr.bf16.mxu0 %v5285_v16 }
 0x212   : > { %4541 = vrot.lane.b32.xlu0 %v3993_v55, %s5291_s9  ;;  %3241 = vmatprep.subr.bf16.mxu0 %v3222_v2 }
 0x213   : > { %4916 = vmatmul.mubr.msk.bf16.vlgmr.msra.gmra.mrb[12].mxu1 %vm2529_vm5, %v6532_v15 }
 0x214   : > { %4988 = vmatpush3.bf16.msra.mxu1 %v2510_v3  ;;  %v3213_v18 = vpop.permute.xlu1 %3212  ;;  %v3203_v19 = vpop.permute.xlu0 %3202  ;;  %4989 = vmatprep.mubr.msk.bf16.mxu1 %vm5287_vm11, %v5280_v59 }
 0x215   : > { %2740 = vmatprep.subr.bf16.mxu1 %v6459_v30  ;;  %v3221_v24 = vsel %vm3220_vm7, %v3203_v19, %v3205_v11 }
 0x216   : > { %3242 = vmatpush1.bf16.msra.mxu0 %v3221_v24 }
 0x218   : > { %v6703_v21 = vpop.permute.xlu1 %3210  ;;  %v6705_v27 = vpop.permute.xlu0 %3214 }
 0x219   : > { %v3225_v25 = vsel %vm3220_vm7, %v6703_v21, %v3213_v18  ;;  %4930 = vmatmul.mubr.msk.bf16.vlgmr.msra.gmra.mrb[8].mxu0 %vm2529_vm5, %v6701_v26  ;;  %v3226_v28 = vsel %vm3220_vm7, %v3213_v18, %v6705_v27 }
 0x21a   : > { %3323 = vmatprep.subr.bf16.mxu0 %v3226_v28  ;;  %3355 = vmatprep.mubr.bf16.mxu0 %v5285_v16 }
 0x21b   : > { %4990 = vmatmul.mubr.msk.bf16.vlgmr.msra.gmra.mrb[16].mxu1 %vm2529_vm5, %v6532_v15  ;;  %3324 = vmatpush1.bf16.msra.mxu0 %v3225_v25 }
 0x21c   : > { %2741 = vmatpush1.bf16.msra.mxu1 %v6448_v35  ;;  %v3460_v30 = vpop.permute.xlu1 %3459  ;;  %v6717_v23 = vpop.permute.xlu0 %3218  ;;  %5005 = vmatprep.subr.bf16.mxu0 %v5280_v59 }
 0x21d   : > { %2781 = vmatprep.subr.bf16.mxu1 %v6468_v38  ;;  %2772 = vmatprep.mubr.bf16.mxu1 %v5285_v16 }
 0x220   : > { %v3458_v29 = vpop.permute.xlu1 %3457  ;;  %v6722_v41 = vpop.permute.xlu0 %3461 }
 0x221   : > { %4932 = vmatmul.mubr.msk.bf16.vlgmr.msra.gmra.mrb[0].mxu0 %vm2529_vm5, %v6701_v26  ;;  %v3477_v36 = vsel %vm3475_vm4, %v3460_v30, %v6722_v41  ;;  %v3476_v45 = vsel %vm3475_vm4, %v3458_v29, %v3460_v30 }
 0x222   : > { %5006 = vmatpush3.bf16.msra.mxu0 %v6717_v23  ;;  %5007 = vmatprep.mubr.msk.bf16.mxu0 %vm5287_vm11, %v5280_v59 }
 0x223   : > { %4918 = vmatmul.mubr.msk.bf16.vlgmr.msra.gmra.mrb[0].mxu1 %vm2529_vm5, %v6486_v1  ;;  %3496 = vmatprep.subr.bf16.mxu0 %v3477_v36 }
 0x224   : > { %2782 = vmatpush1.bf16.msra.mxu1 %v6453_v39  ;;  %v3468_v35 = vpop.permute.xlu1 %3467  ;;  %v2954_v38 = vpop.permute.xlu0 %2953  ;;  %2813 = vmatprep.mubr.bf16.mxu1 %v5285_v16  ;;  %v4935_v39 = vld [vmem:[%s6968_s2 + $0x8] sm:$0x3] }
 0x225   : > { %2863 = vmatprep.subr.bf16.mxu1 %v6510_v33  ;;  %v2969_v33 = vsel %vm2965_vm3, %v2954_v38, %v6626_v51  ;;  %v6757_v43 = vpack.c.bf16 %v4935_v39, %v4935_v39  ;;  %v6810_v51 = vpack.c.bf16 %v4941_v32, %v4941_v32 }
 0x228   : > { %v6736_v40 = vpop.permute.xlu1 %3465  ;;  %v6738_v42 = vpop.permute.xlu0 %3469 }
 0x229   : > { %5008 = vmatmul.mubr.msk.bf16.vlgmr.msra.gmra.mrb[4].mxu0 %vm2529_vm5, %v6701_v26  ;;  %v3481_v47 = vsel %vm3475_vm4, %v3468_v35, %v6738_v42  ;;  %v3480_v31 = vsel %vm3475_vm4, %v6736_v40, %v3468_v35 }
 0x22a   : > { %3497 = vmatpush1.bf16.msra.mxu0 %v3476_v45  ;;  %3528 = vmatprep.mubr.bf16.mxu0 %v5285_v16 }
 0x22b   : > { %4919 = vmatmul.mubr.msk.bf16.vlgmr.msra.gmra.mrb[4].mxu1 %vm2529_vm5, %v6486_v1  ;;  %3578 = vmatprep.subr.bf16.mxu0 %v3481_v47 }
 0x22c   : > { %2864 = vmatpush1.bf16.msra.mxu1 %v6504_v13  ;;  %v6754_v62 = vpop.permute.xlu1 %3473  ;;  %v2962_v17 = vpop.permute.xlu0 %2961  ;;  %2895 = vmatprep.mubr.bf16.mxu1 %v5285_v16  ;;  %v2968_v13 = vsel %vm2965_vm3, %v6546_v46, %v2954_v38 }
 0x22d   : > { %3027 = vmatprep.subr.bf16.mxu1 %v2969_v33  ;;  %v2973_v37 = vsel %vm2965_vm3, %v2962_v17, %v6677_v0  ;;  %v2972_v22 = vsel %vm2965_vm3, %v6628_v52, %v2962_v17 }
 0x230   : > { %v3715_v14 = vpop.permute.xlu1 %3714  ;;  %v3209_v60 = vpop.permute.xlu0 %3208 }
 0x231   : > { %4936 = vmatmul.mubr.msk.bf16.vlgmr.msra.gmra.mrb[8].mxu0 %vm2529_vm5, %v6757_v43  ;;  %v3224_v46 = vsel %vm3220_vm7, %v3209_v60, %v6703_v21  ;;  %v3223_v50 = vsel %vm3220_vm7, %v6684_v10, %v3209_v60  ;;  %v4947_v21 = vld [vmem:[%s6968_s2 + $0xc] sm:$0x3] }
 0x232   : > { %3579 = vmatpush1.bf16.msra.mxu0 %v3480_v31  ;;  %3610 = vmatprep.mubr.bf16.mxu0 %v5285_v16 }
 0x233   : > { %4921 = vmatmul.mubr.msk.bf16.vlgmr.msra.gmra.mrb[12].mxu1 %vm2529_vm5, %v6486_v1  ;;  %5011 = vmatprep.subr.bf16.mxu0 %v5280_v59 }
 0x234   : > { %3028 = vmatpush1.bf16.msra.mxu1 %v2968_v13  ;;  %v3713_v57 = vpop.permute.xlu1 %3712  ;;  %v6771_v15 = vpop.permute.xlu0 %3716  ;;  %3059 = vmatprep.mubr.bf16.mxu1 %v5285_v16  ;;  %v4953_v13 = vld [vmem:[%s6968_s2 + $0xe] sm:$0x3] }
 0x235   : > { %3109 = vmatprep.subr.bf16.mxu1 %v2973_v37  ;;  %v3732_v1 = vsel %vm3730_vm8, %v3715_v14, %v6771_v15  ;;  %v3731_v34 = vsel %vm3730_vm8, %v3713_v57, %v3715_v14 }
 0x238   : > { %v3723_v58 = vpop.permute.xlu1 %3722  ;;  %v3217_v63 = vpop.permute.xlu0 %3216 }
 0x239   : > { %4938 = vmatmul.mubr.msk.bf16.vlgmr.msra.gmra.mrb[0].mxu0 %vm2529_vm5, %v6757_v43  ;;  %v3228_v4 = vsel %vm3220_vm7, %v3217_v63, %v6717_v23  ;;  %v6863_v23 = vpack.c.bf16 %v4947_v21, %v4947_v21 }
 0x23a   : > { %5012 = vmatpush3.bf16.msra.mxu0 %v6754_v62  ;;  %5013 = vmatprep.mubr.msk.bf16.mxu0 %vm5287_vm11, %v5280_v59 }
 0x23b   : > { %4925 = vmatmul.mubr.msk.bf16.vlgmr.msra.gmra.mrb[4].mxu1 %vm2529_vm5, %v6559_v6  ;;  %3751 = vmatprep.subr.bf16.mxu0 %v3732_v1 }
 0x23c   : > { %3110 = vmatpush1.bf16.msra.mxu1 %v2972_v22  ;;  %v6787_v7 = vpop.permute.xlu1 %3720  ;;  %v6789_v56 = vpop.permute.xlu0 %3724  ;;  %3141 = vmatprep.mubr.bf16.mxu1 %v5285_v16 }
 0x23d   : > { %3282 = vmatprep.subr.bf16.mxu1 %v3224_v46  ;;  %v3736_v5 = vsel %vm3730_vm8, %v3723_v58, %v6789_v56  ;;  %v3735_v55 = vsel %vm3730_vm8, %v6787_v7, %v3723_v58 }
 0x240   : > { %v6792_v20 = vpop.permute.xlu1 %3728  ;;  %v3464_v48 = vpop.permute.xlu0 %3463 }
 0x241   : > { %5014 = vmatmul.mubr.msk.bf16.vlgmr.msra.gmra.mrb[4].mxu0 %vm2529_vm5, %v6757_v43  ;;  %v3479_v61 = vsel %vm3475_vm4, %v3464_v48, %v6736_v40  ;;  %v3478_v10 = vsel %vm3475_vm4, %v6722_v41, %v3464_v48 }
 0x242   : > { %3752 = vmatpush1.bf16.msra.mxu0 %v3731_v34  ;;  %3783 = vmatprep.mubr.bf16.mxu0 %v5285_v16 }
 0x243   : > { %4927 = vmatmul.mubr.msk.bf16.vlgmr.msra.gmra.mrb[12].mxu1 %vm2529_vm5, %v6559_v6  ;;  %3833 = vmatprep.subr.bf16.mxu0 %v3736_v5  ;;  %v3227_v6 = vsel %vm3220_vm7, %v6705_v27, %v3217_v63  ;;  %v4264_v63 = vpack.c.bf16 %v4953_v13, %v4953_v13 }
 0x244   : > { %3283 = vmatpush1.bf16.msra.mxu1 %v3223_v50  ;;  %v4010_v49 = vpop.permute.xlu1 %4009  ;;  %v3472_v44 = vpop.permute.xlu0 %3471  ;;  %3314 = vmatprep.mubr.bf16.mxu1 %v5285_v16 }
 0x245   : > { %3364 = vmatprep.subr.bf16.mxu1 %v3228_v4  ;;  %v3483_v11 = vsel %vm3475_vm4, %v3472_v44, %v6754_v62  ;;  %v3482_v27 = vsel %vm3475_vm4, %v6738_v42, %v3472_v44 }
 0x248   : > { %v4008_v52 = vpop.permute.xlu1 %4007  ;;  %v6812_v53 = vpop.permute.xlu0 %4011 }
 0x249   : > { %4942 = vmatmul.mubr.msk.bf16.vlgmr.msra.gmra.mrb[8].mxu0 %vm2529_vm5, %v6810_v51  ;;  %v4029_v9 = vsel %vm4027_vm9, %v4010_v49, %v6812_v53  ;;  %v4028_v24 = vsel %vm4027_vm9, %v4008_v52, %v4010_v49  ;;  %v4959_v52 = vld [vmem:[%s6968_s2 + $0x10] sm:$0x3] }
 0x24a   : > { %3834 = vmatpush1.bf16.msra.mxu0 %v3735_v55  ;;  %3865 = vmatprep.mubr.bf16.mxu0 %v5285_v16 }
 0x24b   : > { %4931 = vmatmul.mubr.msk.bf16.vlgmr.msra.gmra.mrb[4].mxu1 %vm2529_vm5, %v6701_v26  ;;  %5017 = vmatprep.subr.bf16.mxu0 %v5280_v59 }
 0x24c   : > { %3365 = vmatpush1.bf16.msra.mxu1 %v3227_v6  ;;  %v4018_v54 = vpop.permute.xlu1 %4017  ;;  %v3719_v0 = vpop.permute.xlu0 %3718  ;;  %3396 = vmatprep.mubr.bf16.mxu1 %v5285_v16  ;;  %v4522_v6 = vpack.c.bf16 %v4959_v52, %v4959_v52 }
 0x24d   : > { %3537 = vmatprep.subr.bf16.mxu1 %v3479_v61  ;;  %v3734_v25 = vsel %vm3730_vm8, %v3719_v0, %v6787_v7  ;;  %v3733_v35 = vsel %vm3730_vm8, %v6771_v15, %v3719_v0 }
 0x250   : > { %v4016_v3 = vpop.permute.xlu1 %4015  ;;  %v6827_v8 = vpop.permute.xlu0 %4019 }
 0x251   : > { %4944 = vmatmul.mubr.msk.bf16.vlgmr.msra.gmra.mrb[0].mxu0 %vm2529_vm5, %v6810_v51  ;;  %v4032_v36 = vsel %vm4027_vm9, %v4016_v3, %v4018_v54 }
 0x252   : > { %5018 = vmatpush3.bf16.msra.mxu0 %v6792_v20  ;;  %5019 = vmatprep.mubr.msk.bf16.mxu0 %vm5287_vm11, %v5280_v59 }
 0x253   : > { %4933 = vmatmul.mubr.msk.bf16.vlgmr.msra.gmra.mrb[12].mxu1 %vm2529_vm5, %v6701_v26  ;;  %4049 = vmatprep.subr.bf16.mxu0 %v4029_v9  ;;  %v4033_v26 = vsel %vm4027_vm9, %v4018_v54, %v6827_v8 }
 0x254   : > { %3538 = vmatpush1.bf16.msra.mxu1 %v3478_v10  ;;  %v6842_v2 = vpop.permute.xlu1 %4023  ;;  %v3727_v12 = vpop.permute.xlu0 %3726  ;;  %3569 = vmatprep.mubr.bf16.mxu1 %v5285_v16 }
 0x255   : > { %3619 = vmatprep.subr.bf16.mxu1 %v3483_v11  ;;  %v3738_v38 = vsel %vm3730_vm8, %v3727_v12, %v6792_v20  ;;  %v3737_v62 = vsel %vm3730_vm8, %v6789_v56, %v3727_v12 }
 0x258   : > { %v4014_v18 = vpop.permute.xlu1 %4013  ;;  %v4026_v19 = vpop.permute.xlu0 %4025 }
 0x259   : > { %5020 = vmatmul.mubr.msk.bf16.vlgmr.msra.gmra.mrb[4].mxu0 %vm2529_vm5, %v6810_v51  ;;  %v4036_v45 = vsel %vm4027_vm9, %v6842_v2, %v4026_v19  ;;  %v4031_v17 = vsel %vm4027_vm9, %v4014_v18, %v4016_v3  ;;  %v4030_v37 = vsel %vm4027_vm9, %v6812_v53, %v4014_v18 }
 0x25a   : > { %4050 = vmatpush1.bf16.msra.mxu0 %v4028_v24  ;;  %4081 = vmatprep.mubr.bf16.mxu0 %v5285_v16 }
 0x25b   : > { %4937 = vmatmul.mubr.msk.bf16.vlgmr.msra.gmra.mrb[4].mxu1 %vm2529_vm5, %v6757_v43  ;;  %4131 = vmatprep.subr.bf16.mxu0 %v4033_v26 }
 0x25c   : > { %3620 = vmatpush1.bf16.msra.mxu1 %v3482_v27  ;;  %v6860_v28 = vpop.permute.xlu1 %4269  ;;  %v4268_v30 = vpop.permute.xlu0 %4267  ;;  %3651 = vmatprep.mubr.bf16.mxu1 %v5285_v16 }
 0x25d   : > { %3792 = vmatprep.subr.bf16.mxu1 %v3734_v25  ;;  %v4287_v33 = vsel %vm4285_vm10, %v4268_v30, %v6860_v28 }
 0x260   : > { %v4022_v29 = vpop.permute.xlu1 %4021  ;;  %v4266_v41 = vpop.permute.xlu0 %4265 }
 0x261   : > { %4948 = vmatmul.mubr.msk.bf16.vlgmr.msra.gmra.mrb[8].mxu0 %vm2529_vm5, %v6863_v23  ;;  %v4286_v60 = vsel %vm4285_vm10, %v4266_v41, %v4268_v30  ;;  %v4035_v57 = vsel %vm4027_vm9, %v4022_v29, %v6842_v2  ;;  %v4034_v22 = vsel %vm4027_vm9, %v6827_v8, %v4022_v29 }
 0x262   : > { %4132 = vmatpush1.bf16.msra.mxu0 %v4032_v36  ;;  %4163 = vmatprep.mubr.bf16.mxu0 %v5285_v16  ;;  %v5292_v36 = vmov 1983009808  }
 0x263   : > { %4939 = vmatmul.mubr.msk.bf16.vlgmr.msra.gmra.mrb[12].mxu1 %vm2529_vm5, %v6757_v43  ;;  %5023 = vmatprep.subr.bf16.mxu0 %v5280_v59 }
 0x264   : > { %3793 = vmatpush1.bf16.msra.mxu1 %v3733_v35  ;;  %v6876_v40 = vpop.permute.xlu1 %4277  ;;  %v4276_v42 = vpop.permute.xlu0 %4275  ;;  %3824 = vmatprep.mubr.bf16.mxu1 %v5285_v16  ;;  %v4790_v35 = vunpack.c.l.s4 %v5292_v36 }
 0x265   : > { %3874 = vmatprep.subr.bf16.mxu1 %v3738_v38  ;;  %v4291_v31 = vsel %vm4285_vm10, %v4276_v42, %v6876_v40  ;;  %v4792_v38 = vlaneseq }
 0x268   : > { %v4272_v47 = vpop.permute.xlu1 %4271  ;;  %v4274_v39 = vpop.permute.xlu0 %4273 }
 0x269   : > { %4950 = vmatmul.mubr.msk.bf16.vlgmr.msra.gmra.mrb[0].mxu0 %vm2529_vm5, %v6863_v23  ;;  %v4290_v1 = vsel %vm4285_vm10, %v4274_v39, %v4276_v42  ;;  %v4289_v56 = vsel %vm4285_vm10, %v4272_v47, %v4274_v39  ;;  %v4288_v32 = vsel %vm4285_vm10, %v6860_v28, %v4272_v47  ;;  %v4791_v47 = vunpack.c.0.s8 %v4790_v35 }
 0x26a   : > { %5024 = vmatpush3.bf16.msra.mxu0 %v4036_v45  ;;  %5025 = vmatprep.mubr.msk.bf16.mxu0 %vm5287_vm11, %v5280_v59  ;;  %v4793_v39 = vshrl.u32 %v4792_v38, 7 }
 0x26b   : > { %4943 = vmatmul.mubr.msk.bf16.vlgmr.msra.gmra.mrb[4].mxu1 %vm2529_vm5, %v6810_v51  ;;  %4307 = vmatprep.subr.bf16.mxu0 %v4287_v33 }
 0x26c   : > { %3875 = vmatpush1.bf16.msra.mxu1 %v3737_v62  ;;  %3906 = vmatprep.mubr.bf16.mxu1 %v5285_v16  ;;  %v4284_v43 = vpop.permute.xlu1 %4283  ;;  %v4282_v14 = vpop.permute.xlu0 %4281 }
 0x26d   : > { %4090 = vmatprep.subr.bf16.mxu1 %v4031_v17  ;;  %v4294_v20 = vsel %vm4285_vm10, %v4282_v14, %v4284_v43  ;;  %v4794_v43 = vsub.s32 %v4791_v47, %v4793_v39 }
 0x270   : > { %v4526_v15 = vpop.permute.xlu1 %4525  ;;  %v4280_v58 = vpop.permute.xlu0 %4279 }
 0x271   : > { %5026 = vmatmul.mubr.msk.bf16.vlgmr.msra.gmra.mrb[4].mxu0 %vm2529_vm5, %v6863_v23  ;;  %v4293_v50 = vsel %vm4285_vm10, %v4280_v58, %v4282_v14  ;;  %v4292_v53 = vsel %vm4285_vm10, %v6876_v40, %v4280_v58 }
 0x272   : > { %4308 = vmatpush1.bf16.msra.mxu0 %v4286_v60  ;;  %4339 = vmatprep.mubr.bf16.mxu0 %v5285_v16 }
 0x273   : > { %4945 = vmatmul.mubr.msk.bf16.vlgmr.msra.gmra.mrb[12].mxu1 %vm2529_vm5, %v6810_v51  ;;  %4389 = vmatprep.subr.bf16.mxu0 %v4291_v31 }
 0x274   : > { %4091 = vmatpush1.bf16.msra.mxu1 %v4030_v37  ;;  %4122 = vmatprep.mubr.bf16.mxu1 %v5285_v16  ;;  %v4524_v46 = vpop.permute.xlu1 %4523  ;;  %v4528_v7 = vpop.permute.xlu0 %4527 }
 0x275   : > { %4172 = vmatprep.subr.bf16.mxu1 %v4035_v57  ;;  %v4545_v5 = vsel %vm4543_vm6, %v4526_v15, %v4528_v7  ;;  %v4544_v44 = vsel %vm4543_vm6, %v4524_v46, %v4526_v15 }
 0x278   : > { %v4532_v48 = vpop.permute.xlu1 %4531  ;;  %v4530_v34 = vpop.permute.xlu0 %4529 }
 0x279   : > { %4954 = vmatmul.mubr.msk.bf16.vlgmr.msra.gmra.mrb[8].mxu0 %vm2529_vm5, %v4264_v63  ;;  %v4547_v55 = vsel %vm4543_vm6, %v4530_v34, %v4532_v48  ;;  %v4546_v3 = vsel %vm4543_vm6, %v4528_v7, %v4530_v34 }
 0x27a   : > { %4390 = vmatpush1.bf16.msra.mxu0 %v4290_v1  ;;  %4421 = vmatprep.mubr.bf16.mxu0 %v5285_v16 }
 0x27b   : > { %4949 = vmatmul.mubr.msk.bf16.vlgmr.msra.gmra.mrb[4].mxu1 %vm2529_vm5, %v6863_v23  ;;  %5029 = vmatprep.subr.bf16.mxu0 %v5280_v59 }
 0x27c   : > { %4173 = vmatpush1.bf16.msra.mxu1 %v4034_v22  ;;  %4204 = vmatprep.mubr.bf16.mxu1 %v5285_v16  ;;  %v4536_v4 = vpop.permute.xlu1 %4535  ;;  %v4534_v49 = vpop.permute.xlu0 %4533 }
 0x27d   : > { %4348 = vmatprep.subr.bf16.mxu1 %v4289_v56  ;;  %v4549_v51 = vsel %vm4543_vm6, %v4534_v49, %v4536_v4  ;;  %v4548_v54 = vsel %vm4543_vm6, %v4532_v48, %v4534_v49 }
 0x280   : > { %v4538_v61 = vpop.permute.xlu0 %4537  ;;  %v4540_v0 = vpop.permute.xlu1 %4539 }
 0x281   : > { %4956 = vmatmul.mubr.msk.bf16.vlgmr.msra.gmra.mrb[0].mxu0 %vm2529_vm5, %v4264_v63  ;;  %v4551_v8 = vsel %vm4543_vm6, %v4538_v61, %v4540_v0  ;;  %v4550_v11 = vsel %vm4543_vm6, %v4536_v4, %v4538_v61 }
 0x282   : > { %5030 = vmatpush3.bf16.msra.mxu0 %v4294_v20  ;;  %5031 = vmatprep.mubr.msk.bf16.mxu0 %vm5287_vm11, %v5280_v59 }
 0x283   : > { %4951 = vmatmul.mubr.msk.bf16.vlgmr.msra.gmra.mrb[12].mxu1 %vm2529_vm5, %v6863_v23  ;;  %4565 = vmatprep.subr.bf16.mxu0 %v4545_v5 }
 0x284   : > { %4349 = vmatpush1.bf16.msra.mxu1 %v4288_v32  ;;  %4380 = vmatprep.mubr.bf16.mxu1 %v5285_v16  ;;  %v4542_v9 = vpop.permute.xlu0 %4541 }
 0x285   : > { %4430 = vmatprep.subr.bf16.mxu1 %v4293_v50  ;;  %v4552_v10 = vsel %vm4543_vm6, %v4540_v0, %v4542_v9 }
 0x289   : > { %5032 = vmatmul.mubr.msk.bf16.vlgmr.msra.gmra.mrb[4].mxu0 %vm2529_vm5, %v4264_v63 }
 0x28a   : > { %4566 = vmatpush1.bf16.msra.mxu0 %v4544_v44  ;;  %4597 = vmatprep.mubr.bf16.mxu0 %v5285_v16 }
 0x28b   : > { %4955 = vmatmul.mubr.msk.bf16.vlgmr.msra.gmra.mrb[4].mxu1 %vm2529_vm5, %v4264_v63  ;;  %4647 = vmatprep.subr.bf16.mxu0 %v4549_v51 }
 0x28c   : > { %4431 = vmatpush1.bf16.msra.mxu1 %v4292_v53  ;;  %4462 = vmatprep.mubr.bf16.mxu1 %v5285_v16 }
 0x28d   : > { %4606 = vmatprep.subr.bf16.mxu1 %v4547_v55 }
 0x291   : > { %4960 = vmatmul.mubr.msk.bf16.vlgmr.msra.gmra.mrb[8].mxu0 %vm2529_vm5, %v4522_v6 }
 0x292   : > { %4648 = vmatpush1.bf16.msra.mxu0 %v4548_v54  ;;  %4679 = vmatprep.mubr.bf16.mxu0 %v5285_v16 }
 0x293   : > { %4957 = vmatmul.mubr.msk.bf16.vlgmr.msra.gmra.mrb[12].mxu1 %vm2529_vm5, %v4264_v63  ;;  %5035 = vmatprep.subr.bf16.mxu0 %v5280_v59 }
 0x294   : > { %4607 = vmatpush1.bf16.msra.mxu1 %v4546_v3  ;;  %4638 = vmatprep.mubr.bf16.mxu1 %v5285_v16 }
 0x295   : > { %4688 = vmatprep.subr.bf16.mxu1 %v4551_v8 }
 0x299   : > { %4962 = vmatmul.mubr.msk.bf16.vlgmr.msra.gmra.mrb[0].mxu0 %vm2529_vm5, %v4522_v6 }
 0x29a   : > { %5036 = vmatpush3.bf16.msra.mxu0 %v4552_v10  ;;  %5037 = vmatprep.mubr.msk.bf16.mxu0 %vm5287_vm11, %v5280_v59 }
 0x29b   : > { %4961 = vmatmul.mubr.msk.bf16.vlgmr.msra.gmra.mrb[4].mxu1 %vm2529_vm5, %v4522_v6 }
 0x29c   : > { %4689 = vmatpush1.bf16.msra.mxu1 %v4550_v11  ;;  %4720 = vmatprep.mubr.bf16.mxu1 %v5285_v16 }
 0x2a1   : > { %5038 = vmatmul.mubr.msk.bf16.vlgmr.msra.gmra.mrb[4].mxu0 %vm2529_vm5, %v4522_v6 }
 0x2a3   : > { %4963 = vmatmul.mubr.msk.bf16.vlgmr.msra.gmra.mrb[12].mxu1 %vm2529_vm5, %v4522_v6  ;;  %vm4833_vm5 = vcmask 517120  }
 0x2af   : > { %v2649_v2 = vpop.f32.mrb[8].mxu1 }
 0x2b0   : > { %v2651_v12 = vpop.f32.mrb[9].mxu1 }
 0x2b1   : > { %v2653_v18 = vpop.f32.mrb[10].mxu1 }
 0x2b2   : > { %v2654_v19 = vpop.f32.mrb[11].mxu1 }
 0x2ee   : > { %v2731_v24 = vpop.f32.mrb[16].mxu1 }
 0x2ef   : > { %v4991_v26 = vpop.f32.mrb[17].mxu1 }
 0x2f0   : > { %v2734_v21 = vpop.f32.mrb[18].mxu1 }
 0x2f1   : > { %v4992_v27 = vpop.f32.mrb[19].mxu1 }
 0x2f6   : > { %v2774_v59 = vpop.f32.mrb[0].mxu1 }
 0x2f7   : > { %v2776_v25 = vpop.f32.mrb[1].mxu1 }
 0x2f8   : > { %v2778_v28 = vpop.f32.mrb[2].mxu1 }
 0x2f9   : > { %v2779_v30 = vpop.f32.mrb[3].mxu1 }
 0x364   : > { %v4599_v23 = vpop.f32.mrb[8].mxu0 }
 0x365   : > { %v5041_v29 = vadd.f32 %v4599_v23, %v2774_v59  ;;  %v4601_v41 = vpop.f32.mrb[9].mxu0 }
 0x366   : > { %v5042_v16 = vadd.f32 %v4601_v41, %v2776_v25  ;;  %v4603_v40 = vpop.f32.mrb[10].mxu0 }
 0x367   : > { %v4604_v42 = vpop.f32.mrb[11].mxu0 }
 0x368   : > { %v4787_v45 = vcombine.low %v5041_v29, %v5042_v16 }
 0x36a   : > { %v4795_v1 = vrot.slane %v4787_v45, %v4794_v43 }
 0x36c   : > { %v4681_v33 = vpop.f32.mrb[0].mxu0 }
 0x36d   : > { %v5043_v62 = vadd.f32 %v4681_v33, %v2649_v2  ;;  %v4683_v17 = vpop.f32.mrb[1].mxu0 }
 0x36e   : > { %v4640_v14 = vpop.f32.mrb[4].mxu1  ;;  %v5044_v60 = vadd.f32 %v4683_v17, %v2651_v12  ;;  %v4685_v31 = vpop.f32.mrb[2].mxu0 }
 0x36f   : > { %v4642_v13 = vpop.f32.mrb[5].mxu1  ;;  %v4686_v37 = vpop.f32.mrb[3].mxu0 }
 0x370   : > { %v4804_v57 = vcombine.low %v5043_v62, %v5044_v60  ;;  %v4788_v15 = vcombine.low %v4640_v14, %v4642_v13  ;;  %v4644_v58 = vpop.f32.mrb[6].mxu1 }
 0x371   : > { %v4645_v63 = vpop.f32.mrb[7].mxu1 }
 0x372   : > { %v4802_v22 = vrot.slane %v4788_v15, %v4794_v43  ;;  %v4812_v51 = vrot.slane %v4804_v57, %v4794_v43 }
 0x374   : > { %v4803_v46 = vcombine.low %v4795_v1, %v4802_v22  ;;  %v4763_v7 = vpop.f32.mrb[4].mxu0 }
 0x375   : > { %v5045_v56 = vadd.f32 %v4763_v7, %v2731_v24  ;;  %v5039_v20 = vpop.f32.mrb[5].mxu0 }
 0x376   : > { %4831 = vst [vmem:[%s190_s29] sm:$0xff] %v4803_v46  ;;  %v4722_v48 = vpop.f32.mrb[12].mxu1  ;;  %v4766_v34 = vpop.f32.mrb[6].mxu0 }
 0x377   : > { %v4827_v5 = vrot.slane %v5045_v56, %v4794_v43  ;;  %v4724_v32 = vpop.f32.mrb[13].mxu1  ;;  %v5040_v50 = vpop.f32.mrb[7].mxu0 }
 0x378   : > { %v4805_v4 = vcombine.low %v4722_v48, %v4724_v32  ;;  %v4726_v49 = vpop.f32.mrb[14].mxu1 }
 0x379   : > { %4834 = vst.msk [vmem:[%s190_s29 + $0x10] sm:$0x3] %vm4833_vm5, %v4827_v5  ;;  %v4727_v44 = vpop.f32.mrb[15].mxu1 }
 0x37a   : > { %v4819_v52 = vrot.slane %v4805_v4, %v4794_v43 }
 0x37c   : > { %v4820_v53 = vcombine.low %v4812_v51, %v4819_v52 }
 0x37e   : > { %4832 = vst [vmem:[%s190_s29 + $0x8] sm:$0xff] %v4820_v53 }
 0x37f PF: > { %s13_s12 = sadd.s32 1, %s5250_s12  }
 0x380   : > { %p10_p4 = scmp.ge.s32.totalorder %s13_s12, 4  }
 0x382   :  { %12 = sbr.rel (!%p10_p4) target bundleno = 1 (0x1), region = 73 }

</bundles_post_ra>
